<compile_context>
chip_gen: v5e
topology: v5e:2x2
jax: 0.10.0
libtpu: 0.0.40
codegen_flags: <defaults>
</compile_context>

<pallas_src>
import jax
import jax.numpy as jnp
from jax.experimental import pallas as pl
from jax.experimental.pallas import tpu as pltpu


def _zero_halo(pad_ref, H, W, C):
  """Zero only the 1-pixel halo ring of a (1, H+2, W+2, C) padded scratch."""
  zrow = jnp.zeros((1, 1, W + 2, C), pad_ref.dtype)
  pad_ref[:, 0:1, :, :] = zrow
  pad_ref[:, H + 1:H + 2, :, :] = zrow
  zcol = jnp.zeros((1, H + 2, 1, C), pad_ref.dtype)
  pad_ref[:, :, 0:1, :] = zcol
  pad_ref[:, :, W + 1:W + 2, :] = zcol


def _im2col_3x3(pad_ref, col_ref, H, W, C):
  """col[:, y, x, k*C:(k+1)*C] = pad[:, y+dy, x+dx, :] with k = dy*3+dx (bf16)."""
  for dy in range(3):
    for dx in range(3):
      k = dy * 3 + dx
      col_ref[:, :, :, k * C:(k + 1) * C] = (
          pad_ref[:, dy:dy + H, dx:dx + W, :].astype(col_ref.dtype))


def se_basic_block_kernel(
    x_ref,                  # (1, H, W, Cin)          one image, f32
    w1_ref,                 # (9*Cin, Cout)           conv1 weights, bf16
    s1_ref, b1_ref,         # (1, Cout)               folded bn1 scale / bias
    w2_ref,                 # (9*Cout, Cout)          conv2 weights, bf16
    s2_ref, b2_ref,         # (1, Cout)               folded bn2 scale / bias
    wsc_ref,                # (Cin, Cout)             shortcut 1x1 conv weight, f32
    ssc_ref, bsc_ref,       # (1, Cout)               folded shortcut bn scale / bias
    fc1w_ref, fc1b_ref,     # (Cout, Cse), (1, Cse)
    fc2w_ref, fc2b_ref,     # (Cse, Cout), (1, Cout)
    out_ref,                # (1, H, W, Cout)
    pad1_ref,               # scratch (1, H+2, W+2, Cin)   f32
    col1_ref,               # scratch (1, H, W, 9*Cin)     bf16
    pad2_ref,               # scratch (1, H+2, W+2, Cout)  f32
    col2_ref,               # scratch (1, H, W, 9*Cout)    bf16
):
  _, H, W, Cin = x_ref.shape
  Cout = s1_ref.shape[-1]
  M = H * W

  xv = x_ref[...]                                        # (1, H, W, Cin) f32

  # ---- conv1 (3x3, pad 1): im2col -> one K=9*Cin bf16 matmul, then bn1 + relu ----
  _zero_halo(pad1_ref, H, W, Cin)
  pad1_ref[:, 1:H + 1, 1:W + 1, :] = xv
  _im2col_3x3(pad1_ref, col1_ref, H, W, Cin)
  patch1 = col1_ref[...].reshape(M, 9 * Cin)             # bf16
  acc1 = jnp.dot(patch1, w1_ref[...], preferred_element_type=jnp.float32)
  out1 = jnp.maximum(acc1 * s1_ref[...] + b1_ref[...], 0.0)        # (M, Cout) f32

  # ---- conv2 (3x3, pad 1): im2col -> one K=9*Cout bf16 matmul, then bn2 ----
  _zero_halo(pad2_ref, H, W, Cout)
  pad2_ref[:, 1:H + 1, 1:W + 1, :] = out1.reshape(1, H, W, Cout)
  _im2col_3x3(pad2_ref, col2_ref, H, W, Cout)
  patch2 = col2_ref[...].reshape(M, 9 * Cout)            # bf16
  acc2 = jnp.dot(patch2, w2_ref[...], preferred_element_type=jnp.float32)
  out2 = acc2 * s2_ref[...] + b2_ref[...]                # (M, Cout) f32

  # ---- SE branch: global avg pool -> fc1 -> relu -> fc2 -> sigmoid ----
  pooled = jnp.mean(out2, axis=0, keepdims=True)         # (1, Cout)
  h = jnp.maximum(
      jnp.dot(pooled, fc1w_ref[...], preferred_element_type=jnp.float32)
      + fc1b_ref[...], 0.0)                              # (1, Cse)
  z = jnp.dot(h, fc2w_ref[...], preferred_element_type=jnp.float32) + fc2b_ref[...]
  w_se = pl.reciprocal(1.0 + jnp.exp(-z), approx=True)   # sigmoid via EUP reciprocal

  # ---- shortcut 1x1 conv + bn, SE scale, residual add, final relu ----
  sc = (jnp.dot(xv.reshape(M, Cin), wsc_ref[...], preferred_element_type=jnp.float32)
        * ssc_ref[...] + bsc_ref[...])                   # (M, Cout)
  res = jnp.maximum(out2 * w_se + sc, 0.0)
  out_ref[...] = res.reshape(1, H, W, Cout)


def se_basic_block(x, params):
  """x: (N, H, W, Cin) float32 NHWC.  Returns (N, H, W, Cout) float32."""
  (w1, s1, b1, w2, s2, b2, wsc, ssc, bsc, fc1w, fc1b, fc2w, fc2b) = params
  N, H, W, Cin = x.shape
  Cout = s1.shape[-1]
  Cse = fc1w.shape[-1]

  # (3,3,Ci,Co) -> (9*Ci,Co) matches the im2col tap ordering k=dy*3+dx; bf16 for the MXU.
  w1k = w1.reshape(9 * Cin, Cout).astype(jnp.bfloat16)
  w2k = w2.reshape(9 * Cout, Cout).astype(jnp.bfloat16)

  img = lambda n: (n, 0, 0, 0)     # one image per grid step
  const2 = lambda n: (0, 0)        # params resident across grid steps

  grid_spec = pltpu.PrefetchScalarGridSpec(
      num_scalar_prefetch=0,
      grid=(N,),
      in_specs=[
          pl.BlockSpec((1, H, W, Cin), img),
          pl.BlockSpec((9 * Cin, Cout), const2),
          pl.BlockSpec((1, Cout), const2), pl.BlockSpec((1, Cout), const2),
          pl.BlockSpec((9 * Cout, Cout), const2),
          pl.BlockSpec((1, Cout), const2), pl.BlockSpec((1, Cout), const2),
          pl.BlockSpec((Cin, Cout), const2),
          pl.BlockSpec((1, Cout), const2), pl.BlockSpec((1, Cout), const2),
          pl.BlockSpec((Cout, Cse), const2), pl.BlockSpec((1, Cse), const2),
          pl.BlockSpec((Cse, Cout), const2), pl.BlockSpec((1, Cout), const2),
      ],
      out_specs=pl.BlockSpec((1, H, W, Cout), img),
      scratch_shapes=[
          pltpu.VMEM((1, H + 2, W + 2, Cin), jnp.float32),
          pltpu.VMEM((1, H, W, 9 * Cin), jnp.bfloat16),
          pltpu.VMEM((1, H + 2, W + 2, Cout), jnp.float32),
          pltpu.VMEM((1, H, W, 9 * Cout), jnp.bfloat16),
      ])

  return pl.pallas_call(
      se_basic_block_kernel,
      out_shape=jax.ShapeDtypeStruct((N, H, W, Cout), jnp.float32),
      grid_spec=grid_spec,
      compiler_params=pltpu.CompilerParams(dimension_semantics=("parallel",)),
  )(x, w1k, s1, b1, w2k, s2, b2, wsc, ssc, bsc, fc1w, fc1b, fc2w, fc2b)


# ------------------------- parameter construction (glue) -------------------------

def fold_bn(gamma, beta, mean, var, eps=1e-5):
  scale = gamma / jnp.sqrt(var + eps)
  bias = beta - mean * scale
  return scale.reshape(1, -1), bias.reshape(1, -1)


def make_params(key, in_planes, planes):
  ks = jax.random.split(key, 10)
  cse = planes // 16

  def bn_params(k):
    k1, k2, k3, k4 = jax.random.split(k, 4)
    gamma = jax.random.uniform(k1, (planes,), jnp.float32, 0.5, 1.5)
    beta = 0.1 * jax.random.normal(k2, (planes,), jnp.float32)
    mean = 0.1 * jax.random.normal(k3, (planes,), jnp.float32)
    var = jax.random.uniform(k4, (planes,), jnp.float32, 0.5, 1.5)
    return fold_bn(gamma, beta, mean, var)

  w1 = 0.1 * jax.random.normal(ks[0], (3, 3, in_planes, planes), jnp.float32)
  s1, b1 = bn_params(ks[1])
  w2 = 0.1 * jax.random.normal(ks[2], (3, 3, planes, planes), jnp.float32)
  s2, b2 = bn_params(ks[3])
  wsc = 0.1 * jax.random.normal(ks[4], (in_planes, planes), jnp.float32)
  ssc, bsc = bn_params(ks[5])
  fc1w = 0.1 * jax.random.normal(ks[6], (planes, cse), jnp.float32)
  fc1b = 0.1 * jax.random.normal(ks[7], (1, cse), jnp.float32)
  fc2w = 0.1 * jax.random.normal(ks[8], (cse, planes), jnp.float32)
  fc2b = 0.1 * jax.random.normal(ks[9], (1, planes), jnp.float32)
  return (w1, s1, b1, w2, s2, b2, wsc, ssc, bsc, fc1w, fc1b, fc2w, fc2b)


# ------------------------------ pure-JAX reference ------------------------------

def reference(x, params):
  (w1, s1, b1, w2, s2, b2, wsc, ssc, bsc, fc1w, fc1b, fc2w, fc2b) = params
  N, H, W, Cin = x.shape
  Cout = s1.shape[-1]

  def conv3(inp, w):
    return jax.lax.conv_general_dilated(
        inp, w, window_strides=(1, 1), padding=((1, 1), (1, 1)),
        dimension_numbers=('NHWC', 'HWIO', 'NHWC'))

  o1 = jax.nn.relu(conv3(x, w1) * s1 + b1)
  o2 = conv3(o1, w2) * s2 + b2
  pooled = o2.mean(axis=(1, 2))
  h = jax.nn.relu(pooled @ fc1w + fc1b)
  wse = jax.nn.sigmoid(h @ fc2w + fc2b)
  scaled = o2 * wse[:, None, None, :]
  sc = (x.reshape(-1, Cin) @ wsc) * ssc + bsc
  return jax.nn.relu(scaled + sc.reshape(N, H, W, Cout))


if __name__ == "__main__":
  N, H, W = 2, 16, 16
  in_planes, planes = 16, 32   # stride=1, in_planes != planes -> shortcut is 1x1 conv + BN

  key = jax.random.PRNGKey(0)
  kx, kp = jax.random.split(key)
  x = jax.random.normal(kx, (N, H, W, in_planes), jnp.float32)
  params = make_params(kp, in_planes, planes)

  out = jax.block_until_ready(se_basic_block(x, params))
  ref = reference(x, params)

  assert out.shape == (N, H, W, planes)
  # Convs run with bf16 MXU operands (f32 accumulation), so compare against the f32
  # reference with a correspondingly looser tolerance.
  if not jnp.allclose(out, ref, atol=7e-2, rtol=7e-2):
    err = float(jnp.max(jnp.abs(out - ref)))
    raise AssertionError(f"Pallas kernel does not match JAX reference (max abs err {err})")

  print("KERNEL_OK")
</pallas_src>

<mosaic_0001>
module attributes {stable_mosaic.version = 11 : i64} {
  func.func @se_basic_block_kernel(%arg0: i32, %arg1: memref<1x16x16x16xf32, #tpu.memory_space<vmem>>, %arg2: memref<144x32xbf16, #tpu.memory_space<vmem>>, %arg3: memref<1x32xf32, #tpu.memory_space<vmem>>, %arg4: memref<1x32xf32, #tpu.memory_space<vmem>>, %arg5: memref<288x32xbf16, #tpu.memory_space<vmem>>, %arg6: memref<1x32xf32, #tpu.memory_space<vmem>>, %arg7: memref<1x32xf32, #tpu.memory_space<vmem>>, %arg8: memref<16x32xf32, #tpu.memory_space<vmem>>, %arg9: memref<1x32xf32, #tpu.memory_space<vmem>>, %arg10: memref<1x32xf32, #tpu.memory_space<vmem>>, %arg11: memref<32x2xf32, #tpu.memory_space<vmem>>, %arg12: memref<1x2xf32, #tpu.memory_space<vmem>>, %arg13: memref<2x32xf32, #tpu.memory_space<vmem>>, %arg14: memref<1x32xf32, #tpu.memory_space<vmem>>, %arg15: memref<1x16x16x32xf32, #tpu.memory_space<vmem>>, %arg16: memref<1x18x18x16xf32, #tpu.memory_space<vmem>>, %arg17: memref<1x16x16x144xbf16, #tpu.memory_space<vmem>>, %arg18: memref<1x18x18x32xf32, #tpu.memory_space<vmem>>, %arg19: memref<1x16x16x288xbf16, #tpu.memory_space<vmem>>) attributes {dimension_semantics = [#tpu.dimension_semantics<parallel>], iteration_bounds = array<i64: 2>, scalar_prefetch = 0 : i64, scratch_operands = 4 : i64, tpu.core_type = #tpu.core_type<tc>, window_params = [{transform_indices = @transform_0, window_bounds = array<i64: 1, 16, 16, 16>}, {pipeline_mode = #tpu.pipeline_mode<synchronous>, transform_indices = @transform_1, window_bounds = array<i64: 144, 32>}, {pipeline_mode = #tpu.pipeline_mode<synchronous>, transform_indices = @transform_2, window_bounds = array<i64: 1, 32>}, {pipeline_mode = #tpu.pipeline_mode<synchronous>, transform_indices = @transform_3, window_bounds = array<i64: 1, 32>}, {pipeline_mode = #tpu.pipeline_mode<synchronous>, transform_indices = @transform_4, window_bounds = array<i64: 288, 32>}, {pipeline_mode = #tpu.pipeline_mode<synchronous>, transform_indices = @transform_5, window_bounds = array<i64: 1, 32>}, {pipeline_mode = #tpu.pipeline_mode<synchronous>, transform_indices = @transform_6, window_bounds = array<i64: 1, 32>}, {pipeline_mode = #tpu.pipeline_mode<synchronous>, transform_indices = @transform_7, window_bounds = array<i64: 16, 32>}, {pipeline_mode = #tpu.pipeline_mode<synchronous>, transform_indices = @transform_8, window_bounds = array<i64: 1, 32>}, {pipeline_mode = #tpu.pipeline_mode<synchronous>, transform_indices = @transform_9, window_bounds = array<i64: 1, 32>}, {pipeline_mode = #tpu.pipeline_mode<synchronous>, transform_indices = @transform_10, window_bounds = array<i64: 32, 2>}, {pipeline_mode = #tpu.pipeline_mode<synchronous>, transform_indices = @transform_11, window_bounds = array<i64: 1, 2>}, {pipeline_mode = #tpu.pipeline_mode<synchronous>, transform_indices = @transform_12, window_bounds = array<i64: 2, 32>}, {pipeline_mode = #tpu.pipeline_mode<synchronous>, transform_indices = @transform_13, window_bounds = array<i64: 1, 32>}, {transform_indices = @transform_14, window_bounds = array<i64: 1, 16, 16, 32>}]} {
    %c0 = arith.constant 0 : index
    %c0_0 = arith.constant 0 : index
    %c0_1 = arith.constant 0 : index
    %c0_2 = arith.constant 0 : index
    %0 = vector.load %arg1[%c0, %c0_0, %c0_1, %c0_2] : memref<1x16x16x16xf32, #tpu.memory_space<vmem>>, vector<1x16x16x16xf32>
    %cst = arith.constant 0.000000e+00 : f32
    %1 = vector.broadcast %cst : f32 to vector<1x1x18x16xf32>
    %c0_3 = arith.constant 0 : index
    %c0_4 = arith.constant 0 : index
    %c0_5 = arith.constant 0 : index
    %c0_6 = arith.constant 0 : index
    %2 = vector.load %arg16[%c0_3, %c0_4, %c0_5, %c0_6] : memref<1x18x18x16xf32, #tpu.memory_space<vmem>>, vector<1x1x18x16xf32>
    tpu.vector_store %arg16[%c0_3, %c0_4, %c0_5, %c0_6], %1 {strides = array<i32>} : memref<1x18x18x16xf32, #tpu.memory_space<vmem>>, vector<1x1x18x16xf32>,
    %c0_7 = arith.constant 0 : index
    %c17 = arith.constant 17 : index
    %c0_8 = arith.constant 0 : index
    %c0_9 = arith.constant 0 : index
    %3 = vector.load %arg16[%c0_7, %c17, %c0_8, %c0_9] : memref<1x18x18x16xf32, #tpu.memory_space<vmem>>, vector<1x1x18x16xf32>
    tpu.vector_store %arg16[%c0_7, %c17, %c0_8, %c0_9], %1 {strides = array<i32>} : memref<1x18x18x16xf32, #tpu.memory_space<vmem>>, vector<1x1x18x16xf32>,
    %cst_10 = arith.constant 0.000000e+00 : f32
    %4 = vector.broadcast %cst_10 : f32 to vector<1x18x1x16xf32>
    %c0_11 = arith.constant 0 : index
    %c0_12 = arith.constant 0 : index
    %c0_13 = arith.constant 0 : index
    %c0_14 = arith.constant 0 : index
    %5 = vector.load %arg16[%c0_11, %c0_12, %c0_13, %c0_14] : memref<1x18x18x16xf32, #tpu.memory_space<vmem>>, vector<1x18x1x16xf32>
    tpu.vector_store %arg16[%c0_11, %c0_12, %c0_13, %c0_14], %4 {strides = array<i32>} : memref<1x18x18x16xf32, #tpu.memory_space<vmem>>, vector<1x18x1x16xf32>,
    %c0_15 = arith.constant 0 : index
    %c0_16 = arith.constant 0 : index
    %c17_17 = arith.constant 17 : index
    %c0_18 = arith.constant 0 : index
    %6 = vector.load %arg16[%c0_15, %c0_16, %c17_17, %c0_18] : memref<1x18x18x16xf32, #tpu.memory_space<vmem>>, vector<1x18x1x16xf32>
    tpu.vector_store %arg16[%c0_15, %c0_16, %c17_17, %c0_18], %4 {strides = array<i32>} : memref<1x18x18x16xf32, #tpu.memory_space<vmem>>, vector<1x18x1x16xf32>,
    %c0_19 = arith.constant 0 : index
    %c1 = arith.constant 1 : index
    %c1_20 = arith.constant 1 : index
    %c0_21 = arith.constant 0 : index
    %7 = vector.load %arg16[%c0_19, %c1, %c1_20, %c0_21] : memref<1x18x18x16xf32, #tpu.memory_space<vmem>>, vector<1x16x16x16xf32>
    tpu.vector_store %arg16[%c0_19, %c1, %c1_20, %c0_21], %0 {strides = array<i32>} : memref<1x18x18x16xf32, #tpu.memory_space<vmem>>, vector<1x16x16x16xf32>,
    %c0_22 = arith.constant 0 : index
    %c0_23 = arith.constant 0 : index
    %c0_24 = arith.constant 0 : index
    %c0_25 = arith.constant 0 : index
    %8 = vector.load %arg16[%c0_22, %c0_23, %c0_24, %c0_25] : memref<1x18x18x16xf32, #tpu.memory_space<vmem>>, vector<1x16x16x16xf32>
    %9 = arith.truncf %8 : vector<1x16x16x16xf32> to vector<1x16x16x16xbf16>
    %c0_26 = arith.constant 0 : index
    %c0_27 = arith.constant 0 : index
    %c0_28 = arith.constant 0 : index
    %c0_29 = arith.constant 0 : index
    %10 = vector.load %arg17[%c0_26, %c0_27, %c0_28, %c0_29] : memref<1x16x16x144xbf16, #tpu.memory_space<vmem>>, vector<1x16x16x16xbf16>
    tpu.vector_store %arg17[%c0_26, %c0_27, %c0_28, %c0_29], %9 {strides = array<i32>} : memref<1x16x16x144xbf16, #tpu.memory_space<vmem>>, vector<1x16x16x16xbf16>,
    %c0_30 = arith.constant 0 : index
    %c0_31 = arith.constant 0 : index
    %c1_32 = arith.constant 1 : index
    %c0_33 = arith.constant 0 : index
    %11 = vector.load %arg16[%c0_30, %c0_31, %c1_32, %c0_33] : memref<1x18x18x16xf32, #tpu.memory_space<vmem>>, vector<1x16x16x16xf32>
    %12 = arith.truncf %11 : vector<1x16x16x16xf32> to vector<1x16x16x16xbf16>
    %c0_34 = arith.constant 0 : index
    %c0_35 = arith.constant 0 : index
    %c0_36 = arith.constant 0 : index
    %c16 = arith.constant 16 : index
    %13 = vector.load %arg17[%c0_34, %c0_35, %c0_36, %c16] : memref<1x16x16x144xbf16, #tpu.memory_space<vmem>>, vector<1x16x16x16xbf16>
    tpu.vector_store %arg17[%c0_34, %c0_35, %c0_36, %c16], %12 {strides = array<i32>} : memref<1x16x16x144xbf16, #tpu.memory_space<vmem>>, vector<1x16x16x16xbf16>,
    %c0_37 = arith.constant 0 : index
    %c0_38 = arith.constant 0 : index
    %c2 = arith.constant 2 : index
    %c0_39 = arith.constant 0 : index
    %14 = vector.load %arg16[%c0_37, %c0_38, %c2, %c0_39] : memref<1x18x18x16xf32, #tpu.memory_space<vmem>>, vector<1x16x16x16xf32>
    %15 = arith.truncf %14 : vector<1x16x16x16xf32> to vector<1x16x16x16xbf16>
    %c0_40 = arith.constant 0 : index
    %c0_41 = arith.constant 0 : index
    %c0_42 = arith.constant 0 : index
    %c32 = arith.constant 32 : index
    %16 = vector.load %arg17[%c0_40, %c0_41, %c0_42, %c32] : memref<1x16x16x144xbf16, #tpu.memory_space<vmem>>, vector<1x16x16x16xbf16>
    tpu.vector_store %arg17[%c0_40, %c0_41, %c0_42, %c32], %15 {strides = array<i32>} : memref<1x16x16x144xbf16, #tpu.memory_space<vmem>>, vector<1x16x16x16xbf16>,
    %c0_43 = arith.constant 0 : index
    %c1_44 = arith.constant 1 : index
    %c0_45 = arith.constant 0 : index
    %c0_46 = arith.constant 0 : index
    %17 = vector.load %arg16[%c0_43, %c1_44, %c0_45, %c0_46] : memref<1x18x18x16xf32, #tpu.memory_space<vmem>>, vector<1x16x16x16xf32>
    %18 = arith.truncf %17 : vector<1x16x16x16xf32> to vector<1x16x16x16xbf16>
    %c0_47 = arith.constant 0 : index
    %c0_48 = arith.constant 0 : index
    %c0_49 = arith.constant 0 : index
    %c48 = arith.constant 48 : index
    %19 = vector.load %arg17[%c0_47, %c0_48, %c0_49, %c48] : memref<1x16x16x144xbf16, #tpu.memory_space<vmem>>, vector<1x16x16x16xbf16>
    tpu.vector_store %arg17[%c0_47, %c0_48, %c0_49, %c48], %18 {strides = array<i32>} : memref<1x16x16x144xbf16, #tpu.memory_space<vmem>>, vector<1x16x16x16xbf16>,
    %c0_50 = arith.constant 0 : index
    %c1_51 = arith.constant 1 : index
    %c1_52 = arith.constant 1 : index
    %c0_53 = arith.constant 0 : index
    %20 = vector.load %arg16[%c0_50, %c1_51, %c1_52, %c0_53] : memref<1x18x18x16xf32, #tpu.memory_space<vmem>>, vector<1x16x16x16xf32>
    %21 = arith.truncf %20 : vector<1x16x16x16xf32> to vector<1x16x16x16xbf16>
    %c0_54 = arith.constant 0 : index
    %c0_55 = arith.constant 0 : index
    %c0_56 = arith.constant 0 : index
    %c64 = arith.constant 64 : index
    %22 = vector.load %arg17[%c0_54, %c0_55, %c0_56, %c64] : memref<1x16x16x144xbf16, #tpu.memory_space<vmem>>, vector<1x16x16x16xbf16>
    tpu.vector_store %arg17[%c0_54, %c0_55, %c0_56, %c64], %21 {strides = array<i32>} : memref<1x16x16x144xbf16, #tpu.memory_space<vmem>>, vector<1x16x16x16xbf16>,
    %c0_57 = arith.constant 0 : index
    %c1_58 = arith.constant 1 : index
    %c2_59 = arith.constant 2 : index
    %c0_60 = arith.constant 0 : index
    %23 = vector.load %arg16[%c0_57, %c1_58, %c2_59, %c0_60] : memref<1x18x18x16xf32, #tpu.memory_space<vmem>>, vector<1x16x16x16xf32>
    %24 = arith.truncf %23 : vector<1x16x16x16xf32> to vector<1x16x16x16xbf16>
    %c0_61 = arith.constant 0 : index
    %c0_62 = arith.constant 0 : index
    %c0_63 = arith.constant 0 : index
    %c80 = arith.constant 80 : index
    %25 = vector.load %arg17[%c0_61, %c0_62, %c0_63, %c80] : memref<1x16x16x144xbf16, #tpu.memory_space<vmem>>, vector<1x16x16x16xbf16>
    tpu.vector_store %arg17[%c0_61, %c0_62, %c0_63, %c80], %24 {strides = array<i32>} : memref<1x16x16x144xbf16, #tpu.memory_space<vmem>>, vector<1x16x16x16xbf16>,
    %c0_64 = arith.constant 0 : index
    %c2_65 = arith.constant 2 : index
    %c0_66 = arith.constant 0 : index
    %c0_67 = arith.constant 0 : index
    %26 = vector.load %arg16[%c0_64, %c2_65, %c0_66, %c0_67] : memref<1x18x18x16xf32, #tpu.memory_space<vmem>>, vector<1x16x16x16xf32>
    %27 = arith.truncf %26 : vector<1x16x16x16xf32> to vector<1x16x16x16xbf16>
    %c0_68 = arith.constant 0 : index
    %c0_69 = arith.constant 0 : index
    %c0_70 = arith.constant 0 : index
    %c96 = arith.constant 96 : index
    %28 = vector.load %arg17[%c0_68, %c0_69, %c0_70, %c96] : memref<1x16x16x144xbf16, #tpu.memory_space<vmem>>, vector<1x16x16x16xbf16>
    tpu.vector_store %arg17[%c0_68, %c0_69, %c0_70, %c96], %27 {strides = array<i32>} : memref<1x16x16x144xbf16, #tpu.memory_space<vmem>>, vector<1x16x16x16xbf16>,
    %c0_71 = arith.constant 0 : index
    %c2_72 = arith.constant 2 : index
    %c1_73 = arith.constant 1 : index
    %c0_74 = arith.constant 0 : index
    %29 = vector.load %arg16[%c0_71, %c2_72, %c1_73, %c0_74] : memref<1x18x18x16xf32, #tpu.memory_space<vmem>>, vector<1x16x16x16xf32>
    %30 = arith.truncf %29 : vector<1x16x16x16xf32> to vector<1x16x16x16xbf16>
    %c0_75 = arith.constant 0 : index
    %c0_76 = arith.constant 0 : index
    %c0_77 = arith.constant 0 : index
    %c112 = arith.constant 112 : index
    %31 = vector.load %arg17[%c0_75, %c0_76, %c0_77, %c112] : memref<1x16x16x144xbf16, #tpu.memory_space<vmem>>, vector<1x16x16x16xbf16>
    tpu.vector_store %arg17[%c0_75, %c0_76, %c0_77, %c112], %30 {strides = array<i32>} : memref<1x16x16x144xbf16, #tpu.memory_space<vmem>>, vector<1x16x16x16xbf16>,
    %c0_78 = arith.constant 0 : index
    %c2_79 = arith.constant 2 : index
    %c2_80 = arith.constant 2 : index
    %c0_81 = arith.constant 0 : index
    %32 = vector.load %arg16[%c0_78, %c2_79, %c2_80, %c0_81] : memref<1x18x18x16xf32, #tpu.memory_space<vmem>>, vector<1x16x16x16xf32>
    %33 = arith.truncf %32 : vector<1x16x16x16xf32> to vector<1x16x16x16xbf16>
    %c0_82 = arith.constant 0 : index
    %c0_83 = arith.constant 0 : index
    %c0_84 = arith.constant 0 : index
    %c128 = arith.constant 128 : index
    %34 = vector.load %arg17[%c0_82, %c0_83, %c0_84, %c128] : memref<1x16x16x144xbf16, #tpu.memory_space<vmem>>, vector<1x16x16x16xbf16>
    tpu.vector_store %arg17[%c0_82, %c0_83, %c0_84, %c128], %33 {strides = array<i32>} : memref<1x16x16x144xbf16, #tpu.memory_space<vmem>>, vector<1x16x16x16xbf16>,
    %c0_85 = arith.constant 0 : index
    %c0_86 = arith.constant 0 : index
    %c0_87 = arith.constant 0 : index
    %c0_88 = arith.constant 0 : index
    %35 = vector.load %arg17[%c0_85, %c0_86, %c0_87, %c0_88] : memref<1x16x16x144xbf16, #tpu.memory_space<vmem>>, vector<1x16x16x144xbf16>
    %36 = vector.shape_cast %35 : vector<1x16x16x144xbf16> to vector<256x144xbf16>
    %c0_89 = arith.constant 0 : index
    %c0_90 = arith.constant 0 : index
    %37 = vector.load %arg2[%c0_89, %c0_90] : memref<144x32xbf16, #tpu.memory_space<vmem>>, vector<144x32xbf16>
    %cst_91 = arith.constant dense<0.000000e+00> : vector<256x32xf32>
    %38 = tpu.matmul %36, %37, %cst_91 {dimension_numbers = #tpu.dot_dimension_numbers<[1], [0], [0], [1], [0, 0, 1, 1], [], []>} : vector<256x144xbf16>, vector<144x32xbf16>, vector<256x32xf32> -> vector<256x32xf32>
    %c0_92 = arith.constant 0 : index
    %c0_93 = arith.constant 0 : index
    %39 = vector.load %arg3[%c0_92, %c0_93] : memref<1x32xf32, #tpu.memory_space<vmem>>, vector<1x32xf32>
    %40 = vector.broadcast %39 : vector<1x32xf32> to vector<256x32xf32>
    %41 = arith.mulf %38, %40 : vector<256x32xf32>
    %c0_94 = arith.constant 0 : index
    %c0_95 = arith.constant 0 : index
    %42 = vector.load %arg4[%c0_94, %c0_95] : memref<1x32xf32, #tpu.memory_space<vmem>>, vector<1x32xf32>
    %43 = vector.broadcast %42 : vector<1x32xf32> to vector<256x32xf32>
    %44 = arith.addf %41, %43 : vector<256x32xf32>
    %cst_96 = arith.constant 0.000000e+00 : f32
    %45 = vector.broadcast %cst_96 : f32 to vector<256x32xf32>
    %46 = arith.maximumf %44, %45 : vector<256x32xf32>
    %cst_97 = arith.constant 0.000000e+00 : f32
    %47 = vector.broadcast %cst_97 : f32 to vector<1x1x18x32xf32>
    %c0_98 = arith.constant 0 : index
    %c0_99 = arith.constant 0 : index
    %c0_100 = arith.constant 0 : index
    %c0_101 = arith.constant 0 : index
    %48 = vector.load %arg18[%c0_98, %c0_99, %c0_100, %c0_101] : memref<1x18x18x32xf32, #tpu.memory_space<vmem>>, vector<1x1x18x32xf32>
    tpu.vector_store %arg18[%c0_98, %c0_99, %c0_100, %c0_101], %47 {strides = array<i32>} : memref<1x18x18x32xf32, #tpu.memory_space<vmem>>, vector<1x1x18x32xf32>,
    %c0_102 = arith.constant 0 : index
    %c17_103 = arith.constant 17 : index
    %c0_104 = arith.constant 0 : index
    %c0_105 = arith.constant 0 : index
    %49 = vector.load %arg18[%c0_102, %c17_103, %c0_104, %c0_105] : memref<1x18x18x32xf32, #tpu.memory_space<vmem>>, vector<1x1x18x32xf32>
    tpu.vector_store %arg18[%c0_102, %c17_103, %c0_104, %c0_105], %47 {strides = array<i32>} : memref<1x18x18x32xf32, #tpu.memory_space<vmem>>, vector<1x1x18x32xf32>,
    %cst_106 = arith.constant 0.000000e+00 : f32
    %50 = vector.broadcast %cst_106 : f32 to vector<1x18x1x32xf32>
    %c0_107 = arith.constant 0 : index
    %c0_108 = arith.constant 0 : index
    %c0_109 = arith.constant 0 : index
    %c0_110 = arith.constant 0 : index
    %51 = vector.load %arg18[%c0_107, %c0_108, %c0_109, %c0_110] : memref<1x18x18x32xf32, #tpu.memory_space<vmem>>, vector<1x18x1x32xf32>
    tpu.vector_store %arg18[%c0_107, %c0_108, %c0_109, %c0_110], %50 {strides = array<i32>} : memref<1x18x18x32xf32, #tpu.memory_space<vmem>>, vector<1x18x1x32xf32>,
    %c0_111 = arith.constant 0 : index
    %c0_112 = arith.constant 0 : index
    %c17_113 = arith.constant 17 : index
    %c0_114 = arith.constant 0 : index
    %52 = vector.load %arg18[%c0_111, %c0_112, %c17_113, %c0_114] : memref<1x18x18x32xf32, #tpu.memory_space<vmem>>, vector<1x18x1x32xf32>
    tpu.vector_store %arg18[%c0_111, %c0_112, %c17_113, %c0_114], %50 {strides = array<i32>} : memref<1x18x18x32xf32, #tpu.memory_space<vmem>>, vector<1x18x1x32xf32>,
    %53 = vector.shape_cast %46 : vector<256x32xf32> to vector<1x16x16x32xf32>
    %c0_115 = arith.constant 0 : index
    %c1_116 = arith.constant 1 : index
    %c1_117 = arith.constant 1 : index
    %c0_118 = arith.constant 0 : index
    %54 = vector.load %arg18[%c0_115, %c1_116, %c1_117, %c0_118] : memref<1x18x18x32xf32, #tpu.memory_space<vmem>>, vector<1x16x16x32xf32>
    tpu.vector_store %arg18[%c0_115, %c1_116, %c1_117, %c0_118], %53 {strides = array<i32>} : memref<1x18x18x32xf32, #tpu.memory_space<vmem>>, vector<1x16x16x32xf32>,
    %c0_119 = arith.constant 0 : index
    %c0_120 = arith.constant 0 : index
    %c0_121 = arith.constant 0 : index
    %c0_122 = arith.constant 0 : index
    %55 = vector.load %arg18[%c0_119, %c0_120, %c0_121, %c0_122] : memref<1x18x18x32xf32, #tpu.memory_space<vmem>>, vector<1x16x16x32xf32>
    %56 = arith.truncf %55 : vector<1x16x16x32xf32> to vector<1x16x16x32xbf16>
    %c0_123 = arith.constant 0 : index
    %c0_124 = arith.constant 0 : index
    %c0_125 = arith.constant 0 : index
    %c0_126 = arith.constant 0 : index
    %57 = vector.load %arg19[%c0_123, %c0_124, %c0_125, %c0_126] : memref<1x16x16x288xbf16, #tpu.memory_space<vmem>>, vector<1x16x16x32xbf16>
    tpu.vector_store %arg19[%c0_123, %c0_124, %c0_125, %c0_126], %56 {strides = array<i32>} : memref<1x16x16x288xbf16, #tpu.memory_space<vmem>>, vector<1x16x16x32xbf16>,
    %c0_127 = arith.constant 0 : index
    %c0_128 = arith.constant 0 : index
    %c1_129 = arith.constant 1 : index
    %c0_130 = arith.constant 0 : index
    %58 = vector.load %arg18[%c0_127, %c0_128, %c1_129, %c0_130] : memref<1x18x18x32xf32, #tpu.memory_space<vmem>>, vector<1x16x16x32xf32>
    %59 = arith.truncf %58 : vector<1x16x16x32xf32> to vector<1x16x16x32xbf16>
    %c0_131 = arith.constant 0 : index
    %c0_132 = arith.constant 0 : index
    %c0_133 = arith.constant 0 : index
    %c32_134 = arith.constant 32 : index
    %60 = vector.load %arg19[%c0_131, %c0_132, %c0_133, %c32_134] : memref<1x16x16x288xbf16, #tpu.memory_space<vmem>>, vector<1x16x16x32xbf16>
    tpu.vector_store %arg19[%c0_131, %c0_132, %c0_133, %c32_134], %59 {strides = array<i32>} : memref<1x16x16x288xbf16, #tpu.memory_space<vmem>>, vector<1x16x16x32xbf16>,
    %c0_135 = arith.constant 0 : index
    %c0_136 = arith.constant 0 : index
    %c2_137 = arith.constant 2 : index
    %c0_138 = arith.constant 0 : index
    %61 = vector.load %arg18[%c0_135, %c0_136, %c2_137, %c0_138] : memref<1x18x18x32xf32, #tpu.memory_space<vmem>>, vector<1x16x16x32xf32>
    %62 = arith.truncf %61 : vector<1x16x16x32xf32> to vector<1x16x16x32xbf16>
    %c0_139 = arith.constant 0 : index
    %c0_140 = arith.constant 0 : index
    %c0_141 = arith.constant 0 : index
    %c64_142 = arith.constant 64 : index
    %63 = vector.load %arg19[%c0_139, %c0_140, %c0_141, %c64_142] : memref<1x16x16x288xbf16, #tpu.memory_space<vmem>>, vector<1x16x16x32xbf16>
    tpu.vector_store %arg19[%c0_139, %c0_140, %c0_141, %c64_142], %62 {strides = array<i32>} : memref<1x16x16x288xbf16, #tpu.memory_space<vmem>>, vector<1x16x16x32xbf16>,
    %c0_143 = arith.constant 0 : index
    %c1_144 = arith.constant 1 : index
    %c0_145 = arith.constant 0 : index
    %c0_146 = arith.constant 0 : index
    %64 = vector.load %arg18[%c0_143, %c1_144, %c0_145, %c0_146] : memref<1x18x18x32xf32, #tpu.memory_space<vmem>>, vector<1x16x16x32xf32>
    %65 = arith.truncf %64 : vector<1x16x16x32xf32> to vector<1x16x16x32xbf16>
    %c0_147 = arith.constant 0 : index
    %c0_148 = arith.constant 0 : index
    %c0_149 = arith.constant 0 : index
    %c96_150 = arith.constant 96 : index
    %66 = vector.load %arg19[%c0_147, %c0_148, %c0_149, %c96_150] : memref<1x16x16x288xbf16, #tpu.memory_space<vmem>>, vector<1x16x16x32xbf16>
    tpu.vector_store %arg19[%c0_147, %c0_148, %c0_149, %c96_150], %65 {strides = array<i32>} : memref<1x16x16x288xbf16, #tpu.memory_space<vmem>>, vector<1x16x16x32xbf16>,
    %c0_151 = arith.constant 0 : index
    %c1_152 = arith.constant 1 : index
    %c1_153 = arith.constant 1 : index
    %c0_154 = arith.constant 0 : index
    %67 = vector.load %arg18[%c0_151, %c1_152, %c1_153, %c0_154] : memref<1x18x18x32xf32, #tpu.memory_space<vmem>>, vector<1x16x16x32xf32>
    %68 = arith.truncf %67 : vector<1x16x16x32xf32> to vector<1x16x16x32xbf16>
    %c0_155 = arith.constant 0 : index
    %c0_156 = arith.constant 0 : index
    %c0_157 = arith.constant 0 : index
    %c128_158 = arith.constant 128 : index
    %69 = vector.load %arg19[%c0_155, %c0_156, %c0_157, %c128_158] : memref<1x16x16x288xbf16, #tpu.memory_space<vmem>>, vector<1x16x16x32xbf16>
    tpu.vector_store %arg19[%c0_155, %c0_156, %c0_157, %c128_158], %68 {strides = array<i32>} : memref<1x16x16x288xbf16, #tpu.memory_space<vmem>>, vector<1x16x16x32xbf16>,
    %c0_159 = arith.constant 0 : index
    %c1_160 = arith.constant 1 : index
    %c2_161 = arith.constant 2 : index
    %c0_162 = arith.constant 0 : index
    %70 = vector.load %arg18[%c0_159, %c1_160, %c2_161, %c0_162] : memref<1x18x18x32xf32, #tpu.memory_space<vmem>>, vector<1x16x16x32xf32>
    %71 = arith.truncf %70 : vector<1x16x16x32xf32> to vector<1x16x16x32xbf16>
    %c0_163 = arith.constant 0 : index
    %c0_164 = arith.constant 0 : index
    %c0_165 = arith.constant 0 : index
    %c160 = arith.constant 160 : index
    %72 = vector.load %arg19[%c0_163, %c0_164, %c0_165, %c160] : memref<1x16x16x288xbf16, #tpu.memory_space<vmem>>, vector<1x16x16x32xbf16>
    tpu.vector_store %arg19[%c0_163, %c0_164, %c0_165, %c160], %71 {strides = array<i32>} : memref<1x16x16x288xbf16, #tpu.memory_space<vmem>>, vector<1x16x16x32xbf16>,
    %c0_166 = arith.constant 0 : index
    %c2_167 = arith.constant 2 : index
    %c0_168 = arith.constant 0 : index
    %c0_169 = arith.constant 0 : index
    %73 = vector.load %arg18[%c0_166, %c2_167, %c0_168, %c0_169] : memref<1x18x18x32xf32, #tpu.memory_space<vmem>>, vector<1x16x16x32xf32>
    %74 = arith.truncf %73 : vector<1x16x16x32xf32> to vector<1x16x16x32xbf16>
    %c0_170 = arith.constant 0 : index
    %c0_171 = arith.constant 0 : index
    %c0_172 = arith.constant 0 : index
    %c192 = arith.constant 192 : index
    %75 = vector.load %arg19[%c0_170, %c0_171, %c0_172, %c192] : memref<1x16x16x288xbf16, #tpu.memory_space<vmem>>, vector<1x16x16x32xbf16>
    tpu.vector_store %arg19[%c0_170, %c0_171, %c0_172, %c192], %74 {strides = array<i32>} : memref<1x16x16x288xbf16, #tpu.memory_space<vmem>>, vector<1x16x16x32xbf16>,
    %c0_173 = arith.constant 0 : index
    %c2_174 = arith.constant 2 : index
    %c1_175 = arith.constant 1 : index
    %c0_176 = arith.constant 0 : index
    %76 = vector.load %arg18[%c0_173, %c2_174, %c1_175, %c0_176] : memref<1x18x18x32xf32, #tpu.memory_space<vmem>>, vector<1x16x16x32xf32>
    %77 = arith.truncf %76 : vector<1x16x16x32xf32> to vector<1x16x16x32xbf16>
    %c0_177 = arith.constant 0 : index
    %c0_178 = arith.constant 0 : index
    %c0_179 = arith.constant 0 : index
    %c224 = arith.constant 224 : index
    %78 = vector.load %arg19[%c0_177, %c0_178, %c0_179, %c224] : memref<1x16x16x288xbf16, #tpu.memory_space<vmem>>, vector<1x16x16x32xbf16>
    tpu.vector_store %arg19[%c0_177, %c0_178, %c0_179, %c224], %77 {strides = array<i32>} : memref<1x16x16x288xbf16, #tpu.memory_space<vmem>>, vector<1x16x16x32xbf16>,
    %c0_180 = arith.constant 0 : index
    %c2_181 = arith.constant 2 : index
    %c2_182 = arith.constant 2 : index
    %c0_183 = arith.constant 0 : index
    %79 = vector.load %arg18[%c0_180, %c2_181, %c2_182, %c0_183] : memref<1x18x18x32xf32, #tpu.memory_space<vmem>>, vector<1x16x16x32xf32>
    %80 = arith.truncf %79 : vector<1x16x16x32xf32> to vector<1x16x16x32xbf16>
    %c0_184 = arith.constant 0 : index
    %c0_185 = arith.constant 0 : index
    %c0_186 = arith.constant 0 : index
    %c256 = arith.constant 256 : index
    %81 = vector.load %arg19[%c0_184, %c0_185, %c0_186, %c256] : memref<1x16x16x288xbf16, #tpu.memory_space<vmem>>, vector<1x16x16x32xbf16>
    tpu.vector_store %arg19[%c0_184, %c0_185, %c0_186, %c256], %80 {strides = array<i32>} : memref<1x16x16x288xbf16, #tpu.memory_space<vmem>>, vector<1x16x16x32xbf16>,
    %c0_187 = arith.constant 0 : index
    %c0_188 = arith.constant 0 : index
    %c0_189 = arith.constant 0 : index
    %c0_190 = arith.constant 0 : index
    %82 = vector.load %arg19[%c0_187, %c0_188, %c0_189, %c0_190] : memref<1x16x16x288xbf16, #tpu.memory_space<vmem>>, vector<1x16x16x288xbf16>
    %83 = vector.shape_cast %82 : vector<1x16x16x288xbf16> to vector<256x288xbf16>
    %c0_191 = arith.constant 0 : index
    %c0_192 = arith.constant 0 : index
    %84 = vector.load %arg5[%c0_191, %c0_192] : memref<288x32xbf16, #tpu.memory_space<vmem>>, vector<288x32xbf16>
    %cst_193 = arith.constant dense<0.000000e+00> : vector<256x32xf32>
    %85 = tpu.matmul %83, %84, %cst_193 {dimension_numbers = #tpu.dot_dimension_numbers<[1], [0], [0], [1], [0, 0, 1, 1], [], []>} : vector<256x288xbf16>, vector<288x32xbf16>, vector<256x32xf32> -> vector<256x32xf32>
    %c0_194 = arith.constant 0 : index
    %c0_195 = arith.constant 0 : index
    %86 = vector.load %arg6[%c0_194, %c0_195] : memref<1x32xf32, #tpu.memory_space<vmem>>, vector<1x32xf32>
    %87 = vector.broadcast %86 : vector<1x32xf32> to vector<256x32xf32>
    %88 = arith.mulf %85, %87 : vector<256x32xf32>
    %c0_196 = arith.constant 0 : index
    %c0_197 = arith.constant 0 : index
    %89 = vector.load %arg7[%c0_196, %c0_197] : memref<1x32xf32, #tpu.memory_space<vmem>>, vector<1x32xf32>
    %90 = vector.broadcast %89 : vector<1x32xf32> to vector<256x32xf32>
    %91 = arith.addf %88, %90 : vector<256x32xf32>
    %cst_198 = arith.constant dense<0.000000e+00> : vector<32xf32>
    %92 = vector.multi_reduction <add>, %91, %cst_198 [0] : vector<256x32xf32> to vector<32xf32>
    %93 = vector.shape_cast %92 : vector<32xf32> to vector<1x32xf32>
    %cst_199 = arith.constant 2.560000e+02 : f32
    %94 = vector.broadcast %cst_199 : f32 to vector<1x32xf32>
    %95 = arith.divf %93, %94 : vector<1x32xf32>
    %c0_200 = arith.constant 0 : index
    %c0_201 = arith.constant 0 : index
    %96 = vector.load %arg11[%c0_200, %c0_201] : memref<32x2xf32, #tpu.memory_space<vmem>>, vector<32x2xf32>
    %cst_202 = arith.constant dense<0.000000e+00> : vector<1x2xf32>
    %97 = tpu.matmul %95, %96, %cst_202 {dimension_numbers = #tpu.dot_dimension_numbers<[1], [0], [0], [1], [0, 0, 1, 1], [], []>} : vector<1x32xf32>, vector<32x2xf32>, vector<1x2xf32> -> vector<1x2xf32>
    %c0_203 = arith.constant 0 : index
    %c0_204 = arith.constant 0 : index
    %98 = vector.load %arg12[%c0_203, %c0_204] : memref<1x2xf32, #tpu.memory_space<vmem>>, vector<1x2xf32>
    %99 = arith.addf %97, %98 : vector<1x2xf32>
    %cst_205 = arith.constant 0.000000e+00 : f32
    %100 = vector.broadcast %cst_205 : f32 to vector<1x2xf32>
    %101 = arith.maximumf %99, %100 : vector<1x2xf32>
    %c0_206 = arith.constant 0 : index
    %c0_207 = arith.constant 0 : index
    %102 = vector.load %arg13[%c0_206, %c0_207] : memref<2x32xf32, #tpu.memory_space<vmem>>, vector<2x32xf32>
    %cst_208 = arith.constant dense<0.000000e+00> : vector<1x32xf32>
    %103 = tpu.matmul %101, %102, %cst_208 {dimension_numbers = #tpu.dot_dimension_numbers<[1], [0], [0], [1], [0, 0, 1, 1], [], []>} : vector<1x2xf32>, vector<2x32xf32>, vector<1x32xf32> -> vector<1x32xf32>
    %c0_209 = arith.constant 0 : index
    %c0_210 = arith.constant 0 : index
    %104 = vector.load %arg14[%c0_209, %c0_210] : memref<1x32xf32, #tpu.memory_space<vmem>>, vector<1x32xf32>
    %105 = arith.addf %103, %104 : vector<1x32xf32>
    %cst_211 = arith.constant 0.000000e+00 : f32
    %106 = vector.broadcast %cst_211 : f32 to vector<1x32xf32>
    %107 = arith.subf %106, %105 : vector<1x32xf32>
    %108 = math.exp %107 : vector<1x32xf32>
    %cst_212 = arith.constant 1.000000e+00 : f32
    %109 = vector.broadcast %cst_212 : f32 to vector<1x32xf32>
    %110 = arith.addf %109, %108 : vector<1x32xf32>
    %111 = tpu.reciprocal %110 {approx = true} : vector<1x32xf32> -> vector<1x32xf32>
    %112 = vector.shape_cast %0 : vector<1x16x16x16xf32> to vector<256x16xf32>
    %c0_213 = arith.constant 0 : index
    %c0_214 = arith.constant 0 : index
    %113 = vector.load %arg8[%c0_213, %c0_214] : memref<16x32xf32, #tpu.memory_space<vmem>>, vector<16x32xf32>
    %cst_215 = arith.constant dense<0.000000e+00> : vector<256x32xf32>
    %114 = tpu.matmul %112, %113, %cst_215 {dimension_numbers = #tpu.dot_dimension_numbers<[1], [0], [0], [1], [0, 0, 1, 1], [], []>} : vector<256x16xf32>, vector<16x32xf32>, vector<256x32xf32> -> vector<256x32xf32>
    %c0_216 = arith.constant 0 : index
    %c0_217 = arith.constant 0 : index
    %115 = vector.load %arg9[%c0_216, %c0_217] : memref<1x32xf32, #tpu.memory_space<vmem>>, vector<1x32xf32>
    %116 = vector.broadcast %115 : vector<1x32xf32> to vector<256x32xf32>
    %117 = arith.mulf %114, %116 : vector<256x32xf32>
    %c0_218 = arith.constant 0 : index
    %c0_219 = arith.constant 0 : index
    %118 = vector.load %arg10[%c0_218, %c0_219] : memref<1x32xf32, #tpu.memory_space<vmem>>, vector<1x32xf32>
    %119 = vector.broadcast %118 : vector<1x32xf32> to vector<256x32xf32>
    %120 = arith.addf %117, %119 : vector<256x32xf32>
    %121 = vector.broadcast %111 : vector<1x32xf32> to vector<256x32xf32>
    %122 = arith.mulf %91, %121 : vector<256x32xf32>
    %123 = arith.addf %122, %120 : vector<256x32xf32>
    %cst_220 = arith.constant 0.000000e+00 : f32
    %124 = vector.broadcast %cst_220 : f32 to vector<256x32xf32>
    %125 = arith.maximumf %123, %124 : vector<256x32xf32>
    %126 = vector.shape_cast %125 : vector<256x32xf32> to vector<1x16x16x32xf32>
    %c0_221 = arith.constant 0 : index
    %c0_222 = arith.constant 0 : index
    %c0_223 = arith.constant 0 : index
    %c0_224 = arith.constant 0 : index
    %127 = vector.load %arg15[%c0_221, %c0_222, %c0_223, %c0_224] : memref<1x16x16x32xf32, #tpu.memory_space<vmem>>, vector<1x16x16x32xf32>
    tpu.vector_store %arg15[%c0_221, %c0_222, %c0_223, %c0_224], %126 {strides = array<i32>} : memref<1x16x16x32xf32, #tpu.memory_space<vmem>>, vector<1x16x16x32xf32>,
    return
  }
  func.func @transform_0(%arg0: i32) -> (i32, i32, i32, i32) {
    %c0_i32 = arith.constant 0 : i32
    %c0_i32_0 = arith.constant 0 : i32
    %c0_i32_1 = arith.constant 0 : i32
    %c0_i32_2 = arith.constant 0 : i32
    return %arg0, %c0_i32, %c0_i32_0, %c0_i32_1 : i32, i32, i32, i32
  }
  func.func @transform_1(%arg0: i32) -> (i32, i32) {
    %c0_i32 = arith.constant 0 : i32
    %c0_i32_0 = arith.constant 0 : i32
    %c0_i32_1 = arith.constant 0 : i32
    return %c0_i32, %c0_i32_0 : i32, i32
  }
  func.func @transform_2(%arg0: i32) -> (i32, i32) {
    %c0_i32 = arith.constant 0 : i32
    %c0_i32_0 = arith.constant 0 : i32
    %c0_i32_1 = arith.constant 0 : i32
    return %c0_i32, %c0_i32_0 : i32, i32
  }
  func.func @transform_3(%arg0: i32) -> (i32, i32) {
    %c0_i32 = arith.constant 0 : i32
    %c0_i32_0 = arith.constant 0 : i32
    %c0_i32_1 = arith.constant 0 : i32
    return %c0_i32, %c0_i32_0 : i32, i32
  }
  func.func @transform_4(%arg0: i32) -> (i32, i32) {
    %c0_i32 = arith.constant 0 : i32
    %c0_i32_0 = arith.constant 0 : i32
    %c0_i32_1 = arith.constant 0 : i32
    return %c0_i32, %c0_i32_0 : i32, i32
  }
  func.func @transform_5(%arg0: i32) -> (i32, i32) {
    %c0_i32 = arith.constant 0 : i32
    %c0_i32_0 = arith.constant 0 : i32
    %c0_i32_1 = arith.constant 0 : i32
    return %c0_i32, %c0_i32_0 : i32, i32
  }
  func.func @transform_6(%arg0: i32) -> (i32, i32) {
    %c0_i32 = arith.constant 0 : i32
    %c0_i32_0 = arith.constant 0 : i32
    %c0_i32_1 = arith.constant 0 : i32
    return %c0_i32, %c0_i32_0 : i32, i32
  }
  func.func @transform_7(%arg0: i32) -> (i32, i32) {
    %c0_i32 = arith.constant 0 : i32
    %c0_i32_0 = arith.constant 0 : i32
    %c0_i32_1 = arith.constant 0 : i32
    return %c0_i32, %c0_i32_0 : i32, i32
  }
  func.func @transform_8(%arg0: i32) -> (i32, i32) {
    %c0_i32 = arith.constant 0 : i32
    %c0_i32_0 = arith.constant 0 : i32
    %c0_i32_1 = arith.constant 0 : i32
    return %c0_i32, %c0_i32_0 : i32, i32
  }
  func.func @transform_9(%arg0: i32) -> (i32, i32) {
    %c0_i32 = arith.constant 0 : i32
    %c0_i32_0 = arith.constant 0 : i32
    %c0_i32_1 = arith.constant 0 : i32
    return %c0_i32, %c0_i32_0 : i32, i32
  }
  func.func @transform_10(%arg0: i32) -> (i32, i32) {
    %c0_i32 = arith.constant 0 : i32
    %c0_i32_0 = arith.constant 0 : i32
    %c0_i32_1 = arith.constant 0 : i32
    return %c0_i32, %c0_i32_0 : i32, i32
  }
  func.func @transform_11(%arg0: i32) -> (i32, i32) {
    %c0_i32 = arith.constant 0 : i32
    %c0_i32_0 = arith.constant 0 : i32
    %c0_i32_1 = arith.constant 0 : i32
    return %c0_i32, %c0_i32_0 : i32, i32
  }
  func.func @transform_12(%arg0: i32) -> (i32, i32) {
    %c0_i32 = arith.constant 0 : i32
    %c0_i32_0 = arith.constant 0 : i32
    %c0_i32_1 = arith.constant 0 : i32
    return %c0_i32, %c0_i32_0 : i32, i32
  }
  func.func @transform_13(%arg0: i32) -> (i32, i32) {
    %c0_i32 = arith.constant 0 : i32
    %c0_i32_0 = arith.constant 0 : i32
    %c0_i32_1 = arith.constant 0 : i32
    return %c0_i32, %c0_i32_0 : i32, i32
  }
  func.func @transform_14(%arg0: i32) -> (i32, i32, i32, i32) {
    %c0_i32 = arith.constant 0 : i32
    %c0_i32_0 = arith.constant 0 : i32
    %c0_i32_1 = arith.constant 0 : i32
    %c0_i32_2 = arith.constant 0 : i32
    return %arg0, %c0_i32, %c0_i32_0, %c0_i32_1 : i32, i32, i32, i32
  }
}

</mosaic_0001>

<bundles_post_ra>
// kernel: tpu_custom_call.1
= control target key start
LH: loop header
LB: loop body
LE: loop exit
PB: predicated region body
PF: predicated region fallthrough
CT: control target
= control target key end

     0   :  { %s10231_s0 = inlined_call_operand.hbm [shape: f32[2,16,16,16], index: 0, kind: input, shape index: {}]   ;;  %s10232_s1 = inlined_call_operand.vmem [shape: bf16[144,32], index: 1, kind: input, shape index: {}]   ;;  %s10233_s2 = inlined_call_operand.vmem [shape: f32[1,32], index: 2, kind: input, shape index: {}]   ;;  %s10234_s3 = inlined_call_operand.vmem [shape: f32[1,32], index: 3, kind: input, shape index: {}]   ;;  %s10235_s4 = inlined_call_operand.vmem [shape: bf16[288,32], index: 4, kind: input, shape index: {}]   ;;  %s10236_s5 = inlined_call_operand.vmem [shape: f32[1,32], index: 5, kind: input, shape index: {}]   ;;  %s10237_s6 = inlined_call_operand.vmem [shape: f32[1,32], index: 6, kind: input, shape index: {}]   ;;  %s10238_s7 = inlined_call_operand.vmem [shape: f32[16,32], index: 7, kind: input, shape index: {}]   ;;  %s10239_s8 = inlined_call_operand.vmem [shape: f32[1,32], index: 8, kind: input, shape index: {}]   ;;  %s10240_s9 = inlined_call_operand.vmem [shape: f32[1,32], index: 9, kind: input, shape index: {}]   ;;  %s10241_s10 = inlined_call_operand.vmem [shape: f32[32,2], index: 10, kind: input, shape index: {}]   ;;  %s10242_s11 = inlined_call_operand.vmem [shape: f32[1,2], index: 11, kind: input, shape index: {}]   ;;  %s10243_s12 = inlined_call_operand.vmem [shape: f32[2,32], index: 12, kind: input, shape index: {}]   ;;  %s10244_s13 = inlined_call_operand.vmem [shape: f32[1,32], index: 13, kind: input, shape index: {}]   ;;  %s10245_s14 = inlined_call_operand.hbm [shape: f32[2,16,16,32], index: 14, kind: output, shape index: {}]  }
   0x1   :  { %10286 = sst [smem:[#allocation57_spill]] %s10231_s0 }
   0x2   :  { %10287 = sst [smem:[#allocation58_spill]] %s10232_s1 }
   0x3   :  { %10288 = sst [smem:[#allocation59_spill]] %s10245_s14 }
   0x4   :  { %19 = vsyncpa [#allocation7], 0 }
   0x5   :  { %21 = vsyncpa [#allocation7 + $0x1], 0 }
   0x6   :  { %22 = vsyncpa [#allocation8], 0 }
   0x7   :  { %24 = vsyncpa [#allocation8 + $0x1], 0  ;;  %s7036_s29 = smov 0   ;;  %s7038_s30 = smov 0  }
   0x8   :  { %s7040_s15 = smov 0   ;;  %s7042_s16 = smov 0  }
   0x9 LB: > { %10289 = sst [smem:[#allocation12_spill]] %s6934_s29  ;;  %s7057_s17 = sadd.s32 4294967295, %s6946_s16   ;;  %s6946_s16 = sphi %s7042_s16, %s10410_s16   ;;  %s6942_s15 = sphi %s7040_s15, %s10412_s15   ;;  %s6938_s30 = sphi %s7038_s30, %s10414_s30   ;;  %s6934_s29 = sphi %s7036_s29, %s10413_s29  }
   0xa   : > { %10290 = sst [smem:[#allocation13_spill]] %s6942_s15  ;;  %s6140_s18 = sadd.s32 4294967294, %s6946_s16  }
   0xb   : > { %10291 = sst [smem:[#allocation14_spill]] %s7057_s17  ;;  %s7061_s19 = sadd.s32 1, %s6946_s16  }
   0xc   : > { %10292 = sst [smem:[#allocation15_spill]] %s7061_s19  ;;  %s37_s20 = sadd.s32 1, %s6942_s15 }
   0xd   : > { %s34_s21 = ssub.s32 %s6946_s16, %s7061_s19  ;;  %p44_p0 = scmp.ne.s32.totalorder %s6942_s15, %s6938_s30 }
   0xe   : > { %p35_p1 = scmp.eq.s32.totalorder %s34_s21, 0  ;;  %p45_p2 = scmp.eq.s32.totalorder %s6946_s16, 0 }
   0xf   : > { %p50_p3 = scmp.ne.s32.totalorder %s6938_s30, %s6934_s29  ;;  %p51_p4 = scmp.eq.s32.totalorder %s7057_s17, 0 }
  0x10   : > { %s7073_s22 = scalar_select %p35_p1, %s6942_s15, %s37_s20  }
  0x11   : > { %p7075_p5 = por %p45_p2, %p44_p0  ;;  %p7079_p6 = por %p51_p4, %p50_p3 }
  0x12   : > { %10293 = sst [smem:[#allocation16_spill]] %s7073_s22  ;;  %p347_p7 = scmp.eq.s32.totalorder %s7057_s17, 1 }
  0x13   : > { %p353_p8 = scmp.eq.s32.totalorder %s6140_s18, 1  ;;  %p6787_p10 = scmp.lt.s32.totalorder %s6946_s16, 2 }
  0x14   : > { %p7086_p11 = por %p347_p7, %p44_p0  ;;  %s412_s27 = sand.u32 1, %s6942_s15  }
  0x15   : > { %p7090_p12 = por %p353_p8, %p50_p3  ;;  %s6649_s28 = sshll.u32 %s6946_s16, 8 }
  0x16   : > { %s10296_s25 = scalar_select %p7086_p11, 1, 0 }
  0x17   : > { %s10298_s26 = scalar_select %p7090_p12, 1, 0 }
  0x18   : > { %10297 = sst [smem:[#allocation17_spill]] %s10296_s25  ;;  %s6143_s20 = sshll.u32 %s412_s27, 8 }
  0x19   : > { %10299 = sst [smem:[#allocation18_spill]] %s10298_s26  ;;  %s416_s18 = scalar_lea.vmem [#allocation6], %s6143_s20 }
  0x1a   : > { %s10300_s0 = sld [smem:[#allocation57_spill]]  ;;  %s424_s14 = sshll.u32 %s416_s18, 4  ;;  %s425_s14 = int_to_ptr.vmem [resolvable:$true] %s424_s14 }
  0x1b   : > { %p7101_p13 = pnand %p6787_p10, %p7075_p5  ;;  %p6146_p0 = scmp.ge.s32.totalorder %s6946_s16, 1 }
  0x1c   : > { %p432_p1 = scmp.lt.s32.totalorder %s6946_s16, 3  ;;  %s413_s15 = scalar_lea.sflag [#allocation7], %s412_s27 }
  0x1d   : > { %p6854_p3 = pneg %p7101_p13 }
  0x20   : > { %s421_s19 = scalar_lea.hbm %s10300_s0, %s6649_s28  ;;  %s6857_s23 = scalar_lea.hbm %s10300_s0, 512 }
  0x21   : > { %s422_s29 = sshll.u32 %s421_s19, 4  ;;  %s423_s29 = int_to_ptr.hbm [resolvable:$true] %s422_s29 }
  0x22   : > { %s6850_s26 = sshra.s32 %s423_s29, 4  ;;  %s6851_s26 = int_to_ptr.hbm [resolvable:$true] %s6850_s26 }
  0x23   : > { %s6852_s25 = scalar_lea.hbm %s6851_s26, 256  ;;  %p6858_p5 = scmp.lt.s32.totalorder %s6851_s26, %s10300_s0 }
  0x24   : > { %p6853_p2 = scmp.ne.s32.totalorder %s6851_s26, %s6852_s25  ;;  %p6859_p8 = scmp.lt.s32.totalorder %s6857_s23, %s6852_s25 }
  0x26   : > { %p6855_p4 = pnand %p6854_p3, %p6853_p2  ;;  %p6860_p10 = por %p6859_p8, %p6858_p5 }
  0x28   : > { %p6856_p7 = pneg %p6855_p4 }
  0x2a   : > { %p6861_p9 = pnand %p6860_p10, %p6856_p7 }
  0x2c   : > { %6864 = shalt.err (!%p6861_p9)
}
  0x2d   : > { %s6948_s27 = smov 128   ;;  %s6949_s21 = smov 8  }
  0x2e   : > { %6782 = dma.hbm_to_vmem [thread:$0]  (!%p7101_p13), %s423_s29, 4096, %s425_s14, %s413_s15, %s6948_s27, %s6948_s27, %s6949_s21  }
  0x2f   : > { %p433_p2 = pnand %p6146_p0, %p432_p1 }
  0x31   : > { %436 = sbr.rel (%p433_p2) target bundleno = 1838 (0x72e), region = 76 }
  0x36   : > { %s7122_s18 = sand.u32 1, %s6938_s30  }
  0x37   : > { %s6147_s25 = sshll.u32 %s7122_s18, 8  ;;  %s439_s26 = scalar_lea.sflag [#allocation7], %s7122_s18 }
  0x38   : > { %s7128_s19 = scalar_lea.vmem [#allocation6], %s6147_s25 }
  0x39   : > { %6925 = dma.done.wait (%p7079_p6), %s439_s26, 4096  }
  0x3a   : > { %6927 = vsyncadd (%p7079_p6), %s439_s26, 4294963200  ;;  %vm521_vm0 = vcmask 130048   ;;  %v10255_v0 = vmov 0.0   ;;  %vm530_vm1 = vcmask 122880   ;;  %s6951_s14 = smov 16   ;;  %v7206_v3 = vld [vmem:[%s7128_s19 + $0x10] sm:$0xff] }
  0x3b   : > { %522 = vst.msk [vmem:[#allocation2] sm:$0xff] %vm521_vm0, %v10255_v0  ;;  %v7213_v4 = vld [vmem:[%s7128_s19] sm:$0xff]  ;;  %vm524_vm2 = vcmask 123904   ;;  %v7224_v5 = vld [vmem:[%s7128_s19 + $0x18] sm:$0xff]  ;;  %v7229_v6 = vld [vmem:[%s7128_s19 + $0x8] sm:$0xff]  ;;  %vm664_vm3 = vcmask 125952  }
  0x3c   : > { %523 = vst.msk [vmem:[#allocation2 + $0x8] sm:$0xff] %vm521_vm0, %v10255_v0  ;;  %v7234_v7 = vld [vmem:[%s7128_s19 + $0x20] sm:$0xff]  ;;  %v7239_v9 = vld [vmem:[%s7128_s19 + $0x30] sm:$0xff]  ;;  %v7244_v11 = vld [vmem:[%s7128_s19 + $0x28] sm:$0xff]  ;;  %vm889_vm4 = vcmask 257152   ;;  %s6952_s29 = smov 32  }
  0x3d   : > { %531 = vst.msk [vmem:[#allocation2] sm:$0x1] %vm530_vm1, %v10255_v0  ;;  %v7249_v13 = vld [vmem:[%s7128_s19 + $0x38] sm:$0xff]  ;;  %v7257_v16 = vld [vmem:[%s7128_s19 + $0x48] sm:$0xff]  ;;  %v7262_v18 = vld [vmem:[%s7128_s19 + $0x40] sm:$0xff]  ;;  %s6953_s15 = smov 48  }
  0x3e   : > { %527 = vst.msk [vmem:[#allocation2 + $0x198] sm:$0xff] %vm521_vm0, %v10255_v0  ;;  %v7269_v19 = vld [vmem:[%s7128_s19 + $0x50] sm:$0xff]  ;;  %v7275_v20 = vld [vmem:[%s7128_s19 + $0x60] sm:$0xff]  ;;  %v7280_v22 = vld [vmem:[%s7128_s19 + $0x58] sm:$0xff]  ;;  %vm1114_vm5 = vcmask 388352   ;;  %s6954_s17 = smov 64  }
  0x3f   : > { %528 = vst.msk [vmem:[#allocation2 + $0x1a0] sm:$0xff] %vm521_vm0, %v10255_v0  ;;  %v7285_v25 = vld [vmem:[%s7128_s19 + $0x68] sm:$0xff]  ;;  %v7292_v28 = vld [vmem:[%s7128_s19 + $0x78] sm:$0xff]  ;;  %v7297_v30 = vld [vmem:[%s7128_s19 + $0x70] sm:$0xff]  ;;  %s6955_s24 = smov 80   ;;  %s6956_s22 = smov 96  }
  0x40   : > { %532 = vst.msk [vmem:[#allocation2 + $0x18] sm:$0x1] %vm530_vm1, %v10255_v0  ;;  %v7303_v31 = vld [vmem:[%s7128_s19 + $0x80] sm:$0xff]  ;;  %v7308_v33 = vld [vmem:[%s7128_s19 + $0x90] sm:$0xff]  ;;  %v7315_v34 = vld [vmem:[%s7128_s19 + $0x88] sm:$0xff]  ;;  %s6957_s23 = smov 112  }
  0x41   : > { %533 = vst.msk [vmem:[#allocation2 + $0x30] sm:$0x1] %vm530_vm1, %v10255_v0  ;;  %v7321_v36 = vld [vmem:[%s7128_s19 + $0x98] sm:$0xff]  ;;  %v7330_v41 = vld [vmem:[%s7128_s19 + $0xa8] sm:$0xff]  ;;  %v7333_v42 = vld [vmem:[%s7128_s19 + $0xa0] sm:$0xff]  ;;  %vm1339_vm6 = vcmask 519552  }
  0x42   : > { %534 = vst.msk [vmem:[#allocation2 + $0x48] sm:$0x1] %vm530_vm1, %v10255_v0  ;;  %v7339_v43 = vld [vmem:[%s7128_s19 + $0xb0] sm:$0xff]  ;;  %v7348_v50 = vld [vmem:[%s7128_s19 + $0xc0] sm:$0xff]  ;;  %v7351_v51 = vld [vmem:[%s7128_s19 + $0xb8] sm:$0xff]  ;;  %s10321_s1 = sld [smem:[#allocation58_spill]] }
  0x43   : > { %v697_v1 = vld [vmem:[#allocation2 + $0x1] sm:$0xff]  ;;  %535 = vst.msk [vmem:[#allocation2 + $0x60] sm:$0x1] %vm530_vm1, %v10255_v0  ;;  %v7366_v59 = vld [vmem:[%s7128_s19 + $0xd8] sm:$0xff]  ;;  %v7369_v60 = vld [vmem:[%s7128_s19 + $0xd0] sm:$0xff]  ;;  %vm1564_vm7 = vcmask 650752  }
  0x44   : > { %v729_v2 = vpack.c.bf16 %v697_v1, %v697_v1  ;;  %536 = vst.msk [vmem:[#allocation2 + $0x78] sm:$0x1] %vm530_vm1, %v10255_v0  ;;  %v7357_v52 = vld [vmem:[%s7128_s19 + $0xc8] sm:$0xff]  ;;  %v7375_v61 = vld [vmem:[%s7128_s19 + $0xe0] sm:$0xff]  ;;  %vm1789_vm8 = vcmask 781952   ;;  %vm2015_vm9 = vcmask 913152  }
  0x45   : > { %537 = vst.msk [vmem:[#allocation2 + $0x90] sm:$0x1] %vm530_vm1, %v10255_v0  ;;  %vm2240_vm10 = vcmask 1044352   ;;  %vm2947_vm11 = vcmask 261120   ;;  %vm2956_vm12 = vcmask 253952   ;;  %vm2950_vm13 = vcmask 254976  }
  0x46   : > { %793 = vrot.lane.b32.xlu0 %v729_v2, %s6951_s14  ;;  %538 = vst.msk [vmem:[#allocation2 + $0xa8] sm:$0x1] %vm530_vm1, %v10255_v0  ;;  %vm3090_vm14 = vcmask 257024   ;;  %vm3315_vm15 = vcmask 519424   ;;  %s6052_s21 = scalar_lea.sflag [#allocation8], %s7122_s18 }
  0x47   : > { %539 = vst.msk [vmem:[#allocation2 + $0xc0] sm:$0x1] %vm530_vm1, %v10255_v0 }
  0x48   : > { %540 = vst.msk [vmem:[#allocation2 + $0xd8] sm:$0x1] %vm530_vm1, %v10255_v0 }
  0x49   : > { %541 = vst.msk [vmem:[#allocation2 + $0xf0] sm:$0x1] %vm530_vm1, %v10255_v0 }
  0x4a   : > { %542 = vst.msk [vmem:[#allocation2 + $0x108] sm:$0x1] %vm530_vm1, %v10255_v0 }
  0x4b   : > { %543 = vst.msk [vmem:[#allocation2 + $0x120] sm:$0x1] %vm530_vm1, %v10255_v0 }
  0x4c   : > { %544 = vst.msk [vmem:[#allocation2 + $0x138] sm:$0x1] %vm530_vm1, %v10255_v0 }
  0x4d   : > { %545 = vst.msk [vmem:[#allocation2 + $0x150] sm:$0x1] %vm530_vm1, %v10255_v0 }
  0x4e   : > { %546 = vst.msk [vmem:[#allocation2 + $0x168] sm:$0x1] %vm530_vm1, %v10255_v0 }
  0x4f   : > { %547 = vst.msk [vmem:[#allocation2 + $0x180] sm:$0x1] %vm530_vm1, %v10255_v0 }
  0x50   : > { %550 = vst.msk [vmem:[#allocation2 + $0x29] sm:$0x1] %vm530_vm1, %v10255_v0 }
  0x51   : > { %551 = vst.msk [vmem:[#allocation2 + $0x41] sm:$0x1] %vm530_vm1, %v10255_v0 }
  0x52   : > { %552 = vst.msk [vmem:[#allocation2 + $0x59] sm:$0x1] %vm530_vm1, %v10255_v0 }
  0x53   : > { %553 = vst.msk [vmem:[#allocation2 + $0x71] sm:$0x1] %vm530_vm1, %v10255_v0 }
  0x54   : > { %554 = vst.msk [vmem:[#allocation2 + $0x89] sm:$0x1] %vm530_vm1, %v10255_v0 }
  0x55   : > { %555 = vst.msk [vmem:[#allocation2 + $0xa1] sm:$0x1] %vm530_vm1, %v10255_v0 }
  0x56   : > { %556 = vst.msk [vmem:[#allocation2 + $0xb9] sm:$0x1] %vm530_vm1, %v10255_v0 }
  0x57   : > { %557 = vst.msk [vmem:[#allocation2 + $0xd1] sm:$0x1] %vm530_vm1, %v10255_v0 }
  0x58   : > { %558 = vst.msk [vmem:[#allocation2 + $0xe9] sm:$0x1] %vm530_vm1, %v10255_v0 }
  0x59   : > { %559 = vst.msk [vmem:[#allocation2 + $0x101] sm:$0x1] %vm530_vm1, %v10255_v0 }
  0x5a   : > { %560 = vst.msk [vmem:[#allocation2 + $0x119] sm:$0x1] %vm530_vm1, %v10255_v0 }
  0x5b   : > { %561 = vst.msk [vmem:[#allocation2 + $0x131] sm:$0x1] %vm530_vm1, %v10255_v0 }
  0x5c   : > { %562 = vst.msk [vmem:[#allocation2 + $0x149] sm:$0x1] %vm530_vm1, %v10255_v0 }
  0x5d   : > { %563 = vst.msk [vmem:[#allocation2 + $0x161] sm:$0x1] %vm530_vm1, %v10255_v0 }
  0x5e   : > { %564 = vst.msk [vmem:[#allocation2 + $0x179] sm:$0x1] %vm530_vm1, %v10255_v0 }
  0x5f   : > { %565 = vst.msk [vmem:[#allocation2 + $0x191] sm:$0x1] %vm530_vm1, %v10255_v0 }
  0x60   : > { %570 = vst.msk [vmem:[#allocation2 + $0x31] sm:$0xff] %vm521_vm0, %v7206_v3 }
  0x61   : > { %548 = vst.msk [vmem:[#allocation2 + $0x198] sm:$0x1] %vm530_vm1, %v10255_v0 }
  0x62   : > { %568 = vst.msk [vmem:[#allocation2 + $0x19] sm:$0xff] %vm521_vm0, %v7213_v4 }
  0x63   : > { %525 = vst.msk [vmem:[#allocation2 + $0x10] sm:$0x3] %vm524_vm2, %v10255_v0 }
  0x64   : > { %529 = vst.msk [vmem:[#allocation2 + $0x1a8] sm:$0x3] %vm524_vm2, %v10255_v0  ;;  %vm3765_vm2 = vcmask 1044224  }
  0x65   : > { %566 = vst.msk [vmem:[#allocation2 + $0x1a9] sm:$0x1] %vm530_vm1, %v10255_v0 }
  0x66   : > { %549 = vst.msk [vmem:[#allocation2 + $0x11] sm:$0x1] %vm530_vm1, %v10255_v0  ;;  %vm3540_vm1 = vcmask 781824  }
  0x67   : > { %v701_v8 = vld [vmem:[#allocation2 + $0x31] sm:$0xff]  ;;  %571 = vst.msk [vmem:[#allocation2 + $0x39] sm:$0xff] %vm521_vm0, %v7224_v5 }
  0x68   : > { %v733_v10 = vpack.c.bf16 %v701_v8, %v701_v8  ;;  %569 = vst.msk [vmem:[#allocation2 + $0x21] sm:$0xff] %vm521_vm0, %v7229_v6 }
  0x69   : > { %v699_v12 = vld [vmem:[#allocation2 + $0x19] sm:$0xff]  ;;  %572 = vst.msk [vmem:[#allocation2 + $0x49] sm:$0xff] %vm521_vm0, %v7234_v7 }
  0x6a   : > { %801 = vrot.lane.b32.xlu2 %v733_v10, %s6951_s14  ;;  %v7252_v14 = vpack.c.bf16 %v699_v12, %v699_v12  ;;  %v698_v15 = vld [vmem:[#allocation2 + $0x9] sm:$0xff]  ;;  %574 = vst.msk [vmem:[#allocation2 + $0x61] sm:$0xff] %vm521_vm0, %v7239_v9 }
  0x6b   : > { %v730_v17 = vpack.c.bf16 %v698_v15, %v698_v15  ;;  %573 = vst.msk [vmem:[#allocation2 + $0x51] sm:$0xff] %vm521_vm0, %v7244_v11  ;;  %v7384_v12 = vld [vmem:[%s7128_s19 + $0xe8] sm:$0xff] }
  0x6c   : > { %797 = vrot.lane.b32.xlu1 %v7252_v14, %s6951_s14  ;;  %575 = vst.msk [vmem:[#allocation2 + $0x69] sm:$0xff] %vm521_vm0, %v7249_v13 }
  0x6d   : > { %795 = vrot.lane.b32.xlu0 %v730_v17, %s6951_s14  ;;  %577 = vst.msk [vmem:[#allocation2 + $0x81] sm:$0xff] %vm521_vm0, %v7257_v16 }
  0x6e   : > { %10302 = vst [vmem:[#allocation19_spill] sm:$0xff] %v7275_v20  ;;  %v702_v21 = vld [vmem:[#allocation2 + $0x39] sm:$0xff] }
  0x6f   : > { %576 = vst.msk [vmem:[#allocation2 + $0x79] sm:$0xff] %vm521_vm0, %v7262_v18  ;;  %v734_v23 = vpack.c.bf16 %v702_v21, %v702_v21  ;;  %v700_v24 = vld [vmem:[#allocation2 + $0x21] sm:$0xff] }
  0x70   : > { %10303 = vst [vmem:[#allocation20_spill] sm:$0xff] %v7280_v22  ;;  %v7287_v26 = vpack.c.bf16 %v700_v24, %v700_v24  ;;  %v703_v27 = vld [vmem:[#allocation2 + $0x49] sm:$0xff] }
  0x71   : > { %578 = vst.msk [vmem:[#allocation2 + $0x91] sm:$0xff] %vm521_vm0, %v7269_v19  ;;  %v735_v29 = vpack.c.bf16 %v703_v27, %v703_v27  ;;  %v705_v32 = vld [vmem:[#allocation2 + $0x61] sm:$0xff] }
  0x72   : > { %10304 = vst [vmem:[#allocation21_spill] sm:$0xff] %v7285_v25  ;;  %803 = vrot.lane.b32.xlu2 %v734_v23, %s6951_s14  ;;  %v704_v35 = vld [vmem:[#allocation2 + $0x51] sm:$0xff]  ;;  %v737_v37 = vpack.c.bf16 %v705_v32, %v705_v32 }
  0x73   : > { %580 = vst.msk [vmem:[#allocation2 + $0xa9] sm:$0xff] %vm521_vm0, %v7275_v20  ;;  %v706_v38 = vld [vmem:[#allocation2 + $0x69] sm:$0xff]  ;;  %v736_v39 = vpack.c.bf16 %v704_v35, %v704_v35 }
  0x74   : > { %10305 = vst [vmem:[#allocation22_spill] sm:$0xff] %v7292_v28  ;;  %799 = vrot.lane.b32.xlu1 %v7287_v26, %s6951_s14  ;;  %v738_v40 = vpack.c.bf16 %v706_v38, %v706_v38  ;;  %v708_v44 = vld [vmem:[#allocation2 + $0x81] sm:$0xff] }
  0x75   : > { %579 = vst.msk [vmem:[#allocation2 + $0x99] sm:$0xff] %vm521_vm0, %v7280_v22  ;;  %805 = vrot.lane.b32.xlu0 %v735_v29, %s6951_s14  ;;  %v740_v46 = vpack.c.bf16 %v708_v44, %v708_v44 }
  0x76   : > { %10306 = vst [vmem:[#allocation23_spill] sm:$0xff] %v7297_v30  ;;  %v707_v45 = vld [vmem:[#allocation2 + $0x79] sm:$0xff] }
  0x77   : > { %581 = vst.msk [vmem:[#allocation2 + $0xb1] sm:$0xff] %vm521_vm0, %v7285_v25  ;;  %v739_v48 = vpack.c.bf16 %v707_v45, %v707_v45  ;;  %v604_v45 = vld [vmem:[#allocation2 + $0x30] sm:$0xff] }
  0x78   : > { %10307 = vst [vmem:[#allocation24_spill] sm:$0xff] %v7303_v31  ;;  %v709_v47 = vld [vmem:[#allocation2 + $0x91] sm:$0xff] }
  0x79   : > { %583 = vst.msk [vmem:[#allocation2 + $0xc9] sm:$0xff] %vm521_vm0, %v7292_v28  ;;  %v741_v49 = vpack.c.bf16 %v709_v47, %v709_v47 }
  0x7a   : > { %10308 = vst [vmem:[#allocation25_spill] sm:$0xff] %v7308_v33  ;;  %809 = vrot.lane.b32.xlu2 %v737_v37, %s6951_s14  ;;  %v711_v53 = vld [vmem:[#allocation2 + $0xa9] sm:$0xff] }
  0x7b   : > { %582 = vst.msk [vmem:[#allocation2 + $0xc1] sm:$0xff] %vm521_vm0, %v7297_v30  ;;  %v743_v55 = vpack.c.bf16 %v711_v53, %v711_v53 }
  0x7c   : > { %10309 = vst [vmem:[#allocation26_spill] sm:$0xff] %v7315_v34  ;;  %807 = vrot.lane.b32.xlu1 %v736_v39, %s6951_s14  ;;  %v710_v54 = vld [vmem:[#allocation2 + $0x99] sm:$0xff] }
  0x7d   : > { %584 = vst.msk [vmem:[#allocation2 + $0xd9] sm:$0xff] %vm521_vm0, %v7303_v31  ;;  %811 = vrot.lane.b32.xlu0 %v738_v40, %s6951_s14  ;;  %v742_v57 = vpack.c.bf16 %v710_v54, %v710_v54 }
  0x7e   : > { %10310 = vst [vmem:[#allocation27_spill] sm:$0xff] %v7321_v36  ;;  %v712_v56 = vld [vmem:[#allocation2 + $0xb1] sm:$0xff] }
  0x7f   : > { %586 = vst.msk [vmem:[#allocation2 + $0xf1] sm:$0xff] %vm521_vm0, %v7308_v33  ;;  %v744_v58 = vpack.c.bf16 %v712_v56, %v712_v56  ;;  %v605_v56 = vld [vmem:[#allocation2 + $0x38] sm:$0xff] }
  0x80   : > { %585 = vst.msk [vmem:[#allocation2 + $0xe1] sm:$0xff] %vm521_vm0, %v7315_v34  ;;  %v714_v62 = vld [vmem:[#allocation2 + $0xc9] sm:$0xff] }
  0x81   : > { %587 = vst.msk [vmem:[#allocation2 + $0xf9] sm:$0xff] %vm521_vm0, %v7321_v36  ;;  %v746_v1 = vpack.c.bf16 %v714_v62, %v714_v62  ;;  %v7404_v62 = vpack.c.bf16 %v605_v56, %v605_v56  ;;  %v603_v56 = vld [vmem:[#allocation2 + $0x20] sm:$0xff] }
  0x82   : > { %10311 = vst [vmem:[#allocation28_spill] sm:$0xff] %v7330_v41  ;;  %815 = vrot.lane.b32.xlu2 %v740_v46, %s6951_s14  ;;  %v713_v63 = vld [vmem:[#allocation2 + $0xc1] sm:$0xff] }
  0x83   : > { %10312 = vst [vmem:[#allocation29_spill] sm:$0xff] %v7333_v42  ;;  %v745_v8 = vpack.c.bf16 %v713_v63, %v713_v63 }
  0x84   : > { %589 = vst.msk [vmem:[#allocation2 + $0x111] sm:$0xff] %vm521_vm0, %v7330_v41  ;;  %813 = vrot.lane.b32.xlu1 %v739_v48, %s6951_s14  ;;  %v715_v2 = vld [vmem:[#allocation2 + $0xd9] sm:$0xff]  ;;  %v7397_v48 = vpack.c.bf16 %v604_v45, %v604_v45 }
  0x85   : > { %10313 = vst [vmem:[#allocation30_spill] sm:$0xff] %v7339_v43  ;;  %817 = vrot.lane.b32.xlu0 %v741_v49, %s6951_s14  ;;  %v747_v10 = vpack.c.bf16 %v715_v2, %v715_v2  ;;  %v922_v2 = vld [vmem:[#allocation2 + $0x2] sm:$0xff]  ;;  %v926_v45 = vld [vmem:[#allocation2 + $0x32] sm:$0xff] }
  0x86   : > { %588 = vst.msk [vmem:[#allocation2 + $0x109] sm:$0xff] %vm521_vm0, %v7333_v42  ;;  %v717_v15 = vld [vmem:[#allocation2 + $0xf1] sm:$0xff] }
  0x87   : > { %590 = vst.msk [vmem:[#allocation2 + $0x121] sm:$0xff] %vm521_vm0, %v7339_v43  ;;  %v716_v17 = vld [vmem:[#allocation2 + $0xe1] sm:$0xff]  ;;  %v749_v21 = vpack.c.bf16 %v717_v15, %v717_v15 }
  0x88   : > { %10314 = vst [vmem:[#allocation31_spill] sm:$0xff] %v7348_v50  ;;  %v718_v23 = vld [vmem:[#allocation2 + $0xf9] sm:$0xff]  ;;  %v748_v24 = vpack.c.bf16 %v716_v17, %v716_v17  ;;  %v954_v17 = vpack.c.bf16 %v922_v2, %v922_v2 }
  0x89   : > { %10315 = vst [vmem:[#allocation32_spill] sm:$0xff] %v7351_v51  ;;  %v750_v27 = vpack.c.bf16 %v718_v23, %v718_v23  ;;  %v600_v15 = vld [vmem:[#allocation2] sm:$0xff] }
  0x8a   : > { %592 = vst.msk [vmem:[#allocation2 + $0x139] sm:$0xff] %vm521_vm0, %v7348_v50  ;;  %821 = vrot.lane.b32.xlu2 %v743_v55, %s6951_s14  ;;  %v615_v50 = vld [vmem:[#allocation2 + $0xb0] sm:$0xff] }
  0x8b   : > { %10316 = vst [vmem:[#allocation33_spill] sm:$0xff] %v7357_v52  ;;  %v720_v29 = vld [vmem:[#allocation2 + $0x111] sm:$0xff] }
  0x8c   : > { %591 = vst.msk [vmem:[#allocation2 + $0x129] sm:$0xff] %vm521_vm0, %v7351_v51  ;;  %819 = vrot.lane.b32.xlu1 %v742_v57, %s6951_s14  ;;  %v752_v35 = vpack.c.bf16 %v720_v29, %v720_v29  ;;  %v7523_v51 = vpack.c.bf16 %v615_v50, %v615_v50  ;;  %v939_v50 = vld [vmem:[#allocation2 + $0xca] sm:$0xff] }
  0x8d   : > { %593 = vst.msk [vmem:[#allocation2 + $0x141] sm:$0xff] %vm521_vm0, %v7357_v52  ;;  %823 = vrot.lane.b32.xlu0 %v744_v58, %s6951_s14  ;;  %v719_v32 = vld [vmem:[#allocation2 + $0x109] sm:$0xff] }
  0x8e   : > { %10317 = vst [vmem:[#allocation34_spill] sm:$0xff] %v7366_v59  ;;  %v721_v37 = vld [vmem:[#allocation2 + $0x121] sm:$0xff]  ;;  %v751_v38 = vpack.c.bf16 %v719_v32, %v719_v32 }
  0x8f   : > { %10318 = vst [vmem:[#allocation35_spill] sm:$0xff] %v7369_v60  ;;  %v753_v39 = vpack.c.bf16 %v721_v37, %v721_v37  ;;  %v602_v37 = vld [vmem:[#allocation2 + $0x18] sm:$0xff] }
  0x90   : > { %595 = vst.msk [vmem:[#allocation2 + $0x159] sm:$0xff] %vm521_vm0, %v7366_v59  ;;  %v938_v59 = vld [vmem:[#allocation2 + $0xc2] sm:$0xff] }
  0x91   : > { %10319 = vst [vmem:[#allocation36_spill] sm:$0xff] %v7375_v61  ;;  %v723_v40 = vld [vmem:[#allocation2 + $0x139] sm:$0xff]  ;;  %v970_v43 = vpack.c.bf16 %v938_v59, %v938_v59 }
  0x92   : > { %594 = vst.msk [vmem:[#allocation2 + $0x151] sm:$0xff] %vm521_vm0, %v7369_v60  ;;  %827 = vrot.lane.b32.xlu2 %v746_v1, %s6951_s14  ;;  %v755_v46 = vpack.c.bf16 %v723_v40, %v723_v40  ;;  %v611_v40 = vld [vmem:[#allocation2 + $0x80] sm:$0xff] }
  0x93   : > { %596 = vst.msk [vmem:[#allocation2 + $0x169] sm:$0xff] %vm521_vm0, %v7375_v61  ;;  %v722_v44 = vld [vmem:[#allocation2 + $0x129] sm:$0xff] }
  0x94   : > { %10320 = vst [vmem:[#allocation37_spill] sm:$0xff] %v7384_v12  ;;  %825 = vrot.lane.b32.xlu1 %v745_v8, %s6951_s14  ;;  %v724_v47 = vld [vmem:[#allocation2 + $0x141] sm:$0xff]  ;;  %v754_v49 = vpack.c.bf16 %v722_v44, %v722_v44 }
  0x95   : > { %597 = vst.msk [vmem:[#allocation2 + $0x171] sm:$0xff] %vm521_vm0, %v7384_v12  ;;  %829 = vrot.lane.b32.xlu0 %v747_v10, %s6951_s14  ;;  %v756_v53 = vpack.c.bf16 %v724_v47, %v724_v47  ;;  %v608_v10 = vld [vmem:[#allocation2 + $0x60] sm:$0xff]  ;;  %v601_v47 = vld [vmem:[#allocation2 + $0x8] sm:$0xff] }
  0x96   : > { %669 = vst.msk [vmem:[#allocation3 + $0x20] sm:$0xf] %vm664_vm3, %v7397_v48  ;;  %v7411_v23 = vpack.c.bf16 %v608_v10, %v608_v10 }
  0x97   : > { %v726_v54 = vld [vmem:[#allocation2 + $0x159] sm:$0xff]  ;;  %670 = vst.msk [vmem:[#allocation3 + $0x28] sm:$0xf] %vm664_vm3, %v7404_v62 }
  0x98   : > { %v758_v57 = vpack.c.bf16 %v726_v54, %v726_v54  ;;  %673 = vst.msk [vmem:[#allocation3 + $0x40] sm:$0xf] %vm664_vm3, %v7411_v23  ;;  %v7432_v54 = vpack.c.bf16 %v926_v45, %v926_v45  ;;  %v932_v45 = vld [vmem:[#allocation2 + $0x7a] sm:$0xff] }
  0x99   : > { %v725_v55 = vld [vmem:[#allocation2 + $0x151] sm:$0xff]  ;;  %680 = vst.msk [vmem:[#allocation3 + $0x78] sm:$0xf] %vm664_vm3, %v7523_v51 }
  0x9a   : > { %833 = vrot.lane.b32.xlu2 %v749_v21, %s6951_s14  ;;  %v727_v58 = vld [vmem:[#allocation2 + $0x169] sm:$0xff]  ;;  %v757_v63 = vpack.c.bf16 %v725_v55, %v725_v55 }
  0x9b   : > { %v759_v1 = vpack.c.bf16 %v727_v58, %v727_v58  ;;  %v923_v21 = vld [vmem:[#allocation2 + $0xa] sm:$0xff]  ;;  %v7439_v58 = vpack.c.bf16 %v603_v56, %v603_v56 }
  0x9c   : > { %831 = vrot.lane.b32.xlu1 %v748_v24, %s6951_s14  ;;  %v728_v8 = vld [vmem:[#allocation2 + $0x171] sm:$0xff]  ;;  %v632_v24 = vpack.c.bf16 %v600_v15, %v600_v15  ;;  %v955_v29 = vpack.c.bf16 %v923_v21, %v923_v21  ;;  %v606_v15 = vld [vmem:[#allocation2 + $0x48] sm:$0xff] }
  0x9d   : > { %835 = vrot.lane.b32.xlu0 %v750_v27, %s6951_s14  ;;  %v760_v27 = vpack.c.bf16 %v728_v8, %v728_v8  ;;  %v928_v55 = vld [vmem:[#allocation2 + $0x4a] sm:$0xff]  ;;  %v929_v8 = vld [vmem:[#allocation2 + $0x52] sm:$0xff]  ;;  %668 = vst.msk [vmem:[#allocation3 + $0x18] sm:$0xf] %vm664_vm3, %v7439_v58  ;;  %v7454_v21 = vpack.c.bf16 %v606_v15, %v606_v15 }
  0x9e   : > { %665 = vst.msk [vmem:[#allocation3] sm:$0xf] %vm664_vm3, %v632_v24  ;;  %v7444_v2 = vpack.c.bf16 %v928_v55, %v928_v55  ;;  %v7456_v24 = vpack.c.bf16 %v929_v8, %v929_v8 }
  0x9f   : > { %671 = vst.msk [vmem:[#allocation3 + $0x30] sm:$0xf] %vm664_vm3, %v7454_v21 }
  0xa2   : > { %839 = vrot.lane.b32.xlu2 %v752_v35, %s6951_s14  ;;  %v925_v35 = vld [vmem:[#allocation2 + $0x22] sm:$0xff] }
  0xa3   : > { %v7422_v44 = vpack.c.bf16 %v925_v35, %v925_v35 }
  0xa4   : > { %837 = vrot.lane.b32.xlu1 %v751_v38, %s6951_s14  ;;  %v7419_v38 = vpack.c.bf16 %v602_v37, %v602_v37  ;;  %v930_v37 = vld [vmem:[#allocation2 + $0x62] sm:$0xff] }
  0xa5   : > { %841 = vrot.lane.b32.xlu0 %v753_v39, %s6951_s14  ;;  %v924_v39 = vld [vmem:[#allocation2 + $0x1a] sm:$0xff]  ;;  %v7475_v55 = vpack.c.bf16 %v930_v37, %v930_v37 }
  0xa6   : > { %667 = vst.msk [vmem:[#allocation3 + $0x10] sm:$0xf] %vm664_vm3, %v7419_v38  ;;  %v935_v37 = vld [vmem:[#allocation2 + $0x9a] sm:$0xff] }
  0xa7   : > { %v7506_v0 = vpack.c.bf16 %v935_v37, %v935_v37  ;;  %v936_v37 = vld [vmem:[#allocation2 + $0xaa] sm:$0xff] }
  0xaa   : > { %845 = vrot.lane.b32.xlu2 %v755_v46, %s6951_s14  ;;  %v7424_v46 = vpack.c.bf16 %v611_v40, %v611_v40 }
  0xac   : > { %843 = vrot.lane.b32.xlu1 %v754_v49, %s6951_s14  ;;  %v7428_v49 = vpack.c.bf16 %v924_v39, %v924_v39  ;;  %676 = vst.msk [vmem:[#allocation3 + $0x58] sm:$0xf] %vm664_vm3, %v7424_v46  ;;  %v617_v39 = vld [vmem:[#allocation2 + $0xc8] sm:$0xff] }
  0xad   : > { %847 = vrot.lane.b32.xlu0 %v756_v53, %s6951_s14  ;;  %v633_v53 = vpack.c.bf16 %v601_v47, %v601_v47  ;;  %v7471_v47 = vpack.c.bf16 %v617_v39, %v617_v39 }
  0xaf   : > { %666 = vst.msk [vmem:[#allocation3 + $0x8] sm:$0xf] %vm664_vm3, %v633_v53  ;;  %v609_v53 = vld [vmem:[#allocation2 + $0x68] sm:$0xff] }
  0xb0   : > { %682 = vst.msk [vmem:[#allocation3 + $0x88] sm:$0xf] %vm664_vm3, %v7471_v47  ;;  %v7479_v56 = vpack.c.bf16 %v609_v53, %v609_v53 }
  0xb2   : > { %851 = vrot.lane.b32.xlu2 %v758_v57, %s6951_s14  ;;  %674 = vst.msk [vmem:[#allocation3 + $0x48] sm:$0xf] %vm664_vm3, %v7479_v56 }
  0xb4   : > { %849 = vrot.lane.b32.xlu1 %v757_v63, %s6951_s14  ;;  %v927_v63 = vld [vmem:[#allocation2 + $0x3a] sm:$0xff] }
  0xb5   : > { %853 = vrot.lane.b32.xlu0 %v759_v1, %s6951_s14  ;;  %v614_v1 = vld [vmem:[#allocation2 + $0xa8] sm:$0xff] }
  0xb6   : > { %v7446_v10 = vpack.c.bf16 %v614_v1, %v614_v1  ;;  %v610_v1 = vld [vmem:[#allocation2 + $0x78] sm:$0xff] }
  0xb7   : > { %v7489_v15 = vpack.c.bf16 %v610_v1, %v610_v1 }
  0xb8   : > { %v794_v32 = vpop.permute.xlu0 %793  ;;  %679 = vst.msk [vmem:[#allocation3 + $0x70] sm:$0xf] %vm664_vm3, %v7446_v10 }
  0xb9   : > { %890 = vst.msk [vmem:[#allocation3] sm:$0xf] %vm889_vm4, %v794_v32 }
  0xba   : > { %1018 = vrot.lane.b32.xlu2 %v954_v17, %s6952_s29  ;;  %v7450_v17 = vpack.c.bf16 %v927_v63, %v927_v63  ;;  %v934_v63 = vld [vmem:[#allocation2 + $0x92] sm:$0xff]  ;;  %675 = vst.msk [vmem:[#allocation3 + $0x50] sm:$0xf] %vm664_vm3, %v7489_v15 }
  0xbc   : > { %855 = vrot.lane.b32.xlu1 %v760_v27, %s6951_s14  ;;  %v931_v27 = vld [vmem:[#allocation2 + $0x6a] sm:$0xff] }
  0xbd   : > { %1020 = vrot.lane.b32.xlu0 %v955_v29, %s6952_s29  ;;  %v607_v29 = vld [vmem:[#allocation2 + $0x50] sm:$0xff]  ;;  %v7469_v40 = vpack.c.bf16 %v931_v27, %v931_v27  ;;  %v933_v27 = vld [vmem:[#allocation2 + $0x82] sm:$0xff] }
  0xbe   : > { %v7464_v35 = vpack.c.bf16 %v607_v29, %v607_v29  ;;  %v620_v29 = vld [vmem:[#allocation2 + $0xf0] sm:$0xff]  ;;  %v7500_v53 = vpack.c.bf16 %v933_v27, %v933_v27 }
  0xbf   : > { %v7496_v39 = vpack.c.bf16 %v620_v29, %v620_v29 }
  0xc0   : > { %672 = vst.msk [vmem:[#allocation3 + $0x38] sm:$0xf] %vm664_vm3, %v7464_v35 }
  0xc1   : > { %685 = vst.msk [vmem:[#allocation3 + $0xa0] sm:$0xf] %vm664_vm3, %v7496_v39 }
  0xc2   : > { %1024 = vrot.lane.b32.xlu2 %v7422_v44, %s6952_s29 }
  0xc4   : > { %1022 = vrot.lane.b32.xlu1 %v7428_v49, %s6952_s29  ;;  %v802_v57 = vpop.permute.xlu2 %801 }
  0xc5   : > { %1026 = vrot.lane.b32.xlu0 %v7432_v54, %s6952_s29  ;;  %894 = vst.msk [vmem:[#allocation3 + $0x20] sm:$0xf] %vm889_vm4, %v802_v57  ;;  %v7481_v57 = vpack.c.bf16 %v932_v45, %v932_v45  ;;  %v612_v45 = vld [vmem:[#allocation2 + $0x90] sm:$0xff] }
  0xc6   : > { %v7504_v1 = vpack.c.bf16 %v612_v45, %v612_v45  ;;  %v623_v45 = vld [vmem:[#allocation2 + $0x110] sm:$0xff] }
  0xc7   : > { %v655_v60 = vpack.c.bf16 %v623_v45, %v623_v45 }
  0xc8   : > { %677 = vst.msk [vmem:[#allocation3 + $0x60] sm:$0xf] %vm664_vm3, %v7504_v1 }
  0xc9   : > { %688 = vst.msk [vmem:[#allocation3 + $0xb8] sm:$0xf] %vm664_vm3, %v655_v60 }
  0xca   : > { %1030 = vrot.lane.b32.xlu2 %v7444_v2, %s6952_s29 }
  0xcc   : > { %1028 = vrot.lane.b32.xlu1 %v7450_v17, %s6952_s29  ;;  %v804_v32 = vpop.permute.xlu2 %803 }
  0xcd   : > { %1032 = vrot.lane.b32.xlu0 %v7456_v24, %s6952_s29  ;;  %895 = vst.msk [vmem:[#allocation3 + $0x28] sm:$0xf] %vm889_vm4, %v804_v32  ;;  %v7494_v32 = vpack.c.bf16 %v934_v63, %v934_v63  ;;  %v937_v63 = vld [vmem:[#allocation2 + $0xb2] sm:$0xff] }
  0xce   : > { %v969_v61 = vpack.c.bf16 %v937_v63, %v937_v63  ;;  %v940_v63 = vld [vmem:[#allocation2 + $0xda] sm:$0xff] }
  0xcf   : > { %v972_v60 = vpack.c.bf16 %v940_v63, %v940_v63  ;;  %v943_v63 = vld [vmem:[#allocation2 + $0xfa] sm:$0xff] }
  0xd2   : > { %1036 = vrot.lane.b32.xlu2 %v7469_v40, %s6952_s29 }
  0xd4   : > { %1034 = vrot.lane.b32.xlu1 %v7475_v55, %s6952_s29  ;;  %v810_v8 = vpop.permute.xlu2 %809 }
  0xd5   : > { %1038 = vrot.lane.b32.xlu0 %v7481_v57, %s6952_s29  ;;  %898 = vst.msk [vmem:[#allocation3 + $0x40] sm:$0xf] %vm889_vm4, %v810_v8  ;;  %v613_v8 = vld [vmem:[#allocation2 + $0x98] sm:$0xff] }
  0xd6   : > { %v7514_v29 = vpack.c.bf16 %v613_v8, %v613_v8  ;;  %v968_v8 = vpack.c.bf16 %v936_v37, %v936_v37  ;;  %v941_v37 = vld [vmem:[#allocation2 + $0xe2] sm:$0xff] }
  0xd8   : > { %678 = vst.msk [vmem:[#allocation3 + $0x68] sm:$0xf] %vm664_vm3, %v7514_v29 }
  0xda   : > { %1042 = vrot.lane.b32.xlu2 %v7494_v32, %s6952_s29 }
  0xdc   : > { %1040 = vrot.lane.b32.xlu1 %v7500_v53, %s6952_s29  ;;  %v816_v27 = vpop.permute.xlu2 %815 }
  0xdd   : > { %1044 = vrot.lane.b32.xlu0 %v7506_v0, %s6952_s29  ;;  %901 = vst.msk [vmem:[#allocation3 + $0x58] sm:$0xf] %vm889_vm4, %v816_v27  ;;  %v616_v27 = vld [vmem:[#allocation2 + $0xc0] sm:$0xff] }
  0xde   : > { %v798_v12 = vpop.permute.xlu1 %797  ;;  %v7530_v45 = vpack.c.bf16 %v616_v27, %v616_v27  ;;  %v971_v27 = vpack.c.bf16 %v939_v50, %v939_v50  ;;  %v629_v50 = vld [vmem:[#allocation2 + $0x158] sm:$0xff] }
  0xdf   : > { %892 = vst.msk [vmem:[#allocation3 + $0x10] sm:$0xf] %vm889_vm4, %v798_v12  ;;  %v796_v52 = vpop.permute.xlu0 %795 }
  0xe0   : > { %891 = vst.msk [vmem:[#allocation3 + $0x8] sm:$0xf] %vm889_vm4, %v796_v52  ;;  %v626_v52 = vld [vmem:[#allocation2 + $0x138] sm:$0xff] }
  0xe1   : > { %681 = vst.msk [vmem:[#allocation3 + $0x80] sm:$0xf] %vm664_vm3, %v7530_v45 }
  0xe2   : > { %1048 = vrot.lane.b32.xlu2 %v969_v61, %s6952_s29  ;;  %v658_v61 = vpack.c.bf16 %v626_v52, %v626_v52 }
  0xe4   : > { %1046 = vrot.lane.b32.xlu1 %v968_v8, %s6952_s29  ;;  %v822_v12 = vpop.permute.xlu2 %821  ;;  %v618_v8 = vld [vmem:[#allocation2 + $0xd8] sm:$0xff]  ;;  %691 = vst.msk [vmem:[#allocation3 + $0xd0] sm:$0xf] %vm664_vm3, %v658_v61  ;;  %v975_v61 = vpack.c.bf16 %v943_v63, %v943_v63  ;;  %v946_v63 = vld [vmem:[#allocation2 + $0x122] sm:$0xff] }
  0xe5   : > { %1050 = vrot.lane.b32.xlu0 %v970_v43, %s6952_s29  ;;  %904 = vst.msk [vmem:[#allocation3 + $0x70] sm:$0xf] %vm889_vm4, %v822_v12  ;;  %v7538_v42 = vpack.c.bf16 %v618_v8, %v618_v8  ;;  %v973_v43 = vpack.c.bf16 %v941_v37, %v941_v37  ;;  %v619_v12 = vld [vmem:[#allocation2 + $0xe0] sm:$0xff]  ;;  %v944_v8 = vld [vmem:[#allocation2 + $0x10a] sm:$0xff] }
  0xe6   : > { %v800_v59 = vpop.permute.xlu1 %799 }
  0xe7   : > { %893 = vst.msk [vmem:[#allocation3 + $0x18] sm:$0xf] %vm889_vm4, %v800_v59  ;;  %v806_v41 = vpop.permute.xlu0 %805  ;;  %v7545_v59 = vpack.c.bf16 %v619_v12, %v619_v12 }
  0xe8   : > { %896 = vst.msk [vmem:[#allocation3 + $0x30] sm:$0xf] %vm889_vm4, %v806_v41  ;;  %v942_v41 = vld [vmem:[#allocation2 + $0xf2] sm:$0xff] }
  0xe9   : > { %683 = vst.msk [vmem:[#allocation3 + $0x90] sm:$0xf] %vm664_vm3, %v7538_v42  ;;  %v974_v12 = vpack.c.bf16 %v942_v41, %v942_v41 }
  0xea   : > { %1054 = vrot.lane.b32.xlu2 %v972_v60, %s6952_s29  ;;  %v661_v60 = vpack.c.bf16 %v629_v50, %v629_v50  ;;  %684 = vst.msk [vmem:[#allocation3 + $0x98] sm:$0xf] %vm664_vm3, %v7545_v59 }
  0xec   : > { %1052 = vrot.lane.b32.xlu1 %v971_v27, %s6952_s29  ;;  %v828_v52 = vpop.permute.xlu2 %827  ;;  %v621_v27 = vld [vmem:[#allocation2 + $0xf8] sm:$0xff]  ;;  %694 = vst.msk [vmem:[#allocation3 + $0xe8] sm:$0xf] %vm664_vm3, %v661_v60 }
  0xed   : > { %1056 = vrot.lane.b32.xlu0 %v973_v43, %s6952_s29  ;;  %907 = vst.msk [vmem:[#allocation3 + $0x88] sm:$0xf] %vm889_vm4, %v828_v52  ;;  %v653_v33 = vpack.c.bf16 %v621_v27, %v621_v27  ;;  %v976_v43 = vpack.c.bf16 %v944_v8, %v944_v8  ;;  %v622_v52 = vld [vmem:[#allocation2 + $0x108] sm:$0xff] }
  0xee   : > { %v808_v37 = vpop.permute.xlu1 %807  ;;  %v654_v34 = vpack.c.bf16 %v622_v52, %v622_v52  ;;  %v947_v8 = vld [vmem:[#allocation2 + $0x12a] sm:$0xff] }
  0xef   : > { %897 = vst.msk [vmem:[#allocation3 + $0x38] sm:$0xf] %vm889_vm4, %v808_v37  ;;  %v812_v36 = vpop.permute.xlu0 %811  ;;  %v978_v37 = vpack.c.bf16 %v946_v63, %v946_v63  ;;  %v625_v52 = vld [vmem:[#allocation2 + $0x128] sm:$0xff] }
  0xf0   : > { %899 = vst.msk [vmem:[#allocation3 + $0x48] sm:$0xf] %vm889_vm4, %v812_v36  ;;  %v945_v36 = vld [vmem:[#allocation2 + $0x112] sm:$0xff] }
  0xf1   : > { %686 = vst.msk [vmem:[#allocation3 + $0xa8] sm:$0xf] %vm664_vm3, %v653_v33  ;;  %v624_v33 = vld [vmem:[#allocation2 + $0x120] sm:$0xff]  ;;  %v977_v60 = vpack.c.bf16 %v945_v36, %v945_v36  ;;  %v950_v36 = vld [vmem:[#allocation2 + $0x152] sm:$0xff] }
  0xf2   : > { %1060 = vrot.lane.b32.xlu2 %v975_v61, %s6952_s29  ;;  %687 = vst.msk [vmem:[#allocation3 + $0xb0] sm:$0xf] %vm664_vm3, %v654_v34  ;;  %v656_v27 = vpack.c.bf16 %v624_v33, %v624_v33  ;;  %v948_v34 = vld [vmem:[#allocation2 + $0x13a] sm:$0xff] }
  0xf3   : > { %v980_v33 = vpack.c.bf16 %v948_v34, %v948_v34  ;;  %v953_v34 = vld [vmem:[#allocation2 + $0x172] sm:$0xff] }
  0xf4   : > { %1058 = vrot.lane.b32.xlu1 %v974_v12, %s6952_s29  ;;  %v834_v50 = vpop.permute.xlu2 %833  ;;  %v979_v12 = vpack.c.bf16 %v947_v8, %v947_v8  ;;  %689 = vst.msk [vmem:[#allocation3 + $0xc0] sm:$0xf] %vm664_vm3, %v656_v27  ;;  %v627_v8 = vld [vmem:[#allocation2 + $0x140] sm:$0xff]  ;;  %v982_v27 = vpack.c.bf16 %v950_v36, %v950_v36  ;;  %v630_v36 = vld [vmem:[#allocation2 + $0x168] sm:$0xff] }
  0xf5   : > { %1062 = vrot.lane.b32.xlu0 %v976_v43, %s6952_s29  ;;  %910 = vst.msk [vmem:[#allocation3 + $0xa0] sm:$0xf] %vm889_vm4, %v834_v50  ;;  %v949_v43 = vld [vmem:[#allocation2 + $0x142] sm:$0xff]  ;;  %v657_v50 = vpack.c.bf16 %v625_v52, %v625_v52  ;;  %v628_v52 = vld [vmem:[#allocation2 + $0x150] sm:$0xff] }
  0xf6   : > { %v814_v41 = vpop.permute.xlu1 %813 }
  0xf7   : > { %900 = vst.msk [vmem:[#allocation3 + $0x50] sm:$0xf] %vm889_vm4, %v814_v41  ;;  %v818_v61 = vpop.permute.xlu0 %817 }
  0xf8   : > { %902 = vst.msk [vmem:[#allocation3 + $0x60] sm:$0xf] %vm889_vm4, %v818_v61  ;;  %v981_v61 = vpack.c.bf16 %v949_v43, %v949_v43 }
  0xf9   : > { %690 = vst.msk [vmem:[#allocation3 + $0xc8] sm:$0xf] %vm664_vm3, %v657_v50  ;;  %v951_v50 = vld [vmem:[#allocation2 + $0x15a] sm:$0xff] }
  0xfa   : > { %1066 = vrot.lane.b32.xlu2 %v978_v37, %s6952_s29 }
  0xfc   : > { %1064 = vrot.lane.b32.xlu1 %v977_v60, %s6952_s29  ;;  %v840_v63 = vpop.permute.xlu2 %839  ;;  %v659_v60 = vpack.c.bf16 %v627_v8, %v627_v8  ;;  %v983_v8 = vpack.c.bf16 %v951_v50, %v951_v50 }
  0xfd   : > { %1068 = vrot.lane.b32.xlu0 %v979_v12, %s6952_s29  ;;  %913 = vst.msk [vmem:[#allocation3 + $0xb8] sm:$0xf] %vm889_vm4, %v840_v63  ;;  %v952_v12 = vld [vmem:[#allocation2 + $0x16a] sm:$0xff]  ;;  %v660_v63 = vpack.c.bf16 %v628_v52, %v628_v52 }
  0xfe   : > { %v820_v41 = vpop.permute.xlu1 %819  ;;  %692 = vst.msk [vmem:[#allocation3 + $0xd8] sm:$0xf] %vm664_vm3, %v659_v60  ;;  %v985_v60 = vpack.c.bf16 %v953_v34, %v953_v34 }
  0xff   : > { %903 = vst.msk [vmem:[#allocation3 + $0x68] sm:$0xf] %vm889_vm4, %v820_v41  ;;  %v824_v37 = vpop.permute.xlu0 %823 }
 0x100   : > { %905 = vst.msk [vmem:[#allocation3 + $0x78] sm:$0xf] %vm889_vm4, %v824_v37  ;;  %v984_v37 = vpack.c.bf16 %v952_v12, %v952_v12 }
 0x101   : > { %693 = vst.msk [vmem:[#allocation3 + $0xe0] sm:$0xf] %vm664_vm3, %v660_v63 }
 0x102   : > { %1072 = vrot.lane.b32.xlu2 %v981_v61, %s6952_s29 }
 0x104   : > { %1070 = vrot.lane.b32.xlu1 %v980_v33, %s6952_s29  ;;  %v846_v43 = vpop.permute.xlu2 %845  ;;  %v662_v33 = vpack.c.bf16 %v630_v36, %v630_v36 }
 0x105   : > { %1074 = vrot.lane.b32.xlu0 %v982_v27, %s6952_s29  ;;  %916 = vst.msk [vmem:[#allocation3 + $0xd0] sm:$0xf] %vm889_vm4, %v846_v43  ;;  %v631_v27 = vld [vmem:[#allocation2 + $0x170] sm:$0xff] }
 0x106   : > { %v826_v41 = vpop.permute.xlu1 %825  ;;  %695 = vst.msk [vmem:[#allocation3 + $0xf0] sm:$0xf] %vm664_vm3, %v662_v33  ;;  %v663_v52 = vpack.c.bf16 %v631_v27, %v631_v27 }
 0x107   : > { %906 = vst.msk [vmem:[#allocation3 + $0x80] sm:$0xf] %vm889_vm4, %v826_v41  ;;  %v830_v61 = vpop.permute.xlu0 %829 }
 0x108   : > { %908 = vst.msk [vmem:[#allocation3 + $0x90] sm:$0xf] %vm889_vm4, %v830_v61 }
 0x109   : > { %696 = vst.msk [vmem:[#allocation3 + $0xf8] sm:$0xf] %vm664_vm3, %v663_v52 }
 0x10a   : > { %1078 = vrot.lane.b32.xlu2 %v984_v37, %s6952_s29 }
 0x10c   : > { %1076 = vrot.lane.b32.xlu1 %v983_v8, %s6952_s29  ;;  %v852_v12 = vpop.permute.xlu2 %851 }
 0x10d   : > { %1080 = vrot.lane.b32.xlu0 %v985_v60, %s6952_s29  ;;  %919 = vst.msk [vmem:[#allocation3 + $0xe8] sm:$0xf] %vm889_vm4, %v852_v12 }
 0x10e   : > { %v832_v43 = vpop.permute.xlu1 %831 }
 0x10f   : > { %909 = vst.msk [vmem:[#allocation3 + $0x98] sm:$0xf] %vm889_vm4, %v832_v43  ;;  %v836_v63 = vpop.permute.xlu0 %835 }
 0x110   : > { %911 = vst.msk [vmem:[#allocation3 + $0xa8] sm:$0xf] %vm889_vm4, %v836_v63 }
 0x112   : > { %1245 = vrot.lane.b32.xlu2 %v7439_v58, %s6953_s15 }
 0x114   : > { %1243 = vrot.lane.b32.xlu1 %v7419_v38, %s6953_s15  ;;  %v1019_v50 = vpop.permute.xlu2 %1018 }
 0x115   : > { %1247 = vrot.lane.b32.xlu0 %v7397_v48, %s6953_s15  ;;  %1115 = vst.msk [vmem:[#allocation3] sm:$0xf] %vm1114_vm5, %v1019_v50 }
 0x116   : > { %v838_v41 = vpop.permute.xlu1 %837 }
 0x117   : > { %912 = vst.msk [vmem:[#allocation3 + $0xb0] sm:$0xf] %vm889_vm4, %v838_v41  ;;  %v842_v37 = vpop.permute.xlu0 %841 }
 0x118   : > { %914 = vst.msk [vmem:[#allocation3 + $0xc0] sm:$0xf] %vm889_vm4, %v842_v37 }
 0x11a   : > { %1251 = vrot.lane.b32.xlu2 %v7454_v21, %s6953_s15 }
 0x11c   : > { %1249 = vrot.lane.b32.xlu1 %v7404_v62, %s6953_s15  ;;  %v1025_v58 = vpop.permute.xlu2 %1024 }
 0x11d   : > { %1253 = vrot.lane.b32.xlu0 %v7464_v35, %s6953_s15  ;;  %1118 = vst.msk [vmem:[#allocation3 + $0x18] sm:$0xf] %vm1114_vm5, %v1025_v58 }
 0x11e   : > { %v844_v38 = vpop.permute.xlu1 %843 }
 0x11f   : > { %915 = vst.msk [vmem:[#allocation3 + $0xc8] sm:$0xf] %vm889_vm4, %v844_v38  ;;  %v848_v34 = vpop.permute.xlu0 %847 }
 0x120   : > { %917 = vst.msk [vmem:[#allocation3 + $0xd8] sm:$0xf] %vm889_vm4, %v848_v34  ;;  %v2049_v34 = vld [vmem:[#allocation2 + $0x39] sm:$0xff] }
 0x122   : > { %1257 = vrot.lane.b32.xlu2 %v7479_v56, %s6953_s15 }
 0x124   : > { %1255 = vrot.lane.b32.xlu1 %v7411_v23, %s6953_s15  ;;  %v1031_v61 = vpop.permute.xlu2 %1030 }
 0x125   : > { %1259 = vrot.lane.b32.xlu0 %v7489_v15, %s6953_s15  ;;  %1121 = vst.msk [vmem:[#allocation3 + $0x30] sm:$0xf] %vm1114_vm5, %v1031_v61 }
 0x126   : > { %v850_v36 = vpop.permute.xlu1 %849 }
 0x127   : > { %918 = vst.msk [vmem:[#allocation3 + $0xe0] sm:$0xf] %vm889_vm4, %v850_v36  ;;  %v854_v8 = vpop.permute.xlu0 %853 }
 0x128   : > { %920 = vst.msk [vmem:[#allocation3 + $0xf0] sm:$0xf] %vm889_vm4, %v854_v8 }
 0x12a   : > { %1263 = vrot.lane.b32.xlu2 %v7504_v1, %s6953_s15 }
 0x12c   : > { %1261 = vrot.lane.b32.xlu1 %v7424_v46, %s6953_s15  ;;  %v1037_v33 = vpop.permute.xlu2 %1036 }
 0x12d   : > { %1265 = vrot.lane.b32.xlu0 %v7514_v29, %s6953_s15  ;;  %1124 = vst.msk [vmem:[#allocation3 + $0x48] sm:$0xf] %vm1114_vm5, %v1037_v33 }
 0x12e   : > { %v856_v60 = vpop.permute.xlu1 %855 }
 0x12f   : > { %921 = vst.msk [vmem:[#allocation3 + $0xf8] sm:$0xf] %vm889_vm4, %v856_v60  ;;  %v1021_v27 = vpop.permute.xlu0 %1020  ;;  %v2051_v60 = vld [vmem:[#allocation2 + $0x51] sm:$0xff]  ;;  %vm5610_vm4 = vcmask 1041408  }
 0x130   : > { %1116 = vst.msk [vmem:[#allocation3 + $0x8] sm:$0xf] %vm1114_vm5, %v1021_v27 }
 0x132   : > { %1269 = vrot.lane.b32.xlu2 %v7523_v51, %s6953_s15 }
 0x134   : > { %1267 = vrot.lane.b32.xlu1 %v7446_v10, %s6953_s15  ;;  %v1043_v12 = vpop.permute.xlu2 %1042 }
 0x135   : > { %1271 = vrot.lane.b32.xlu0 %v7530_v45, %s6953_s15  ;;  %1127 = vst.msk [vmem:[#allocation3 + $0x60] sm:$0xf] %vm1114_vm5, %v1043_v12 }
 0x136   : > { %v1023_v52 = vpop.permute.xlu1 %1022 }
 0x137   : > { %1117 = vst.msk [vmem:[#allocation3 + $0x10] sm:$0xf] %vm1114_vm5, %v1023_v52  ;;  %v1027_v43 = vpop.permute.xlu0 %1026  ;;  %v2083_v52 = vpack.c.bf16 %v2051_v60, %v2051_v60 }
 0x138   : > { %1119 = vst.msk [vmem:[#allocation3 + $0x20] sm:$0xf] %vm1114_vm5, %v1027_v43 }
 0x13a   : > { %1275 = vrot.lane.b32.xlu2 %v7538_v42, %s6953_s15 }
 0x13c   : > { %1273 = vrot.lane.b32.xlu1 %v7471_v47, %s6953_s15  ;;  %v1049_v63 = vpop.permute.xlu2 %1048 }
 0x13d   : > { %1277 = vrot.lane.b32.xlu0 %v7545_v59, %s6953_s15  ;;  %1130 = vst.msk [vmem:[#allocation3 + $0x78] sm:$0xf] %vm1114_vm5, %v1049_v63 }
 0x13e   : > { %v1029_v50 = vpop.permute.xlu1 %1028 }
 0x13f   : > { %1120 = vst.msk [vmem:[#allocation3 + $0x28] sm:$0xf] %vm1114_vm5, %v1029_v50  ;;  %v1033_v41 = vpop.permute.xlu0 %1032 }
 0x140   : > { %1122 = vst.msk [vmem:[#allocation3 + $0x38] sm:$0xf] %vm1114_vm5, %v1033_v41 }
 0x142   : > { %1468 = vrot.lane.b32.xlu2 %v7252_v14, %s6954_s17  ;;  %v2048_v14 = vld [vmem:[#allocation2 + $0x31] sm:$0xff] }
 0x143   : > { %v2080_v38 = vpack.c.bf16 %v2048_v14, %v2048_v14 }
 0x144   : > { %1279 = vrot.lane.b32.xlu1 %v7496_v39, %s6953_s15  ;;  %v1055_v47 = vpop.permute.xlu2 %1054 }
 0x145   : > { %1470 = vrot.lane.b32.xlu0 %v7287_v26, %s6954_s17  ;;  %1133 = vst.msk [vmem:[#allocation3 + $0x90] sm:$0xf] %vm1114_vm5, %v1055_v47  ;;  %v2052_v47 = vld [vmem:[#allocation2 + $0x61] sm:$0xff] }
 0x146   : > { %v1035_v37 = vpop.permute.xlu1 %1034 }
 0x147   : > { %1123 = vst.msk [vmem:[#allocation3 + $0x40] sm:$0xf] %vm1114_vm5, %v1035_v37  ;;  %v1039_v58 = vpop.permute.xlu0 %1038 }
 0x148   : > { %1125 = vst.msk [vmem:[#allocation3 + $0x50] sm:$0xf] %vm1114_vm5, %v1039_v58  ;;  %v2084_v58 = vpack.c.bf16 %v2052_v47, %v2052_v47 }
 0x14a   : > { %1695 = vrot.lane.b32.xlu2 %v7422_v44, %s6955_s24  ;;  %v2081_v44 = vpack.c.bf16 %v2049_v34, %v2049_v34  ;;  %v2054_v34 = vld [vmem:[#allocation2 + $0x79] sm:$0xff] }
 0x14c   : > { %1693 = vrot.lane.b32.xlu1 %v7428_v49, %s6955_s24  ;;  %v1061_v39 = vpop.permute.xlu2 %1060 }
 0x14d   : > { %1919 = vrot.lane.b32.xlu0 %v7397_v48, %s6956_s22  ;;  %1136 = vst.msk [vmem:[#allocation3 + $0xa8] sm:$0xf] %vm1114_vm5, %v1061_v39 }
 0x14e   : > { %v1041_v26 = vpop.permute.xlu1 %1040 }
 0x14f   : > { %1126 = vst.msk [vmem:[#allocation3 + $0x58] sm:$0xf] %vm1114_vm5, %v1041_v26  ;;  %v1045_v61 = vpop.permute.xlu0 %1044 }
 0x150   : > { %1128 = vst.msk [vmem:[#allocation3 + $0x68] sm:$0xf] %vm1114_vm5, %v1045_v61 }
 0x152   : > { %2144 = vrot.lane.b32.xlu2 %v2080_v38, %s6957_s23 }
 0x154   : > { %1921 = vrot.lane.b32.xlu1 %v7404_v62, %s6956_s22  ;;  %v1067_v49 = vpop.permute.xlu2 %1066 }
 0x155   : > { %2146 = vrot.lane.b32.xlu0 %v2081_v44, %s6957_s23  ;;  %1139 = vst.msk [vmem:[#allocation3 + $0xc0] sm:$0xf] %vm1114_vm5, %v1067_v49  ;;  %v2086_v49 = vpack.c.bf16 %v2054_v34, %v2054_v34 }
 0x156   : > { %v1047_v48 = vpop.permute.xlu1 %1046 }
 0x157   : > { %1129 = vst.msk [vmem:[#allocation3 + $0x70] sm:$0xf] %vm1114_vm5, %v1047_v48  ;;  %v1051_v36 = vpop.permute.xlu0 %1050  ;;  %v2055_v48 = vld [vmem:[#allocation2 + $0x81] sm:$0xff] }
 0x158   : > { %1131 = vst.msk [vmem:[#allocation3 + $0x80] sm:$0xf] %vm1114_vm5, %v1051_v36 }
 0x15a   : > { %1474 = vrot.lane.b32.xlu2 %v2081_v44, %s6954_s17 }
 0x15c   : > { %1472 = vrot.lane.b32.xlu1 %v2080_v38, %s6954_s17  ;;  %v1073_v8 = vpop.permute.xlu2 %1072 }
 0x15d   : > { %1697 = vrot.lane.b32.xlu0 %v7432_v54, %s6955_s24  ;;  %1142 = vst.msk [vmem:[#allocation3 + $0xd8] sm:$0xf] %vm1114_vm5, %v1073_v8  ;;  %v2050_v54 = vld [vmem:[#allocation2 + $0x49] sm:$0xff]  ;;  %v2087_v8 = vpack.c.bf16 %v2055_v48, %v2055_v48 }
 0x15e   : > { %v1053_v62 = vpop.permute.xlu1 %1052  ;;  %v2082_v63 = vpack.c.bf16 %v2050_v54, %v2050_v54 }
 0x15f   : > { %1132 = vst.msk [vmem:[#allocation3 + $0x88] sm:$0xf] %vm1114_vm5, %v1053_v62  ;;  %v1057_v33 = vpop.permute.xlu0 %1056 }
 0x160   : > { %1134 = vst.msk [vmem:[#allocation3 + $0x98] sm:$0xf] %vm1114_vm5, %v1057_v33 }
 0x162   : > { %1923 = vrot.lane.b32.xlu2 %v7454_v21, %s6956_s22 }
 0x164   : > { %1699 = vrot.lane.b32.xlu1 %v7450_v17, %s6955_s24  ;;  %v1079_v27 = vpop.permute.xlu2 %1078 }
 0x165   : > { %1925 = vrot.lane.b32.xlu0 %v7464_v35, %s6956_s22  ;;  %1145 = vst.msk [vmem:[#allocation3 + $0xf0] sm:$0xf] %vm1114_vm5, %v1079_v27  ;;  %v6686_v27 = vld [vmem:[%s10321_s1 + $0x20] sm:$0xff] }
 0x166   : > { %v1059_v12 = vpop.permute.xlu1 %1058 }
 0x167   : > { %1135 = vst.msk [vmem:[#allocation3 + $0xa0] sm:$0xf] %vm1114_vm5, %v1059_v12  ;;  %v1063_v43 = vpop.permute.xlu0 %1062 }
 0x168   : > { %1137 = vst.msk [vmem:[#allocation3 + $0xb0] sm:$0xf] %vm1114_vm5, %v1063_v43 }
 0x16a   : > { %2150 = vrot.lane.b32.xlu2 %v2083_v52, %s6957_s23 }
 0x16c   : > { %2148 = vrot.lane.b32.xlu1 %v2082_v63, %s6957_s23  ;;  %v1246_v17 = vpop.permute.xlu2 %1245 }
 0x16d   : > { %1476 = vrot.lane.b32.xlu0 %v2082_v63, %s6954_s17  ;;  %1341 = vst.msk [vmem:[#allocation3 + $0x8] sm:$0xf] %vm1339_vm6, %v1246_v17  ;;  %v2056_v63 = vld [vmem:[#allocation2 + $0x91] sm:$0xff] }
 0x16e   : > { %v1065_v21 = vpop.permute.xlu1 %1064  ;;  %v6684_v17 = vld [vmem:[%s10321_s1 + $0x10] sm:$0xff] }
 0x16f   : > { %1138 = vst.msk [vmem:[#allocation3 + $0xb8] sm:$0xf] %vm1114_vm5, %v1065_v21  ;;  %v1069_v35 = vpop.permute.xlu0 %1068  ;;  %v2273_v21 = vld [vmem:[#allocation2 + $0x32] sm:$0xff] }
 0x170   : > { %1140 = vst.msk [vmem:[#allocation3 + $0xc8] sm:$0xf] %vm1114_vm5, %v1069_v35  ;;  %v2274_v35 = vld [vmem:[#allocation2 + $0x3a] sm:$0xff]  ;;  %v2305_v47 = vpack.c.bf16 %v2273_v21, %v2273_v21 }
 0x171   : > { %v2060_v21 = vld [vmem:[#allocation2 + $0xc1] sm:$0xff] }
 0x172   : > { %1701 = vrot.lane.b32.xlu2 %v7444_v2, %s6955_s24  ;;  %2337 = vst.msk [vmem:[#allocation3 + $0x4] sm:$0xf] %vm664_vm3, %v2305_v47  ;;  %v1836_v47 = vld [vmem:[#allocation2 + $0xc8] sm:$0xff] }
 0x174   : > { %1478 = vrot.lane.b32.xlu1 %v2083_v52, %s6954_s17  ;;  %v1252_v50 = vpop.permute.xlu2 %1251  ;;  %v6685_v52 = vld [vmem:[%s10321_s1 + $0x18] sm:$0xff] }
 0x175   : > { %1703 = vrot.lane.b32.xlu0 %v7456_v24, %s6955_s24  ;;  %1344 = vst.msk [vmem:[#allocation3 + $0x20] sm:$0xf] %vm1339_vm6, %v1252_v50  ;;  %v2053_v24 = vld [vmem:[#allocation2 + $0x69] sm:$0xff] }
 0x176   : > { %v1071_v41 = vpop.permute.xlu1 %1070  ;;  %v2085_v26 = vpack.c.bf16 %v2053_v24, %v2053_v24  ;;  %v1609_v24 = vld [vmem:[#allocation2 + $0xaa] sm:$0xff] }
 0x177   : > { %1141 = vst.msk [vmem:[#allocation3 + $0xd0] sm:$0xf] %vm1114_vm5, %v1071_v41  ;;  %v1075_v37 = vpop.permute.xlu0 %1074 }
 0x178   : > { %1143 = vst.msk [vmem:[#allocation3 + $0xe0] sm:$0xf] %vm1114_vm5, %v1075_v37 }
 0x179   : > { %v6650_v34 = vld [vmem:[#allocation3 + $0x4] sm:$0xf] }
 0x17a   : > { %1929 = vrot.lane.b32.xlu2 %v7479_v56, %s6956_s22 }
 0x17c   : > { %1927 = vrot.lane.b32.xlu1 %v7411_v23, %s6956_s22  ;;  %v1258_v2 = vpop.permute.xlu2 %1257 }
 0x17d   : > { %2152 = vrot.lane.b32.xlu0 %v2084_v58, %s6957_s23  ;;  %1347 = vst.msk [vmem:[#allocation3 + $0x38] sm:$0xf] %vm1339_vm6, %v1258_v2 }
 0x17e   : > { %v1077_v14 = vpop.permute.xlu1 %1076 }
 0x17f   : > { %1144 = vst.msk [vmem:[#allocation3 + $0xe8] sm:$0xf] %vm1114_vm5, %v1077_v14  ;;  %v1081_v39 = vpop.permute.xlu0 %1080  ;;  %v7765_v14 = vpack.c.bf16 %v1609_v24, %v1609_v24  ;;  %v1868_v24 = vpack.c.bf16 %v1836_v47, %v1836_v47 }
 0x180   : > { %1146 = vst.msk [vmem:[#allocation3 + $0xf8] sm:$0xf] %vm1114_vm5, %v1081_v39  ;;  %vm5606_vm5 = vcmask 15360  }
 0x181   : > { %2347 = vst.msk [vmem:[#allocation3 + $0x54] sm:$0xf] %vm664_vm3, %v7765_v14 }
 0x182   : > { %1480 = vrot.lane.b32.xlu2 %v2084_v58, %s6954_s17  ;;  %v1610_v58 = vld [vmem:[#allocation2 + $0xb2] sm:$0xff] }
 0x183   : > { %v7761_v2 = vpack.c.bf16 %v1610_v58, %v1610_v58 }
 0x184   : > { %2154 = vrot.lane.b32.xlu1 %v2085_v26, %s6957_s23  ;;  %v1264_v56 = vpop.permute.xlu2 %1263 }
 0x185   : > { %1482 = vrot.lane.b32.xlu0 %v2085_v26, %s6954_s17  ;;  %1350 = vst.msk [vmem:[#allocation3 + $0x50] sm:$0xf] %vm1339_vm6, %v1264_v56  ;;  %v6682_v26 = vld [vmem:[%s10321_s1] sm:$0xff] }
 0x186   : > { %v1244_v23 = vpop.permute.xlu1 %1243  ;;  %2348 = vst.msk [vmem:[#allocation3 + $0x5c] sm:$0xf] %vm664_vm3, %v7761_v2  ;;  %v6690_v56 = vld [vmem:[%s10321_s1 + $0x40] sm:$0xff] }
 0x187   : > { %1340 = vst.msk [vmem:[#allocation3] sm:$0xf] %vm1339_vm6, %v1244_v23  ;;  %v1248_v38 = vpop.permute.xlu0 %1247  ;;  %2761 = vmatpush.bf16.msra.mxu1 %v6690_v56  ;;  %6758 = vmatpush.bf16.msra.mxu2 %v6690_v56 }
 0x188   : > { %1342 = vst.msk [vmem:[#allocation3 + $0x10] sm:$0xf] %vm1339_vm6, %v1248_v38 }
 0x18a   : > { %1707 = vrot.lane.b32.xlu2 %v7469_v40, %s6955_s24  ;;  %v6689_v40 = vld [vmem:[%s10321_s1 + $0x38] sm:$0xff] }
 0x18b   : > { %2665 = vmatpush.bf16.msra.mxu0 %v6689_v40 }
 0x18c   : > { %1705 = vrot.lane.b32.xlu1 %v7475_v55, %s6955_s24  ;;  %v1270_v61 = vpop.permute.xlu2 %1269 }
 0x18d   : > { %1931 = vrot.lane.b32.xlu0 %v7489_v15, %s6956_s22  ;;  %1353 = vst.msk [vmem:[#allocation3 + $0x68] sm:$0xf] %vm1339_vm6, %v1270_v61  ;;  %v6688_v15 = vld [vmem:[%s10321_s1 + $0x30] sm:$0xff] }
 0x18e   : > { %v1250_v44 = vpop.permute.xlu1 %1249 }
 0x18f   : > { %1343 = vst.msk [vmem:[#allocation3 + $0x18] sm:$0xf] %vm1339_vm6, %v1250_v44  ;;  %v1254_v36 = vpop.permute.xlu0 %1253  ;;  %2666 = vmatpush.bf16.msra.mxu0 %v6688_v15  ;;  %v2275_v15 = vld [vmem:[#allocation2 + $0x4a] sm:$0xff] }
 0x190   : > { %1345 = vst.msk [vmem:[#allocation3 + $0x28] sm:$0xf] %vm1339_vm6, %v1254_v36  ;;  %v2058_v36 = vld [vmem:[#allocation2 + $0xa9] sm:$0xff] }
 0x192   : > { %2156 = vrot.lane.b32.xlu2 %v2086_v49, %s6957_s23 }
 0x194   : > { %1933 = vrot.lane.b32.xlu1 %v7424_v46, %s6956_s22  ;;  %v1276_v55 = vpop.permute.xlu2 %1275  ;;  %v6687_v46 = vld [vmem:[%s10321_s1 + $0x28] sm:$0xff] }
 0x195   : > { %2158 = vrot.lane.b32.xlu0 %v2087_v8, %s6957_s23  ;;  %1356 = vst.msk [vmem:[#allocation3 + $0x80] sm:$0xf] %vm1339_vm6, %v1276_v55  ;;  %2667 = vmatpush.bf16.msra.mxu0 %v6687_v46 }
 0x196   : > { %v1256_v62 = vpop.permute.xlu1 %1255 }
 0x197   : > { %1346 = vst.msk [vmem:[#allocation3 + $0x30] sm:$0xf] %vm1339_vm6, %v1256_v62  ;;  %v1260_v33 = vpop.permute.xlu0 %1259  ;;  %v2276_v62 = vld [vmem:[#allocation2 + $0x52] sm:$0xff] }
 0x198   : > { %1348 = vst.msk [vmem:[#allocation3 + $0x40] sm:$0xf] %vm1339_vm6, %v1260_v33  ;;  %v2059_v33 = vld [vmem:[#allocation2 + $0xb1] sm:$0xff] }
 0x199   : > { %2668 = vmatpush.bf16.msra.mxu0 %v6686_v27  ;;  %v2308_v27 = vpack.c.bf16 %v2276_v62, %v2276_v62 }
 0x19a   : > { %1486 = vrot.lane.b32.xlu2 %v2087_v8, %s6954_s17  ;;  %v1611_v8 = vld [vmem:[#allocation2 + $0xc2] sm:$0xff] }
 0x19b   : > { %v7794_v55 = vpack.c.bf16 %v1611_v8, %v1611_v8  ;;  %2340 = vst.msk [vmem:[#allocation3 + $0x1c] sm:$0xf] %vm664_vm3, %v2308_v27 }
 0x19c   : > { %1484 = vrot.lane.b32.xlu1 %v2086_v49, %s6954_s17  ;;  %v1469_v60 = vpop.permute.xlu2 %1468 }
 0x19d   : > { %1709 = vrot.lane.b32.xlu0 %v7481_v57, %s6955_s24  ;;  %1565 = vst.msk [vmem:[#allocation3] sm:$0xf] %vm1564_vm7, %v1469_v60  ;;  %v2057_v57 = vld [vmem:[#allocation2 + $0x99] sm:$0xff]  ;;  %2669 = vmatpush.bf16.msra.mxu0 %v6685_v52  ;;  %v2307_v60 = vpack.c.bf16 %v2275_v15, %v2275_v15  ;;  %v2063_v15 = vld [vmem:[#allocation2 + $0xe1] sm:$0xff] }
 0x19e   : > { %v1262_v54 = vpop.permute.xlu1 %1261  ;;  %v2089_v41 = vpack.c.bf16 %v2057_v57, %v2057_v57  ;;  %2349 = vst.msk [vmem:[#allocation3 + $0x64] sm:$0xf] %vm664_vm3, %v7794_v55 }
 0x19f   : > { %1349 = vst.msk [vmem:[#allocation3 + $0x48] sm:$0xf] %vm1339_vm6, %v1262_v54  ;;  %v1266_v12 = vpop.permute.xlu0 %1265  ;;  %v1612_v54 = vld [vmem:[#allocation2 + $0xca] sm:$0xff] }
 0x1a0   : > { %1351 = vst.msk [vmem:[#allocation3 + $0x58] sm:$0xf] %vm1339_vm6, %v1266_v12  ;;  %v7805_v12 = vpack.c.bf16 %v1612_v54, %v1612_v54  ;;  %v2095_v54 = vpack.c.bf16 %v2063_v15, %v2063_v15 }
 0x1a1   : > { %2670 = vmatpush.bf16.msra.mxu0 %v6684_v17  ;;  %2339 = vst.msk [vmem:[#allocation3 + $0x14] sm:$0xf] %vm664_vm3, %v2307_v60  ;;  %v2279_v60 = vld [vmem:[#allocation2 + $0x7a] sm:$0xff] }
 0x1a2   : > { %1935 = vrot.lane.b32.xlu2 %v7504_v1, %s6956_s22  ;;  %v2306_v1 = vpack.c.bf16 %v2274_v35, %v2274_v35  ;;  %2350 = vst.msk [vmem:[#allocation3 + $0x6c] sm:$0xf] %vm664_vm3, %v7805_v12  ;;  %v6161_v17 = vld [vmem:[#allocation3 + $0x18] sm:$0xf0] }
 0x1a4   : > { %1711 = vrot.lane.b32.xlu1 %v7500_v53, %s6955_s24  ;;  %v1696_v43 = vpop.permute.xlu2 %1695  ;;  %v2088_v53 = vpack.c.bf16 %v2056_v63, %v2056_v63  ;;  %2338 = vst.msk [vmem:[#allocation3 + $0xc] sm:$0xf] %vm664_vm3, %v2306_v1 }
 0x1a5   : > { %1937 = vrot.lane.b32.xlu0 %v7514_v29, %s6956_s22  ;;  %v6683_v29 = vld [vmem:[%s10321_s1 + $0x8] sm:$0xff] }
 0x1a6   : > { %v1268_v50 = vpop.permute.xlu1 %1267  ;;  %2671 = vmatpush.bf16.msra.mxu0 %v6683_v29 }
 0x1a7   : > { %1352 = vst.msk [vmem:[#allocation3 + $0x60] sm:$0xf] %vm1339_vm6, %v1268_v50  ;;  %v1272_v37 = vpop.permute.xlu0 %1271 }
 0x1a8   : > { %1354 = vst.msk [vmem:[#allocation3 + $0x70] sm:$0xf] %vm1339_vm6, %v1272_v37  ;;  %v6652_v63 = vld [vmem:[#allocation3 + $0x14] sm:$0xf]  ;;  %v2092_v37 = vpack.c.bf16 %v2060_v21, %v2060_v21 }
 0x1a9   : > { %v6164_v35 = vor.u32 %v6652_v63, %v6161_v17  ;;  %v1615_v63 = vld [vmem:[#allocation2 + $0xf2] sm:$0xff]  ;;  %v1616_v17 = vld [vmem:[#allocation2 + $0xfa] sm:$0xff] }
 0x1aa   : > { %2162 = vrot.lane.b32.xlu2 %v2089_v41, %s6957_s23  ;;  %2672 = vmatpush.bf16.msra.mxu0 %v6682_v26  ;;  %v1614_v26 = vld [vmem:[#allocation2 + $0xe2] sm:$0xff]  ;;  %v7863_v21 = vpack.c.bf16 %v1616_v17, %v1616_v17 }
 0x1ab   : > { %v6153_v61 = vld [vmem:[#allocation3 + $0x8] sm:$0xf0]  ;;  %v7828_v56 = vpack.c.bf16 %v1614_v26, %v1614_v26 }
 0x1ac   : > { %2160 = vrot.lane.b32.xlu1 %v2088_v53, %s6957_s23  ;;  %v2145_v39 = vpop.permute.xlu2 %2144  ;;  %v6156_v44 = vor.u32 %v6650_v34, %v6153_v61  ;;  %v2278_v34 = vld [vmem:[#allocation2 + $0x6a] sm:$0xff]  ;;  %2354 = vst.msk [vmem:[#allocation3 + $0x8c] sm:$0xf] %vm664_vm3, %v7863_v21 }
 0x1ad   : > { %1488 = vrot.lane.b32.xlu0 %v2088_v53, %s6954_s17  ;;  %v2061_v53 = vld [vmem:[#allocation2 + $0xc9] sm:$0xff]  ;;  %2352 = vst.msk [vmem:[#allocation3 + $0x7c] sm:$0xf] %vm664_vm3, %v7828_v56 }
 0x1ae   : > { %v1274_v23 = vpop.permute.xlu1 %1273  ;;  %6313 = vmatmul.msk.bf16.vlgmr.msra.gmra.mxu1 %vm521_vm0, %v6156_v44 }
 0x1af   : > { %1355 = vst.msk [vmem:[#allocation3 + $0x78] sm:$0xf] %vm1339_vm6, %v1274_v23  ;;  %v1278_v38 = vpop.permute.xlu0 %1277 }
 0x1b0   : > { %1357 = vst.msk [vmem:[#allocation3 + $0x88] sm:$0xf] %vm1339_vm6, %v1278_v38  ;;  %v2277_v38 = vld [vmem:[#allocation2 + $0x62] sm:$0xff] }
 0x1b1   : > { %v2309_v44 = vpack.c.bf16 %v2277_v38, %v2277_v38  ;;  %v2281_v38 = vld [vmem:[#allocation2 + $0x92] sm:$0xff] }
 0x1b2   : > { %1713 = vrot.lane.b32.xlu2 %v7494_v32, %s6955_s24  ;;  %v2090_v32 = vpack.c.bf16 %v2058_v36, %v2058_v36 }
 0x1b3   : > { %2341 = vst.msk [vmem:[#allocation3 + $0x24] sm:$0xf] %vm664_vm3, %v2309_v44 }
 0x1b4   : > { %1490 = vrot.lane.b32.xlu1 %v2089_v41, %s6954_s17  ;;  %v1475_v49 = vpop.permute.xlu2 %1474 }
 0x1b5   : > { %1715 = vrot.lane.b32.xlu0 %v7506_v0, %s6955_s24  ;;  %1568 = vst.msk [vmem:[#allocation3 + $0x18] sm:$0xf] %vm1564_vm7, %v1475_v49 }
 0x1b6   : > { %v1280_v48 = vpop.permute.xlu1 %1279 }
 0x1b7   : > { %1358 = vst.msk [vmem:[#allocation3 + $0x90] sm:$0xf] %vm1339_vm6, %v1280_v48  ;;  %v1471_v40 = vpop.permute.xlu0 %1470  ;;  %v2310_v48 = vpack.c.bf16 %v2278_v34, %v2278_v34  ;;  %v2282_v34 = vld [vmem:[#allocation2 + $0x9a] sm:$0xff] }
 0x1b8   : > { %1566 = vst.msk [vmem:[#allocation3 + $0x8] sm:$0xf] %vm1564_vm7, %v1471_v40 }
 0x1b9   : > { %1791 = vst.msk [vmem:[#allocation3 + $0x8] sm:$0xf] %vm1789_vm8, %v1696_v43 }
 0x1ba   : > { %1941 = vrot.lane.b32.xlu2 %v7523_v51, %s6956_s22  ;;  %2342 = vst.msk [vmem:[#allocation3 + $0x2c] sm:$0xf] %vm664_vm3, %v2310_v48  ;;  %v6654_v8 = vld [vmem:[#allocation3 + $0x24] sm:$0xf]  ;;  %v2313_v48 = vpack.c.bf16 %v2281_v38, %v2281_v38 }
 0x1bc   : > { %1939 = vrot.lane.b32.xlu1 %v7446_v10, %s6956_s22  ;;  %v1924_v0 = vpop.permute.xlu2 %1923  ;;  %v2091_v10 = vpack.c.bf16 %v2059_v33, %v2059_v33  ;;  %2345 = vst.msk [vmem:[#allocation3 + $0x44] sm:$0xf] %vm664_vm3, %v2313_v48 }
 0x1bd   : > { %2164 = vrot.lane.b32.xlu0 %v2090_v32, %s6957_s23 }
 0x1be   : > { %v1694_v46 = vpop.permute.xlu1 %1693  ;;  %6314 = vmatmul.msk.bf16.gmra.mxu1 %vm521_vm0, %v6164_v35 }
 0x1bf   : > { %1790 = vst.msk [vmem:[#allocation3] sm:$0xf] %vm1789_vm8, %v1694_v46  ;;  %v1920_v51 = vpop.permute.xlu0 %1919  ;;  %v2062_v46 = vld [vmem:[#allocation2 + $0xd9] sm:$0xff] }
 0x1c0   : > { %2016 = vst.msk [vmem:[#allocation3] sm:$0xf] %vm2015_vm9, %v1920_v51  ;;  %v2280_v51 = vld [vmem:[#allocation2 + $0x82] sm:$0xff] }
 0x1c1   : > { %2241 = vst.msk [vmem:[#allocation3] sm:$0xf] %vm2240_vm10, %v2145_v39  ;;  %v2093_v39 = vpack.c.bf16 %v2061_v53, %v2061_v53 }
 0x1c2   : > { %1492 = vrot.lane.b32.xlu2 %v2090_v32, %s6954_s17 }
 0x1c4   : > { %2166 = vrot.lane.b32.xlu1 %v2091_v10, %s6957_s23  ;;  %v2151_v52 = vpop.permute.xlu2 %2150 }
 0x1c5   : > { %1494 = vrot.lane.b32.xlu0 %v2091_v10, %s6954_s17 }
 0x1c6   : > { %v1922_v57 = vpop.permute.xlu1 %1921 }
 0x1c7   : > { %2017 = vst.msk [vmem:[#allocation3 + $0x8] sm:$0xf] %vm2015_vm9, %v1922_v57  ;;  %v2147_v43 = vpop.permute.xlu0 %2146 }
 0x1c8   : > { %2242 = vst.msk [vmem:[#allocation3 + $0x8] sm:$0xf] %vm2240_vm10, %v2147_v43  ;;  %v6151_v41 = vld [vmem:[#allocation3] sm:$0xf]  ;;  %v2312_v43 = vpack.c.bf16 %v2280_v51, %v2280_v51 }
 0x1ca   : > { %1719 = vrot.lane.b32.xlu2 %v7761_v2, %s6955_s24  ;;  %2344 = vst.msk [vmem:[#allocation3 + $0x3c] sm:$0xf] %vm664_vm3, %v2312_v43 }
 0x1cc   : > { %1717 = vrot.lane.b32.xlu1 %v7765_v14, %s6955_s24  ;;  %v1702_v50 = vpop.permute.xlu2 %1701  ;;  %v1613_v14 = vld [vmem:[#allocation2 + $0xda] sm:$0xff] }
 0x1cd   : > { %1943 = vrot.lane.b32.xlu0 %v7530_v45, %s6956_s22  ;;  %v7825_v45 = vpack.c.bf16 %v1613_v14, %v1613_v14  ;;  %v2064_v14 = vld [vmem:[#allocation2 + $0xf1] sm:$0xff] }
 0x1ce   : > { %v1473_v1 = vpop.permute.xlu1 %1472  ;;  %v2096_v26 = vpack.c.bf16 %v2064_v14, %v2064_v14 }
 0x1cf   : > { %1567 = vst.msk [vmem:[#allocation3 + $0x10] sm:$0xf] %vm1564_vm7, %v1473_v1  ;;  %v1698_v29 = vpop.permute.xlu0 %1697  ;;  %v6651_v58 = vld [vmem:[#allocation3 + $0x4] sm:$0xf0] }
 0x1d0   : > { %1792 = vst.msk [vmem:[#allocation3 + $0x10] sm:$0xf] %vm1789_vm8, %v1698_v29  ;;  %v6152_v2 = vor.u32 %v6651_v58, %v6151_v41  ;;  %v1839_v58 = vld [vmem:[#allocation2 + $0xf0] sm:$0xff] }
 0x1d1   : > { %2018 = vst.msk [vmem:[#allocation3 + $0x10] sm:$0xf] %vm2015_vm9, %v1924_v0  ;;  %v6169_v0 = vld [vmem:[#allocation3 + $0x28] sm:$0xf0]  ;;  %v6177_v1 = vld [vmem:[#allocation3 + $0x38] sm:$0xf0] }
 0x1d2   : > { %2673 = vmatmul.bf16.vlgmr.msra.gmra.mxu0 %v6152_v2  ;;  %2168 = vrot.lane.b32.xlu2 %v2092_v37, %s6957_s23  ;;  %2351 = vst.msk [vmem:[#allocation3 + $0x74] sm:$0xf] %vm664_vm3, %v7825_v45  ;;  %v6172_v62 = vor.u32 %v6654_v8, %v6169_v0  ;;  %v1617_v0 = vld [vmem:[#allocation2 + $0x10a] sm:$0xff] }
 0x1d3   : > { %v7892_v15 = vpack.c.bf16 %v1617_v0, %v1617_v0  ;;  %v6201_v0 = vld [vmem:[#allocation3 + $0x68] sm:$0xf0] }
 0x1d4   : > { %1945 = vrot.lane.b32.xlu1 %v1868_v24, %s6956_s22  ;;  %v1930_v23 = vpop.permute.xlu2 %1929  ;;  %6315 = vmatmul.msk.bf16.gmra.mxu1 %vm521_vm0, %v6172_v62 }
 0x1d5   : > { %2170 = vrot.lane.b32.xlu0 %v2093_v39, %s6957_s23  ;;  %2355 = vst.msk [vmem:[#allocation3 + $0x94] sm:$0xf] %vm664_vm3, %v7892_v15 }
 0x1d6   : > { %v1700_v61 = vpop.permute.xlu1 %1699 }
 0x1d7   : > { %1793 = vst.msk [vmem:[#allocation3 + $0x18] sm:$0xf] %vm1789_vm8, %v1700_v61  ;;  %v1926_v49 = vpop.permute.xlu0 %1925  ;;  %v2065_v61 = vld [vmem:[#allocation2 + $0xf9] sm:$0xff] }
 0x1d8   : > { %2019 = vst.msk [vmem:[#allocation3 + $0x18] sm:$0xf] %vm2015_vm9, %v1926_v49  ;;  %v2097_v8 = vpack.c.bf16 %v2065_v61, %v2065_v61 }
 0x1d9   : > { %2244 = vst.msk [vmem:[#allocation3 + $0x18] sm:$0xf] %vm2240_vm10, %v2151_v52 }
 0x1da   : > { %1498 = vrot.lane.b32.xlu2 %v2093_v39, %s6954_s17 }
 0x1dc   : > { %1496 = vrot.lane.b32.xlu1 %v2092_v37, %s6954_s17  ;;  %v1481_v36 = vpop.permute.xlu2 %1480  ;;  %v1840_v37 = vld [vmem:[#allocation2 + $0xf8] sm:$0xff] }
 0x1dd   : > { %1721 = vrot.lane.b32.xlu0 %v7794_v55, %s6955_s24  ;;  %1571 = vst.msk [vmem:[#allocation3 + $0x30] sm:$0xf] %vm1564_vm7, %v1481_v36  ;;  %v1872_v24 = vpack.c.bf16 %v1840_v37, %v1840_v37 }
 0x1de   : > { %v2149_v40 = vpop.permute.xlu1 %2148 }
 0x1df   : > { %2243 = vst.msk [vmem:[#allocation3 + $0x10] sm:$0xf] %vm2240_vm10, %v2149_v40  ;;  %v1477_v32 = vpop.permute.xlu0 %1476 }
 0x1e0   : > { %1569 = vst.msk [vmem:[#allocation3 + $0x20] sm:$0xf] %vm1564_vm7, %v1477_v32  ;;  %v6653_v33 = vld [vmem:[#allocation3 + $0x14] sm:$0xf0]  ;;  %v2314_v32 = vpack.c.bf16 %v2282_v34, %v2282_v34 }
 0x1e1   : > { %1794 = vst.msk [vmem:[#allocation3 + $0x20] sm:$0xf] %vm1789_vm8, %v1702_v50 }
 0x1e2   : > { %1947 = vrot.lane.b32.xlu2 %v7538_v42, %s6956_s22  ;;  %v2311_v42 = vpack.c.bf16 %v2279_v60, %v2279_v60  ;;  %2346 = vst.msk [vmem:[#allocation3 + $0x4c] sm:$0xf] %vm664_vm3, %v2314_v32  ;;  %v1618_v60 = vld [vmem:[#allocation2 + $0x112] sm:$0xff] }
 0x1e4   : > { %1723 = vrot.lane.b32.xlu1 %v7805_v12, %s6955_s24  ;;  %v1708_v55 = vpop.permute.xlu2 %1707  ;;  %v2094_v12 = vpack.c.bf16 %v2062_v46, %v2062_v46  ;;  %2343 = vst.msk [vmem:[#allocation3 + $0x34] sm:$0xf] %vm664_vm3, %v2311_v42  ;;  %v6658_v46 = vld [vmem:[#allocation3 + $0x44] sm:$0xf] }
 0x1e5   : > { %1949 = vrot.lane.b32.xlu0 %v7545_v59, %s6956_s22  ;;  %v7860_v59 = vpack.c.bf16 %v1615_v63, %v1615_v63  ;;  %v2066_v63 = vld [vmem:[#allocation2 + $0x109] sm:$0xff] }
 0x1e6   : > { %v1479_v27 = vpop.permute.xlu1 %1478  ;;  %v6159_v10 = vld [vmem:[#allocation3 + $0x10] sm:$0xf] }
 0x1e7   : > { %1570 = vst.msk [vmem:[#allocation3 + $0x28] sm:$0xf] %vm1564_vm7, %v1479_v27  ;;  %v1704_v52 = vpop.permute.xlu0 %1703  ;;  %v6160_v57 = vor.u32 %v6653_v33, %v6159_v10  ;;  %v7903_v27 = vpack.c.bf16 %v1618_v60, %v1618_v60  ;;  %v1842_v10 = vld [vmem:[#allocation2 + $0x110] sm:$0xff] }
 0x1e8   : > { %1795 = vst.msk [vmem:[#allocation3 + $0x28] sm:$0xf] %vm1789_vm8, %v1704_v52 }
 0x1e9   : > { %2021 = vst.msk [vmem:[#allocation3 + $0x28] sm:$0xf] %vm2015_vm9, %v1930_v23  ;;  %2678 = vmatmul.bf16.gmra.mxu0 %v6160_v57  ;;  %v6185_v51 = vld [vmem:[#allocation3 + $0x48] sm:$0xf0]  ;;  %v1841_v57 = vld [vmem:[#allocation2 + $0x108] sm:$0xff] }
 0x1ea   : > { %2174 = vrot.lane.b32.xlu2 %v2095_v54, %s6957_s23  ;;  %2353 = vst.msk [vmem:[#allocation3 + $0x84] sm:$0xf] %vm664_vm3, %v7860_v59 }
 0x1eb   : > { %v6656_v47 = vld [vmem:[#allocation3 + $0x34] sm:$0xf]  ;;  %2356 = vst.msk [vmem:[#allocation3 + $0x9c] sm:$0xf] %vm664_vm3, %v7903_v27 }
 0x1ec   : > { %2172 = vrot.lane.b32.xlu1 %v2094_v12, %s6957_s23  ;;  %v2157_v35 = vpop.permute.xlu2 %2156  ;;  %v6180_v53 = vor.u32 %v6656_v47, %v6177_v1  ;;  %v2067_v47 = vld [vmem:[#allocation2 + $0x111] sm:$0xff] }
 0x1ed   : > { %1500 = vrot.lane.b32.xlu0 %v2094_v12, %s6954_s17  ;;  %v1874_v12 = vpack.c.bf16 %v1842_v10, %v1842_v10 }
 0x1ee   : > { %v1928_v50 = vpop.permute.xlu1 %1927  ;;  %6316 = vmatmul.msk.bf16.gmra.mxu1 %vm521_vm0, %v6180_v53  ;;  %v2099_v53 = vpack.c.bf16 %v2067_v47, %v2067_v47 }
 0x1ef   : > { %2020 = vst.msk [vmem:[#allocation3 + $0x20] sm:$0xf] %vm2015_vm9, %v1928_v50  ;;  %v2153_v41 = vpop.permute.xlu0 %2152  ;;  %v1873_v50 = vpack.c.bf16 %v1841_v57, %v1841_v57  ;;  %v6664_v57 = vld [vmem:[#allocation3 + $0x74] sm:$0xf] }
 0x1f0   : > { %2245 = vst.msk [vmem:[#allocation3 + $0x20] sm:$0xf] %vm2240_vm10, %v2153_v41  ;;  %v2098_v41 = vpack.c.bf16 %v2066_v63, %v2066_v63  ;;  %v10322_v63 = vmov 0.0  }
 0x1f1   : > { %2948 = vst.msk [vmem:[#allocation4] sm:$0xff] %vm2947_vm11, %v10322_v63 }
 0x1f2   : > { %1725 = vrot.lane.b32.xlu2 %v7825_v45, %s6955_s24  ;;  %v1871_v45 = vpack.c.bf16 %v1839_v58, %v1839_v58  ;;  %v6193_v58 = vld [vmem:[#allocation3 + $0x58] sm:$0xf0]  ;;  %2949 = vst.msk [vmem:[#allocation4 + $0x8] sm:$0xff] %vm2947_vm11, %v10322_v63 }
 0x1f3   : > { %2953 = vst.msk [vmem:[#allocation4 + $0x198] sm:$0xff] %vm2947_vm11, %v10322_v63 }
 0x1f4   : > { %1502 = vrot.lane.b32.xlu1 %v2095_v54, %s6954_s17  ;;  %v1487_v29 = vpop.permute.xlu2 %1486  ;;  %v6188_v54 = vor.u32 %v6658_v46, %v6185_v51  ;;  %v2068_v46 = vld [vmem:[#allocation2 + $0x121] sm:$0xff]  ;;  %2954 = vst.msk [vmem:[#allocation4 + $0x1a0] sm:$0xff] %vm2947_vm11, %v10322_v63 }
 0x1f5   : > { %1727 = vrot.lane.b32.xlu0 %v7828_v56, %s6955_s24  ;;  %1574 = vst.msk [vmem:[#allocation3 + $0x48] sm:$0xf] %vm1564_vm7, %v1487_v29  ;;  %v6660_v29 = vld [vmem:[#allocation3 + $0x54] sm:$0xf] }
 0x1f6   : > { %v2155_v2 = vpop.permute.xlu1 %2154  ;;  %2957 = vst.msk [vmem:[#allocation4] sm:$0x1] %vm2956_vm12, %v10322_v63 }
 0x1f7   : > { %2246 = vst.msk [vmem:[#allocation3 + $0x28] sm:$0xf] %vm2240_vm10, %v2155_v2  ;;  %v1483_v39 = vpop.permute.xlu0 %1482  ;;  %v6167_v23 = vld [vmem:[#allocation3 + $0x20] sm:$0xf]  ;;  %v6196_v2 = vor.u32 %v6660_v29, %v6193_v58  ;;  %v1846_v29 = vld [vmem:[#allocation2 + $0x140] sm:$0xff] }
 0x1f8   : > { %1572 = vst.msk [vmem:[#allocation3 + $0x38] sm:$0xf] %vm1564_vm7, %v1483_v39 }
 0x1f9   : > { %1797 = vst.msk [vmem:[#allocation3 + $0x38] sm:$0xf] %vm1789_vm8, %v1708_v55 }
 0x1fa   : > { %1953 = vrot.lane.b32.xlu2 %v1872_v24, %s6956_s22  ;;  %2958 = vst.msk [vmem:[#allocation4 + $0x18] sm:$0x1] %vm2956_vm12, %v10322_v63 }
 0x1fb   : > { %2959 = vst.msk [vmem:[#allocation4 + $0x30] sm:$0x1] %vm2956_vm12, %v10322_v63 }
 0x1fc   : > { %1951 = vrot.lane.b32.xlu1 %v1871_v45, %s6956_s22  ;;  %v1936_v56 = vpop.permute.xlu2 %1935  ;;  %v1620_v45 = vld [vmem:[#allocation2 + $0x12a] sm:$0xff]  ;;  %2960 = vst.msk [vmem:[#allocation4 + $0x48] sm:$0x1] %vm2956_vm12, %v10322_v63 }
 0x1fd   : > { %2176 = vrot.lane.b32.xlu0 %v2096_v26, %s6957_s23  ;;  %v7931_v38 = vpack.c.bf16 %v1620_v45, %v1620_v45  ;;  %2961 = vst.msk [vmem:[#allocation4 + $0x60] sm:$0x1] %vm2956_vm12, %v10322_v63  ;;  %v6666_v45 = vld [vmem:[#allocation3 + $0x84] sm:$0xf] }
 0x1fe   : > { %v1706_v44 = vpop.permute.xlu1 %1705  ;;  %v6655_v49 = vld [vmem:[#allocation3 + $0x24] sm:$0xf0]  ;;  %6317 = vmatmul.msk.bf16.gmra.mxu1 %vm521_vm0, %v6188_v54  ;;  %v2100_v54 = vpack.c.bf16 %v2068_v46, %v2068_v46  ;;  %2962 = vst.msk [vmem:[#allocation4 + $0x78] sm:$0x1] %vm2956_vm12, %v10322_v63 }
 0x1ff   : > { %1796 = vst.msk [vmem:[#allocation3 + $0x30] sm:$0xf] %vm1789_vm8, %v1706_v44  ;;  %v1932_v36 = vpop.permute.xlu0 %1931  ;;  %v6168_v40 = vor.u32 %v6655_v49, %v6167_v23  ;;  %v1843_v23 = vld [vmem:[#allocation2 + $0x120] sm:$0xff] }
 0x200   : > { %2022 = vst.msk [vmem:[#allocation3 + $0x30] sm:$0xf] %vm2015_vm9, %v1932_v36  ;;  %v1875_v48 = vpack.c.bf16 %v1843_v23, %v1843_v23  ;;  %v1844_v36 = vld [vmem:[#allocation2 + $0x128] sm:$0xff] }
 0x201   : > { %2247 = vst.msk [vmem:[#allocation3 + $0x30] sm:$0xf] %vm2240_vm10, %v2157_v35  ;;  %2683 = vmatmul.bf16.gmra.mxu0 %v6168_v40 }
 0x202   : > { %1281 = vrot.lane.b32.xlu2 %v1872_v24, %s6953_s15  ;;  %2358 = vst.msk [vmem:[#allocation3 + $0xac] sm:$0xf] %vm664_vm3, %v7931_v38 }
 0x203   : > { %2963 = vst.msk [vmem:[#allocation4 + $0x90] sm:$0x1] %vm2956_vm12, %v10322_v63 }
 0x204   : > { %2178 = vrot.lane.b32.xlu1 %v2097_v8, %s6957_s23  ;;  %v2163_v62 = vpop.permute.xlu2 %2162  ;;  %2964 = vst.msk [vmem:[#allocation4 + $0xa8] sm:$0x1] %vm2956_vm12, %v10322_v63 }
 0x205   : > { %1504 = vrot.lane.b32.xlu0 %v2096_v26, %s6954_s17  ;;  %v1619_v26 = vld [vmem:[#allocation2 + $0x122] sm:$0xff]  ;;  %2965 = vst.msk [vmem:[#allocation4 + $0xc0] sm:$0x1] %vm2956_vm12, %v10322_v63 }
 0x206   : > { %v1934_v55 = vpop.permute.xlu1 %1933  ;;  %2966 = vst.msk [vmem:[#allocation4 + $0xd8] sm:$0x1] %vm2956_vm12, %v10322_v63 }
 0x207   : > { %2023 = vst.msk [vmem:[#allocation3 + $0x38] sm:$0xf] %vm2015_vm9, %v1934_v55  ;;  %v2159_v33 = vpop.permute.xlu0 %2158  ;;  %v2069_v55 = vld [vmem:[#allocation2 + $0x129] sm:$0xff] }
 0x208   : > { %2248 = vst.msk [vmem:[#allocation3 + $0x38] sm:$0xf] %vm2240_vm10, %v2159_v33  ;;  %v6175_v52 = vld [vmem:[#allocation3 + $0x30] sm:$0xf]  ;;  %v2101_v51 = vpack.c.bf16 %v2069_v55, %v2069_v55 }
 0x209   : > { %2967 = vst.msk [vmem:[#allocation4 + $0xf0] sm:$0x1] %vm2956_vm12, %v10322_v63 }
 0x20a   : > { %1729 = vrot.lane.b32.xlu2 %v7860_v59, %s6955_s24  ;;  %2968 = vst.msk [vmem:[#allocation4 + $0x108] sm:$0x1] %vm2956_vm12, %v10322_v63 }
 0x20b   : > { %2969 = vst.msk [vmem:[#allocation4 + $0x120] sm:$0x1] %vm2956_vm12, %v10322_v63 }
 0x20c   : > { %1506 = vrot.lane.b32.xlu1 %v2097_v8, %s6954_s17  ;;  %v1714_v42 = vpop.permute.xlu2 %1713  ;;  %v6662_v8 = vld [vmem:[#allocation3 + $0x64] sm:$0xf]  ;;  %2970 = vst.msk [vmem:[#allocation4 + $0x138] sm:$0x1] %vm2956_vm12, %v10322_v63 }
 0x20d   : > { %1731 = vrot.lane.b32.xlu0 %v7863_v21, %s6955_s24  ;;  %2971 = vst.msk [vmem:[#allocation4 + $0x150] sm:$0x1] %vm2956_vm12, %v10322_v63 }
 0x20e   : > { %v1485_v43 = vpop.permute.xlu1 %1484  ;;  %6318 = vmatmul.msk.bf16.gmra.mxu1 %vm521_vm0, %v6196_v2  ;;  %2972 = vst.msk [vmem:[#allocation4 + $0x168] sm:$0x1] %vm2956_vm12, %v10322_v63 }
 0x20f   : > { %1573 = vst.msk [vmem:[#allocation3 + $0x40] sm:$0xf] %vm1564_vm7, %v1485_v43  ;;  %v1710_v59 = vpop.permute.xlu0 %1709  ;;  %v6657_v17 = vld [vmem:[#allocation3 + $0x34] sm:$0xf0]  ;;  %v6209_v43 = vld [vmem:[#allocation3 + $0x78] sm:$0xf0] }
 0x210   : > { %1798 = vst.msk [vmem:[#allocation3 + $0x40] sm:$0xf] %vm1789_vm8, %v1710_v59  ;;  %v6176_v35 = vor.u32 %v6657_v17, %v6175_v52 }
 0x211   : > { %2024 = vst.msk [vmem:[#allocation3 + $0x40] sm:$0xf] %vm2015_vm9, %v1936_v56  ;;  %v7929_v56 = vpack.c.bf16 %v1619_v26, %v1619_v26 }
 0x212   : > { %2688 = vmatmul.bf16.gmra.mxu0 %v6176_v35  ;;  %1957 = vrot.lane.b32.xlu2 %v1874_v12, %s6956_s22  ;;  %2973 = vst.msk [vmem:[#allocation4 + $0x180] sm:$0x1] %vm2956_vm12, %v10322_v63 }
 0x213   : > { %2357 = vst.msk [vmem:[#allocation3 + $0xa4] sm:$0xf] %vm664_vm3, %v7929_v56 }
 0x214   : > { %1955 = vrot.lane.b32.xlu1 %v1873_v50, %s6956_s22  ;;  %v1942_v21 = vpop.permute.xlu2 %1941  ;;  %2974 = vst.msk [vmem:[#allocation4 + $0x198] sm:$0x1] %vm2956_vm12, %v10322_v63 }
 0x215   : > { %2180 = vrot.lane.b32.xlu0 %v2098_v41, %s6957_s23  ;;  %2976 = vst.msk [vmem:[#allocation4 + $0x29] sm:$0x1] %vm2956_vm12, %v10322_v63 }
 0x216   : > { %v1712_v1 = vpop.permute.xlu1 %1711  ;;  %2977 = vst.msk [vmem:[#allocation4 + $0x41] sm:$0x1] %vm2956_vm12, %v10322_v63 }
 0x217   : > { %1799 = vst.msk [vmem:[#allocation3 + $0x48] sm:$0xf] %vm1789_vm8, %v1712_v1  ;;  %v1938_v37 = vpop.permute.xlu0 %1937 }
 0x218   : > { %2025 = vst.msk [vmem:[#allocation3 + $0x48] sm:$0xf] %vm2015_vm9, %v1938_v37  ;;  %v2070_v37 = vld [vmem:[#allocation2 + $0x139] sm:$0xff] }
 0x219   : > { %2250 = vst.msk [vmem:[#allocation3 + $0x48] sm:$0xf] %vm2240_vm10, %v2163_v62  ;;  %v1876_v62 = vpack.c.bf16 %v1844_v36, %v1844_v36  ;;  %v2102_v2 = vpack.c.bf16 %v2070_v37, %v2070_v37 }
 0x21a   : > { %1283 = vrot.lane.b32.xlu2 %v1873_v50, %s6953_s15  ;;  %2978 = vst.msk [vmem:[#allocation4 + $0x59] sm:$0x1] %vm2956_vm12, %v10322_v63 }
 0x21b   : > { %2979 = vst.msk [vmem:[#allocation4 + $0x71] sm:$0x1] %vm2956_vm12, %v10322_v63 }
 0x21c   : > { %2182 = vrot.lane.b32.xlu1 %v2099_v53, %s6957_s23  ;;  %v1493_v24 = vpop.permute.xlu2 %1492  ;;  %2980 = vst.msk [vmem:[#allocation4 + $0x89] sm:$0x1] %vm2956_vm12, %v10322_v63 }
 0x21d   : > { %1285 = vrot.lane.b32.xlu0 %v1874_v12, %s6953_s15  ;;  %1577 = vst.msk [vmem:[#allocation3 + $0x60] sm:$0xf] %vm1564_vm7, %v1493_v24  ;;  %v6212_v12 = vor.u32 %v6664_v57, %v6209_v43  ;;  %v2071_v24 = vld [vmem:[#allocation2 + $0x141] sm:$0xff] }
 0x21e   : > { %v2161_v14 = vpop.permute.xlu1 %2160  ;;  %v2103_v26 = vpack.c.bf16 %v2071_v24, %v2071_v24  ;;  %2981 = vst.msk [vmem:[#allocation4 + $0xa1] sm:$0x1] %vm2956_vm12, %v10322_v63 }
 0x21f   : > { %2249 = vst.msk [vmem:[#allocation3 + $0x40] sm:$0xf] %vm2240_vm10, %v2161_v14  ;;  %v1489_v39 = vpop.permute.xlu0 %1488 }
 0x220   : > { %1575 = vst.msk [vmem:[#allocation3 + $0x50] sm:$0xf] %vm1564_vm7, %v1489_v39  ;;  %v6659_v61 = vld [vmem:[#allocation3 + $0x44] sm:$0xf0]  ;;  %v1878_v39 = vpack.c.bf16 %v1846_v29, %v1846_v29 }
 0x221   : > { %1800 = vst.msk [vmem:[#allocation3 + $0x50] sm:$0xf] %vm1789_vm8, %v1714_v42 }
 0x222   : > { %1510 = vrot.lane.b32.xlu2 %v2099_v53, %s6954_s17  ;;  %2982 = vst.msk [vmem:[#allocation4 + $0xb9] sm:$0x1] %vm2956_vm12, %v10322_v63 }
 0x223   : > { %2983 = vst.msk [vmem:[#allocation4 + $0xd1] sm:$0x1] %vm2956_vm12, %v10322_v63 }
 0x224   : > { %1508 = vrot.lane.b32.xlu1 %v2098_v41, %s6954_s17  ;;  %v1720_v34 = vpop.permute.xlu2 %1719  ;;  %v1845_v41 = vld [vmem:[#allocation2 + $0x138] sm:$0xff]  ;;  %2984 = vst.msk [vmem:[#allocation4 + $0xe9] sm:$0x1] %vm2956_vm12, %v10322_v63 }
 0x225   : > { %1733 = vrot.lane.b32.xlu0 %v7892_v15, %s6955_s24  ;;  %v6204_v15 = vor.u32 %v6662_v8, %v6201_v0  ;;  %v1877_v1 = vpack.c.bf16 %v1845_v41, %v1845_v41  ;;  %v8023_v8 = vld [vmem:[%s10234_s3] ss:$0 sm:$0xff]  ;;  %2985 = vst.msk [vmem:[#allocation4 + $0x101] sm:$0x1] %vm2956_vm12, %v10322_v63 }
 0x226   : > { %v1491_v44 = vpop.permute.xlu1 %1490  ;;  %v6183_v49 = vld [vmem:[#allocation3 + $0x40] sm:$0xf]  ;;  %2986 = vst.msk [vmem:[#allocation4 + $0x119] sm:$0x1] %vm2956_vm12, %v10322_v63 }
 0x227   : > { %1576 = vst.msk [vmem:[#allocation3 + $0x58] sm:$0xf] %vm1564_vm7, %v1491_v44  ;;  %v1716_v40 = vpop.permute.xlu0 %1715  ;;  %v6184_v32 = vor.u32 %v6659_v61, %v6183_v49  ;;  %6319 = vmatmul.msk.bf16.gmra.mxu1 %vm521_vm0, %v6204_v15  ;;  %v8014_v49 = vld [vmem:[%s10233_s2] ss:$0 sm:$0xff] }
 0x228   : > { %1801 = vst.msk [vmem:[#allocation3 + $0x58] sm:$0xf] %vm1789_vm8, %v1716_v40  ;;  %v1621_v15 = vld [vmem:[#allocation2 + $0x13a] sm:$0xff] }
 0x229   : > { %2027 = vst.msk [vmem:[#allocation3 + $0x58] sm:$0xf] %vm2015_vm9, %v1942_v21  ;;  %2693 = vmatmul.bf16.gmra.mxu0 %v6184_v32 }
 0x22a   : > { %1959 = vrot.lane.b32.xlu2 %v1875_v48, %s6956_s22  ;;  %2987 = vst.msk [vmem:[#allocation4 + $0x131] sm:$0x1] %vm2956_vm12, %v10322_v63 }
 0x22b   : > { %2988 = vst.msk [vmem:[#allocation4 + $0x149] sm:$0x1] %vm2956_vm12, %v10322_v63 }
 0x22c   : > { %1735 = vrot.lane.b32.xlu1 %v7903_v27, %s6955_s24  ;;  %v2169_v33 = vpop.permute.xlu2 %2168  ;;  %2989 = vst.msk [vmem:[#allocation4 + $0x161] sm:$0x1] %vm2956_vm12, %v10322_v63 }
 0x22d   : > { %1961 = vrot.lane.b32.xlu0 %v1876_v62, %s6956_s22  ;;  %2990 = vst.msk [vmem:[#allocation4 + $0x179] sm:$0x1] %vm2956_vm12, %v10322_v63 }
 0x22e   : > { %v1940_v60 = vpop.permute.xlu1 %1939  ;;  %2991 = vst.msk [vmem:[#allocation4 + $0x191] sm:$0x1] %vm2956_vm12, %v10322_v63 }
 0x22f   : > { %2026 = vst.msk [vmem:[#allocation3 + $0x50] sm:$0xf] %vm2015_vm9, %v1940_v60  ;;  %v2165_v10 = vpop.permute.xlu0 %2164 }
 0x230   : > { %2251 = vst.msk [vmem:[#allocation3 + $0x50] sm:$0xf] %vm2240_vm10, %v2165_v10  ;;  %v8042_v10 = vpack.c.bf16 %v1621_v15, %v1621_v15 }
 0x231   : > { %2951 = vst.msk [vmem:[#allocation4 + $0x10] sm:$0x3] %vm2950_vm13, %v10322_v63 }
 0x232   : > { %2186 = vrot.lane.b32.xlu2 %v2101_v51, %s6957_s23  ;;  %2955 = vst.msk [vmem:[#allocation4 + $0x1a8] sm:$0x3] %vm2950_vm13, %v10322_v63 }
 0x233   : > { %2975 = vst.msk [vmem:[#allocation4 + $0x11] sm:$0x1] %vm2956_vm12, %v10322_v63 }
 0x234   : > { %2184 = vrot.lane.b32.xlu1 %v2100_v54, %s6957_s23  ;;  %v1499_v42 = vpop.permute.xlu2 %1498  ;;  %2992 = vst.msk [vmem:[#allocation4 + $0x1a9] sm:$0x1] %vm2956_vm12, %v10322_v63 }
 0x235   : > { %1287 = vrot.lane.b32.xlu0 %v1875_v48, %s6953_s15  ;;  %1580 = vst.msk [vmem:[#allocation3 + $0x78] sm:$0xf] %vm1564_vm7, %v1499_v42 }
 0x236   : > { %v2167_v27 = vpop.permute.xlu1 %2166  ;;  %2359 = vst.msk [vmem:[#allocation3 + $0xb4] sm:$0xf] %vm664_vm3, %v8042_v10 }
 0x237   : > { %2252 = vst.msk [vmem:[#allocation3 + $0x58] sm:$0xf] %vm2240_vm10, %v2167_v27  ;;  %v1495_v52 = vpop.permute.xlu0 %1494  ;;  %v6191_v17 = vld [vmem:[#allocation3 + $0x50] sm:$0xf]  ;;  %6320 = vmatmul.msk.bf16.gmra.mxu1 %vm521_vm0, %v6212_v12  ;;  %v1848_v12 = vld [vmem:[#allocation2 + $0x158] sm:$0xff] }
 0x238   : > { %1578 = vst.msk [vmem:[#allocation3 + $0x68] sm:$0xf] %vm1564_vm7, %v1495_v52 }
 0x239   : > { %1803 = vst.msk [vmem:[#allocation3 + $0x68] sm:$0xf] %vm1789_vm8, %v1720_v34 }
 0x23a   : > { %1512 = vrot.lane.b32.xlu2 %v2100_v54, %s6954_s17  ;;  %v1622_v54 = vld [vmem:[#allocation2 + $0x142] sm:$0xff] }
 0x23b   : > { %v8049_v57 = vpack.c.bf16 %v1622_v54, %v1622_v54  ;;  %v6756_v54 = vld [vmem:[%s10235_s4 + $0x88] sm:$0xff] }
 0x23c   : > { %1289 = vrot.lane.b32.xlu1 %v1876_v62, %s6953_s15  ;;  %v7963_v59 = vpop.permute.xlu2 %1947  ;;  %5343 = vmatpush.bf16.msrb.mxu1 %v6756_v54 }
 0x23d   : > { %1514 = vrot.lane.b32.xlu0 %v2101_v51, %s6954_s17  ;;  %2360 = vst.msk [vmem:[#allocation3 + $0xbc] sm:$0xf] %vm664_vm3, %v8049_v57 }
 0x23e   : > { %v1718_v35 = vpop.permute.xlu1 %1717  ;;  %v6661_v50 = vld [vmem:[#allocation3 + $0x54] sm:$0xf0] }
 0x23f   : > { %1802 = vst.msk [vmem:[#allocation3 + $0x60] sm:$0xf] %vm1789_vm8, %v1718_v35  ;;  %v1944_v21 = vpop.permute.xlu0 %1943  ;;  %v6192_v47 = vor.u32 %v6661_v50, %v6191_v17  ;;  %v1847_v35 = vld [vmem:[#allocation2 + $0x150] sm:$0xff] }
 0x240   : > { %2028 = vst.msk [vmem:[#allocation3 + $0x60] sm:$0xf] %vm2015_vm9, %v1944_v21  ;;  %v8065_v21 = vpack.c.bf16 %v1848_v12, %v1848_v12  ;;  %v8071_v37 = vpack.c.bf16 %v1847_v35, %v1847_v35 }
 0x241   : > { %2253 = vst.msk [vmem:[#allocation3 + $0x60] sm:$0xf] %vm2240_vm10, %v2169_v33  ;;  %2698 = vmatmul.bf16.gmra.mxu0 %v6192_v47  ;;  %v2072_v47 = vld [vmem:[#allocation2 + $0x151] sm:$0xff] }
 0x242   : > { %1739 = vrot.lane.b32.xlu2 %v7931_v38, %s6955_s24  ;;  %v2763_v38 = vpop.f32.mrf.mxu1 }
 0x244   : > { %1737 = vrot.lane.b32.xlu1 %v7929_v56, %s6955_s24  ;;  %v7984_v53 = vpop.permute.xlu2 %2174  ;;  %v6217_v56 = vld [vmem:[#allocation3 + $0x88] sm:$0xf0] }
 0x245   : > { %1963 = vrot.lane.b32.xlu0 %v1877_v1, %s6956_s22  ;;  %v6220_v23 = vor.u32 %v6666_v45, %v6217_v56 }
 0x246   : > { %v1946_v58 = vpop.permute.xlu1 %1945 }
 0x247   : > { %2029 = vst.msk [vmem:[#allocation3 + $0x68] sm:$0xf] %vm2015_vm9, %v1946_v58  ;;  %v2171_v14 = vpop.permute.xlu0 %2170  ;;  %6321 = vmatmul.msk.bf16.gmra.mxu1 %vm521_vm0, %v6220_v23  ;;  %v3123_v58 = vld [vmem:[#allocation4 + $0x1] sm:$0xff] }
 0x248   : > { %2254 = vst.msk [vmem:[#allocation3 + $0x68] sm:$0xf] %vm2240_vm10, %v2171_v14  ;;  %v6199_v61 = vld [vmem:[#allocation3 + $0x60] sm:$0xf]  ;;  %v2073_v14 = vld [vmem:[#allocation2 + $0x159] sm:$0xff]  ;;  %v3155_v56 = vpack.c.bf16 %v3123_v58, %v3123_v58 }
 0x24a   : > { %2188 = vrot.lane.b32.xlu2 %v2102_v2, %s6957_s23  ;;  %v2765_v46 = vpop.f32.mrf.mxu1 }
 0x24c   : > { %1965 = vrot.lane.b32.xlu1 %v1878_v39, %s6956_s22  ;;  %v8003_v34 = vpop.permute.xlu2 %1725 }
 0x24d   : > { %2190 = vrot.lane.b32.xlu0 %v2103_v26, %s6957_s23 }
 0x24e   : > { %v1497_v44 = vpop.permute.xlu1 %1496 }
 0x24f   : > { %1579 = vst.msk [vmem:[#allocation3 + $0x70] sm:$0xf] %vm1564_vm7, %v1497_v44  ;;  %v1722_v48 = vpop.permute.xlu0 %1721  ;;  %v2674_v36 = vpop.f32.mrf.mxu0  ;;  %v6663_v40 = vld [vmem:[#allocation3 + $0x64] sm:$0xf0]  ;;  %v6225_v44 = vld [vmem:[#allocation3 + $0x98] sm:$0xf0] }
 0x250   : > { %1804 = vst.msk [vmem:[#allocation3 + $0x70] sm:$0xf] %vm1789_vm8, %v1722_v48  ;;  %v2764_v32 = vadd.f32 %v2763_v38, %v2674_v36  ;;  %v6200_v0 = vor.u32 %v6663_v40, %v6199_v61  ;;  %v6668_v61 = vld [vmem:[#allocation3 + $0x94] sm:$0xf]  ;;  %v8096_v48 = vpack.c.bf16 %v2073_v14, %v2073_v14 }
 0x251   : > { %2030 = vst.msk [vmem:[#allocation3 + $0x70] sm:$0xf] %vm2015_vm9, %v7963_v59  ;;  %v6228_v36 = vor.u32 %v6668_v61, %v6225_v44 }
 0x252   : > { %v2847_v62 = vmul.f32 %v8014_v49, %v2764_v32  ;;  %2703 = vmatmul.bf16.gmra.mxu0 %v6200_v0  ;;  %1293 = vrot.lane.b32.xlu2 %v1878_v39, %s6953_s15  ;;  %v2768_v29 = vpop.f32.mrf.mxu1 }
 0x254   : > { %v2883_v55 = vadd.f32 %v8023_v8, %v2847_v62  ;;  %1291 = vrot.lane.b32.xlu1 %v1877_v1, %s6953_s15  ;;  %v8035_v33 = vpop.permute.xlu2 %1953 }
 0x255   : > { %1516 = vrot.lane.b32.xlu0 %v2102_v2, %s6954_s17 }
 0x256   : > { %v2915_v60 = vmax.f32 %v2883_v55, 0.0  ;;  %v1724_v51 = vpop.permute.xlu1 %1723  ;;  %v3348_v55 = vld [vmem:[#allocation4 + $0x2] sm:$0xff] }
 0x257   : > { %1805 = vst.msk [vmem:[#allocation3 + $0x78] sm:$0xf] %vm1789_vm8, %v1724_v51  ;;  %v1950_v42 = vpop.permute.xlu0 %1949  ;;  %v2676_v27 = vpop.f32.mrf.mxu0  ;;  %6322 = vmatmul.msk.bf16.gmra.mxu1 %vm521_vm0, %v6228_v36 }
 0x258   : > { %2994 = vst.msk [vmem:[#allocation4 + $0x19] sm:$0xff] %vm2947_vm11, %v2915_v60  ;;  %v2766_v52 = vadd.f32 %v2765_v46, %v2676_v27 }
 0x259   : > { %2031 = vst.msk [vmem:[#allocation3 + $0x78] sm:$0xf] %vm2015_vm9, %v1950_v42  ;;  %v3380_v42 = vpack.c.bf16 %v3348_v55, %v3348_v55 }
 0x25a   : > { %2256 = vst.msk [vmem:[#allocation3 + $0x78] sm:$0xf] %vm2240_vm10, %v7984_v53  ;;  %v2848_v43 = vmul.f32 %v8014_v49, %v2766_v52  ;;  %1741 = vrot.lane.b32.xlu2 %v8042_v10, %s6955_s24  ;;  %v8074_v53 = vpack.c.bf16 %v2072_v47, %v2072_v47  ;;  %v2770_v0 = vpop.f32.mrf.mxu1 }
 0x25c   : > { %v2884_v59 = vadd.f32 %v8023_v8, %v2848_v43  ;;  %1518 = vrot.lane.b32.xlu1 %v2103_v26, %s6954_s17  ;;  %v1282_v17 = vpop.permute.xlu2 %1281 }
 0x25d   : > { %1743 = vrot.lane.b32.xlu0 %v8049_v57, %s6955_s24  ;;  %1359 = vst.msk [vmem:[#allocation3 + $0x98] sm:$0xf] %vm1339_vm6, %v1282_v17 }
 0x25e   : > { %v2916_v50 = vmax.f32 %v2884_v59, 0.0  ;;  %v2173_v41 = vpop.permute.xlu1 %2172 }
 0x25f   : > { %2255 = vst.msk [vmem:[#allocation3 + $0x70] sm:$0xf] %vm2240_vm10, %v2173_v41  ;;  %v1501_v1 = vpop.permute.xlu0 %1500  ;;  %v6755_v41 = vld [vmem:[%s10235_s4 + $0x80] sm:$0xff]  ;;  %v3573_v36 = vld [vmem:[#allocation4 + $0x18] sm:$0xff] }
 0x260   : > { %2995 = vst.msk [vmem:[#allocation4 + $0x21] sm:$0xff] %vm2947_vm11, %v2916_v50  ;;  %5344 = vmatpush.bf16.msrb.mxu1 %v6755_v41 }
 0x261   : > { %1581 = vst.msk [vmem:[#allocation3 + $0x80] sm:$0xf] %vm1564_vm7, %v1501_v1  ;;  %v6665_v24 = vld [vmem:[#allocation3 + $0x74] sm:$0xf0]  ;;  %v3124_v1 = vld [vmem:[#allocation4 + $0x9] sm:$0xff] }
 0x262   : > { %1806 = vst.msk [vmem:[#allocation3 + $0x80] sm:$0xf] %vm1789_vm8, %v8003_v34  ;;  %1969 = vrot.lane.b32.xlu2 %v8065_v21, %s6956_s22  ;;  %v2773_v50 = vpop.f32.mrf.mxu1  ;;  %v3156_v58 = vpack.c.bf16 %v3124_v1, %v3124_v1 }
 0x264   : > { %1967 = vrot.lane.b32.xlu1 %v8071_v37, %s6956_s22  ;;  %v8084_v2 = vpop.permute.xlu2 %1729 }
 0x265   : > { %2192 = vrot.lane.b32.xlu0 %v8074_v53, %s6957_s23 }
 0x266   : > { %v1503_v39 = vpop.permute.xlu1 %1502  ;;  %v2679_v45 = vpop.f32.mrf.mxu0  ;;  %v6207_v26 = vld [vmem:[#allocation3 + $0x70] sm:$0xf] }
 0x267   : > { %1582 = vst.msk [vmem:[#allocation3 + $0x88] sm:$0xf] %vm1564_vm7, %v1503_v39  ;;  %v2769_v23 = vadd.f32 %v2768_v29, %v2679_v45  ;;  %v1728_v38 = vpop.permute.xlu0 %1727  ;;  %v6208_v34 = vor.u32 %v6665_v24, %v6207_v26  ;;  %v3574_v35 = vld [vmem:[#allocation4 + $0x20] sm:$0xff]  ;;  %v3349_v24 = vld [vmem:[#allocation4 + $0xa] sm:$0xff] }
 0x268   : > { %1807 = vst.msk [vmem:[#allocation3 + $0x88] sm:$0xf] %vm1789_vm8, %v1728_v38  ;;  %v3606_v47 = vpack.c.bf16 %v3574_v35, %v3574_v35  ;;  %v3381_v39 = vpack.c.bf16 %v3349_v24, %v3349_v24 }
 0x269   : > { %v2849_v40 = vmul.f32 %v8014_v49, %v2769_v23  ;;  %2033 = vst.msk [vmem:[#allocation3 + $0x88] sm:$0xf] %vm2015_vm9, %v8035_v33  ;;  %2708 = vmatmul.bf16.gmra.mxu0 %v6208_v34 }
 0x26a   : > { %3219 = vrot.lane.b32.xlu2 %v3155_v56, %s6952_s29  ;;  %v2775_v34 = vpop.f32.mrf.mxu1 }
 0x26b   : > { %v2885_v32 = vadd.f32 %v8023_v8, %v2849_v40 }
 0x26c   : > { %2194 = vrot.lane.b32.xlu1 %v8096_v48, %s6957_s23  ;;  %v8112_v62 = vpop.permute.xlu2 %1957 }
 0x26d   : > { %v2917_v15 = vmax.f32 %v2885_v32, 0.0  ;;  %3221 = vrot.lane.b32.xlu0 %v3156_v58, %s6952_s29 }
 0x26e   : > { %v1952_v33 = vpop.permute.xlu1 %1951  ;;  %v2681_v46 = vpop.f32.mrf.mxu0 }
 0x26f   : > { %2996 = vst.msk [vmem:[#allocation4 + $0x31] sm:$0xff] %vm2947_vm11, %v2917_v15  ;;  %v2771_v60 = vadd.f32 %v2770_v0, %v2681_v46  ;;  %v2177_v51 = vpop.permute.xlu0 %2176  ;;  %v3605_v15 = vpack.c.bf16 %v3573_v36, %v3573_v36  ;;  %v1624_v46 = vld [vmem:[#allocation2 + $0x15a] sm:$0xff] }
 0x270   : > { %2032 = vst.msk [vmem:[#allocation3 + $0x80] sm:$0xf] %vm2015_vm9, %v1952_v33 }
 0x271   : > { %v2850_v27 = vmul.f32 %v8014_v49, %v2771_v60  ;;  %2257 = vst.msk [vmem:[#allocation3 + $0x80] sm:$0xf] %vm2240_vm10, %v2177_v51  ;;  %v3028_v60 = vld [vmem:[#allocation4 + $0x18] sm:$0xff] }
 0x272   : > { %3446 = vrot.lane.b32.xlu2 %v3381_v39, %s6954_s17  ;;  %v2778_v58 = vpop.f32.mrf.mxu1 }
 0x273   : > { %v2886_v52 = vadd.f32 %v8023_v8, %v2850_v27 }
 0x274   : > { %3444 = vrot.lane.b32.xlu1 %v3380_v42, %s6954_s17  ;;  %v1284_v43 = vpop.permute.xlu2 %1283 }
 0x275   : > { %v2918_v12 = vmax.f32 %v2886_v52, 0.0  ;;  %1360 = vst.msk [vmem:[#allocation3 + $0xa0] sm:$0xf] %vm1339_vm6, %v1284_v43  ;;  %3669 = vrot.lane.b32.xlu0 %v3605_v15, %s6956_s22  ;;  %v1656_v43 = vpack.c.bf16 %v1624_v46, %v1624_v46 }
 0x276   : > { %v2179_v59 = vpop.permute.xlu1 %2178 }
 0x277   : > { %v1505_v17 = vpop.permute.xlu0 %1504  ;;  %2997 = vst.msk [vmem:[#allocation4 + $0x39] sm:$0xff] %vm2947_vm11, %v2918_v12  ;;  %v6670_v12 = vld [vmem:[#allocation3 + $0xa4] sm:$0xf] }
 0x278   : > { %2258 = vst.msk [vmem:[#allocation3 + $0x88] sm:$0xf] %vm2240_vm10, %v2179_v59  ;;  %v6233_v59 = vld [vmem:[#allocation3 + $0xa8] sm:$0xf0] }
 0x279   : > { %1583 = vst.msk [vmem:[#allocation3 + $0x90] sm:$0xf] %vm1564_vm7, %v1505_v17  ;;  %v3060_v17 = vpack.c.bf16 %v3028_v60, %v3028_v60  ;;  %v6236_v35 = vor.u32 %v6670_v12, %v6233_v59 }
 0x27a   : > { %1808 = vst.msk [vmem:[#allocation3 + $0x90] sm:$0xf] %vm1789_vm8, %v8084_v2  ;;  %v6215_v2 = vld [vmem:[#allocation3 + $0x80] sm:$0xf]  ;;  %1295 = vrot.lane.b32.xlu2 %v8071_v37, %s6953_s15 }
 0x27b   : > { %6323 = vmatmul.msk.bf16.vlgmr.msra.gmra.mxu2 %vm521_vm0, %v6236_v35  ;;  %2362 = vst.msk [vmem:[#allocation3 + $0xcc] sm:$0xf] %vm664_vm3, %v1656_v43  ;;  %v1850_v35 = vld [vmem:[#allocation2 + $0x170] sm:$0xff] }
 0x27c   : > { %3671 = vrot.lane.b32.xlu1 %v3606_v47, %s6956_s22  ;;  %v8149_v29 = vpop.permute.xlu2 %1510  ;;  %3093 = vst.msk [vmem:[#allocation5 + $0x18] sm:$0xf] %vm3090_vm14, %v3060_v17 }
 0x27d   : > { %1297 = vrot.lane.b32.xlu0 %v8065_v21, %s6953_s15 }
 0x27e   : > { %v1507_v63 = vpop.permute.xlu1 %1506  ;;  %v2684_v14 = vpop.f32.mrf.mxu0  ;;  %v4567_v56 = vld [vmem:[#allocation4 + $0x32] sm:$0xff]  ;;  %v4568_v23 = vld [vmem:[#allocation4 + $0x3a] sm:$0xff] }
 0x27f   : > { %v2774_v45 = vadd.f32 %v2773_v50, %v2684_v14  ;;  %v1732_v26 = vpop.permute.xlu0 %1731  ;;  %1584 = vst.msk [vmem:[#allocation3 + $0x98] sm:$0xf] %vm1564_vm7, %v1507_v63  ;;  %v8160_v61 = vpack.c.bf16 %v4567_v56, %v4567_v56  ;;  %v8162_v44 = vpack.c.bf16 %v4568_v23, %v4568_v23  ;;  %v6667_v32 = vld [vmem:[#allocation3 + $0x84] sm:$0xf0]  ;;  %v3576_v27 = vld [vmem:[#allocation4 + $0x38] sm:$0xff]  ;;  %v3030_v63 = vld [vmem:[#allocation4 + $0x30] sm:$0xff] }
 0x280   : > { %1809 = vst.msk [vmem:[#allocation3 + $0x98] sm:$0xf] %vm1789_vm8, %v1732_v26  ;;  %v6216_v33 = vor.u32 %v6667_v32, %v6215_v2  ;;  %v8188_v41 = vpack.c.bf16 %v3576_v27, %v3576_v27  ;;  %v3798_v23 = vld [vmem:[#allocation4 + $0x19] sm:$0xff]  ;;  %v8206_v36 = vpack.c.bf16 %v3030_v63, %v3030_v63  ;;  %v3799_v2 = vld [vmem:[#allocation4 + $0x21] sm:$0xff] }
 0x281   : > { %v2851_v38 = vmul.f32 %v8014_v49, %v2774_v45  ;;  %2035 = vst.msk [vmem:[#allocation3 + $0x98] sm:$0xf] %vm2015_vm9, %v8112_v62  ;;  %v1623_v62 = vld [vmem:[#allocation2 + $0x152] sm:$0xff]  ;;  %v2074_v45 = vld [vmem:[#allocation2 + $0x169] sm:$0xff]  ;;  %v3830_v21 = vpack.c.bf16 %v3798_v23, %v3798_v23 }
 0x282   : > { %4631 = vst.msk [vmem:[#allocation5 + $0x8] sm:$0xf] %vm3090_vm14, %v8160_v61  ;;  %2713 = vmatmul.bf16.gmra.mxu0 %v6216_v33  ;;  %v8181_v52 = vpack.c.bf16 %v1623_v62, %v1623_v62  ;;  %v8209_v32 = vpack.c.bf16 %v2074_v45, %v2074_v45  ;;  %1522 = vrot.lane.b32.xlu2 %v8096_v48, %s6954_s17 }
 0x283   : > { %v2887_v40 = vadd.f32 %v8023_v8, %v2851_v38  ;;  %4632 = vst.msk [vmem:[#allocation5 + $0x14] sm:$0xf] %vm3090_vm14, %v8162_v44  ;;  %v3831_v62 = vpack.c.bf16 %v3799_v2, %v3799_v2  ;;  %v8246_v45 = vpack.c.bf16 %v1850_v35, %v1850_v35 }
 0x284   : > { %1520 = vrot.lane.b32.xlu1 %v8074_v53, %s6954_s17  ;;  %v8171_v0 = vpop.permute.xlu2 %1959  ;;  %v3029_v53 = vld [vmem:[#allocation4 + $0x20] sm:$0xff]  ;;  %2361 = vst.msk [vmem:[#allocation3 + $0xc4] sm:$0xf] %vm664_vm3, %v8181_v52 }
 0x285   : > { %v2919_v55 = vmax.f32 %v2887_v40, 0.0  ;;  %v3061_v50 = vpack.c.bf16 %v3029_v53, %v3029_v53  ;;  %3096 = vst.msk [vmem:[#allocation5 + $0x3c] sm:$0xf] %vm3090_vm14, %v8188_v41  ;;  %1745 = vrot.lane.b32.xlu0 %v8181_v52, %s6955_s24 }
 0x286   : > { %v1956_v51 = vpop.permute.xlu1 %1955  ;;  %v2686_v10 = vpop.f32.mrf.mxu0  ;;  %3095 = vst.msk [vmem:[#allocation5 + $0x30] sm:$0xf] %vm3090_vm14, %v8206_v36 }
 0x287   : > { %2998 = vst.msk [vmem:[#allocation4 + $0x49] sm:$0xff] %vm2947_vm11, %v2919_v55  ;;  %v2776_v54 = vadd.f32 %v2775_v34, %v2686_v10  ;;  %v2181_v42 = vpop.permute.xlu0 %2180  ;;  %v1849_v55 = vld [vmem:[#allocation2 + $0x168] sm:$0xff] }
 0x288   : > { %2034 = vst.msk [vmem:[#allocation3 + $0x90] sm:$0xf] %vm2015_vm9, %v1956_v51  ;;  %v8228_v48 = vpack.c.bf16 %v1849_v55, %v1849_v55  ;;  %v2780_v51 = vpop.f32.mrf.mxu1 }
 0x289   : > { %v2852_v57 = vmul.f32 %v8014_v49, %v2776_v54  ;;  %2259 = vst.msk [vmem:[#allocation3 + $0x90] sm:$0xf] %vm2240_vm10, %v2181_v42  ;;  %v6339_v1 = vld [vmem:[#allocation5 + $0x8] sm:$0xf]  ;;  %v3126_v54 = vld [vmem:[#allocation4 + $0x21] sm:$0xff] }
 0x28a   : > { %v6693_v37 = vld [vmem:[#allocation5 + $0x10] sm:$0xf0]  ;;  %3094 = vst.msk [vmem:[#allocation5 + $0x24] sm:$0xf] %vm3090_vm14, %v3061_v50  ;;  %1971 = vrot.lane.b32.xlu2 %v8228_v48, %s6956_s22 }
 0x28b   : > { %v2888_v47 = vadd.f32 %v8023_v8, %v2852_v57  ;;  %v6340_v39 = vor.u32 %v6693_v37, %v6339_v1  ;;  %3862 = vst.msk [vmem:[#allocation5 + $0x4] sm:$0xf] %vm3090_vm14, %v3830_v21  ;;  %v6672_v57 = vld [vmem:[#allocation3 + $0xb4] sm:$0xf]  ;;  %v2075_v37 = vld [vmem:[#allocation2 + $0x171] sm:$0xff] }
 0x28c   : > { %1747 = vrot.lane.b32.xlu1 %v1656_v43, %s6955_s24  ;;  %v8196_v24 = vpop.permute.xlu2 %2186  ;;  %3863 = vst.msk [vmem:[#allocation5 + $0x10] sm:$0xf] %vm3090_vm14, %v3831_v62  ;;  %v3575_v21 = vld [vmem:[#allocation4 + $0x30] sm:$0xff]  ;;  %v3125_v62 = vld [vmem:[#allocation4 + $0x19] sm:$0xff] }
 0x28d   : > { %v2920_v14 = vmax.f32 %v2888_v47, 0.0  ;;  %6593 = vmatmul.msk.bf16.vlgmr.msrb.gmra.mxu1 %vm2947_vm11, %v6340_v39  ;;  %1973 = vrot.lane.b32.xlu0 %v8246_v45, %s6956_s22 }
 0x28e   : > { %v2183_v26 = vpop.permute.xlu1 %2182  ;;  %v3577_v56 = vld [vmem:[#allocation4 + $0x48] sm:$0xff] }
 0x28f   : > { %2999 = vst.msk [vmem:[#allocation4 + $0x51] sm:$0xff] %vm2947_vm11, %v2920_v14  ;;  %v1286_v38 = vpop.permute.xlu0 %1285  ;;  %v2689_v34 = vpop.f32.mrf.mxu0  ;;  %v8211_v15 = vpack.c.bf16 %v3577_v56, %v3577_v56  ;;  %v3158_v14 = vpack.c.bf16 %v3126_v54, %v3126_v54 }
 0x290   : > { %2260 = vst.msk [vmem:[#allocation3 + $0x98] sm:$0xf] %vm2240_vm10, %v2183_v26  ;;  %v2779_v40 = vadd.f32 %v2778_v58, %v2689_v34  ;;  %v6241_v58 = vld [vmem:[#allocation3 + $0xb8] sm:$0xf0] }
 0x291   : > { %1361 = vst.msk [vmem:[#allocation3 + $0xa8] sm:$0xf] %vm1339_vm6, %v1286_v38  ;;  %v6244_v52 = vor.u32 %v6672_v57, %v6241_v58  ;;  %v8262_v38 = vpack.c.bf16 %v2075_v37, %v2075_v37  ;;  %v3157_v57 = vpack.c.bf16 %v3125_v62, %v3125_v62  ;;  %v3351_v62 = vld [vmem:[#allocation4 + $0x22] sm:$0xff] }
 0x292   : > { %1586 = vst.msk [vmem:[#allocation3 + $0xa8] sm:$0xf] %vm1564_vm7, %v8149_v29  ;;  %v2853_v33 = vmul.f32 %v8014_v49, %v2779_v40  ;;  %v6223_v29 = vld [vmem:[#allocation3 + $0x90] sm:$0xf] }
 0x293   : > { %3097 = vst.msk [vmem:[#allocation5 + $0x48] sm:$0xf] %vm3090_vm14, %v8211_v15  ;;  %6324 = vmatmul.msk.bf16.gmra.mxu2 %vm521_vm0, %v6244_v52  ;;  %2198 = vrot.lane.b32.xlu2 %v8262_v38, %s6957_s23 }
 0x294   : > { %v2889_v46 = vadd.f32 %v8023_v8, %v2853_v33  ;;  %2196 = vrot.lane.b32.xlu1 %v8209_v32, %s6957_s23  ;;  %v8224_v60 = vpop.permute.xlu2 %1512 }
 0x295   : > { %3223 = vrot.lane.b32.xlu0 %v3157_v57, %s6952_s29  ;;  %v4345_v57 = vld [vmem:[#allocation4 + $0x49] sm:$0xff] }
 0x296   : > { %v2921_v10 = vmax.f32 %v2889_v46, 0.0  ;;  %v1509_v53 = vpop.permute.xlu1 %1508  ;;  %v4569_v42 = vld [vmem:[#allocation4 + $0x4a] sm:$0xff]  ;;  %v4570_v27 = vld [vmem:[#allocation4 + $0x52] sm:$0xff] }
 0x297   : > { %1585 = vst.msk [vmem:[#allocation3 + $0xa0] sm:$0xf] %vm1564_vm7, %v1509_v53  ;;  %v1734_v43 = vpop.permute.xlu0 %1733  ;;  %v2691_v12 = vpop.f32.mrf.mxu0  ;;  %v6669_v59 = vld [vmem:[#allocation3 + $0x94] sm:$0xf0]  ;;  %v8235_v17 = vpack.c.bf16 %v4569_v42, %v4569_v42  ;;  %v8238_v1 = vpack.c.bf16 %v4570_v27, %v4570_v27  ;;  %v3033_v39 = vld [vmem:[#allocation4 + $0x50] sm:$0xff]  ;;  %v1626_v53 = vld [vmem:[#allocation2 + $0x172] sm:$0xff] }
 0x298   : > { %3000 = vst.msk [vmem:[#allocation4 + $0x61] sm:$0xff] %vm2947_vm11, %v2921_v10  ;;  %v2781_v50 = vadd.f32 %v2780_v51, %v2691_v12  ;;  %v6224_v47 = vor.u32 %v6669_v59, %v6223_v29  ;;  %v8251_v26 = vpack.c.bf16 %v3033_v39, %v3033_v39  ;;  %v3607_v51 = vpack.c.bf16 %v3575_v21, %v3575_v21  ;;  %v2783_v29 = vpop.f32.mrf.mxu1  ;;  %v1625_v10 = vld [vmem:[#allocation2 + $0x16a] sm:$0xff]  ;;  %v8282_v27 = vld [vmem:[%s7128_s19 + $0xf8] sm:$0xff]  ;;  %v6674_v39 = vld [vmem:[#allocation3 + $0xc4] sm:$0xf] }
 0x299   : > { %1810 = vst.msk [vmem:[#allocation3 + $0xa0] sm:$0xf] %vm1789_vm8, %v1734_v43  ;;  %v8279_v42 = vpack.c.bf16 %v1625_v10, %v1625_v10  ;;  %v3350_v43 = vld [vmem:[#allocation4 + $0x1a] sm:$0xff] }
 0x29a   : > { %2036 = vst.msk [vmem:[#allocation3 + $0xa0] sm:$0xf] %vm2015_vm9, %v8171_v0  ;;  %v2854_v63 = vmul.f32 %v8014_v49, %v2781_v50  ;;  %2718 = vmatmul.bf16.gmra.mxu0 %v6224_v47  ;;  %v8260_v0 = vld [vmem:[%s7128_s19 + $0xf0] sm:$0xff]  ;;  %v4343_v47 = vld [vmem:[#allocation4 + $0x31] sm:$0xff]  ;;  %v3382_v37 = vpack.c.bf16 %v3350_v43, %v3350_v43  ;;  %v3383_v43 = vpack.c.bf16 %v3351_v62, %v3351_v62 }
 0x29b   : > { %4633 = vst.msk [vmem:[#allocation5 + $0x20] sm:$0xf] %vm3090_vm14, %v8235_v17 }
 0x29c   : > { %v2890_v56 = vadd.f32 %v8023_v8, %v2854_v63  ;;  %3225 = vrot.lane.b32.xlu1 %v3158_v14, %s6952_s29  ;;  %v8255_v23 = vpop.permute.xlu2 %1739  ;;  %4634 = vst.msk [vmem:[#allocation5 + $0x2c] sm:$0xf] %vm3090_vm14, %v8238_v1  ;;  %3448 = vrot.lane.b32.xlu2 %v3382_v37, %s6954_s17 }
 0x29d   : > { %10323 = vst [vmem:[#allocation38_spill] sm:$0xff] %v8260_v0  ;;  %3450 = vrot.lane.b32.xlu0 %v3383_v43, %s6954_s17 }
 0x29e   : > { %598 = vst.msk [vmem:[#allocation2 + $0x181] sm:$0xff] %vm521_vm0, %v8260_v0  ;;  %v2922_v34 = vmax.f32 %v2890_v56, 0.0  ;;  %v1736_v2 = vpop.permute.xlu1 %1735 }
 0x29f   : > { %3098 = vst.msk [vmem:[#allocation5 + $0x54] sm:$0xf] %vm3090_vm14, %v8251_v26  ;;  %v1962_v40 = vpop.permute.xlu0 %1961  ;;  %v3579_v55 = vld [vmem:[#allocation4 + $0x60] sm:$0xff] }
 0x2a0   : > { %1811 = vst.msk [vmem:[#allocation3 + $0xa8] sm:$0xf] %vm1789_vm8, %v1736_v2  ;;  %v8272_v33 = vpack.c.bf16 %v3579_v55, %v3579_v55  ;;  %v6249_v2 = vld [vmem:[#allocation3 + $0xc8] sm:$0xf0] }
 0x2a1   : > { %3001 = vst.msk [vmem:[#allocation4 + $0x69] sm:$0xff] %vm2947_vm11, %v2922_v34  ;;  %v6252_v55 = vor.u32 %v6674_v39, %v6249_v2 }
 0x2a2   : > { %2037 = vst.msk [vmem:[#allocation3 + $0xa8] sm:$0xf] %vm2015_vm9, %v1962_v40  ;;  %v6351_v46 = vld [vmem:[#allocation5 + $0x20] sm:$0xf] }
 0x2a3   : > { %2262 = vst.msk [vmem:[#allocation3 + $0xa8] sm:$0xf] %vm2240_vm10, %v8196_v24  ;;  %v6696_v54 = vld [vmem:[#allocation5 + $0x28] sm:$0xf0]  ;;  %v8289_v24 = vpack.c.bf16 %v1626_v53, %v1626_v53  ;;  %6325 = vmatmul.msk.bf16.gmra.mxu2 %vm521_vm0, %v6252_v55  ;;  %v4347_v55 = vld [vmem:[#allocation4 + $0x61] sm:$0xff] }
 0x2a4   : > { %10324 = vst [vmem:[#allocation39_spill] sm:$0xff] %v8282_v27  ;;  %v6352_v12 = vor.u32 %v6696_v54, %v6351_v46  ;;  %3673 = vrot.lane.b32.xlu1 %v3607_v51, %s6956_s22  ;;  %v8287_v59 = vpop.permute.xlu2 %2188  ;;  %v8313_v51 = vpack.c.bf16 %v4343_v47, %v4343_v47  ;;  %v4344_v54 = vld [vmem:[#allocation4 + $0x39] sm:$0xff]  ;;  %3675 = vrot.lane.b32.xlu2 %v8188_v41, %s6956_s22 }
 0x2a5   : > { %3099 = vst.msk [vmem:[#allocation5 + $0x60] sm:$0xf] %vm3090_vm14, %v8272_v33  ;;  %1299 = vrot.lane.b32.xlu0 %v8228_v48, %s6953_s15 }
 0x2a6   : > { %599 = vst.msk [vmem:[#allocation2 + $0x189] sm:$0xff] %vm521_vm0, %v8282_v27  ;;  %6594 = vmatmul.msk.bf16.gmra.mxu1 %vm2947_vm11, %v6352_v12  ;;  %v2185_v35 = vpop.permute.xlu1 %2184  ;;  %v2694_v50 = vpop.f32.mrf.mxu0 }
 0x2a7   : > { %2363 = vst.msk [vmem:[#allocation3 + $0xd4] sm:$0xf] %vm664_vm3, %v8279_v42  ;;  %v2784_v63 = vadd.f32 %v2783_v29, %v2694_v50  ;;  %v1288_v14 = vpop.permute.xlu0 %1287 }
 0x2a8   : > { %2364 = vst.msk [vmem:[#allocation3 + $0xdc] sm:$0xf] %vm664_vm3, %v8289_v24  ;;  %v4571_v58 = vld [vmem:[#allocation4 + $0x62] sm:$0xff]  ;;  %v4572_v52 = vld [vmem:[#allocation4 + $0x6a] sm:$0xff] }
 0x2a9   : > { %2261 = vst.msk [vmem:[#allocation3 + $0xa0] sm:$0xf] %vm2240_vm10, %v2185_v35  ;;  %v8300_v56 = vpack.c.bf16 %v4571_v58, %v4571_v58  ;;  %v8302_v34 = vpack.c.bf16 %v4572_v52, %v4572_v52  ;;  %v3580_v40 = vld [vmem:[#allocation4 + $0x68] sm:$0xff]  ;;  %v2855_v21 = vmul.f32 %v8014_v49, %v2784_v63  ;;  %v4346_v58 = vld [vmem:[#allocation4 + $0x51] sm:$0xff]  ;;  %v8328_v63 = vpack.c.bf16 %v4344_v54, %v4344_v54 }
 0x2aa   : > { %1362 = vst.msk [vmem:[#allocation3 + $0xb0] sm:$0xf] %vm1339_vm6, %v1288_v14  ;;  %v8311_v46 = vpack.c.bf16 %v3580_v40, %v3580_v40  ;;  %v6671_v53 = vld [vmem:[#allocation3 + $0xa4] sm:$0xf0]  ;;  %v8331_v14 = vpack.c.bf16 %v4345_v57, %v4345_v57  ;;  %v8337_v40 = vpack.c.bf16 %v4346_v58, %v4346_v58 }
 0x2ab   : > { %1587 = vst.msk [vmem:[#allocation3 + $0xb0] sm:$0xf] %vm1564_vm7, %v8224_v60  ;;  %v2891_v29 = vadd.f32 %v8023_v8, %v2855_v21  ;;  %v2785_v60 = vpop.f32.mrf.mxu1  ;;  %v4348_v43 = vld [vmem:[#allocation4 + $0x69] sm:$0xff] }
 0x2ac   : > { %4635 = vst.msk [vmem:[#allocation5 + $0x38] sm:$0xf] %vm3090_vm14, %v8300_v56  ;;  %1301 = vrot.lane.b32.xlu1 %v8246_v45, %s6953_s15  ;;  %v1294_v10 = vpop.permute.xlu2 %1293  ;;  %1524 = vrot.lane.b32.xlu2 %v8209_v32, %s6954_s17 }
 0x2ad   : > { %4636 = vst.msk [vmem:[#allocation5 + $0x44] sm:$0xf] %vm3090_vm14, %v8302_v34  ;;  %v2923_v12 = vmax.f32 %v2891_v29, 0.0  ;;  %1526 = vrot.lane.b32.xlu0 %v8262_v38, %s6954_s17 }
 0x2ae   : > { %3100 = vst.msk [vmem:[#allocation5 + $0x6c] sm:$0xf] %vm3090_vm14, %v8311_v46  ;;  %v1290_v35 = vpop.permute.xlu1 %1289  ;;  %v2696_v50 = vpop.f32.mrf.mxu0 }
 0x2af   : > { %1365 = vst.msk [vmem:[#allocation3 + $0xc8] sm:$0xf] %vm1339_vm6, %v1294_v10  ;;  %v2786_v45 = vadd.f32 %v2785_v60, %v2696_v50  ;;  %v1515_v52 = vpop.permute.xlu0 %1514  ;;  %v8342_v60 = vpack.c.bf16 %v4347_v55, %v4347_v55  ;;  %v6676_v50 = vld [vmem:[#allocation3 + $0xd4] sm:$0xf] }
 0x2b0   : > { %v6231_v47 = vld [vmem:[#allocation3 + $0xa0] sm:$0xf]  ;;  %3864 = vst.msk [vmem:[#allocation5 + $0x1c] sm:$0xf] %vm3090_vm14, %v8313_v51 }
 0x2b1   : > { %3002 = vst.msk [vmem:[#allocation4 + $0x79] sm:$0xff] %vm2947_vm11, %v2923_v12  ;;  %v6232_v37 = vor.u32 %v6671_v53, %v6231_v47  ;;  %v2856_v39 = vmul.f32 %v8014_v49, %v2786_v45  ;;  %v3026_v12 = vld [vmem:[#allocation4] sm:$0xff]  ;;  %v6257_v47 = vld [vmem:[#allocation3 + $0xd8] sm:$0xf0] }
 0x2b2   : > { %1363 = vst.msk [vmem:[#allocation3 + $0xb8] sm:$0xf] %vm1339_vm6, %v1290_v35  ;;  %v3058_v35 = vpack.c.bf16 %v3026_v12, %v3026_v12  ;;  %v6260_v48 = vor.u32 %v6676_v50, %v6257_v47  ;;  %v2076_v12 = vld [vmem:[#allocation2 + $0x181] sm:$0xff] }
 0x2b3   : > { %1588 = vst.msk [vmem:[#allocation3 + $0xb8] sm:$0xf] %vm1564_vm7, %v1515_v52  ;;  %2723 = vmatmul.bf16.gmra.mxu0 %v6232_v37  ;;  %v6363_v2 = vld [vmem:[#allocation5 + $0x38] sm:$0xf]  ;;  %v2892_v62 = vadd.f32 %v8023_v8, %v2856_v39  ;;  %v2788_v45 = vpop.f32.mrf.mxu1  ;;  %v8368_v52 = vpack.c.bf16 %v4348_v43, %v4348_v43 }
 0x2b4   : > { %1813 = vst.msk [vmem:[#allocation3 + $0xb8] sm:$0xf] %vm1789_vm8, %v8255_v23  ;;  %v6699_v21 = vld [vmem:[#allocation5 + $0x40] sm:$0xf0]  ;;  %1749 = vrot.lane.b32.xlu1 %v8279_v42, %s6955_s24  ;;  %v8348_v41 = vpop.permute.xlu2 %1741  ;;  %v1852_v23 = vld [vmem:[#allocation2 + $0x188] sm:$0xff]  ;;  %6326 = vmatmul.msk.bf16.gmra.mxu2 %vm521_vm0, %v6260_v48 }
 0x2b5   : > { %v6364_v29 = vor.u32 %v6699_v21, %v6363_v2  ;;  %3865 = vst.msk [vmem:[#allocation5 + $0x28] sm:$0xf] %vm3090_vm14, %v8328_v63  ;;  %v2924_v10 = vmax.f32 %v2892_v62, 0.0  ;;  %v8361_v57 = vpack.c.bf16 %v1852_v23, %v1852_v23  ;;  %v3127_v23 = vld [vmem:[#allocation4 + $0x31] sm:$0xff]  ;;  %1751 = vrot.lane.b32.xlu2 %v8289_v24, %s6955_s24 }
 0x2b6   : > { %3866 = vst.msk [vmem:[#allocation5 + $0x34] sm:$0xf] %vm3090_vm14, %v8331_v14  ;;  %v1738_v53 = vpop.permute.xlu1 %1737 }
 0x2b7   : > { %3867 = vst.msk [vmem:[#allocation5 + $0x40] sm:$0xf] %vm3090_vm14, %v8337_v40  ;;  %6595 = vmatmul.msk.bf16.gmra.mxu1 %vm2947_vm11, %v6364_v29  ;;  %v1964_v42 = vpop.permute.xlu0 %1963 }
 0x2b8   : > { %v3581_v54 = vld [vmem:[#allocation4 + $0x78] sm:$0xff]  ;;  %3868 = vst.msk [vmem:[#allocation5 + $0x4c] sm:$0xf] %vm3090_vm14, %v8342_v60 }
 0x2b9   : > { %3003 = vst.msk [vmem:[#allocation4 + $0x81] sm:$0xff] %vm2947_vm11, %v2924_v10  ;;  %v8363_v58 = vpack.c.bf16 %v3581_v54, %v3581_v54  ;;  %v1851_v54 = vld [vmem:[#allocation2 + $0x180] sm:$0xff] }
 0x2ba   : > { %1812 = vst.msk [vmem:[#allocation3 + $0xb0] sm:$0xf] %vm1789_vm8, %v1738_v53  ;;  %v2302_v53 = vld [vmem:[#allocation2 + $0x18a] sm:$0xff]  ;;  %v8401_v47 = vpack.c.bf16 %v1851_v54, %v1851_v54 }
 0x2bb   : > { %2038 = vst.msk [vmem:[#allocation3 + $0xb0] sm:$0xf] %vm2015_vm9, %v1964_v42  ;;  %v8392_v42 = vpack.c.bf16 %v2302_v53, %v2302_v53  ;;  %v2790_v48 = vpop.f32.mrf.mxu1 }
 0x2bc   : > { %2263 = vst.msk [vmem:[#allocation3 + $0xb0] sm:$0xf] %vm2240_vm10, %v8287_v59  ;;  %1977 = vrot.lane.b32.xlu1 %v8361_v57, %s6956_s22  ;;  %v8376_v37 = vpop.permute.xlu2 %1969  ;;  %v2301_v59 = vld [vmem:[#allocation2 + $0x182] sm:$0xff]  ;;  %1975 = vrot.lane.b32.xlu0 %v8401_v47, %s6956_s22 }
 0x2bd   : > { %3091 = vst.msk [vmem:[#allocation5] sm:$0xf] %vm3090_vm14, %v3058_v35  ;;  %v8390_v43 = vpack.c.bf16 %v2301_v59, %v2301_v59  ;;  %v3159_v35 = vpack.c.bf16 %v3127_v23, %v3127_v23 }
 0x2be   : > { %3101 = vst.msk [vmem:[#allocation5 + $0x78] sm:$0xf] %vm3090_vm14, %v8363_v58  ;;  %v1966_v2 = vpop.permute.xlu1 %1965  ;;  %v2699_v21 = vpop.f32.mrf.mxu0 }
 0x2bf   : > { %3869 = vst.msk [vmem:[#allocation5 + $0x58] sm:$0xf] %vm3090_vm14, %v8368_v52  ;;  %v2789_v29 = vadd.f32 %v2788_v45, %v2699_v21  ;;  %v2191_v10 = vpop.permute.xlu0 %2190 }
 0x2c0   : > { %v4573_v32 = vld [vmem:[#allocation4 + $0x7a] sm:$0xff]  ;;  %v4574_v39 = vld [vmem:[#allocation4 + $0x82] sm:$0xff]  ;;  %2039 = vst.msk [vmem:[#allocation3 + $0xb8] sm:$0xf] %vm2015_vm9, %v1966_v2  ;;  %v8411_v2 = vpack.c.bf16 %v2076_v12, %v2076_v12 }
 0x2c1   : > { %v8384_v55 = vpack.c.bf16 %v4573_v32, %v4573_v32  ;;  %v8386_v62 = vpack.c.bf16 %v4574_v39, %v4574_v39  ;;  %2264 = vst.msk [vmem:[#allocation3 + $0xb8] sm:$0xf] %vm2240_vm10, %v2191_v10  ;;  %v2857_v38 = vmul.f32 %v8014_v49, %v2789_v29  ;;  %v3582_v50 = vld [vmem:[#allocation4 + $0x80] sm:$0xff] }
 0x2c2   : > { %2365 = vst.msk [vmem:[#allocation3 + $0xe4] sm:$0xf] %vm664_vm3, %v8390_v43  ;;  %v8406_v32 = vpack.c.bf16 %v3582_v50, %v3582_v50  ;;  %v4349_v39 = vld [vmem:[#allocation4 + $0x79] sm:$0xff]  ;;  %2200 = vrot.lane.b32.xlu2 %v8411_v2, %s6957_s23 }
 0x2c3   : > { %4637 = vst.msk [vmem:[#allocation5 + $0x50] sm:$0xf] %vm3090_vm14, %v8384_v55  ;;  %v2893_v45 = vadd.f32 %v8023_v8, %v2857_v38  ;;  %v6239_v59 = vld [vmem:[#allocation3 + $0xb0] sm:$0xf]  ;;  %v8419_v38 = vpack.c.bf16 %v4349_v39, %v4349_v39  ;;  %v2077_v12 = vld [vmem:[#allocation2 + $0x189] sm:$0xff] }
 0x2c4   : > { %4638 = vst.msk [vmem:[#allocation5 + $0x5c] sm:$0xf] %vm3090_vm14, %v8386_v62  ;;  %3227 = vrot.lane.b32.xlu1 %v3159_v35, %s6952_s29  ;;  %v3220_v24 = vpop.permute.xlu2 %3219 }
 0x2c5   : > { %2366 = vst.msk [vmem:[#allocation3 + $0xec] sm:$0xf] %vm664_vm3, %v8392_v42  ;;  %v2925_v21 = vmax.f32 %v2893_v45, 0.0 }
 0x2c6   : > { %3316 = vst.msk [vmem:[#allocation5] sm:$0xf] %vm3315_vm15, %v3220_v24  ;;  %v1292_v29 = vpop.permute.xlu1 %1291  ;;  %v2701_v10 = vpop.f32.mrf.mxu0 }
 0x2c7   : > { %3102 = vst.msk [vmem:[#allocation5 + $0x84] sm:$0xf] %vm3090_vm14, %v8406_v32  ;;  %v2791_v23 = vadd.f32 %v2790_v48, %v2701_v10  ;;  %v1517_v53 = vpop.permute.xlu0 %1516 }
 0x2c8   : > { %3004 = vst.msk [vmem:[#allocation4 + $0x91] sm:$0xff] %vm2947_vm11, %v2925_v21  ;;  %v6673_v54 = vld [vmem:[#allocation3 + $0xb4] sm:$0xf0]  ;;  %v6746_v21 = vld [vmem:[%s10235_s4 + $0x38] sm:$0xff] }
 0x2c9   : > { %1364 = vst.msk [vmem:[#allocation3 + $0xc0] sm:$0xf] %vm1339_vm6, %v1292_v29  ;;  %v6240_v35 = vor.u32 %v6673_v54, %v6239_v59  ;;  %v2858_v45 = vmul.f32 %v8014_v49, %v2791_v23  ;;  %v6678_v39 = vld [vmem:[#allocation3 + $0xe4] sm:$0xf]  ;;  %v8431_v59 = vpack.c.bf16 %v2077_v12, %v2077_v12  ;;  %v3128_v23 = vld [vmem:[#allocation4 + $0x39] sm:$0xff]  ;;  %v2793_v54 = vpop.f32.mrf.mxu1  ;;  %5159 = vmatpush.bf16.msrb.mxu2 %v6746_v21 }
 0x2ca   : > { %v6375_v50 = vld [vmem:[#allocation5 + $0x50] sm:$0xf]  ;;  %1589 = vst.msk [vmem:[#allocation3 + $0xc0] sm:$0xf] %vm1564_vm7, %v1517_v53 }
 0x2cb   : > { %v6702_v24 = vld [vmem:[#allocation5 + $0x58] sm:$0xf0]  ;;  %1814 = vst.msk [vmem:[#allocation3 + $0xc0] sm:$0xf] %vm1789_vm8, %v8348_v41  ;;  %2728 = vmatmul.bf16.gmra.mxu0 %v6240_v35  ;;  %v2894_v29 = vadd.f32 %v8023_v8, %v2858_v45  ;;  %v6745_v12 = vld [vmem:[%s10235_s4 + $0x30] sm:$0xff]  ;;  %v2304_v45 = vld [vmem:[#allocation2 + $0x1a2] sm:$0xff]  ;;  %2202 = vrot.lane.b32.xlu0 %v8431_v59, %s6957_s23 }
 0x2cc   : > { %v6376_v48 = vor.u32 %v6702_v24, %v6375_v50  ;;  %v6265_v10 = vld [vmem:[#allocation3 + $0xe8] sm:$0xf0]  ;;  %3870 = vst.msk [vmem:[#allocation5 + $0x64] sm:$0xf] %vm3090_vm14, %v8419_v38  ;;  %3454 = vrot.lane.b32.xlu1 %v8162_v44, %s6954_s17  ;;  %v3160_v24 = vpack.c.bf16 %v3128_v23, %v3128_v23 }
 0x2cd   : > { %v6268_v41 = vor.u32 %v6678_v39, %v6265_v10  ;;  %v2926_v53 = vmax.f32 %v2894_v29, 0.0  ;;  %v2303_v50 = vld [vmem:[#allocation2 + $0x19a] sm:$0xff]  ;;  %5160 = vmatpush.bf16.msrb.mxu2 %v6745_v12 }
 0x2ce   : > { %6596 = vmatmul.msk.bf16.gmra.mxu1 %vm2947_vm11, %v6376_v48  ;;  %v1519_v35 = vpop.permute.xlu1 %1518  ;;  %v3027_v48 = vld [vmem:[#allocation4 + $0x8] sm:$0xff]  ;;  %v2335_v10 = vpack.c.bf16 %v2303_v50, %v2303_v50  ;;  %3229 = vrot.lane.b32.xlu2 %v3160_v24, %s6952_s29 }
 0x2cf   : > { %6327 = vmatmul.msk.bf16.gmra.mxu2 %vm521_vm0, %v6268_v41  ;;  %3005 = vst.msk [vmem:[#allocation4 + $0x99] sm:$0xff] %vm2947_vm11, %v2926_v53  ;;  %v2704_v44 = vpop.f32.mrf.mxu0  ;;  %v1744_v39 = vpop.permute.xlu0 %1743  ;;  %v3059_v29 = vpack.c.bf16 %v3027_v48, %v3027_v48  ;;  %v2336_v41 = vpack.c.bf16 %v2304_v45, %v2304_v45  ;;  %v6744_v53 = vld [vmem:[%s10235_s4 + $0x28] sm:$0xff] }
 0x2d0   : > { %1590 = vst.msk [vmem:[#allocation3 + $0xc8] sm:$0xf] %vm1564_vm7, %v1519_v35  ;;  %v2794_v21 = vadd.f32 %v2793_v54, %v2704_v44  ;;  %v3583_v54 = vld [vmem:[#allocation4 + $0x90] sm:$0xff] }
 0x2d1   : > { %1815 = vst.msk [vmem:[#allocation3 + $0xc8] sm:$0xf] %vm1789_vm8, %v1744_v39  ;;  %v8460_v12 = vpack.c.bf16 %v3583_v54, %v3583_v54  ;;  %5161 = vmatpush.bf16.msrb.mxu2 %v6744_v53  ;;  %v6743_v44 = vld [vmem:[%s10235_s4 + $0x20] sm:$0xff]  ;;  %v2795_v48 = vpop.f32.mrf.mxu1  ;;  %v6742_v53 = vld [vmem:[%s10235_s4 + $0x18] sm:$0xff] }
 0x2d2   : > { %2041 = vst.msk [vmem:[#allocation3 + $0xc8] sm:$0xf] %vm2015_vm9, %v8376_v37  ;;  %v2859_v23 = vmul.f32 %v8014_v49, %v2794_v21  ;;  %v4350_v49 = vld [vmem:[#allocation4 + $0x81] sm:$0xff] }
 0x2d3   : > { %3092 = vst.msk [vmem:[#allocation5 + $0xc] sm:$0xf] %vm3090_vm14, %v3059_v29  ;;  %3452 = vrot.lane.b32.xlu0 %v8160_v61, %s6954_s17  ;;  %v8476_v29 = vpack.c.bf16 %v4350_v49, %v4350_v49  ;;  %v3578_v61 = vld [vmem:[#allocation4 + $0x50] sm:$0xff] }
 0x2d4   : > { %v2895_v35 = vadd.f32 %v8023_v8, %v2859_v23  ;;  %1303 = vrot.lane.b32.xlu1 %v8401_v47, %s6953_s15  ;;  %2367 = vst.msk [vmem:[#allocation3 + $0xf4] sm:$0xf] %vm664_vm3, %v2335_v10 }
 0x2d5   : > { %2368 = vst.msk [vmem:[#allocation3 + $0xfc] sm:$0xf] %vm664_vm3, %v2336_v41  ;;  %5162 = vmatpush.bf16.msrb.mxu2 %v6743_v44  ;;  %v8487_v41 = vld [vmem:[%s10233_s2] ss:$0 sm:$0xff]  ;;  %v1853_v44 = vld [vmem:[#allocation2 + $0x198] sm:$0xff] }
 0x2d6   : > { %v4575_v37 = vld [vmem:[#allocation4 + $0x92] sm:$0xff]  ;;  %v4576_v50 = vld [vmem:[#allocation4 + $0x9a] sm:$0xff]  ;;  %v2927_v45 = vmax.f32 %v2895_v35, 0.0  ;;  %v1968_v24 = vpop.permute.xlu1 %1967  ;;  %3103 = vst.msk [vmem:[#allocation5 + $0x90] sm:$0xf] %vm3090_vm14, %v8460_v12  ;;  %3677 = vrot.lane.b32.xlu2 %v8211_v15, %s6956_s22  ;;  %v8493_v35 = vpop.permute.xlu2 %3446 }
 0x2d7   : > { %v8470_v8 = vpack.c.bf16 %v4575_v37, %v4575_v37  ;;  %v8472_v47 = vpack.c.bf16 %v4576_v50, %v4576_v50  ;;  %2040 = vst.msk [vmem:[#allocation3 + $0xc0] sm:$0xf] %vm2015_vm9, %v1968_v24  ;;  %v2706_v39 = vpop.f32.mrf.mxu0  ;;  %v2193_v10 = vpop.permute.xlu0 %2192  ;;  %v3584_v54 = vld [vmem:[#allocation4 + $0x98] sm:$0xff]  ;;  %v8501_v37 = vld [vmem:[%s10234_s3] ss:$0 sm:$0xff]  ;;  %v3610_v24 = vpack.c.bf16 %v3578_v61, %v3578_v61  ;;  %v1885_v61 = vpack.c.bf16 %v1853_v44, %v1853_v44 }
 0x2d8   : > { %3006 = vst.msk [vmem:[#allocation4 + $0xa9] sm:$0xff] %vm2947_vm11, %v2927_v45  ;;  %v2796_v21 = vadd.f32 %v2795_v48, %v2706_v39  ;;  %v8496_v49 = vpack.c.bf16 %v3584_v54, %v3584_v54  ;;  %v6740_v54 = vld [vmem:[%s10235_s4 + $0x8] sm:$0xff] }
 0x2d9   : > { %4639 = vst.msk [vmem:[#allocation5 + $0x68] sm:$0xf] %vm3090_vm14, %v8470_v8  ;;  %5163 = vmatpush.bf16.msrb.mxu2 %v6742_v53 }
 0x2da   : > { %4640 = vst.msk [vmem:[#allocation5 + $0x74] sm:$0xf] %vm3090_vm14, %v8472_v47  ;;  %v2860_v23 = vmul.f32 %v8487_v41, %v2796_v21 }
 0x2db   : > { %2265 = vst.msk [vmem:[#allocation3 + $0xc0] sm:$0xf] %vm2240_vm10, %v2193_v10  ;;  %v6680_v15 = vld [vmem:[#allocation3 + $0xf4] sm:$0xf]  ;;  %v6741_v10 = vld [vmem:[%s10235_s4 + $0x10] sm:$0xff]  ;;  %3679 = vrot.lane.b32.xlu0 %v3610_v24, %s6956_s22 }
 0x2dc   : > { %v2896_v50 = vadd.f32 %v8501_v37, %v2860_v23  ;;  %1530 = vrot.lane.b32.xlu1 %v8431_v59, %s6954_s17  ;;  %v6273_v45 = vld [vmem:[#allocation3 + $0xf8] sm:$0xf0]  ;;  %3871 = vst.msk [vmem:[#allocation5 + $0x70] sm:$0xf] %vm3090_vm14, %v8476_v29 }
 0x2dd   : > { %v6276_v48 = vor.u32 %v6680_v15, %v6273_v45  ;;  %3104 = vst.msk [vmem:[#allocation5 + $0x9c] sm:$0xf] %vm3090_vm14, %v8496_v49  ;;  %5164 = vmatpush.bf16.msrb.mxu2 %v6741_v10  ;;  %v4351_v45 = vld [vmem:[#allocation4 + $0x91] sm:$0xff] }
 0x2de   : > { %v2928_v39 = vmax.f32 %v2896_v50, 0.0  ;;  %v2195_v21 = vpop.permute.xlu1 %2194  ;;  %1305 = vrot.lane.b32.xlu2 %v8361_v57, %s6953_s15  ;;  %v1296_v15 = vpop.permute.xlu2 %1295  ;;  %v8525_v44 = vpack.c.bf16 %v4351_v45, %v4351_v45  ;;  %v2079_v57 = vld [vmem:[#allocation2 + $0x1a1] sm:$0xff] }
 0x2df   : > { %2266 = vst.msk [vmem:[#allocation3 + $0xc8] sm:$0xf] %vm2240_vm10, %v2195_v21  ;;  %6328 = vmatmul.msk.bf16.gmra.mxu2 %vm521_vm0, %v6276_v48  ;;  %v2798_v50 = vpop.f32.mrf.mxu1  ;;  %v6739_v10 = vld [vmem:[%s10235_s4] sm:$0xff]  ;;  %v2111_v45 = vpack.c.bf16 %v2079_v57, %v2079_v57  ;;  %v3585_v0 = vld [vmem:[#allocation4 + $0xa8] sm:$0xff] }
 0x2e0   : > { %3007 = vst.msk [vmem:[#allocation4 + $0xb1] sm:$0xff] %vm2947_vm11, %v2928_v39  ;;  %v6387_v59 = vld [vmem:[#allocation5 + $0x68] sm:$0xf] }
 0x2e1   : > { %v6705_v23 = vld [vmem:[#allocation5 + $0x70] sm:$0xf0]  ;;  %1366 = vst.msk [vmem:[#allocation3 + $0xd0] sm:$0xf] %vm1339_vm6, %v1296_v15  ;;  %5165 = vmatpush.bf16.msrb.mxu2 %v6740_v54 }
 0x2e2   : > { %v6388_v53 = vor.u32 %v6705_v23, %v6387_v59  ;;  %v6247_v24 = vld [vmem:[#allocation3 + $0xc0] sm:$0xf]  ;;  %3872 = vst.msk [vmem:[#allocation5 + $0x7c] sm:$0xf] %vm3090_vm14, %v8525_v44 }
 0x2e3   : > { %1528 = vrot.lane.b32.xlu0 %v8411_v2, %s6954_s17  ;;  %v1854_v2 = vld [vmem:[#allocation2 + $0x1a0] sm:$0xff] }
 0x2e4   : > { %6597 = vmatmul.msk.bf16.gmra.mxu1 %vm2947_vm11, %v6388_v53  ;;  %1979 = vrot.lane.b32.xlu1 %v1885_v61, %s6956_s22 }
 0x2e5   : > { %5166 = vmatpush.bf16.msrb.mxu2 %v6739_v10  ;;  %v1886_v10 = vpack.c.bf16 %v1854_v2, %v1854_v2 }
 0x2e6   : > { %v3445_v48 = vpop.permute.xlu1 %3444  ;;  %v2709_v39 = vpop.f32.mrf.mxu0  ;;  %v6675_v21 = vld [vmem:[#allocation3 + $0xc4] sm:$0xf0]  ;;  %1753 = vrot.lane.b32.xlu2 %v8390_v43, %s6955_s24 }
 0x2e7   : > { %v4577_v59 = vld [vmem:[#allocation4 + $0xaa] sm:$0xff]  ;;  %v4578_v61 = vld [vmem:[#allocation4 + $0xb2] sm:$0xff]  ;;  %3541 = vst.msk [vmem:[#allocation5] sm:$0xf] %vm3540_vm1, %v3445_v48  ;;  %v2799_v23 = vadd.f32 %v2798_v50, %v2709_v39  ;;  %v6248_v53 = vor.u32 %v6675_v21, %v6247_v24  ;;  %v8544_v48 = vpack.c.bf16 %v3585_v0, %v3585_v0  ;;  %v8548_v50 = vpop.permute.xlu2 %1522  ;;  %v2800_v21 = vpop.f32.mrf.mxu1 }
 0x2e8   : > { %v8535_v54 = vpack.c.bf16 %v4577_v59, %v4577_v59  ;;  %v8537_v15 = vpack.c.bf16 %v4578_v61, %v4578_v61  ;;  %v3586_v57 = vld [vmem:[#allocation4 + $0xb0] sm:$0xff]  ;;  %v4352_v39 = vld [vmem:[#allocation4 + $0x99] sm:$0xff] }
 0x2e9   : > { %v2861_v27 = vmul.f32 %v8487_v41, %v2799_v23  ;;  %2733 = vmatmul.bf16.gmra.mxu0 %v6248_v53  ;;  %v8552_v43 = vpack.c.bf16 %v3586_v57, %v3586_v57  ;;  %3105 = vst.msk [vmem:[#allocation5 + $0xa8] sm:$0xf] %vm3090_vm14, %v8544_v48  ;;  %v8556_v59 = vpack.c.bf16 %v4352_v39, %v4352_v39  ;;  %v2078_v53 = vld [vmem:[#allocation2 + $0x199] sm:$0xff] }
 0x2ea   : > { %4641 = vst.msk [vmem:[#allocation5 + $0x80] sm:$0xf] %vm3090_vm14, %v8535_v54  ;;  %v2110_v39 = vpack.c.bf16 %v2078_v53, %v2078_v53 }
 0x2eb   : > { %4642 = vst.msk [vmem:[#allocation5 + $0x8c] sm:$0xf] %vm3090_vm14, %v8537_v15  ;;  %v2897_v24 = vadd.f32 %v8501_v37, %v2861_v27  ;;  %1755 = vrot.lane.b32.xlu0 %v8392_v42, %s6955_s24 }
 0x2ec   : > { %2206 = vrot.lane.b32.xlu1 %v2111_v45, %s6957_s23  ;;  %3106 = vst.msk [vmem:[#allocation5 + $0xb4] sm:$0xf] %vm3090_vm14, %v8552_v43  ;;  %v3222_v45 = vpop.permute.xlu0 %3221 }
 0x2ed   : > { %v2929_v0 = vmax.f32 %v2897_v24, 0.0  ;;  %3873 = vst.msk [vmem:[#allocation5 + $0x88] sm:$0xf] %vm3090_vm14, %v8556_v59 }
 0x2ee   : > { %v3672_v61 = vpop.permute.xlu1 %3671  ;;  %v2711_v23 = vpop.f32.mrf.mxu0  ;;  %1981 = vrot.lane.b32.xlu2 %v1886_v10, %s6956_s22  ;;  %3317 = vst.msk [vmem:[#allocation5 + $0xc] sm:$0xf] %vm3315_vm15, %v3222_v45 }
 0x2ef   : > { %3008 = vst.msk [vmem:[#allocation4 + $0xc1] sm:$0xff] %vm2947_vm11, %v2929_v0  ;;  %v2801_v27 = vadd.f32 %v2800_v21, %v2711_v23  ;;  %v8568_v31 = vpop.permute.xlu2 %1971  ;;  %v3129_v0 = vld [vmem:[#allocation4 + $0x49] sm:$0xff] }
 0x2f0   : > { %3542 = vst.msk [vmem:[#allocation5 + $0xc] sm:$0xf] %vm3540_vm1, %v8493_v35 }
 0x2f1   : > { %v2862_v2 = vmul.f32 %v8487_v41, %v2801_v27  ;;  %v6399_v24 = vld [vmem:[#allocation5 + $0x80] sm:$0xf]  ;;  %3767 = vst.msk [vmem:[#allocation5 + $0xc] sm:$0xf] %vm3765_vm2, %v3672_v61  ;;  %v3161_v27 = vpack.c.bf16 %v3129_v0, %v3129_v0 }
 0x2f2   : > { %v6708_v57 = vld [vmem:[#allocation5 + $0x88] sm:$0xf0]  ;;  %v3130_v61 = vld [vmem:[#allocation4 + $0x51] sm:$0xff] }
 0x2f3   : > { %v2898_v42 = vadd.f32 %v8501_v37, %v2862_v2  ;;  %v6400_v21 = vor.u32 %v6708_v57, %v6399_v24  ;;  %2204 = vrot.lane.b32.xlu0 %v2110_v39, %s6957_s23  ;;  %v4353_v2 = vld [vmem:[#allocation4 + $0xa9] sm:$0xff]  ;;  %v4354_v57 = vld [vmem:[#allocation4 + $0xb1] sm:$0xff]  ;;  %v3162_v39 = vpack.c.bf16 %v3130_v61, %v3130_v61  ;;  %s10405_s23 = sld [smem:[#allocation59_spill]] }
 0x2f4   : > { %3456 = vrot.lane.b32.xlu1 %v8235_v17, %s6954_s17  ;;  %v3670_v35 = vpop.permute.xlu0 %3669  ;;  %v8588_v24 = vpack.c.bf16 %v4353_v2, %v4353_v2 }
 0x2f5   : > { %v2930_v10 = vmax.f32 %v2898_v42, 0.0  ;;  %6598 = vmatmul.msk.bf16.gmra.mxu1 %vm2947_vm11, %v6400_v21  ;;  %3766 = vst.msk [vmem:[#allocation5] sm:$0xf] %vm3765_vm2, %v3670_v35  ;;  %v8592_v42 = vpack.c.bf16 %v4354_v57, %v4354_v57  ;;  %v2803_v35 = vpop.f32.mrf.mxu1 }
 0x2f6   : > { %v1521_v23 = vpop.permute.xlu1 %1520  ;;  %3231 = vrot.lane.b32.xlu2 %v3161_v27, %s6952_s29  ;;  %v3587_v53 = vld [vmem:[#allocation4 + $0xc0] sm:$0xff]  ;;  %3874 = vst.msk [vmem:[#allocation5 + $0x94] sm:$0xf] %vm3090_vm14, %v8588_v24 }
 0x2f7   : > { %3009 = vst.msk [vmem:[#allocation4 + $0xc9] sm:$0xff] %vm2947_vm11, %v2930_v10  ;;  %v8582_v45 = vpop.permute.xlu2 %2198  ;;  %v8584_v17 = vpack.c.bf16 %v3587_v53, %v3587_v53 }
 0x2f8   : > { %1591 = vst.msk [vmem:[#allocation3 + $0xd0] sm:$0xf] %vm1564_vm7, %v1521_v23  ;;  %v6692_v27 = vld [vmem:[#allocation5 + $0x8] sm:$0xf0] }
 0x2f9   : > { %3107 = vst.msk [vmem:[#allocation5 + $0xc0] sm:$0xf] %vm3090_vm14, %v8584_v17 }
 0x2fa   : > { %3875 = vst.msk [vmem:[#allocation5 + $0xa0] sm:$0xf] %vm3090_vm14, %v8592_v42 }
 0x2fb   : > { %3233 = vrot.lane.b32.xlu0 %v3162_v39, %s6952_s29 }
 0x2fc   : > { %3683 = vrot.lane.b32.xlu1 %v8311_v46, %s6956_s22  ;;  %v1298_v61 = vpop.permute.xlu0 %1297  ;;  %v6331_v53 = vld [vmem:[#allocation5] sm:$0xf] }
 0x2fd   : > { %v6332_v2 = vor.u32 %v6692_v27, %v6331_v53  ;;  %1367 = vst.msk [vmem:[#allocation3 + $0xd8] sm:$0xf] %vm1339_vm6, %v1298_v61 }
 0x2fe   : > { %v4579_v21 = vld [vmem:[#allocation4 + $0xc2] sm:$0xff]  ;;  %v4580_v0 = vld [vmem:[#allocation4 + $0xca] sm:$0xff]  ;;  %v1748_v10 = vpop.permute.xlu1 %1747  ;;  %3458 = vrot.lane.b32.xlu2 %v8238_v1, %s6954_s17  ;;  %1592 = vst.msk [vmem:[#allocation3 + $0xd8] sm:$0xf] %vm1564_vm7, %v8548_v50 }
 0x2ff   : > { %v8597_v23 = vpack.c.bf16 %v4579_v21, %v4579_v21  ;;  %v8599_v46 = vpack.c.bf16 %v4580_v0, %v4580_v0  ;;  %v3588_v57 = vld [vmem:[#allocation4 + $0xc8] sm:$0xff]  ;;  %v8610_v39 = vpop.permute.xlu2 %3448  ;;  %5167 = vmatmul.bf16.vlgmr.msrb.gmra.mxu2 %v6332_v2  ;;  %v2714_v28 = vpop.f32.mrf.mxu0  ;;  %1817 = vst.msk [vmem:[#allocation3 + $0xd8] sm:$0xf] %vm1789_vm8, %v1748_v10 }
 0x300   : > { %v8612_v21 = vpack.c.bf16 %v3588_v57, %v3588_v57  ;;  %v3131_v0 = vld [vmem:[#allocation4 + $0x61] sm:$0xff]  ;;  %v2804_v1 = vadd.f32 %v2803_v35, %v2714_v28  ;;  %v3132_v28 = vld [vmem:[#allocation4 + $0x69] sm:$0xff]  ;;  %v2805_v35 = vpop.f32.mrf.mxu1 }
 0x301   : > { %4643 = vst.msk [vmem:[#allocation5 + $0x98] sm:$0xf] %vm3090_vm14, %v8597_v23  ;;  %v3163_v61 = vpack.c.bf16 %v3131_v0, %v3131_v0  ;;  %v4355_v0 = vld [vmem:[#allocation4 + $0xc1] sm:$0xff] }
 0x302   : > { %4644 = vst.msk [vmem:[#allocation5 + $0xa4] sm:$0xf] %vm3090_vm14, %v8599_v46  ;;  %v2863_v53 = vmul.f32 %v8487_v41, %v2804_v1 }
 0x303   : > { %3108 = vst.msk [vmem:[#allocation5 + $0xcc] sm:$0xf] %vm3090_vm14, %v8612_v21  ;;  %3681 = vrot.lane.b32.xlu0 %v8272_v33, %s6956_s22 }
 0x304   : > { %3460 = vrot.lane.b32.xlu1 %v8300_v56, %s6954_s17  ;;  %v1746_v2 = vpop.permute.xlu0 %1745  ;;  %v2899_v57 = vadd.f32 %v8501_v37, %v2863_v53  ;;  %v3164_v53 = vpack.c.bf16 %v3132_v28, %v3132_v28  ;;  %v3133_v28 = vld [vmem:[#allocation4 + $0x79] sm:$0xff] }
 0x305   : > { %1816 = vst.msk [vmem:[#allocation3 + $0xd0] sm:$0xf] %vm1789_vm8, %v1746_v2 }
 0x306   : > { %v2197_v27 = vpop.permute.xlu1 %2196  ;;  %3235 = vrot.lane.b32.xlu2 %v3163_v61, %s6952_s29  ;;  %2042 = vst.msk [vmem:[#allocation3 + $0xd0] sm:$0xf] %vm2015_vm9, %v8568_v31  ;;  %v2931_v33 = vmax.f32 %v2899_v57, 0.0  ;;  %v8635_v61 = vpack.c.bf16 %v4355_v0, %v4355_v0 }
 0x307   : > { %v8629_v30 = vpop.permute.xlu2 %3675  ;;  %2267 = vst.msk [vmem:[#allocation3 + $0xd0] sm:$0xf] %vm2240_vm10, %v2197_v27  ;;  %v2716_v1 = vpop.f32.mrf.mxu0 }
 0x308   : > { %v6411_v50 = vld [vmem:[#allocation5 + $0x98] sm:$0xf]  ;;  %3010 = vst.msk [vmem:[#allocation4 + $0xd9] sm:$0xff] %vm2947_vm11, %v2931_v33 }
 0x309   : > { %v6711_v56 = vld [vmem:[#allocation5 + $0xa0] sm:$0xf0]  ;;  %3876 = vst.msk [vmem:[#allocation5 + $0xac] sm:$0xf] %vm3090_vm14, %v8635_v61 }
 0x30a   : > { %v6412_v10 = vor.u32 %v6711_v56, %v6411_v50  ;;  %v2806_v50 = vadd.f32 %v2805_v35, %v2716_v1  ;;  %v2808_v35 = vpop.f32.mrf.mxu1 }
 0x30b   : > { %3237 = vrot.lane.b32.xlu0 %v3164_v53, %s6952_s29 }
 0x30c   : > { %6599 = vmatmul.msk.bf16.gmra.mxu1 %vm2947_vm11, %v6412_v10  ;;  %3687 = vrot.lane.b32.xlu1 %v8406_v32, %s6956_s22  ;;  %v2864_v31 = vmul.f32 %v8487_v41, %v2806_v50  ;;  %v1974_v27 = vpop.permute.xlu0 %1973 }
 0x30d   : > { %2043 = vst.msk [vmem:[#allocation3 + $0xd8] sm:$0xf] %vm2015_vm9, %v1974_v27 }
 0x30e   : > { %v3226_v2 = vpop.permute.xlu1 %3225  ;;  %3462 = vrot.lane.b32.xlu2 %v8302_v34, %s6954_s17  ;;  %v2900_v32 = vadd.f32 %v8501_v37, %v2864_v31  ;;  %2268 = vst.msk [vmem:[#allocation3 + $0xd8] sm:$0xf] %vm2240_vm10, %v8582_v45  ;;  %v4356_v34 = vld [vmem:[#allocation4 + $0xc9] sm:$0xff]  ;;  %v3165_v45 = vpack.c.bf16 %v3133_v28, %v3133_v28  ;;  %v3134_v31 = vld [vmem:[#allocation4 + $0x81] sm:$0xff] }
 0x30f   : > { %3319 = vst.msk [vmem:[#allocation5 + $0x24] sm:$0xf] %vm3315_vm15, %v3226_v2  ;;  %v8649_v57 = vpop.permute.xlu2 %1524  ;;  %v3589_v10 = vld [vmem:[#allocation4 + $0xd8] sm:$0xff]  ;;  %v8656_v1 = vpack.c.bf16 %v4356_v34, %v4356_v34  ;;  %v6255_v50 = vld [vmem:[#allocation3 + $0xd0] sm:$0xf] }
 0x310   : > { %v2932_v56 = vmax.f32 %v2900_v32, 0.0  ;;  %v8654_v33 = vpack.c.bf16 %v3589_v10, %v3589_v10  ;;  %v3814_v28 = vld [vmem:[#allocation4 + $0xd9] sm:$0xff] }
 0x311   : > { %3877 = vst.msk [vmem:[#allocation5 + $0xb8] sm:$0xf] %vm3090_vm14, %v8656_v1 }
 0x312   : > { %3011 = vst.msk [vmem:[#allocation4 + $0xe1] sm:$0xff] %vm2947_vm11, %v2932_v56 }
 0x313   : > { %3685 = vrot.lane.b32.xlu0 %v8363_v58, %s6956_s22  ;;  %3109 = vst.msk [vmem:[#allocation5 + $0xd8] sm:$0xf] %vm3090_vm14, %v8654_v33 }
 0x314   : > { %3464 = vrot.lane.b32.xlu1 %v8384_v55, %s6954_s17  ;;  %v3224_v2 = vpop.permute.xlu0 %3223 }
 0x315   : > { %3318 = vst.msk [vmem:[#allocation5 + $0x18] sm:$0xf] %vm3315_vm15, %v3224_v2  ;;  %v6677_v27 = vld [vmem:[#allocation3 + $0xd4] sm:$0xf0] }
 0x316   : > { %v3674_v0 = vpop.permute.xlu1 %3673  ;;  %3239 = vrot.lane.b32.xlu2 %v3165_v45, %s6952_s29  ;;  %3543 = vst.msk [vmem:[#allocation5 + $0x18] sm:$0xf] %vm3540_vm1, %v8610_v39  ;;  %v6256_v56 = vor.u32 %v6677_v27, %v6255_v50  ;;  %v8675_v45 = vpack.c.bf16 %v3814_v28, %v3814_v28  ;;  %v3166_v39 = vpack.c.bf16 %v3134_v31, %v3134_v31 }
 0x317   : > { %v2719_v53 = vpop.f32.mrf.mxu0  ;;  %v8669_v58 = vpop.permute.xlu2 %1751  ;;  %3768 = vst.msk [vmem:[#allocation5 + $0x18] sm:$0xf] %vm3765_vm2, %v3674_v0 }
 0x318   : > { %v2809_v55 = vadd.f32 %v2808_v35, %v2719_v53  ;;  %2738 = vmatmul.bf16.gmra.mxu0 %v6256_v56  ;;  %3878 = vst.msk [vmem:[#allocation5 + $0xc4] sm:$0xf] %vm3090_vm14, %v8675_v45  ;;  %v2810_v0 = vpop.f32.mrf.mxu1 }
 0x319   : > { %v4581_v10 = vld [vmem:[#allocation4 + $0xda] sm:$0xff]  ;;  %v4582_v35 = vld [vmem:[#allocation4 + $0xe2] sm:$0xff] }
 0x31a   : > { %v2865_v32 = vmul.f32 %v8487_v41, %v2809_v55  ;;  %v8677_v53 = vpack.c.bf16 %v4581_v10, %v4581_v10  ;;  %v8679_v55 = vpack.c.bf16 %v4582_v35, %v4582_v35  ;;  %v3590_v27 = vld [vmem:[#allocation4 + $0xe0] sm:$0xff] }
 0x31b   : > { %3241 = vrot.lane.b32.xlu0 %v3166_v39, %s6952_s29  ;;  %v8691_v56 = vpack.c.bf16 %v3590_v27, %v3590_v27  ;;  %v3135_v39 = vld [vmem:[#allocation4 + $0x91] sm:$0xff] }
 0x31c   : > { %v2901_v34 = vadd.f32 %v8501_v37, %v2865_v32  ;;  %3691 = vrot.lane.b32.xlu1 %v8496_v49, %s6956_s22  ;;  %4645 = vst.msk [vmem:[#allocation5 + $0xb0] sm:$0xf] %vm3090_vm14, %v8677_v53  ;;  %v3142_v32 = vld [vmem:[#allocation4 + $0xe1] sm:$0xff]  ;;  %v3451_v31 = vpop.permute.xlu0 %3450 }
 0x31d   : > { %4646 = vst.msk [vmem:[#allocation5 + $0xbc] sm:$0xf] %vm3090_vm14, %v8679_v55  ;;  %v8695_v35 = vpack.c.bf16 %v3142_v32, %v3142_v32 }
 0x31e   : > { %v2933_v2 = vmax.f32 %v2901_v34, 0.0  ;;  %v1302_v50 = vpop.permute.xlu1 %1301  ;;  %3466 = vrot.lane.b32.xlu2 %v8386_v62, %s6954_s17  ;;  %3544 = vst.msk [vmem:[#allocation5 + $0x24] sm:$0xf] %vm3540_vm1, %v3451_v31 }
 0x31f   : > { %v2721_v49 = vpop.f32.mrf.mxu0  ;;  %3769 = vst.msk [vmem:[#allocation5 + $0x24] sm:$0xf] %vm3765_vm2, %v8629_v30  ;;  %v8699_v34 = vpop.permute.xlu2 %2200  ;;  %v3167_v30 = vpack.c.bf16 %v3135_v39, %v3135_v39 }
 0x320   : > { %v2811_v28 = vadd.f32 %v2810_v0, %v2721_v49  ;;  %3012 = vst.msk [vmem:[#allocation4 + $0xf1] sm:$0xff] %vm2947_vm11, %v2933_v2 }
 0x321   : > { %1369 = vst.msk [vmem:[#allocation3 + $0xe8] sm:$0xf] %vm1339_vm6, %v1302_v50  ;;  %v6343_v50 = vld [vmem:[#allocation5 + $0x18] sm:$0xf] }
 0x322   : > { %v2866_v10 = vmul.f32 %v8487_v41, %v2811_v28  ;;  %3110 = vst.msk [vmem:[#allocation5 + $0xe4] sm:$0xf] %vm3090_vm14, %v8691_v56 }
 0x323   : > { %v6423_v27 = vld [vmem:[#allocation5 + $0xb0] sm:$0xf]  ;;  %3879 = vst.msk [vmem:[#allocation5 + $0xd0] sm:$0xf] %vm3090_vm14, %v8695_v35  ;;  %3689 = vrot.lane.b32.xlu0 %v8460_v12, %s6956_s22  ;;  %v2813_v12 = vpop.f32.mrf.mxu2 }
 0x324   : > { %v2902_v62 = vadd.f32 %v8501_v37, %v2866_v10  ;;  %3468 = vrot.lane.b32.xlu1 %v8470_v8, %s6954_s17  ;;  %v6714_v49 = vld [vmem:[#allocation5 + $0xb8] sm:$0xf0]  ;;  %v1300_v28 = vpop.permute.xlu0 %1299  ;;  %v3136_v8 = vld [vmem:[#allocation4 + $0x99] sm:$0xff] }
 0x325   : > { %v6424_v32 = vor.u32 %v6714_v49, %v6423_v27  ;;  %1368 = vst.msk [vmem:[#allocation3 + $0xe0] sm:$0xf] %vm1339_vm6, %v1300_v28 }
 0x326   : > { %v2934_v2 = vmax.f32 %v2902_v62, 0.0  ;;  %v1750_v0 = vpop.permute.xlu1 %1749  ;;  %3243 = vrot.lane.b32.xlu2 %v3167_v30, %s6952_s29  ;;  %v6695_v31 = vld [vmem:[#allocation5 + $0x20] sm:$0xf0]  ;;  %1593 = vst.msk [vmem:[#allocation3 + $0xe0] sm:$0xf] %vm1564_vm7, %v8649_v57 }
 0x327   : > { %6600 = vmatmul.msk.bf16.gmra.mxu1 %vm2947_vm11, %v6424_v32  ;;  %v3591_v10 = vld [vmem:[#allocation4 + $0xf0] sm:$0xff]  ;;  %v6344_v62 = vor.u32 %v6695_v31, %v6343_v50  ;;  %1818 = vst.msk [vmem:[#allocation3 + $0xe0] sm:$0xf] %vm1789_vm8, %v1750_v0 }
 0x328   : > { %3013 = vst.msk [vmem:[#allocation4 + $0xf9] sm:$0xff] %vm2947_vm11, %v2934_v2  ;;  %v3230_v39 = vpop.permute.xlu2 %3229  ;;  %v8717_v25 = vpack.c.bf16 %v3591_v10, %v3591_v10  ;;  %v3168_v2 = vpack.c.bf16 %v3136_v8, %v3136_v8 }
 0x329   : > { %3321 = vst.msk [vmem:[#allocation5 + $0x3c] sm:$0xf] %vm3315_vm15, %v3230_v39  ;;  %5172 = vmatmul.bf16.gmra.mxu2 %v6344_v62 }
 0x32a   : > { %3111 = vst.msk [vmem:[#allocation5 + $0xf0] sm:$0xf] %vm3090_vm14, %v8717_v25 }
 0x32b   : > { %3245 = vrot.lane.b32.xlu0 %v3168_v2, %s6952_s29 }
 0x32c   : > { %3695 = vrot.lane.b32.xlu1 %v8552_v43, %s6956_s22  ;;  %v1527_v31 = vpop.permute.xlu0 %1526 }
 0x32d   : > { %1594 = vst.msk [vmem:[#allocation3 + $0xe8] sm:$0xf] %vm1564_vm7, %v1527_v31 }
 0x32e   : > { %v1978_v27 = vpop.permute.xlu1 %1977  ;;  %3470 = vrot.lane.b32.xlu2 %v8472_v47, %s6954_s17  ;;  %1819 = vst.msk [vmem:[#allocation3 + $0xe8] sm:$0xf] %vm1789_vm8, %v8669_v58  ;;  %v2815_v47 = vpop.f32.mrf.mxu2 }
 0x32f   : > { %v4583_v57 = vld [vmem:[#allocation4 + $0xf2] sm:$0xff]  ;;  %v4584_v49 = vld [vmem:[#allocation4 + $0xfa] sm:$0xff]  ;;  %2045 = vst.msk [vmem:[#allocation3 + $0xe8] sm:$0xf] %vm2015_vm9, %v1978_v27 }
 0x330   : > { %v2724_v30 = vpop.f32.mrf.mxu0  ;;  %v8726_v32 = vpack.c.bf16 %v4583_v57, %v4583_v57  ;;  %v8728_v28 = vpack.c.bf16 %v4584_v49, %v4584_v49  ;;  %v3592_v0 = vld [vmem:[#allocation4 + $0xf8] sm:$0xff]  ;;  %v8737_v8 = vpop.permute.xlu2 %3677 }
 0x331   : > { %v2814_v50 = vadd.f32 %v2813_v12, %v2724_v30  ;;  %v3137_v12 = vld [vmem:[#allocation4 + $0xa9] sm:$0xff]  ;;  %v8745_v62 = vpack.c.bf16 %v3592_v0, %v3592_v0  ;;  %v3138_v27 = vld [vmem:[#allocation4 + $0xb1] sm:$0xff] }
 0x332   : > { %4647 = vst.msk [vmem:[#allocation5 + $0xc8] sm:$0xf] %vm3090_vm14, %v8726_v32  ;;  %v3169_v57 = vpack.c.bf16 %v3137_v12, %v3137_v12 }
 0x333   : > { %v2867_v43 = vmul.f32 %v8487_v41, %v2814_v50  ;;  %4648 = vst.msk [vmem:[#allocation5 + $0xd4] sm:$0xf] %vm3090_vm14, %v8728_v28  ;;  %3693 = vrot.lane.b32.xlu0 %v8544_v48, %s6956_s22 }
 0x334   : > { %3472 = vrot.lane.b32.xlu1 %v8535_v54, %s6954_s17  ;;  %v1976_v54 = vpop.permute.xlu0 %1975  ;;  %3112 = vst.msk [vmem:[#allocation5 + $0xfc] sm:$0xf] %vm3090_vm14, %v8745_v62 }
 0x335   : > { %v2903_v10 = vadd.f32 %v8501_v37, %v2867_v43  ;;  %2044 = vst.msk [vmem:[#allocation3 + $0xe0] sm:$0xf] %vm2015_vm9, %v1976_v54  ;;  %v3139_v54 = vld [vmem:[#allocation4 + $0xc1] sm:$0xff] }
 0x336   : > { %v3228_v2 = vpop.permute.xlu1 %3227  ;;  %3247 = vrot.lane.b32.xlu2 %v3169_v57, %s6952_s29  ;;  %2269 = vst.msk [vmem:[#allocation3 + $0xe0] sm:$0xf] %vm2240_vm10, %v8699_v34 }
 0x337   : > { %v2935_v39 = vmax.f32 %v2903_v10, 0.0  ;;  %3320 = vst.msk [vmem:[#allocation5 + $0x30] sm:$0xf] %vm3315_vm15, %v3228_v2  ;;  %v3816_v10 = vld [vmem:[#allocation4 + $0xf1] sm:$0xff] }
 0x338   : > { %v2726_v30 = vpop.f32.mrf.mxu0  ;;  %v1306_v48 = vpop.permute.xlu2 %1305  ;;  %v3848_v12 = vpack.c.bf16 %v3816_v10, %v3816_v10  ;;  %v3171_v10 = vpack.c.bf16 %v3139_v54, %v3139_v54 }
 0x339   : > { %3014 = vst.msk [vmem:[#allocation4 + $0x109] sm:$0xff] %vm2947_vm11, %v2935_v39  ;;  %v2816_v49 = vadd.f32 %v2815_v47, %v2726_v30  ;;  %v6435_v50 = vld [vmem:[#allocation5 + $0xc8] sm:$0xf]  ;;  %v3170_v47 = vpack.c.bf16 %v3138_v27, %v3138_v27 }
 0x33a   : > { %v6717_v31 = vld [vmem:[#allocation5 + $0xd0] sm:$0xf0]  ;;  %1371 = vst.msk [vmem:[#allocation3 + $0xf8] sm:$0xf] %vm1339_vm6, %v1306_v48 }
 0x33b   : > { %v2868_v58 = vmul.f32 %v8487_v41, %v2816_v49  ;;  %v6436_v0 = vor.u32 %v6717_v31, %v6435_v50  ;;  %3880 = vst.msk [vmem:[#allocation5 + $0xdc] sm:$0xf] %vm3090_vm14, %v3848_v12  ;;  %3249 = vrot.lane.b32.xlu0 %v3170_v47, %s6952_s29  ;;  %v3817_v49 = vld [vmem:[#allocation4 + $0xf9] sm:$0xff]  ;;  %v2818_v50 = vpop.f32.mrf.mxu2 }
 0x33c   : > { %3699 = vrot.lane.b32.xlu1 %v8612_v21, %s6956_s22 }
 0x33d   : > { %v2904_v43 = vadd.f32 %v8501_v37, %v2868_v58  ;;  %6601 = vmatmul.msk.bf16.gmra.mxu1 %vm2947_vm11, %v6436_v0  ;;  %v2203_v34 = vpop.permute.xlu0 %2202  ;;  %v3849_v58 = vpack.c.bf16 %v3817_v49, %v3817_v49  ;;  %v6263_v0 = vld [vmem:[#allocation3 + $0xe0] sm:$0xf] }
 0x33e   : > { %v3455_v2 = vpop.permute.xlu1 %3454  ;;  %3474 = vrot.lane.b32.xlu2 %v8537_v15, %s6954_s17  ;;  %2270 = vst.msk [vmem:[#allocation3 + $0xe8] sm:$0xf] %vm2240_vm10, %v2203_v34 }
 0x33f   : > { %v2936_v39 = vmax.f32 %v2904_v43, 0.0  ;;  %3546 = vst.msk [vmem:[#allocation5 + $0x3c] sm:$0xf] %vm3540_vm1, %v3455_v2  ;;  %v3140_v2 = vld [vmem:[#allocation4 + $0xc9] sm:$0xff] }
 0x340   : > { %v3593_v21 = vld [vmem:[#allocation4 + $0x108] sm:$0xff]  ;;  %v8771_v30 = vpop.permute.xlu2 %1753  ;;  %3881 = vst.msk [vmem:[#allocation5 + $0xe8] sm:$0xf] %vm3090_vm14, %v3849_v58 }
 0x341   : > { %3015 = vst.msk [vmem:[#allocation4 + $0x111] sm:$0xff] %vm2947_vm11, %v2936_v39  ;;  %v8773_v57 = vpack.c.bf16 %v3593_v21, %v3593_v21 }
 0x343   : > { %3113 = vst.msk [vmem:[#allocation5 + $0x108] sm:$0xf] %vm3090_vm14, %v8773_v57  ;;  %3697 = vrot.lane.b32.xlu0 %v8584_v17, %s6956_s22 }
 0x344   : > { %3476 = vrot.lane.b32.xlu1 %v8597_v23, %s6954_s17 }
 0x345   : > { %v3453_v47 = vpop.permute.xlu0 %3452  ;;  %v6679_v39 = vld [vmem:[#allocation3 + $0xe4] sm:$0xf0] }
 0x346   : > { %v1304_v15 = vpop.permute.xlu1 %1303  ;;  %3251 = vrot.lane.b32.xlu2 %v3171_v10, %s6952_s29  ;;  %v6264_v17 = vor.u32 %v6679_v39, %v6263_v0  ;;  %3545 = vst.msk [vmem:[#allocation5 + $0x30] sm:$0xf] %vm3540_vm1, %v3453_v47 }
 0x347   : > { %1370 = vst.msk [vmem:[#allocation3 + $0xf0] sm:$0xf] %vm1339_vm6, %v1304_v15  ;;  %v2820_v15 = vpop.f32.mrf.mxu2 }
 0x348   : > { %v4585_v27 = vld [vmem:[#allocation4 + $0x10a] sm:$0xff]  ;;  %v4586_v31 = vld [vmem:[#allocation4 + $0x112] sm:$0xff]  ;;  %v2729_v23 = vpop.f32.mrf.mxu0  ;;  %v1982_v49 = vpop.permute.xlu2 %1981  ;;  %3770 = vst.msk [vmem:[#allocation5 + $0x30] sm:$0xf] %vm3765_vm2, %v8737_v8  ;;  %2743 = vmatmul.bf16.gmra.mxu0 %v6264_v17 }
 0x349   : > { %v8782_v48 = vpack.c.bf16 %v4585_v27, %v4585_v27  ;;  %v8784_v43 = vpack.c.bf16 %v4586_v31, %v4586_v31  ;;  %v2819_v12 = vadd.f32 %v2818_v50, %v2729_v23  ;;  %v3594_v21 = vld [vmem:[#allocation4 + $0x110] sm:$0xff]  ;;  %v3172_v50 = vpack.c.bf16 %v3140_v2, %v3140_v2  ;;  %v3141_v17 = vld [vmem:[#allocation4 + $0xd9] sm:$0xff] }
 0x34a   : > { %v8794_v54 = vpack.c.bf16 %v3594_v21, %v3594_v21 }
 0x34b   : > { %4649 = vst.msk [vmem:[#allocation5 + $0xe0] sm:$0xf] %vm3090_vm14, %v8782_v48  ;;  %v2869_v34 = vmul.f32 %v8487_v41, %v2819_v12  ;;  %3253 = vrot.lane.b32.xlu0 %v3172_v50, %s6952_s29  ;;  %v3173_v50 = vpack.c.bf16 %v3141_v17, %v3141_v17 }
 0x34c   : > { %4650 = vst.msk [vmem:[#allocation5 + $0xec] sm:$0xf] %vm3090_vm14, %v8784_v43  ;;  %3703 = vrot.lane.b32.xlu1 %v8691_v56, %s6956_s22 }
 0x34d   : > { %v2905_v58 = vadd.f32 %v8501_v37, %v2869_v34  ;;  %3114 = vst.msk [vmem:[#allocation5 + $0x114] sm:$0xf] %vm3090_vm14, %v8794_v54  ;;  %v3680_v23 = vpop.permute.xlu0 %3679  ;;  %v3818_v34 = vld [vmem:[#allocation4 + $0x109] sm:$0xff] }
 0x34e   : > { %v1531_v31 = vpop.permute.xlu1 %1530  ;;  %3478 = vrot.lane.b32.xlu2 %v8599_v46, %s6954_s17  ;;  %3771 = vst.msk [vmem:[#allocation5 + $0x3c] sm:$0xf] %vm3765_vm2, %v3680_v23  ;;  %v3850_v21 = vpack.c.bf16 %v3818_v34, %v3818_v34 }
 0x34f   : > { %v2937_v27 = vmax.f32 %v2905_v58, 0.0  ;;  %1596 = vst.msk [vmem:[#allocation3 + $0xf8] sm:$0xf] %vm1564_vm7, %v1531_v31  ;;  %v6355_v31 = vld [vmem:[#allocation5 + $0x30] sm:$0xf] }
 0x350   : > { %v2731_v0 = vpop.f32.mrf.mxu0  ;;  %v3232_v39 = vpop.permute.xlu2 %3231  ;;  %3882 = vst.msk [vmem:[#allocation5 + $0xf4] sm:$0xf] %vm3090_vm14, %v3850_v21 }
 0x351   : > { %3016 = vst.msk [vmem:[#allocation4 + $0x121] sm:$0xff] %vm2947_vm11, %v2937_v27  ;;  %v2821_v8 = vadd.f32 %v2820_v15, %v2731_v0 }
 0x352   : > { %v6447_v10 = vld [vmem:[#allocation5 + $0xe0] sm:$0xf]  ;;  %3322 = vst.msk [vmem:[#allocation5 + $0x48] sm:$0xf] %vm3315_vm15, %v3232_v39 }
 0x353   : > { %v6720_v56 = vld [vmem:[#allocation5 + $0xe8] sm:$0xf0]  ;;  %v2870_v12 = vmul.f32 %v8487_v41, %v2821_v8  ;;  %3701 = vrot.lane.b32.xlu0 %v8654_v33, %s6956_s22 }
 0x354   : > { %v6448_v47 = vor.u32 %v6720_v56, %v6447_v10  ;;  %3480 = vrot.lane.b32.xlu1 %v8677_v53, %s6954_s17  ;;  %v3819_v10 = vld [vmem:[#allocation4 + $0x111] sm:$0xff] }
 0x355   : > { %v2906_v2 = vadd.f32 %v8501_v37, %v2870_v12  ;;  %v1529_v27 = vpop.permute.xlu0 %1528  ;;  %v6698_v15 = vld [vmem:[#allocation5 + $0x38] sm:$0xf0]  ;;  %v3851_v33 = vpack.c.bf16 %v3819_v10, %v3819_v10  ;;  %v3144_v10 = vld [vmem:[#allocation4 + $0xf9] sm:$0xff] }
 0x356   : > { %6602 = vmatmul.msk.bf16.gmra.mxu1 %vm2947_vm11, %v6448_v47  ;;  %v1980_v58 = vpop.permute.xlu1 %1979  ;;  %3255 = vrot.lane.b32.xlu2 %v3173_v50, %s6952_s29  ;;  %1595 = vst.msk [vmem:[#allocation3 + $0xf0] sm:$0xf] %vm1564_vm7, %v1529_v27  ;;  %v6356_v0 = vor.u32 %v6698_v15, %v6355_v31 }
 0x357   : > { %v2938_v46 = vmax.f32 %v2906_v2, 0.0  ;;  %1820 = vst.msk [vmem:[#allocation3 + $0xf0] sm:$0xf] %vm1789_vm8, %v8771_v30  ;;  %v2823_v2 = vpop.f32.mrf.mxu2 }
 0x358   : > { %v8823_v8 = vpop.permute.xlu2 %3458  ;;  %5177 = vmatmul.bf16.gmra.mxu2 %v6356_v0  ;;  %2046 = vst.msk [vmem:[#allocation3 + $0xf0] sm:$0xf] %vm2015_vm9, %v1980_v58  ;;  %v3595_v17 = vld [vmem:[#allocation4 + $0x120] sm:$0xff] }
 0x359   : > { %3017 = vst.msk [vmem:[#allocation4 + $0x129] sm:$0xff] %vm2947_vm11, %v2938_v46  ;;  %v8845_v46 = vpack.c.bf16 %v3595_v17, %v3595_v17  ;;  %v8869_v17 = vpack.c.bf16 %v3144_v10, %v3144_v10 }
 0x35a   : > { %3883 = vst.msk [vmem:[#allocation5 + $0x100] sm:$0xf] %vm3090_vm14, %v3851_v33 }
 0x35b   : > { %3257 = vrot.lane.b32.xlu0 %v8695_v35, %s6952_s29  ;;  %v3143_v35 = vld [vmem:[#allocation4 + $0xf1] sm:$0xff]  ;;  %3115 = vst.msk [vmem:[#allocation5 + $0x120] sm:$0xf] %vm3090_vm14, %v8845_v46 }
 0x35c   : > { %3707 = vrot.lane.b32.xlu1 %v8745_v62, %s6956_s22 }
 0x35d   : > { %v1756_v30 = vpop.permute.xlu0 %1755 }
 0x35e   : > { %v2207_v23 = vpop.permute.xlu1 %2206  ;;  %3482 = vrot.lane.b32.xlu2 %v8679_v55, %s6954_s17  ;;  %1821 = vst.msk [vmem:[#allocation3 + $0xf8] sm:$0xf] %vm1789_vm8, %v1756_v30 }
 0x35f   : > { %2047 = vst.msk [vmem:[#allocation3 + $0xf8] sm:$0xf] %vm2015_vm9, %v1982_v49  ;;  %v8850_v49 = vpack.c.bf16 %v3143_v35, %v3143_v35  ;;  %v2825_v30 = vpop.f32.mrf.mxu2 }
 0x360   : > { %v4587_v56 = vld [vmem:[#allocation4 + $0x122] sm:$0xff]  ;;  %v4588_v12 = vld [vmem:[#allocation4 + $0x12a] sm:$0xff]  ;;  %v3236_v34 = vpop.permute.xlu2 %3235  ;;  %2272 = vst.msk [vmem:[#allocation3 + $0xf8] sm:$0xf] %vm2240_vm10, %v2207_v23 }
 0x361   : > { %v8831_v47 = vpack.c.bf16 %v4587_v56, %v4587_v56  ;;  %v8833_v39 = vpack.c.bf16 %v4588_v12, %v4588_v12  ;;  %v3596_v21 = vld [vmem:[#allocation4 + $0x128] sm:$0xff]  ;;  %3324 = vst.msk [vmem:[#allocation5 + $0x60] sm:$0xf] %vm3315_vm15, %v3236_v34 }
 0x362   : > { %v8853_v31 = vpack.c.bf16 %v3596_v21, %v3596_v21 }
 0x363   : > { %4651 = vst.msk [vmem:[#allocation5 + $0xf8] sm:$0xf] %vm3090_vm14, %v8831_v47  ;;  %3705 = vrot.lane.b32.xlu0 %v8717_v25, %s6956_s22 }
 0x364   : > { %3484 = vrot.lane.b32.xlu1 %v8726_v32, %s6954_s17  ;;  %4652 = vst.msk [vmem:[#allocation5 + $0x104] sm:$0xf] %vm3090_vm14, %v8833_v39 }
 0x365   : > { %v2205_v15 = vpop.permute.xlu0 %2204  ;;  %3116 = vst.msk [vmem:[#allocation5 + $0x12c] sm:$0xf] %vm3090_vm14, %v8853_v31 }
 0x366   : > { %v3457_v58 = vpop.permute.xlu1 %3456  ;;  %v2734_v50 = vpop.f32.mrf.mxu0  ;;  %3259 = vrot.lane.b32.xlu2 %v8850_v49, %s6952_s29  ;;  %2271 = vst.msk [vmem:[#allocation3 + $0xf0] sm:$0xf] %vm2240_vm10, %v2205_v15 }
 0x367   : > { %v2824_v27 = vadd.f32 %v2823_v2, %v2734_v50  ;;  %3547 = vst.msk [vmem:[#allocation5 + $0x48] sm:$0xf] %vm3540_vm1, %v3457_v58  ;;  %v6681_v58 = vld [vmem:[#allocation3 + $0xf4] sm:$0xf0] }
 0x368   : > { %v8862_v33 = vpop.permute.xlu2 %3462 }
 0x369   : > { %v2871_v0 = vmul.f32 %v8487_v41, %v2824_v27 }
 0x36a   : > { %v6459_v56 = vld [vmem:[#allocation5 + $0xf8] sm:$0xf] }
 0x36b   : > { %v2907_v23 = vadd.f32 %v8501_v37, %v2871_v0  ;;  %v6723_v12 = vld [vmem:[#allocation5 + $0x100] sm:$0xf0]  ;;  %3261 = vrot.lane.b32.xlu0 %v8869_v17, %s6952_s29 }
 0x36c   : > { %3711 = vrot.lane.b32.xlu1 %v8794_v54, %s6956_s22  ;;  %v6460_v34 = vor.u32 %v6723_v12, %v6459_v56 }
 0x36d   : > { %v2939_v2 = vmax.f32 %v2907_v23, 0.0  ;;  %v3234_v27 = vpop.permute.xlu0 %3233  ;;  %v6271_v15 = vld [vmem:[#allocation3 + $0xf0] sm:$0xf]  ;;  %v3820_v23 = vld [vmem:[#allocation4 + $0x121] sm:$0xff] }
 0x36e   : > { %v3684_v35 = vpop.permute.xlu1 %3683  ;;  %v2736_v21 = vpop.f32.mrf.mxu0  ;;  %6603 = vmatmul.msk.bf16.gmra.mxu1 %vm2947_vm11, %v6460_v34  ;;  %3486 = vrot.lane.b32.xlu2 %v8728_v28, %s6954_s17  ;;  %3323 = vst.msk [vmem:[#allocation5 + $0x54] sm:$0xf] %vm3315_vm15, %v3234_v27  ;;  %v6272_v10 = vor.u32 %v6681_v58, %v6271_v15  ;;  %v3821_v34 = vld [vmem:[#allocation4 + $0x129] sm:$0xff]  ;;  %v4120_v15 = vld [vmem:[#allocation4 + $0x38] sm:$0xff] }
 0x36f   : > { %3018 = vst.msk [vmem:[#allocation4 + $0x139] sm:$0xff] %vm2947_vm11, %v2939_v2  ;;  %v2826_v50 = vadd.f32 %v2825_v30, %v2736_v21  ;;  %v3852_v2 = vpack.c.bf16 %v3820_v23, %v3820_v23  ;;  %v3894_v30 = vld [vmem:[#allocation4 + $0x1a] sm:$0xff]  ;;  %v3853_v21 = vpack.c.bf16 %v3821_v34, %v3821_v34 }
 0x370   : > { %3548 = vst.msk [vmem:[#allocation5 + $0x54] sm:$0xf] %vm3540_vm1, %v8823_v8  ;;  %v3240_v56 = vpop.permute.xlu2 %3239  ;;  %2748 = vmatmul.bf16.gmra.mxu0 %v6272_v10 }
 0x371   : > { %v2872_v0 = vmul.f32 %v8487_v41, %v2826_v50  ;;  %3326 = vst.msk [vmem:[#allocation5 + $0x78] sm:$0xf] %vm3315_vm15, %v3240_v56 }
 0x372   : > { %3773 = vst.msk [vmem:[#allocation5 + $0x54] sm:$0xf] %vm3765_vm2, %v3684_v35 }
 0x373   : > { %v2908_v12 = vadd.f32 %v8501_v37, %v2872_v0  ;;  %3884 = vst.msk [vmem:[#allocation5 + $0x10c] sm:$0xf] %vm3090_vm14, %v3852_v2  ;;  %3709 = vrot.lane.b32.xlu0 %v8773_v57, %s6956_s22  ;;  %v3926_v37 = vpack.c.bf16 %v3894_v30, %v3894_v30  ;;  %v4152_v30 = vpack.c.bf16 %v4120_v15, %v4120_v15 }
 0x374   : > { %4215 = vrot.lane.b32.xlu1 %v8206_v36, %s6954_s17  ;;  %3885 = vst.msk [vmem:[#allocation5 + $0x118] sm:$0xf] %vm3090_vm14, %v3853_v21  ;;  %v3895_v36 = vld [vmem:[#allocation4 + $0x22] sm:$0xff] }
 0x375   : > { %v2940_v41 = vmax.f32 %v2908_v12, 0.0  ;;  %v3682_v8 = vpop.permute.xlu0 %3681  ;;  %v3927_v0 = vpack.c.bf16 %v3895_v36, %v3895_v36 }
 0x376   : > { %v3461_v58 = vpop.permute.xlu1 %3460  ;;  %3990 = vrot.lane.b32.xlu2 %v3926_v37, %s6952_s29  ;;  %3772 = vst.msk [vmem:[#allocation5 + $0x48] sm:$0xf] %vm3765_vm2, %v3682_v8  ;;  %v3597_v35 = vld [vmem:[#allocation4 + $0x138] sm:$0xff]  ;;  %v3145_v8 = vld [vmem:[#allocation4 + $0x109] sm:$0xff] }
 0x377   : > { %3019 = vst.msk [vmem:[#allocation4 + $0x141] sm:$0xff] %vm2947_vm11, %v2940_v41  ;;  %v8894_v27 = vpack.c.bf16 %v3597_v35, %v3597_v35  ;;  %v8921_v15 = vpack.c.bf16 %v3145_v8, %v3145_v8 }
 0x378   : > { %3549 = vst.msk [vmem:[#allocation5 + $0x60] sm:$0xf] %vm3540_vm1, %v3461_v58  ;;  %v3467_v50 = vpop.permute.xlu2 %3466 }
 0x379   : > { %3117 = vst.msk [vmem:[#allocation5 + $0x138] sm:$0xf] %vm3090_vm14, %v8894_v27  ;;  %v6701_v34 = vld [vmem:[#allocation5 + $0x50] sm:$0xf0] }
 0x37b   : > { %3992 = vrot.lane.b32.xlu0 %v3927_v0, %s6952_s29 }
 0x37c   : > { %4441 = vrot.lane.b32.xlu1 %v8328_v63, %s6956_s22 }
 0x37d   : > { %v3238_v41 = vpop.permute.xlu0 %3237  ;;  %v6367_v63 = vld [vmem:[#allocation5 + $0x48] sm:$0xf] }
 0x37e   : > { %v4589_v10 = vld [vmem:[#allocation4 + $0x13a] sm:$0xff]  ;;  %v4590_v23 = vld [vmem:[#allocation4 + $0x142] sm:$0xff]  ;;  %v3688_v56 = vpop.permute.xlu1 %3687  ;;  %4217 = vrot.lane.b32.xlu2 %v4152_v30, %s6954_s17  ;;  %v6368_v21 = vor.u32 %v6701_v34, %v6367_v63  ;;  %3325 = vst.msk [vmem:[#allocation5 + $0x6c] sm:$0xf] %vm3315_vm15, %v3238_v41 }
 0x37f   : > { %v8901_v12 = vpack.c.bf16 %v4589_v10, %v4589_v10  ;;  %v8903_v2 = vpack.c.bf16 %v4590_v23, %v4590_v23  ;;  %v3598_v58 = vld [vmem:[#allocation4 + $0x140] sm:$0xff]  ;;  %3550 = vst.msk [vmem:[#allocation5 + $0x6c] sm:$0xf] %vm3540_vm1, %v8862_v33  ;;  %v3146_v10 = vld [vmem:[#allocation4 + $0x111] sm:$0xff] }
 0x380   : > { %v3244_v37 = vpop.permute.xlu2 %3243  ;;  %5182 = vmatmul.bf16.gmra.mxu2 %v6368_v21  ;;  %v8915_v36 = vpack.c.bf16 %v3598_v58, %v3598_v58  ;;  %3775 = vst.msk [vmem:[#allocation5 + $0x6c] sm:$0xf] %vm3765_vm2, %v3688_v56  ;;  %v3822_v30 = vld [vmem:[#allocation4 + $0x139] sm:$0xff]  ;;  %v8932_v34 = vpack.c.bf16 %v3146_v10, %v3146_v10  ;;  %v3823_v8 = vld [vmem:[#allocation4 + $0x141] sm:$0xff] }
 0x381   : > { %4653 = vst.msk [vmem:[#allocation5 + $0x110] sm:$0xf] %vm3090_vm14, %v8901_v12 }
 0x382   : > { %4654 = vst.msk [vmem:[#allocation5 + $0x11c] sm:$0xf] %vm3090_vm14, %v8903_v2 }
 0x383   : > { %3328 = vst.msk [vmem:[#allocation5 + $0x90] sm:$0xf] %vm3315_vm15, %v3244_v37  ;;  %4439 = vrot.lane.b32.xlu0 %v8313_v51, %s6956_s22  ;;  %v3854_v51 = vpack.c.bf16 %v3822_v30, %v3822_v30 }
 0x384   : > { %4022 = vrot.lane.b32.xlu1 %v8677_v53, %s6952_s29  ;;  %3118 = vst.msk [vmem:[#allocation5 + $0x144] sm:$0xf] %vm3090_vm14, %v8915_v36 }
 0x385   : > { %v3686_v0 = vpop.permute.xlu0 %3685  ;;  %3886 = vst.msk [vmem:[#allocation5 + $0x124] sm:$0xf] %vm3090_vm14, %v3854_v51 }
 0x386   : > { %v3465_v35 = vpop.permute.xlu1 %3464  ;;  %3263 = vrot.lane.b32.xlu2 %v8921_v15, %s6952_s29  ;;  %3774 = vst.msk [vmem:[#allocation5 + $0x60] sm:$0xf] %vm3765_vm2, %v3686_v0 }
 0x387   : > { %3551 = vst.msk [vmem:[#allocation5 + $0x78] sm:$0xf] %vm3540_vm1, %v3465_v35  ;;  %v6704_v63 = vld [vmem:[#allocation5 + $0x68] sm:$0xf0]  ;;  %v3855_v35 = vpack.c.bf16 %v3823_v8, %v3823_v8 }
 0x388   : > { %v6471_v33 = vld [vmem:[#allocation5 + $0x110] sm:$0xf]  ;;  %v3471_v56 = vpop.permute.xlu2 %3470 }
 0x389   : > { %v6726_v53 = vld [vmem:[#allocation5 + $0x118] sm:$0xf0]  ;;  %3887 = vst.msk [vmem:[#allocation5 + $0x130] sm:$0xf] %vm3090_vm14, %v3855_v35 }
 0x38a   : > { %v6472_v23 = vor.u32 %v6726_v53, %v6471_v33 }
 0x38b   : > { %3265 = vrot.lane.b32.xlu0 %v8932_v34, %s6952_s29 }
 0x38c   : > { %6604 = vmatmul.msk.bf16.gmra.mxu1 %vm2947_vm11, %v6472_v23  ;;  %3490 = vrot.lane.b32.xlu1 %v8784_v43, %s6954_s17 }
 0x38d   : > { %v3242_v21 = vpop.permute.xlu0 %3241  ;;  %v6379_v58 = vld [vmem:[#allocation5 + $0x60] sm:$0xf] }
 0x38e   : > { %v3692_v41 = vpop.permute.xlu1 %3691  ;;  %4024 = vrot.lane.b32.xlu2 %v8679_v55, %s6952_s29  ;;  %3327 = vst.msk [vmem:[#allocation5 + $0x84] sm:$0xf] %vm3315_vm15, %v3242_v21  ;;  %v6380_v37 = vor.u32 %v6704_v63, %v6379_v58  ;;  %v3897_v55 = vld [vmem:[#allocation4 + $0x3a] sm:$0xff]  ;;  %v4121_v58 = vld [vmem:[#allocation4 + $0x48] sm:$0xff] }
 0x38f   : > { %3552 = vst.msk [vmem:[#allocation5 + $0x84] sm:$0xf] %vm3540_vm1, %v3467_v50  ;;  %v2828_v50 = vpop.f32.mrf.mxu2  ;;  %v3929_v10 = vpack.c.bf16 %v3897_v55, %v3897_v55 }
 0x390   : > { %v3248_v43 = vpop.permute.xlu2 %3247  ;;  %5187 = vmatmul.bf16.gmra.mxu2 %v6380_v37  ;;  %3777 = vst.msk [vmem:[#allocation5 + $0x84] sm:$0xf] %vm3765_vm2, %v3692_v41 }
 0x391   : > { %3330 = vst.msk [vmem:[#allocation5 + $0xa8] sm:$0xf] %vm3315_vm15, %v3248_v43 }
 0x393   : > { %3488 = vrot.lane.b32.xlu0 %v8782_v48, %s6954_s17  ;;  %v8956_v48 = vld [vmem:[%s10233_s2] ss:$0 sm:$0xff] }
 0x394   : > { %3713 = vrot.lane.b32.xlu1 %v8845_v46, %s6956_s22 }
 0x395   : > { %v3690_v0 = vpop.permute.xlu0 %3689  ;;  %v2739_v53 = vpop.f32.mrf.mxu0 }
 0x396   : > { %v3469_v33 = vpop.permute.xlu1 %3468  ;;  %4247 = vrot.lane.b32.xlu2 %v8717_v25, %s6954_s17  ;;  %3776 = vst.msk [vmem:[#allocation5 + $0x78] sm:$0xf] %vm3765_vm2, %v3690_v0  ;;  %v2829_v30 = vadd.f32 %v2828_v50, %v2739_v53  ;;  %v8964_v25 = vld [vmem:[%s10234_s3] ss:$0 sm:$0xff]  ;;  %v4153_v50 = vpack.c.bf16 %v4121_v58, %v4121_v58 }
 0x397   : > { %3553 = vst.msk [vmem:[#allocation5 + $0x90] sm:$0xf] %vm3540_vm1, %v3469_v33  ;;  %v6707_v21 = vld [vmem:[#allocation5 + $0x80] sm:$0xf0]  ;;  %v2830_v35 = vpop.f32.mrf.mxu2 }
 0x398   : > { %v3475_v23 = vpop.permute.xlu2 %3474  ;;  %v2873_v51 = vmul.f32 %v8956_v48, %v2829_v30  ;;  %v3896_v33 = vld [vmem:[#allocation4 + $0x32] sm:$0xff] }
 0x39a   : > { %v2909_v63 = vadd.f32 %v8964_v25, %v2873_v51 }
 0x39b   : > { %4249 = vrot.lane.b32.xlu0 %v8745_v62, %s6954_s17 }
 0x39c   : > { %3996 = vrot.lane.b32.xlu1 %v3929_v10, %s6952_s29  ;;  %v2941_v37 = vmax.f32 %v2909_v63, 0.0  ;;  %v3928_v10 = vpack.c.bf16 %v3896_v33, %v3896_v33 }
 0x39d   : > { %v3246_v43 = vpop.permute.xlu0 %3245  ;;  %v6391_v8 = vld [vmem:[#allocation5 + $0x78] sm:$0xf]  ;;  %v2741_v62 = vpop.f32.mrf.mxu0 }
 0x39e   : > { %v3696_v41 = vpop.permute.xlu1 %3695  ;;  %3715 = vrot.lane.b32.xlu2 %v8853_v31, %s6956_s22  ;;  %3329 = vst.msk [vmem:[#allocation5 + $0x9c] sm:$0xf] %vm3315_vm15, %v3246_v43  ;;  %v6392_v55 = vor.u32 %v6707_v21, %v6391_v8  ;;  %v2831_v53 = vadd.f32 %v2830_v35, %v2741_v62 }
 0x39f   : > { %3020 = vst.msk [vmem:[#allocation4 + $0x151] sm:$0xff] %vm2947_vm11, %v2941_v37 }
 0x3a0   : > { %v3252_v0 = vpop.permute.xlu2 %3251  ;;  %3554 = vst.msk [vmem:[#allocation5 + $0x9c] sm:$0xf] %vm3540_vm1, %v3471_v56  ;;  %5192 = vmatmul.bf16.gmra.mxu2 %v6392_v55  ;;  %v2874_v30 = vmul.f32 %v8956_v48, %v2831_v53  ;;  %v6754_v55 = vld [vmem:[%s10235_s4 + $0x78] sm:$0xff] }
 0x3a1   : > { %3332 = vst.msk [vmem:[#allocation5 + $0xc0] sm:$0xf] %vm3315_vm15, %v3252_v0  ;;  %5248 = vmatpush.bf16.msrb.mxu0 %v6754_v55  ;;  %6760 = vmatpush.bf16.msra.mxu3 %v6754_v55 }
 0x3a2   : > { %3779 = vst.msk [vmem:[#allocation5 + $0x9c] sm:$0xf] %vm3765_vm2, %v3696_v41  ;;  %v2910_v63 = vadd.f32 %v8964_v25, %v2874_v30  ;;  %6759 = vmatpush.bf16.msra.mxu2 %v6754_v55 }
 0x3a3   : > { %3994 = vrot.lane.b32.xlu0 %v3928_v10, %s6952_s29 }
 0x3a4   : > { %4219 = vrot.lane.b32.xlu1 %v4153_v50, %s6954_s17  ;;  %v2942_v21 = vmax.f32 %v2910_v63, 0.0 }
 0x3a5   : > { %v3694_v58 = vpop.permute.xlu0 %3693 }
 0x3a6   : > { %v3473_v51 = vpop.permute.xlu1 %3472  ;;  %4471 = vrot.lane.b32.xlu2 %v8850_v49, %s6956_s22  ;;  %3778 = vst.msk [vmem:[#allocation5 + $0x90] sm:$0xf] %vm3765_vm2, %v3694_v58  ;;  %v3599_v37 = vld [vmem:[#allocation4 + $0x150] sm:$0xff] }
 0x3a7   : > { %3555 = vst.msk [vmem:[#allocation5 + $0xa8] sm:$0xf] %vm3540_vm1, %v3473_v51  ;;  %v8987_v41 = vpack.c.bf16 %v3599_v37, %v3599_v37  ;;  %v3824_v10 = vld [vmem:[#allocation4 + $0x151] sm:$0xff]  ;;  %v9011_v51 = vpop.f32.mrf.mxu1  ;;  %v3148_v58 = vld [vmem:[#allocation4 + $0x129] sm:$0xff] }
 0x3a8   : > { %3021 = vst.msk [vmem:[#allocation4 + $0x159] sm:$0xff] %vm2947_vm11, %v2942_v21  ;;  %v8983_v56 = vpop.permute.xlu2 %3478 }
 0x3a9   : > { %3119 = vst.msk [vmem:[#allocation5 + $0x150] sm:$0xf] %vm3090_vm14, %v8987_v41  ;;  %v6710_v49 = vld [vmem:[#allocation5 + $0x98] sm:$0xf0] }
 0x3ab   : > { %4473 = vrot.lane.b32.xlu0 %v8869_v17, %s6956_s22 }
 0x3ac   : > { %4445 = vrot.lane.b32.xlu1 %v8337_v40, %s6956_s22 }
 0x3ad   : > { %v3250_v8 = vpop.permute.xlu0 %3249  ;;  %v6403_v35 = vld [vmem:[#allocation5 + $0x90] sm:$0xf] }
 0x3ae   : > { %v3700_v43 = vpop.permute.xlu1 %3699  ;;  %4221 = vrot.lane.b32.xlu2 %v8251_v26, %s6954_s17  ;;  %3331 = vst.msk [vmem:[#allocation5 + $0xb4] sm:$0xf] %vm3315_vm15, %v3250_v8  ;;  %v6404_v40 = vor.u32 %v6710_v49, %v6403_v35  ;;  %v3147_v26 = vld [vmem:[#allocation4 + $0x121] sm:$0xff]  ;;  %v9031_v49 = vpack.c.bf16 %v3148_v58, %v3148_v58 }
 0x3af   : > { %v4591_v33 = vld [vmem:[#allocation4 + $0x152] sm:$0xff]  ;;  %v4592_v62 = vld [vmem:[#allocation4 + $0x15a] sm:$0xff]  ;;  %3556 = vst.msk [vmem:[#allocation5 + $0xb4] sm:$0xf] %vm3540_vm1, %v3475_v23  ;;  %v9017_v63 = vpack.c.bf16 %v3147_v26, %v3147_v26  ;;  %v9036_v55 = vpop.f32.mrf.mxu1 }
 0x3b0   : > { %v8999_v50 = vpack.c.bf16 %v4591_v33, %v4591_v33  ;;  %v9001_v0 = vpack.c.bf16 %v4592_v62, %v4592_v62  ;;  %v3256_v17 = vpop.permute.xlu2 %3255  ;;  %v3600_v53 = vld [vmem:[#allocation4 + $0x158] sm:$0xff]  ;;  %5197 = vmatmul.bf16.gmra.mxu2 %v6404_v40  ;;  %3781 = vst.msk [vmem:[#allocation5 + $0xb4] sm:$0xf] %vm3765_vm2, %v3700_v43 }
 0x3b1   : > { %3334 = vst.msk [vmem:[#allocation5 + $0xd8] sm:$0xf] %vm3315_vm15, %v3256_v17  ;;  %v9009_v30 = vpack.c.bf16 %v3600_v53, %v3600_v53  ;;  %v3825_v43 = vld [vmem:[#allocation4 + $0x159] sm:$0xff] }
 0x3b2   : > { %4655 = vst.msk [vmem:[#allocation5 + $0x128] sm:$0xf] %vm3090_vm14, %v8999_v50  ;;  %v3857_v35 = vpack.c.bf16 %v3825_v43, %v3825_v43 }
 0x3b3   : > { %4656 = vst.msk [vmem:[#allocation5 + $0x134] sm:$0xf] %vm3090_vm14, %v9001_v0  ;;  %4443 = vrot.lane.b32.xlu0 %v8331_v14, %s6956_s22 }
 0x3b4   : > { %4026 = vrot.lane.b32.xlu1 %v8726_v32, %s6952_s29  ;;  %v3856_v32 = vpack.c.bf16 %v3824_v10, %v3824_v10  ;;  %3120 = vst.msk [vmem:[#allocation5 + $0x15c] sm:$0xf] %vm3090_vm14, %v9009_v30  ;;  %v2833_v10 = vpop.f32.mrf.mxu2 }
 0x3b5   : > { %v3698_v21 = vpop.permute.xlu0 %3697  ;;  %3889 = vst.msk [vmem:[#allocation5 + $0x148] sm:$0xf] %vm3090_vm14, %v3857_v35 }
 0x3b6   : > { %v3477_v23 = vpop.permute.xlu1 %3476  ;;  %3267 = vrot.lane.b32.xlu2 %v9017_v63, %s6952_s29  ;;  %3780 = vst.msk [vmem:[#allocation5 + $0xa8] sm:$0xf] %vm3765_vm2, %v3698_v21 }
 0x3b7   : > { %3557 = vst.msk [vmem:[#allocation5 + $0xc0] sm:$0xf] %vm3540_vm1, %v3477_v23  ;;  %v6713_v40 = vld [vmem:[#allocation5 + $0xb0] sm:$0xf0] }
 0x3b8   : > { %v9026_v37 = vpop.permute.xlu2 %3482  ;;  %3888 = vst.msk [vmem:[#allocation5 + $0x13c] sm:$0xf] %vm3090_vm14, %v3856_v32 }
 0x3b9   : > { %v6483_v14 = vld [vmem:[#allocation5 + $0x128] sm:$0xf] }
 0x3ba   : > { %v6729_v8 = vld [vmem:[#allocation5 + $0x130] sm:$0xf0] }
 0x3bb   : > { %v6484_v33 = vor.u32 %v6729_v8, %v6483_v14  ;;  %3269 = vrot.lane.b32.xlu0 %v9031_v49, %s6952_s29  ;;  %v6753_v14 = vld [vmem:[%s10235_s4 + $0x70] sm:$0xff] }
 0x3bc   : > { %3494 = vrot.lane.b32.xlu1 %v8833_v39, %s6954_s17  ;;  %5249 = vmatpush.bf16.msrb.mxu0 %v6753_v14 }
 0x3bd   : > { %6605 = vmatmul.msk.bf16.gmra.mxu1 %vm2947_vm11, %v6484_v33  ;;  %v3254_v17 = vpop.permute.xlu0 %3253  ;;  %v6415_v39 = vld [vmem:[#allocation5 + $0xa8] sm:$0xf]  ;;  %6762 = vmatpush.bf16.msra.mxu3 %v6753_v14  ;;  %v4123_v33 = vld [vmem:[#allocation4 + $0x60] sm:$0xff] }
 0x3be   : > { %v3704_v62 = vpop.permute.xlu1 %3703  ;;  %4028 = vrot.lane.b32.xlu2 %v8728_v28, %s6952_s29  ;;  %3333 = vst.msk [vmem:[#allocation5 + $0xcc] sm:$0xf] %vm3315_vm15, %v3254_v17  ;;  %v6416_v53 = vor.u32 %v6713_v40, %v6415_v39  ;;  %v3899_v28 = vld [vmem:[#allocation4 + $0x52] sm:$0xff]  ;;  %6761 = vmatpush.bf16.msra.mxu2 %v6753_v14 }
 0x3bf   : > { %3558 = vst.msk [vmem:[#allocation5 + $0xcc] sm:$0xf] %vm3540_vm1, %v8983_v56  ;;  %v3931_v58 = vpack.c.bf16 %v3899_v28, %v3899_v28  ;;  %v4155_v28 = vpack.c.bf16 %v4123_v33, %v4123_v33  ;;  %v4124_v33 = vld [vmem:[#allocation4 + $0x68] sm:$0xff] }
 0x3c0   : > { %v3260_v26 = vpop.permute.xlu2 %3259  ;;  %5202 = vmatmul.bf16.gmra.mxu2 %v6416_v53  ;;  %3783 = vst.msk [vmem:[#allocation5 + $0xcc] sm:$0xf] %vm3765_vm2, %v3704_v62  ;;  %v2835_v62 = vpop.f32.mrf.mxu2 }
 0x3c1   : > { %3336 = vst.msk [vmem:[#allocation5 + $0xf0] sm:$0xf] %vm3315_vm15, %v3260_v26 }
 0x3c3   : > { %3492 = vrot.lane.b32.xlu0 %v8831_v47, %s6954_s17 }
 0x3c4   : > { %3717 = vrot.lane.b32.xlu1 %v8894_v27, %s6956_s22 }
 0x3c5   : > { %v3702_v32 = vpop.permute.xlu0 %3701  ;;  %v2744_v21 = vpop.f32.mrf.mxu0 }
 0x3c6   : > { %v3481_v23 = vpop.permute.xlu1 %3480  ;;  %4251 = vrot.lane.b32.xlu2 %v8773_v57, %s6954_s17  ;;  %3782 = vst.msk [vmem:[#allocation5 + $0xc0] sm:$0xf] %vm3765_vm2, %v3702_v32  ;;  %v2834_v56 = vadd.f32 %v2833_v10, %v2744_v21  ;;  %v3898_v10 = vld [vmem:[#allocation4 + $0x4a] sm:$0xff] }
 0x3c7   : > { %3559 = vst.msk [vmem:[#allocation5 + $0xd8] sm:$0xf] %vm3540_vm1, %v3481_v23  ;;  %v6716_v35 = vld [vmem:[#allocation5 + $0xc8] sm:$0xf0] }
 0x3c8   : > { %v9057_v43 = vpop.permute.xlu2 %3486  ;;  %v2875_v47 = vmul.f32 %v8956_v48, %v2834_v56  ;;  %v3930_v56 = vpack.c.bf16 %v3898_v10, %v3898_v10 }
 0x3ca   : > { %v2911_v8 = vadd.f32 %v8964_v25, %v2875_v47 }
 0x3cb   : > { %4253 = vrot.lane.b32.xlu0 %v8794_v54, %s6954_s17  ;;  %v6752_v54 = vld [vmem:[%s10235_s4 + $0x68] sm:$0xff] }
 0x3cc   : > { %4000 = vrot.lane.b32.xlu1 %v3931_v58, %s6952_s29  ;;  %v2943_v40 = vmax.f32 %v2911_v8, 0.0  ;;  %5250 = vmatpush.bf16.msrb.mxu0 %v6752_v54 }
 0x3cd   : > { %v3258_v17 = vpop.permute.xlu0 %3257  ;;  %v2746_v39 = vpop.f32.mrf.mxu0  ;;  %v6427_v53 = vld [vmem:[#allocation5 + $0xc0] sm:$0xf]  ;;  %6764 = vmatpush.bf16.msra.mxu3 %v6752_v54  ;;  %6763 = vmatpush.bf16.msra.mxu2 %v6752_v54 }
 0x3ce   : > { %v3708_v57 = vpop.permute.xlu1 %3707  ;;  %3719 = vrot.lane.b32.xlu2 %v8915_v36, %s6956_s22  ;;  %3022 = vst.msk [vmem:[#allocation4 + $0x169] sm:$0xff] %vm2947_vm11, %v2943_v40  ;;  %v2836_v26 = vadd.f32 %v2835_v62, %v2746_v39  ;;  %v6428_v23 = vor.u32 %v6716_v35, %v6427_v53  ;;  %v6750_v35 = vld [vmem:[%s10235_s4 + $0x58] sm:$0xff] }
 0x3cf   : > { %3335 = vst.msk [vmem:[#allocation5 + $0xe4] sm:$0xf] %vm3315_vm15, %v3258_v17  ;;  %v3914_v40 = vld [vmem:[#allocation4 + $0x10a] sm:$0xff]  ;;  %v6749_v17 = vld [vmem:[%s10235_s4 + $0x50] sm:$0xff] }
 0x3d0   : > { %v3991_v32 = vpop.permute.xlu2 %3990  ;;  %3560 = vst.msk [vmem:[#allocation5 + $0xe4] sm:$0xf] %vm3540_vm1, %v9026_v37  ;;  %v2876_v21 = vmul.f32 %v8956_v48, %v2836_v26  ;;  %5207 = vmatmul.bf16.gmra.mxu2 %v6428_v23  ;;  %v6751_v37 = vld [vmem:[%s10235_s4 + $0x60] sm:$0xff] }
 0x3d1   : > { %4086 = vst.msk [vmem:[#allocation5 + $0x4] sm:$0xf] %vm3315_vm15, %v3991_v32  ;;  %5251 = vmatpush.bf16.msrb.mxu0 %v6751_v37  ;;  %6766 = vmatpush.bf16.msra.mxu3 %v6751_v37 }
 0x3d2   : > { %v2912_v58 = vadd.f32 %v8964_v25, %v2876_v21  ;;  %3785 = vst.msk [vmem:[#allocation5 + $0xe4] sm:$0xf] %vm3765_vm2, %v3708_v57  ;;  %6765 = vmatpush.bf16.msra.mxu2 %v6751_v37 }
 0x3d3   : > { %3998 = vrot.lane.b32.xlu0 %v3930_v56, %s6952_s29  ;;  %v3149_v56 = vld [vmem:[#allocation4 + $0x139] sm:$0xff] }
 0x3d4   : > { %4223 = vrot.lane.b32.xlu1 %v4155_v28, %s6954_s17  ;;  %v2944_v47 = vmax.f32 %v2912_v58, 0.0  ;;  %v3946_v28 = vpack.c.bf16 %v3914_v40, %v3914_v40 }
 0x3d5   : > { %v3706_v8 = vpop.permute.xlu0 %3705  ;;  %5252 = vmatpush.bf16.msrb.mxu0 %v6750_v35  ;;  %6768 = vmatpush.bf16.msra.mxu3 %v6750_v35  ;;  %v3601_v32 = vld [vmem:[#allocation4 + $0x168] sm:$0xff] }
 0x3d6   : > { %v3485_v14 = vpop.permute.xlu1 %3484  ;;  %4475 = vrot.lane.b32.xlu2 %v8921_v15, %s6956_s22  ;;  %3023 = vst.msk [vmem:[#allocation4 + $0x171] sm:$0xff] %vm2947_vm11, %v2944_v47  ;;  %6767 = vmatpush.bf16.msra.mxu2 %v6750_v35  ;;  %v4156_v15 = vpack.c.bf16 %v4124_v33, %v4124_v33  ;;  %v9114_v37 = vpack.c.bf16 %v3601_v32, %v3601_v32  ;;  %v3153_v47 = vld [vmem:[#allocation4 + $0x169] sm:$0xff]  ;;  %v2838_v32 = vpop.f32.mrf.mxu2 }
 0x3d7   : > { %3561 = vst.msk [vmem:[#allocation5 + $0xf0] sm:$0xf] %vm3540_vm1, %v3485_v14  ;;  %v9110_v14 = vpop.f32.mrf.mxu1  ;;  %v9127_v40 = vpack.c.bf16 %v3153_v47, %v3153_v47 }
 0x3d8   : > { %3784 = vst.msk [vmem:[#allocation5 + $0xd8] sm:$0xf] %vm3765_vm2, %v3706_v8  ;;  %v9087_v57 = vpop.permute.xlu2 %4217  ;;  %v9119_v8 = vpack.c.bf16 %v3149_v56, %v3149_v56 }
 0x3d9   : > { %v6719_v39 = vld [vmem:[#allocation5 + $0xe0] sm:$0xf0]  ;;  %5253 = vmatpush.bf16.msrb.mxu0 %v6749_v17  ;;  %6770 = vmatpush.bf16.msra.mxu3 %v6749_v17  ;;  %3121 = vst.msk [vmem:[#allocation5 + $0x168] sm:$0xf] %vm3090_vm14, %v9114_v37 }
 0x3da   : > { %6769 = vmatpush.bf16.msra.mxu2 %v6749_v17  ;;  %3890 = vst.msk [vmem:[#allocation5 + $0x154] sm:$0xf] %vm3090_vm14, %v9127_v40 }
 0x3db   : > { %4477 = vrot.lane.b32.xlu0 %v8932_v34, %s6956_s22 }
 0x3dc   : > { %4449 = vrot.lane.b32.xlu1 %v8368_v52, %s6956_s22 }
 0x3dd   : > { %v4593_v53 = vld [vmem:[#allocation4 + $0x16a] sm:$0xff]  ;;  %v4594_v26 = vld [vmem:[#allocation4 + $0x172] sm:$0xff]  ;;  %v3262_v10 = vpop.permute.xlu0 %3261 }
 0x3de   : > { %v3712_v62 = vpop.permute.xlu1 %3711  ;;  %4225 = vrot.lane.b32.xlu2 %v4156_v15, %s6954_s17  ;;  %v9100_v52 = vpack.c.bf16 %v4593_v53, %v4593_v53  ;;  %v9102_v23 = vpack.c.bf16 %v4594_v26, %v4594_v26  ;;  %3337 = vst.msk [vmem:[#allocation5 + $0xfc] sm:$0xf] %vm3315_vm15, %v3262_v10  ;;  %v3602_v58 = vld [vmem:[#allocation4 + $0x170] sm:$0xff] }
 0x3df   : > { %v6439_v34 = vld [vmem:[#allocation5 + $0xd8] sm:$0xf]  ;;  %3562 = vst.msk [vmem:[#allocation5 + $0xfc] sm:$0xf] %vm3540_vm1, %v9057_v43  ;;  %v9122_v35 = vpack.c.bf16 %v3602_v58, %v3602_v58  ;;  %v3827_v33 = vld [vmem:[#allocation4 + $0x171] sm:$0xff] }
 0x3e0   : > { %v3264_v54 = vpop.permute.xlu2 %3263  ;;  %v6440_v21 = vor.u32 %v6719_v39, %v6439_v34  ;;  %4657 = vst.msk [vmem:[#allocation5 + $0x140] sm:$0xf] %vm3090_vm14, %v9100_v52  ;;  %v3859_v17 = vpack.c.bf16 %v3827_v33, %v3827_v33  ;;  %v3915_v26 = vld [vmem:[#allocation4 + $0x112] sm:$0xff] }
 0x3e1   : > { %4658 = vst.msk [vmem:[#allocation5 + $0x14c] sm:$0xf] %vm3090_vm14, %v9102_v23  ;;  %v6747_v58 = vld [vmem:[%s10235_s4 + $0x40] sm:$0xff] }
 0x3e2   : > { %5212 = vmatmul.bf16.gmra.mxu2 %v6440_v21  ;;  %3338 = vst.msk [vmem:[#allocation5 + $0x108] sm:$0xf] %vm3315_vm15, %v3264_v54  ;;  %v9145_v21 = vpop.f32.mrf.mxu1 }
 0x3e3   : > { %4447 = vrot.lane.b32.xlu0 %v8342_v60, %s6956_s22  ;;  %3787 = vst.msk [vmem:[#allocation5 + $0xfc] sm:$0xf] %vm3765_vm2, %v3712_v62  ;;  %v3150_v60 = vld [vmem:[#allocation4 + $0x141] sm:$0xff] }
 0x3e4   : > { %4030 = vrot.lane.b32.xlu1 %v3946_v28, %s6952_s29  ;;  %3122 = vst.msk [vmem:[#allocation5 + $0x174] sm:$0xf] %vm3090_vm14, %v9122_v35  ;;  %v9137_v34 = vpack.c.bf16 %v3150_v60, %v3150_v60  ;;  %v6748_v28 = vld [vmem:[%s10235_s4 + $0x48] sm:$0xff] }
 0x3e5   : > { %v3710_v15 = vpop.permute.xlu0 %3709  ;;  %3891 = vst.msk [vmem:[#allocation5 + $0x160] sm:$0xf] %vm3090_vm14, %v3859_v17  ;;  %5254 = vmatpush.bf16.msrb.mxu0 %v6748_v28  ;;  %6772 = vmatpush.bf16.msra.mxu3 %v6748_v28 }
 0x3e6   : > { %v4216_v43 = vpop.permute.xlu1 %4215  ;;  %3271 = vrot.lane.b32.xlu2 %v9119_v8, %s6952_s29  ;;  %3786 = vst.msk [vmem:[#allocation5 + $0xf0] sm:$0xf] %vm3765_vm2, %v3710_v15  ;;  %6771 = vmatpush.bf16.msra.mxu2 %v6748_v28 }
 0x3e7   : > { %4311 = vst.msk [vmem:[#allocation5 + $0x4] sm:$0xf] %vm3540_vm1, %v4216_v43  ;;  %v6495_v39 = vld [vmem:[#allocation5 + $0x140] sm:$0xf] }
 0x3e8   : > { %v4025_v62 = vpop.permute.xlu2 %4024  ;;  %v6732_v53 = vld [vmem:[#allocation5 + $0x148] sm:$0xf0] }
 0x3e9   : > { %4103 = vst.msk [vmem:[#allocation5 + $0xd0] sm:$0xf] %vm3315_vm15, %v4025_v62  ;;  %v6496_v10 = vor.u32 %v6732_v53, %v6495_v39  ;;  %5255 = vmatpush.bf16.msrb.mxu0 %v6747_v58  ;;  %6774 = vmatpush.bf16.msra.mxu3 %v6747_v58 }
 0x3ea   : > { %v6722_v56 = vld [vmem:[#allocation5 + $0xf8] sm:$0xf0]  ;;  %6773 = vmatpush.bf16.msra.mxu2 %v6747_v58 }
 0x3eb   : > { %6606 = vmatmul.msk.bf16.gmra.mxu1 %vm2947_vm11, %v6496_v10  ;;  %3273 = vrot.lane.b32.xlu0 %v9137_v34, %s6952_s29 }
 0x3ec   : > { %3498 = vrot.lane.b32.xlu1 %v8903_v2, %s6954_s17  ;;  %v3947_v2 = vpack.c.bf16 %v3915_v26, %v3915_v26  ;;  %v2840_v26 = vpop.f32.mrf.mxu2 }
 0x3ed   : > { %v3993_v43 = vpop.permute.xlu0 %3992  ;;  %v2749_v47 = vpop.f32.mrf.mxu0  ;;  %v6451_v33 = vld [vmem:[#allocation5 + $0xf0] sm:$0xf] }
 0x3ee   : > { %v4442_v54 = vpop.permute.xlu1 %4441  ;;  %4032 = vrot.lane.b32.xlu2 %v3947_v2, %s6952_s29  ;;  %4087 = vst.msk [vmem:[#allocation5 + $0x10] sm:$0xf] %vm3315_vm15, %v3993_v43  ;;  %v2839_v15 = vadd.f32 %v2838_v32, %v2749_v47  ;;  %v6452_v60 = vor.u32 %v6722_v56, %v6451_v33  ;;  %v4125_v47 = vld [vmem:[#allocation4 + $0x78] sm:$0xff] }
 0x3ef   : > { %4312 = vst.msk [vmem:[#allocation5 + $0x10] sm:$0xf] %vm3540_vm1, %v9087_v57  ;;  %v3901_v57 = vld [vmem:[#allocation4 + $0x6a] sm:$0xff] }
 0x3f0   : > { %v4248_v17 = vpop.permute.xlu2 %4247  ;;  %v2877_v39 = vmul.f32 %v8956_v48, %v2839_v15  ;;  %4536 = vst.msk [vmem:[#allocation5 + $0x10] sm:$0xf] %vm3765_vm2, %v4442_v54  ;;  %v3933_v2 = vpack.c.bf16 %v3901_v57, %v3901_v57 }
 0x3f2   : > { %5217 = vmatmul.bf16.gmra.mxu2 %v6452_v60  ;;  %v2913_v62 = vadd.f32 %v8964_v25, %v2877_v39  ;;  %v3900_v60 = vld [vmem:[#allocation4 + $0x62] sm:$0xff] }
 0x3f3   : > { %3496 = vrot.lane.b32.xlu0 %v8901_v12, %s6954_s17 }
 0x3f4   : > { %3721 = vrot.lane.b32.xlu1 %v8987_v41, %s6956_s22  ;;  %v2945_v10 = vmax.f32 %v2913_v62, 0.0 }
 0x3f5   : > { %v4440_v28 = vpop.permute.xlu0 %4439  ;;  %v2751_v32 = vpop.f32.mrf.mxu0 }
 0x3f6   : > { %v4023_v53 = vpop.permute.xlu1 %4022  ;;  %4255 = vrot.lane.b32.xlu2 %v8845_v46, %s6954_s17  ;;  %3024 = vst.msk [vmem:[#allocation4 + $0x181] sm:$0xff] %vm2947_vm11, %v2945_v10  ;;  %v2841_v54 = vadd.f32 %v2840_v26, %v2751_v32 }
 0x3f7   : > { %4102 = vst.msk [vmem:[#allocation5 + $0xc4] sm:$0xf] %vm3315_vm15, %v4023_v53  ;;  %v6333_v33 = vld [vmem:[#allocation5 + $0xc] sm:$0xf0] }
 0x3f8   : > { %4327 = vst.msk [vmem:[#allocation5 + $0xc4] sm:$0xf] %vm3540_vm1, %v4248_v17  ;;  %v3716_v56 = vpop.permute.xlu2 %3715  ;;  %v2878_v12 = vmul.f32 %v8956_v48, %v2841_v54  ;;  %v4157_v48 = vpack.c.bf16 %v4125_v47, %v4125_v47 }
 0x3f9   : > { %4535 = vst.msk [vmem:[#allocation5 + $0x4] sm:$0xf] %vm3765_vm2, %v4440_v28 }
 0x3fa   : > { %v2914_v58 = vadd.f32 %v8964_v25, %v2878_v12  ;;  %v9193_v12 = vpop.f32.mrf.mxu1 }
 0x3fb   : > { %4257 = vrot.lane.b32.xlu0 %v8853_v31, %s6954_s17  ;;  %v3932_v31 = vpack.c.bf16 %v3900_v60, %v3900_v60 }
 0x3fc   : > { %4004 = vrot.lane.b32.xlu1 %v3933_v2, %s6952_s29  ;;  %v2946_v46 = vmax.f32 %v2914_v58, 0.0  ;;  %v4126_v2 = vld [vmem:[#allocation4 + $0x80] sm:$0xff] }
 0x3fd   : > { %v3266_v15 = vpop.permute.xlu0 %3265  ;;  %v4371_v54 = vld [vmem:[#allocation4 + $0x181] sm:$0xff]  ;;  %v4158_v58 = vpack.c.bf16 %v4126_v2, %v4126_v2 }
 0x3fe   : > { %v3491_v43 = vpop.permute.xlu1 %3490  ;;  %3723 = vrot.lane.b32.xlu2 %v9009_v30, %s6956_s22  ;;  %3025 = vst.msk [vmem:[#allocation4 + $0x189] sm:$0xff] %vm2947_vm11, %v2946_v46 }
 0x3ff   : > { %3339 = vst.msk [vmem:[#allocation5 + $0x114] sm:$0xf] %vm3315_vm15, %v3266_v15 }
 0x400   : > { %v6691_v17 = vld [vmem:[#allocation5 + $0x4] sm:$0xf]  ;;  %v4472_v39 = vpop.permute.xlu2 %4471  ;;  %3564 = vst.msk [vmem:[#allocation5 + $0x114] sm:$0xf] %vm3540_vm1, %v3491_v43  ;;  %v3916_v43 = vld [vmem:[#allocation4 + $0x122] sm:$0xff] }
 0x401   : > { %v6336_v25 = vor.u32 %v6691_v17, %v6333_v33  ;;  %4551 = vst.msk [vmem:[#allocation5 + $0xc4] sm:$0xf] %vm3765_vm2, %v4472_v39  ;;  %v3948_v33 = vpack.c.bf16 %v3916_v43, %v3916_v43  ;;  %v3151_v39 = vld [vmem:[#allocation4 + $0x151] sm:$0xff] }
 0x402   : > { %3789 = vst.msk [vmem:[#allocation5 + $0x114] sm:$0xf] %vm3765_vm2, %v3716_v56  ;;  %v9191_v56 = vpack.c.bf16 %v4371_v54, %v4371_v54 }
 0x403   : > { %5256 = vmatmul.bf16.vlgmr.msrb.gmra.mxu0 %v6336_v25  ;;  %4002 = vrot.lane.b32.xlu0 %v3932_v31, %s6952_s29 }
 0x404   : > { %4227 = vrot.lane.b32.xlu1 %v4157_v48, %s6954_s17  ;;  %3892 = vst.msk [vmem:[#allocation5 + $0x16c] sm:$0xf] %vm3090_vm14, %v9191_v56 }
 0x405   : > { %v4595_v53 = vld [vmem:[#allocation4 + $0x182] sm:$0xff]  ;;  %v4596_v57 = vld [vmem:[#allocation4 + $0x18a] sm:$0xff]  ;;  %v3489_v26 = vpop.permute.xlu0 %3488 }
 0x406   : > { %v3714_v62 = vpop.permute.xlu1 %3713  ;;  %4479 = vrot.lane.b32.xlu2 %v9017_v63, %s6956_s22  ;;  %v4627_v10 = vpack.c.bf16 %v4595_v53, %v4595_v53  ;;  %v4628_v28 = vpack.c.bf16 %v4596_v57, %v4596_v57  ;;  %3563 = vst.msk [vmem:[#allocation5 + $0x108] sm:$0xf] %vm3540_vm1, %v3489_v26  ;;  %v4372_v48 = vld [vmem:[#allocation4 + $0x189] sm:$0xff]  ;;  %v9210_v53 = vpop.f32.mrf.mxu1  ;;  %v9215_v57 = vpack.c.bf16 %v3151_v39, %v3151_v39 }
 0x407   : > { %3788 = vst.msk [vmem:[#allocation5 + $0x108] sm:$0xf] %vm3765_vm2, %v3714_v62  ;;  %v9206_v25 = vpack.c.bf16 %v4372_v48, %v4372_v48  ;;  %v4127_v48 = vld [vmem:[#allocation4 + $0x90] sm:$0xff] }
 0x408   : > { %v4222_v32 = vpop.permute.xlu2 %4221  ;;  %4659 = vst.msk [vmem:[#allocation5 + $0x158] sm:$0xf] %vm3090_vm14, %v4627_v10  ;;  %v3152_v10 = vld [vmem:[#allocation4 + $0x159] sm:$0xff] }
 0x409   : > { %4660 = vst.msk [vmem:[#allocation5 + $0x164] sm:$0xf] %vm3090_vm14, %v4628_v28  ;;  %v6725_v46 = vld [vmem:[#allocation5 + $0x110] sm:$0xf0] }
 0x40a   : > { %3893 = vst.msk [vmem:[#allocation5 + $0x178] sm:$0xf] %vm3090_vm14, %v9206_v25 }
 0x40b   : > { %4481 = vrot.lane.b32.xlu0 %v9031_v49, %s6956_s22 }
 0x40c   : > { %4453 = vrot.lane.b32.xlu1 %v8476_v29, %s6956_s22 }
 0x40d   : > { %v4250_v29 = vpop.permute.xlu0 %4249 }
 0x40e   : > { %v3997_v63 = vpop.permute.xlu1 %3996  ;;  %4229 = vrot.lane.b32.xlu2 %v4158_v58, %s6954_s17  ;;  %4328 = vst.msk [vmem:[#allocation5 + $0xd0] sm:$0xf] %vm3540_vm1, %v4250_v29  ;;  %v6463_v47 = vld [vmem:[#allocation5 + $0x108] sm:$0xf] }
 0x40f   : > { %4089 = vst.msk [vmem:[#allocation5 + $0x28] sm:$0xf] %vm3315_vm15, %v3997_v63  ;;  %v6507_v60 = vld [vmem:[#allocation5 + $0x158] sm:$0xf]  ;;  %v6464_v17 = vor.u32 %v6725_v46, %v6463_v47  ;;  %v6715_v47 = vld [vmem:[#allocation5 + $0xc4] sm:$0xf] }
 0x410   : > { %4314 = vst.msk [vmem:[#allocation5 + $0x28] sm:$0xf] %vm3540_vm1, %v4222_v32  ;;  %v3268_v15 = vpop.permute.xlu2 %3267  ;;  %v6735_v49 = vld [vmem:[#allocation5 + $0x160] sm:$0xf0]  ;;  %v3917_v32 = vld [vmem:[#allocation4 + $0x12a] sm:$0xff] }
 0x411   : > { %3340 = vst.msk [vmem:[#allocation5 + $0x120] sm:$0xf] %vm3315_vm15, %v3268_v15  ;;  %v6508_v31 = vor.u32 %v6735_v49, %v6507_v60  ;;  %5222 = vmatmul.bf16.gmra.mxu2 %v6464_v17  ;;  %v3949_v2 = vpack.c.bf16 %v3917_v32, %v3917_v32  ;;  %v9254_v32 = vpop.f32.mrf.mxu2 }
 0x413   : > { %4451 = vrot.lane.b32.xlu0 %v8419_v38, %s6956_s22  ;;  %6607 = vmatmul.msk.bf16.gmra.mxu1 %vm2947_vm11, %v6508_v31  ;;  %v9224_v38 = vpack.c.bf16 %v3152_v10, %v3152_v10 }
 0x414   : > { %4034 = vrot.lane.b32.xlu1 %v3948_v33, %s6952_s29 }
 0x415   : > { %v3995_v26 = vpop.permute.xlu0 %3994 }
 0x416   : > { %v4220_v62 = vpop.permute.xlu1 %4219  ;;  %3275 = vrot.lane.b32.xlu2 %v9215_v57, %s6952_s29  ;;  %4088 = vst.msk [vmem:[#allocation5 + $0x1c] sm:$0xf] %vm3315_vm15, %v3995_v26 }
 0x417   : > { %4313 = vst.msk [vmem:[#allocation5 + $0x1c] sm:$0xf] %vm3540_vm1, %v4220_v62  ;;  %v4159_v62 = vpack.c.bf16 %v4127_v48, %v4127_v48 }
 0x418   : > { %v4029_v28 = vpop.permute.xlu2 %4028 }
 0x419   : > { %4105 = vst.msk [vmem:[#allocation5 + $0xe8] sm:$0xf] %vm3315_vm15, %v4029_v28 }
 0x41b   : > { %3277 = vrot.lane.b32.xlu0 %v9224_v38, %s6952_s29 }
 0x41c   : > { %3502 = vrot.lane.b32.xlu1 %v9001_v0, %s6954_s17  ;;  %v3903_v0 = vld [vmem:[#allocation4 + $0x82] sm:$0xff] }
 0x41d   : > { %v4474_v63 = vpop.permute.xlu0 %4473  ;;  %v3935_v15 = vpack.c.bf16 %v3903_v0, %v3903_v0 }
 0x41e   : > { %v4446_v54 = vpop.permute.xlu1 %4445  ;;  %4036 = vrot.lane.b32.xlu2 %v3949_v2, %s6952_s29  ;;  %4552 = vst.msk [vmem:[#allocation5 + $0xd0] sm:$0xf] %vm3765_vm2, %v4474_v63  ;;  %v4128_v2 = vld [vmem:[#allocation4 + $0x98] sm:$0xff] }
 0x41f   : > { %4538 = vst.msk [vmem:[#allocation5 + $0x28] sm:$0xf] %vm3765_vm2, %v4446_v54 }
 0x420   : > { %v4252_v58 = vpop.permute.xlu2 %4251 }
 0x423   : > { %3500 = vrot.lane.b32.xlu0 %v8999_v50, %s6954_s17 }
 0x424   : > { %3725 = vrot.lane.b32.xlu1 %v9114_v37, %s6956_s22 }
 0x425   : > { %v4444_v29 = vpop.permute.xlu0 %4443  ;;  %v6429_v46 = vld [vmem:[#allocation5 + $0xcc] sm:$0xf0] }
 0x426   : > { %v4027_v43 = vpop.permute.xlu1 %4026  ;;  %4259 = vrot.lane.b32.xlu2 %v8894_v27, %s6954_s17  ;;  %4537 = vst.msk [vmem:[#allocation5 + $0x1c] sm:$0xf] %vm3765_vm2, %v4444_v29  ;;  %v6432_v33 = vor.u32 %v6715_v47, %v6429_v46  ;;  %v6345_v17 = vld [vmem:[#allocation5 + $0x24] sm:$0xf0] }
 0x427   : > { %4104 = vst.msk [vmem:[#allocation5 + $0xdc] sm:$0xf] %vm3315_vm15, %v4027_v43  ;;  %v3902_v27 = vld [vmem:[#allocation4 + $0x7a] sm:$0xff] }
 0x428   : > { %4329 = vst.msk [vmem:[#allocation5 + $0xdc] sm:$0xf] %vm3540_vm1, %v4252_v58  ;;  %v3720_v60 = vpop.permute.xlu2 %3719  ;;  %5296 = vmatmul.bf16.vlgmr.msra.gmra.mxu3 %v6432_v33  ;;  %v4160_v58 = vpack.c.bf16 %v4128_v2, %v4128_v2  ;;  %v3918_v43 = vld [vmem:[#allocation4 + $0x13a] sm:$0xff] }
 0x429   : > { %v3950_v47 = vpack.c.bf16 %v3918_v43, %v3918_v43 }
 0x42b   : > { %4261 = vrot.lane.b32.xlu0 %v8915_v36, %s6954_s17  ;;  %v3934_v36 = vpack.c.bf16 %v3902_v27, %v3902_v27 }
 0x42c   : > { %4008 = vrot.lane.b32.xlu1 %v3935_v15, %s6952_s29 }
 0x42d   : > { %v3270_v49 = vpop.permute.xlu0 %3269  ;;  %v6694_v39 = vld [vmem:[#allocation5 + $0x1c] sm:$0xf] }
 0x42e   : > { %v3495_v50 = vpop.permute.xlu1 %3494  ;;  %3727 = vrot.lane.b32.xlu2 %v9122_v35, %s6956_s22  ;;  %3341 = vst.msk [vmem:[#allocation5 + $0x12c] sm:$0xf] %vm3315_vm15, %v3270_v49  ;;  %v6348_v31 = vor.u32 %v6694_v39, %v6345_v17  ;;  %v3919_v17 = vld [vmem:[#allocation4 + $0x142] sm:$0xff] }
 0x42f   : > { %3566 = vst.msk [vmem:[#allocation5 + $0x12c] sm:$0xf] %vm3540_vm1, %v3495_v50  ;;  %v3603_v39 = vld [vmem:[#allocation4 + $0x180] sm:$0xff] }
 0x430   : > { %v4476_v26 = vpop.permute.xlu2 %4475  ;;  %5261 = vmatmul.bf16.gmra.mxu0 %v6348_v31  ;;  %3791 = vst.msk [vmem:[#allocation5 + $0x12c] sm:$0xf] %vm3765_vm2, %v3720_v60  ;;  %v3154_v60 = vld [vmem:[#allocation4 + $0x171] sm:$0xff]  ;;  %v9285_v31 = vpack.c.bf16 %v3603_v39, %v3603_v39 }
 0x431   : > { %4553 = vst.msk [vmem:[#allocation5 + $0xdc] sm:$0xf] %vm3765_vm2, %v4476_v26  ;;  %v9278_v48 = vpack.c.bf16 %v3154_v60, %v3154_v60  ;;  %v3905_v26 = vld [vmem:[#allocation4 + $0x9a] sm:$0xff] }
 0x432   : > { %v3937_v2 = vpack.c.bf16 %v3905_v26, %v3905_v26 }
 0x433   : > { %4006 = vrot.lane.b32.xlu0 %v3934_v36, %s6952_s29 }
 0x434   : > { %4231 = vrot.lane.b32.xlu1 %v4159_v62, %s6954_s17 }
 0x435   : > { %v3493_v28 = vpop.permute.xlu0 %3492 }
 0x436   : > { %v3718_v10 = vpop.permute.xlu1 %3717  ;;  %4483 = vrot.lane.b32.xlu2 %v9119_v8, %s6956_s22  ;;  %3565 = vst.msk [vmem:[#allocation5 + $0x120] sm:$0xf] %vm3540_vm1, %v3493_v28 }
 0x437   : > { %3790 = vst.msk [vmem:[#allocation5 + $0x120] sm:$0xf] %vm3765_vm2, %v3718_v10  ;;  %v6728_v29 = vld [vmem:[#allocation5 + $0x128] sm:$0xf0] }
 0x438   : > { %v4226_v54 = vpop.permute.xlu2 %4225  ;;  %v6718_v10 = vld [vmem:[#allocation5 + $0xdc] sm:$0xf] }
 0x43b   : > { %4485 = vrot.lane.b32.xlu0 %v9137_v34, %s6956_s22  ;;  %v9267_v34 = vpop.f32.mrf.mxu2 }
 0x43c   : > { %4457 = vrot.lane.b32.xlu1 %v8556_v59, %s6956_s22 }
 0x43d   : > { %v4254_v8 = vpop.permute.xlu0 %4253 }
 0x43e   : > { %v4001_v63 = vpop.permute.xlu1 %4000  ;;  %4233 = vrot.lane.b32.xlu2 %v4160_v58, %s6954_s17  ;;  %4330 = vst.msk [vmem:[#allocation5 + $0xe8] sm:$0xf] %vm3540_vm1, %v4254_v8  ;;  %v6475_v0 = vld [vmem:[#allocation5 + $0x120] sm:$0xf]  ;;  %v3604_v58 = vld [vmem:[#allocation4 + $0x188] sm:$0xff] }
 0x43f   : > { %4091 = vst.msk [vmem:[#allocation5 + $0x40] sm:$0xf] %vm3315_vm15, %v4001_v63  ;;  %v6476_v59 = vor.u32 %v6728_v29, %v6475_v0  ;;  %v9301_v8 = vpack.c.bf16 %v3604_v58, %v3604_v58  ;;  %v4129_v29 = vld [vmem:[#allocation4 + $0xa8] sm:$0xff] }
 0x440   : > { %4316 = vst.msk [vmem:[#allocation5 + $0x40] sm:$0xf] %vm3540_vm1, %v4226_v54  ;;  %v3272_v46 = vpop.permute.xlu2 %3271 }
 0x441   : > { %3342 = vst.msk [vmem:[#allocation5 + $0x138] sm:$0xf] %vm3315_vm15, %v3272_v46  ;;  %5227 = vmatmul.bf16.gmra.mxu2 %v6476_v59  ;;  %v3904_v46 = vld [vmem:[#allocation4 + $0x92] sm:$0xff] }
 0x443   : > { %4455 = vrot.lane.b32.xlu0 %v8525_v44, %s6956_s22  ;;  %v3951_v44 = vpack.c.bf16 %v3919_v17, %v3919_v17  ;;  %v9297_v43 = vpop.f32.mrf.mxu2 }
 0x444   : > { %4038 = vrot.lane.b32.xlu1 %v3950_v47, %s6952_s29 }
 0x445   : > { %v3999_v15 = vpop.permute.xlu0 %3998 }
 0x446   : > { %v4224_v33 = vpop.permute.xlu1 %4223  ;;  %3279 = vrot.lane.b32.xlu2 %v9127_v40, %s6952_s29  ;;  %4090 = vst.msk [vmem:[#allocation5 + $0x34] sm:$0xf] %vm3315_vm15, %v3999_v15 }
 0x447   : > { %4315 = vst.msk [vmem:[#allocation5 + $0x34] sm:$0xf] %vm3540_vm1, %v4224_v33  ;;  %v4161_v33 = vpack.c.bf16 %v4129_v29, %v4129_v29 }
 0x448   : > { %v4033_v50 = vpop.permute.xlu2 %4032 }
 0x449   : > { %4107 = vst.msk [vmem:[#allocation5 + $0x100] sm:$0xf] %vm3315_vm15, %v4033_v50 }
 0x44b   : > { %3281 = vrot.lane.b32.xlu0 %v9278_v48, %s6952_s29  ;;  %v9311_v50 = vpop.f32.mrf.mxu2 }
 0x44c   : > { %3506 = vrot.lane.b32.xlu1 %v9102_v23, %s6954_s17 }
 0x44d   : > { %v4478_v27 = vpop.permute.xlu0 %4477 }
 0x44e   : > { %v4450_v49 = vpop.permute.xlu1 %4449  ;;  %4040 = vrot.lane.b32.xlu2 %v3951_v44, %s6952_s29  ;;  %4554 = vst.msk [vmem:[#allocation5 + $0xe8] sm:$0xf] %vm3765_vm2, %v4478_v27  ;;  %v4130_v44 = vld [vmem:[#allocation4 + $0xb0] sm:$0xff] }
 0x44f   : > { %4540 = vst.msk [vmem:[#allocation5 + $0x40] sm:$0xf] %vm3765_vm2, %v4450_v49  ;;  %v4162_v27 = vpack.c.bf16 %v4130_v44, %v4130_v44 }
 0x450   : > { %v4256_v62 = vpop.permute.xlu2 %4255 }
 0x453   : > { %3504 = vrot.lane.b32.xlu0 %v9100_v52, %s6954_s17 }
 0x454   : > { %3729 = vrot.lane.b32.xlu1 %v9285_v31, %s6956_s22 }
 0x455   : > { %v4448_v36 = vpop.permute.xlu0 %4447  ;;  %v6441_v28 = vld [vmem:[#allocation5 + $0xe4] sm:$0xf0] }
 0x456   : > { %v4031_v23 = vpop.permute.xlu1 %4030  ;;  %4263 = vrot.lane.b32.xlu2 %v8987_v41, %s6954_s17  ;;  %4539 = vst.msk [vmem:[#allocation5 + $0x34] sm:$0xf] %vm3765_vm2, %v4448_v36  ;;  %v6444_v54 = vor.u32 %v6718_v10, %v6441_v28  ;;  %v6357_v0 = vld [vmem:[#allocation5 + $0x3c] sm:$0xf0] }
 0x457   : > { %4106 = vst.msk [vmem:[#allocation5 + $0xf4] sm:$0xf] %vm3315_vm15, %v4031_v23 }
 0x458   : > { %4331 = vst.msk [vmem:[#allocation5 + $0xf4] sm:$0xf] %vm3540_vm1, %v4256_v62  ;;  %v3724_v63 = vpop.permute.xlu2 %3723  ;;  %5301 = vmatmul.bf16.gmra.mxu3 %v6444_v54  ;;  %v3920_v62 = vld [vmem:[#allocation4 + $0x152] sm:$0xff] }
 0x45b   : > { %4265 = vrot.lane.b32.xlu0 %v9009_v30, %s6954_s17  ;;  %v3936_v30 = vpack.c.bf16 %v3904_v46, %v3904_v46 }
 0x45c   : > { %4012 = vrot.lane.b32.xlu1 %v3937_v2, %s6952_s29 }
 0x45d   : > { %v3274_v41 = vpop.permute.xlu0 %3273  ;;  %v6697_v47 = vld [vmem:[#allocation5 + $0x34] sm:$0xf] }
 0x45e   : > { %v3499_v52 = vpop.permute.xlu1 %3498  ;;  %3731 = vrot.lane.b32.xlu2 %v9301_v8, %s6956_s22  ;;  %3343 = vst.msk [vmem:[#allocation5 + $0x144] sm:$0xf] %vm3315_vm15, %v3274_v41  ;;  %v6360_v59 = vor.u32 %v6697_v47, %v6357_v0  ;;  %v3921_v47 = vld [vmem:[#allocation4 + $0x15a] sm:$0xff] }
 0x45f   : > { %3568 = vst.msk [vmem:[#allocation5 + $0x144] sm:$0xf] %vm3540_vm1, %v3499_v52  ;;  %v3909_v52 = vld [vmem:[#allocation4 + $0xca] sm:$0xff] }
 0x460   : > { %v4480_v15 = vpop.permute.xlu2 %4479  ;;  %5266 = vmatmul.bf16.gmra.mxu0 %v6360_v59  ;;  %3793 = vst.msk [vmem:[#allocation5 + $0x144] sm:$0xf] %vm3765_vm2, %v3724_v63  ;;  %v4134_v63 = vld [vmem:[#allocation4 + $0xe0] sm:$0xff]  ;;  %v3953_v59 = vpack.c.bf16 %v3921_v47, %v3921_v47 }
 0x461   : > { %4555 = vst.msk [vmem:[#allocation5 + $0xf4] sm:$0xf] %vm3765_vm2, %v4480_v15  ;;  %v4166_v0 = vpack.c.bf16 %v4134_v63, %v4134_v63 }
 0x463   : > { %4010 = vrot.lane.b32.xlu0 %v3936_v30, %s6952_s29  ;;  %v4133_v30 = vld [vmem:[#allocation4 + $0xd8] sm:$0xff] }
 0x464   : > { %4235 = vrot.lane.b32.xlu1 %v4161_v33, %s6954_s17  ;;  %v3906_v33 = vld [vmem:[#allocation4 + $0xaa] sm:$0xff]  ;;  %v4165_v44 = vpack.c.bf16 %v4133_v30, %v4133_v30 }
 0x465   : > { %v3497_v17 = vpop.permute.xlu0 %3496  ;;  %v4132_v30 = vld [vmem:[#allocation4 + $0xc8] sm:$0xff] }
 0x466   : > { %v3722_v60 = vpop.permute.xlu1 %3721  ;;  %4487 = vrot.lane.b32.xlu2 %v9215_v57, %s6956_s22  ;;  %3567 = vst.msk [vmem:[#allocation5 + $0x138] sm:$0xf] %vm3540_vm1, %v3497_v17  ;;  %v9323_v57 = vpop.f32.mrf.mxu2 }
 0x467   : > { %3792 = vst.msk [vmem:[#allocation5 + $0x138] sm:$0xf] %vm3765_vm2, %v3722_v60  ;;  %v6731_v36 = vld [vmem:[#allocation5 + $0x140] sm:$0xf0]  ;;  %v3938_v60 = vpack.c.bf16 %v3906_v33, %v3906_v33 }
 0x468   : > { %v4230_v49 = vpop.permute.xlu2 %4229 }
 0x46b   : > { %4489 = vrot.lane.b32.xlu0 %v9224_v38, %s6956_s22  ;;  %v3908_v38 = vld [vmem:[#allocation4 + $0xc2] sm:$0xff] }
 0x46c   : > { %4461 = vrot.lane.b32.xlu1 %v8592_v42, %s6956_s22  ;;  %v3952_v42 = vpack.c.bf16 %v3920_v62, %v3920_v62  ;;  %v3940_v2 = vpack.c.bf16 %v3908_v38, %v3908_v38 }
 0x46d   : > { %v4258_v23 = vpop.permute.xlu0 %4257 }
 0x46e   : > { %v4005_v39 = vpop.permute.xlu1 %4004  ;;  %4237 = vrot.lane.b32.xlu2 %v4162_v27, %s6954_s17  ;;  %4332 = vst.msk [vmem:[#allocation5 + $0x100] sm:$0xf] %vm3540_vm1, %v4258_v23  ;;  %v6487_v26 = vld [vmem:[#allocation5 + $0x138] sm:$0xf]  ;;  %v9333_v29 = vpop.f32.mrf.mxu2  ;;  %v6721_v23 = vld [vmem:[#allocation5 + $0xf4] sm:$0xf] }
 0x46f   : > { %4093 = vst.msk [vmem:[#allocation5 + $0x58] sm:$0xf] %vm3315_vm15, %v4005_v39  ;;  %v6488_v28 = vor.u32 %v6731_v36, %v6487_v26  ;;  %v4358_v27 = vld [vmem:[#allocation4 + $0xe1] sm:$0xff] }
 0x470   : > { %4318 = vst.msk [vmem:[#allocation5 + $0x58] sm:$0xf] %vm3540_vm1, %v4230_v49  ;;  %v3276_v10 = vpop.permute.xlu2 %3275 }
 0x471   : > { %3344 = vst.msk [vmem:[#allocation5 + $0x150] sm:$0xf] %vm3315_vm15, %v3276_v10  ;;  %5232 = vmatmul.bf16.gmra.mxu2 %v6488_v28  ;;  %v3907_v28 = vld [vmem:[#allocation4 + $0xb2] sm:$0xff] }
 0x473   : > { %4459 = vrot.lane.b32.xlu0 %v8588_v24, %s6956_s22  ;;  %v3941_v24 = vpack.c.bf16 %v3909_v52, %v3909_v52  ;;  %v9356_v52 = vpop.f32.mrf.mxu1 }
 0x474   : > { %4042 = vrot.lane.b32.xlu1 %v3952_v42, %s6952_s29  ;;  %v4390_v42 = vpack.c.bf16 %v4358_v27, %v4358_v27 }
 0x475   : > { %v4003_v58 = vpop.permute.xlu0 %4002 }
 0x476   : > { %v4228_v54 = vpop.permute.xlu1 %4227  ;;  %4018 = vrot.lane.b32.xlu2 %v3940_v2, %s6952_s29  ;;  %4092 = vst.msk [vmem:[#allocation5 + $0x4c] sm:$0xf] %vm3315_vm15, %v4003_v58  ;;  %v9342_v17 = vpop.f32.mrf.mxu2  ;;  %v3939_v2 = vpack.c.bf16 %v3907_v28, %v3907_v28  ;;  %v4131_v58 = vld [vmem:[#allocation4 + $0xc0] sm:$0xff] }
 0x477   : > { %4317 = vst.msk [vmem:[#allocation5 + $0x4c] sm:$0xf] %vm3540_vm1, %v4228_v54  ;;  %v4163_v47 = vpack.c.bf16 %v4131_v58, %v4131_v58 }
 0x478   : > { %v4037_v41 = vpop.permute.xlu2 %4036 }
 0x479   : > { %4109 = vst.msk [vmem:[#allocation5 + $0x118] sm:$0xf] %vm3315_vm15, %v4037_v41 }
 0x47b   : > { %4020 = vrot.lane.b32.xlu0 %v3941_v24, %s6952_s29  ;;  %v9370_v33 = vpop.f32.mrf.mxu1 }
 0x47c   : > { %4245 = vrot.lane.b32.xlu1 %v4166_v0, %s6954_s17 }
 0x47d   : > { %v4482_v15 = vpop.permute.xlu0 %4481 }
 0x47e   : > { %v4454_v46 = vpop.permute.xlu1 %4453  ;;  %4044 = vrot.lane.b32.xlu2 %v3953_v59, %s6952_s29  ;;  %4556 = vst.msk [vmem:[#allocation5 + $0x100] sm:$0xf] %vm3765_vm2, %v4482_v15  ;;  %v9352_v38 = vpop.f32.mrf.mxu2 }
 0x47f   : > { %4542 = vst.msk [vmem:[#allocation5 + $0x58] sm:$0xf] %vm3765_vm2, %v4454_v46 }
 0x480   : > { %v4260_v49 = vpop.permute.xlu2 %4259 }
 0x483   : > { %4243 = vrot.lane.b32.xlu0 %v4165_v44, %s6954_s17  ;;  %v9383_v44 = vpop.f32.mrf.mxu1 }
 0x484   : > { %4014 = vrot.lane.b32.xlu1 %v3938_v60, %s6952_s29 }
 0x485   : > { %v4452_v62 = vpop.permute.xlu0 %4451  ;;  %v6453_v26 = vld [vmem:[#allocation5 + $0xfc] sm:$0xf0] }
 0x486   : > { %v4035_v39 = vpop.permute.xlu1 %4034  ;;  %4267 = vrot.lane.b32.xlu2 %v9114_v37, %s6954_s17  ;;  %4541 = vst.msk [vmem:[#allocation5 + $0x4c] sm:$0xf] %vm3765_vm2, %v4452_v62  ;;  %v6456_v36 = vor.u32 %v6721_v23, %v6453_v26  ;;  %v6369_v63 = vld [vmem:[#allocation5 + $0x54] sm:$0xf0]  ;;  %v9364_v46 = vpop.f32.mrf.mxu2 }
 0x487   : > { %4108 = vst.msk [vmem:[#allocation5 + $0x10c] sm:$0xf] %vm3315_vm15, %v4035_v39 }
 0x488   : > { %4333 = vst.msk [vmem:[#allocation5 + $0x10c] sm:$0xf] %vm3540_vm1, %v4260_v49  ;;  %v3728_v10 = vpop.permute.xlu2 %3727  ;;  %5306 = vmatmul.bf16.gmra.mxu3 %v6456_v36 }
 0x48b   : > { %4269 = vrot.lane.b32.xlu0 %v9122_v35, %s6954_s17 }
 0x48c   : > { %4469 = vrot.lane.b32.xlu1 %v4390_v42, %s6956_s22  ;;  %v3923_v42 = vld [vmem:[#allocation4 + $0x172] sm:$0xff] }
 0x48d   : > { %v3278_v37 = vpop.permute.xlu0 %3277  ;;  %v6700_v0 = vld [vmem:[#allocation5 + $0x4c] sm:$0xf] }
 0x48e   : > { %v3503_v54 = vpop.permute.xlu1 %3502  ;;  %4016 = vrot.lane.b32.xlu2 %v3939_v2, %s6952_s29  ;;  %3345 = vst.msk [vmem:[#allocation5 + $0x15c] sm:$0xf] %vm3315_vm15, %v3278_v37  ;;  %v6372_v41 = vor.u32 %v6700_v0, %v6369_v63  ;;  %v3924_v0 = vld [vmem:[#allocation4 + $0x182] sm:$0xff] }
 0x48f   : > { %3570 = vst.msk [vmem:[#allocation5 + $0x15c] sm:$0xf] %vm3540_vm1, %v3503_v54  ;;  %v9396_v54 = vpop.f32.mrf.mxu1 }
 0x490   : > { %v4484_v24 = vpop.permute.xlu2 %4483  ;;  %5271 = vmatmul.bf16.gmra.mxu0 %v6372_v41  ;;  %3795 = vst.msk [vmem:[#allocation5 + $0x15c] sm:$0xf] %vm3765_vm2, %v3728_v10 }
 0x491   : > { %4557 = vst.msk [vmem:[#allocation5 + $0x10c] sm:$0xf] %vm3765_vm2, %v4484_v24 }
 0x493   : > { %4467 = vrot.lane.b32.xlu0 %v8675_v45, %s6956_s22  ;;  %v4164_v45 = vpack.c.bf16 %v4132_v30, %v4132_v30 }
 0x494   : > { %4239 = vrot.lane.b32.xlu1 %v4163_v47, %s6954_s17 }
 0x495   : > { %v3501_v59 = vpop.permute.xlu0 %3500 }
 0x496   : > { %v3726_v35 = vpop.permute.xlu1 %3725  ;;  %4491 = vrot.lane.b32.xlu2 %v9127_v40, %s6956_s22  ;;  %3569 = vst.msk [vmem:[#allocation5 + $0x150] sm:$0xf] %vm3540_vm1, %v3501_v59  ;;  %v9380_v40 = vpop.f32.mrf.mxu2 }
 0x497   : > { %3794 = vst.msk [vmem:[#allocation5 + $0x150] sm:$0xf] %vm3765_vm2, %v3726_v35  ;;  %v9409_v47 = vpop.f32.mrf.mxu1  ;;  %v3956_v35 = vpack.c.bf16 %v3924_v0, %v3924_v0 }
 0x498   : > { %v4234_v15 = vpop.permute.xlu2 %4233 }
 0x49b   : > { %4493 = vrot.lane.b32.xlu0 %v9278_v48, %s6956_s22  ;;  %v3922_v48 = vld [vmem:[#allocation4 + $0x16a] sm:$0xff] }
 0x49c   : > { %4465 = vrot.lane.b32.xlu1 %v8656_v1, %s6956_s22  ;;  %v6734_v1 = vld [vmem:[#allocation5 + $0x158] sm:$0xf0]  ;;  %v3954_v26 = vpack.c.bf16 %v3922_v48, %v3922_v48  ;;  %v4373_v48 = vld [vmem:[#allocation4 + $0x199] sm:$0xff] }
 0x49d   : > { %v4262_v49 = vpop.permute.xlu0 %4261 }
 0x49e   : > { %v4009_v60 = vpop.permute.xlu1 %4008  ;;  %4241 = vrot.lane.b32.xlu2 %v4164_v45, %s6954_s17  ;;  %4334 = vst.msk [vmem:[#allocation5 + $0x118] sm:$0xf] %vm3540_vm1, %v4262_v49  ;;  %v6499_v39 = vld [vmem:[#allocation5 + $0x150] sm:$0xf]  ;;  %v9393_v10 = vpop.f32.mrf.mxu2  ;;  %v3925_v45 = vld [vmem:[#allocation4 + $0x18a] sm:$0xff] }
 0x49f   : > { %4095 = vst.msk [vmem:[#allocation5 + $0x70] sm:$0xf] %vm3315_vm15, %v4009_v60  ;;  %v6500_v62 = vor.u32 %v6734_v1, %v6499_v39 }
 0x4a0   : > { %4320 = vst.msk [vmem:[#allocation5 + $0x70] sm:$0xf] %vm3540_vm1, %v4234_v15  ;;  %v3280_v27 = vpop.permute.xlu2 %3279  ;;  %v6724_v15 = vld [vmem:[#allocation5 + $0x10c] sm:$0xf] }
 0x4a1   : > { %3346 = vst.msk [vmem:[#allocation5 + $0x168] sm:$0xf] %vm3315_vm15, %v3280_v27  ;;  %5237 = vmatmul.bf16.gmra.mxu2 %v6500_v62  ;;  %v9421_v62 = vpop.f32.mrf.mxu1 }
 0x4a3   : > { %4463 = vrot.lane.b32.xlu0 %v8635_v61, %s6956_s22  ;;  %v3955_v61 = vpack.c.bf16 %v3923_v42, %v3923_v42 }
 0x4a4   : > { %4271 = vrot.lane.b32.xlu1 %v9285_v31, %s6954_s17  ;;  %v4149_v31 = vld [vmem:[#allocation4 + $0x198] sm:$0xff] }
 0x4a5   : > { %v4007_v36 = vpop.permute.xlu0 %4006  ;;  %v4181_v63 = vpack.c.bf16 %v4149_v31, %v4149_v31 }
 0x4a6   : > { %v4232_v23 = vpop.permute.xlu1 %4231  ;;  %4046 = vrot.lane.b32.xlu2 %v3954_v26, %s6952_s29  ;;  %4094 = vst.msk [vmem:[#allocation5 + $0x64] sm:$0xf] %vm3315_vm15, %v4007_v36  ;;  %v9407_v41 = vpop.f32.mrf.mxu2 }
 0x4a7   : > { %4319 = vst.msk [vmem:[#allocation5 + $0x64] sm:$0xf] %vm3540_vm1, %v4232_v23 }
 0x4a8   : > { %v4041_v28 = vpop.permute.xlu2 %4040 }
 0x4a9   : > { %4111 = vst.msk [vmem:[#allocation5 + $0x130] sm:$0xf] %vm3315_vm15, %v4041_v28  ;;  %v4405_v28 = vpack.c.bf16 %v4373_v48, %v4373_v48  ;;  %v9428_v31 = vpop.f32.mrf.mxu1 }
 0x4ab   : > { %4048 = vrot.lane.b32.xlu0 %v3955_v61, %s6952_s29 }
 0x4ac   : > { %4497 = vrot.lane.b32.xlu1 %v9206_v25, %s6956_s22  ;;  %v4374_v25 = vld [vmem:[#allocation4 + $0x1a1] sm:$0xff] }
 0x4ad   : > { %v4486_v58 = vpop.permute.xlu0 %4485 }
 0x4ae   : > { %v4458_v2 = vpop.permute.xlu1 %4457  ;;  %4273 = vrot.lane.b32.xlu2 %v9301_v8, %s6954_s17  ;;  %4558 = vst.msk [vmem:[#allocation5 + $0x118] sm:$0xf] %vm3765_vm2, %v4486_v58  ;;  %v4406_v8 = vpack.c.bf16 %v4374_v25, %v4374_v25  ;;  %v9418_v1 = vpop.f32.mrf.mxu2 }
 0x4af   : > { %4544 = vst.msk [vmem:[#allocation5 + $0x70] sm:$0xf] %vm3765_vm2, %v4458_v2  ;;  %v4150_v2 = vld [vmem:[#allocation4 + $0x1a0] sm:$0xff] }
 0x4b0   : > { %v4264_v37 = vpop.permute.xlu2 %4263 }
 0x4b3   : > { %4495 = vrot.lane.b32.xlu0 %v9191_v56, %s6956_s22  ;;  %v3957_v56 = vpack.c.bf16 %v3925_v45, %v3925_v45 }
 0x4b4   : > { %4275 = vrot.lane.b32.xlu1 %v4181_v63, %s6954_s17 }
 0x4b5   : > { %v4456_v59 = vpop.permute.xlu0 %4455  ;;  %v6465_v30 = vld [vmem:[#allocation5 + $0x114] sm:$0xf0] }
 0x4b6   : > { %v4039_v24 = vpop.permute.xlu1 %4038  ;;  %4050 = vrot.lane.b32.xlu2 %v3956_v35, %s6952_s29  ;;  %4543 = vst.msk [vmem:[#allocation5 + $0x64] sm:$0xf] %vm3765_vm2, %v4456_v59  ;;  %v6468_v60 = vor.u32 %v6724_v15, %v6465_v30  ;;  %v6381_v27 = vld [vmem:[#allocation5 + $0x6c] sm:$0xf0]  ;;  %v9430_v63 = vpop.f32.mrf.mxu2 }
 0x4b7   : > { %4110 = vst.msk [vmem:[#allocation5 + $0x124] sm:$0xf] %vm3315_vm15, %v4039_v24  ;;  %v9437_v35 = vpop.f32.mrf.mxu1 }
 0x4b8   : > { %4335 = vst.msk [vmem:[#allocation5 + $0x124] sm:$0xf] %vm3540_vm1, %v4264_v37  ;;  %v3732_v49 = vpop.permute.xlu2 %3731  ;;  %5311 = vmatmul.bf16.gmra.mxu3 %v6468_v60  ;;  %v4182_v37 = vpack.c.bf16 %v4150_v2, %v4150_v2 }
 0x4b9   : > { %10325 = vst [vmem:[#allocation40_spill] sm:$0xff] %v9437_v35 }
 0x4bb   : > { %4052 = vrot.lane.b32.xlu0 %v3957_v56, %s6952_s29  ;;  %s10047_s29 = scalar_lea.vmem [#allocation9], %s6147_s25  ;;  %s10401_s25 = sld [smem:[#allocation14_spill]] }
 0x4bc   : > { %4501 = vrot.lane.b32.xlu1 %v4406_v8, %s6956_s22  ;;  %s6064_s20 = sshll.u32 %s10047_s29, 4  ;;  %s6065_s20 = int_to_ptr.vmem [resolvable:$true] %s6064_s20 }
 0x4bd   : > { %v3282_v23 = vpop.permute.xlu0 %3281  ;;  %v6703_v26 = vld [vmem:[#allocation5 + $0x64] sm:$0xf] }
 0x4be   : > { %v3507_v39 = vpop.permute.xlu1 %3506  ;;  %3347 = vst.msk [vmem:[#allocation5 + $0x174] sm:$0xf] %vm3315_vm15, %v3282_v23  ;;  %v6384_v36 = vor.u32 %v6703_v26, %v6381_v27  ;;  %4277 = vrot.lane.b32.xlu2 %v4182_v37, %s6954_s17  ;;  %v9440_v15 = vpop.f32.mrf.mxu2 }
 0x4bf   : > { %3572 = vst.msk [vmem:[#allocation5 + $0x174] sm:$0xf] %vm3540_vm1, %v3507_v39  ;;  %v9444_v56 = vpop.f32.mrf.mxu1 }
 0x4c0   : > { %v4488_v42 = vpop.permute.xlu2 %4487  ;;  %5276 = vmatmul.bf16.gmra.mxu0 %v6384_v36  ;;  %3797 = vst.msk [vmem:[#allocation5 + $0x174] sm:$0xf] %vm3765_vm2, %v3732_v49 }
 0x4c1   : > { %4559 = vst.msk [vmem:[#allocation5 + $0x124] sm:$0xf] %vm3765_vm2, %v4488_v42  ;;  %s6757_s17 = sshll.u32 %s10401_s25, 8 }
 0x4c2   : > { %s6063_s28 = scalar_lea.hbm %s10405_s23, %s6757_s17  ;;  %s6900_s17 = scalar_lea.hbm %s10405_s23, 512 }
 0x4c3   : > { %4499 = vrot.lane.b32.xlu0 %v4405_v28, %s6956_s22  ;;  %s6066_s19 = sshll.u32 %s6063_s28, 4  ;;  %s6067_s19 = int_to_ptr.hbm [resolvable:$true] %s6066_s19 }
 0x4c4   : > { %s6894_s26 = sshra.s32 %s6067_s19, 4  ;;  %s6895_s26 = int_to_ptr.hbm [resolvable:$true] %s6894_s26 }
 0x4c5   : > { %v3505_v58 = vpop.permute.xlu0 %3504  ;;  %s6896_s15 = scalar_lea.hbm %s6895_s26, 256  ;;  %p6901_p0 = scmp.lt.s32.totalorder %s6895_s26, %s10405_s23 }
 0x4c6   : > { %v3730_v61 = vpop.permute.xlu1 %3729  ;;  %3571 = vst.msk [vmem:[#allocation5 + $0x168] sm:$0xf] %vm3540_vm1, %v3505_v58  ;;  %v9448_v27 = vpop.f32.mrf.mxu2  ;;  %p6897_p6 = scmp.ne.s32.totalorder %s6895_s26, %s6896_s15  ;;  %p6902_p1 = scmp.lt.s32.totalorder %s6900_s17, %s6896_s15 }
 0x4c7   : > { %3796 = vst.msk [vmem:[#allocation5 + $0x168] sm:$0xf] %vm3765_vm2, %v3730_v61  ;;  %v6737_v59 = vld [vmem:[#allocation5 + $0x170] sm:$0xf0]  ;;  %v9452_v36 = vpop.f32.mrf.mxu1 }
 0x4c8   : > { %v4238_v0 = vpop.permute.xlu2 %4237  ;;  %v6727_v2 = vld [vmem:[#allocation5 + $0x124] sm:$0xf]  ;;  %p6898_p9 = pnand %p6897_p6, %p7086_p11  ;;  %p6903_p3 = por %p6902_p1, %p6901_p0 }
 0x4ca   : > { %p6899_p13 = pneg %p6898_p9 }
 0x4cc   : > { %p6904_p4 = pnand %p6903_p3, %p6899_p13 }
 0x4cd   : > { %v4266_v24 = vpop.permute.xlu0 %4265 }
 0x4ce   : > { %v4013_v25 = vpop.permute.xlu1 %4012  ;;  %4336 = vst.msk [vmem:[#allocation5 + $0x130] sm:$0xf] %vm3540_vm1, %v4266_v24  ;;  %v6511_v8 = vld [vmem:[#allocation5 + $0x168] sm:$0xf]  ;;  %v9454_v28 = vpop.f32.mrf.mxu2 }
 0x4cf   : > { %4097 = vst.msk [vmem:[#allocation5 + $0x88] sm:$0xf] %vm3315_vm15, %v4013_v25  ;;  %v6512_v60 = vor.u32 %v6737_v59, %v6511_v8  ;;  %v9462_v24 = vpop.f32.mrf.mxu1 }
 0x4d0   : > { %4322 = vst.msk [vmem:[#allocation5 + $0x88] sm:$0xf] %vm3540_vm1, %v4238_v0  ;;  %v4019_v30 = vpop.permute.xlu2 %4018  ;;  %v9459_v0 = vpop.f32.mrf.mxu3 }
 0x4d1   : > { %4100 = vst.msk [vmem:[#allocation5 + $0xac] sm:$0xf] %vm3315_vm15, %v4019_v30  ;;  %5242 = vmatmul.bf16.gmra.mxu2 %v6512_v60 }
 0x4d5   : > { %v4011_v49 = vpop.permute.xlu0 %4010 }
 0x4d6   : > { %v4236_v45 = vpop.permute.xlu1 %4235  ;;  %4096 = vst.msk [vmem:[#allocation5 + $0x7c] sm:$0xf] %vm3315_vm15, %v4011_v49  ;;  %v9464_v30 = vpop.f32.mrf.mxu2 }
 0x4d7   : > { %4321 = vst.msk [vmem:[#allocation5 + $0x7c] sm:$0xf] %vm3540_vm1, %v4236_v45 }
 0x4d8   : > { %v4045_v39 = vpop.permute.xlu2 %4044 }
 0x4d9   : > { %4113 = vst.msk [vmem:[#allocation5 + $0x148] sm:$0xf] %vm3315_vm15, %v4045_v39 }
 0x4dd   : > { %v4490_v23 = vpop.permute.xlu0 %4489 }
 0x4de   : > { %v4462_v48 = vpop.permute.xlu1 %4461  ;;  %4560 = vst.msk [vmem:[#allocation5 + $0x130] sm:$0xf] %vm3765_vm2, %v4490_v23 }
 0x4df   : > { %4546 = vst.msk [vmem:[#allocation5 + $0x88] sm:$0xf] %vm3765_vm2, %v4462_v48  ;;  %v9469_v48 = vpop.f32.mrf.mxu3 }
 0x4e0   : > { %v4268_v26 = vpop.permute.xlu2 %4267 }
 0x4e5   : > { %v4460_v61 = vpop.permute.xlu0 %4459  ;;  %v6477_v58 = vld [vmem:[#allocation5 + $0x12c] sm:$0xf0] }
 0x4e6   : > { %v4043_v42 = vpop.permute.xlu1 %4042  ;;  %4545 = vst.msk [vmem:[#allocation5 + $0x7c] sm:$0xf] %vm3765_vm2, %v4460_v61  ;;  %v6480_v37 = vor.u32 %v6727_v2, %v6477_v58  ;;  %v6393_v59 = vld [vmem:[#allocation5 + $0x84] sm:$0xf0]  ;;  %v9478_v2 = vpop.f32.mrf.mxu2 }
 0x4e7   : > { %4112 = vst.msk [vmem:[#allocation5 + $0x13c] sm:$0xf] %vm3315_vm15, %v4043_v42  ;;  %v5640_v42 = vld [vmem:[%s10238_s7 + $0x8] sm:$0xff] }
 0x4e8   : > { %4337 = vst.msk [vmem:[#allocation5 + $0x13c] sm:$0xf] %vm3540_vm1, %v4268_v26  ;;  %v4017_v25 = vpop.permute.xlu2 %4016  ;;  %5316 = vmatmul.bf16.gmra.mxu3 %v6480_v37  ;;  %v9471_v26 = vpop.f32.mrf.mxu1 }
 0x4e9   : > { %4099 = vst.msk [vmem:[#allocation5 + $0xa0] sm:$0xf] %vm3315_vm15, %v4017_v25  ;;  %5751 = vmatpush.msrb.mxu3 %v5640_v42  ;;  %v9481_v37 = vpop.f32.mrf.mxu3 }
 0x4ea   : > { %10326 = vst [vmem:[#allocation41_spill] sm:$0xff] %v9471_v26 }
 0x4eb   : > { %10327 = vst [vmem:[#allocation42_spill] sm:$0xff] %v9481_v37 }
 0x4ed   : > { %v4021_v60 = vpop.permute.xlu0 %4020  ;;  %v6706_v45 = vld [vmem:[#allocation5 + $0x7c] sm:$0xf] }
 0x4ee   : > { %v4246_v8 = vpop.permute.xlu1 %4245  ;;  %4101 = vst.msk [vmem:[#allocation5 + $0xb8] sm:$0xf] %vm3315_vm15, %v4021_v60  ;;  %v6396_v49 = vor.u32 %v6706_v45, %v6393_v59  ;;  %v9488_v45 = vpop.f32.mrf.mxu2 }
 0x4ef   : > { %4326 = vst.msk [vmem:[#allocation5 + $0xb8] sm:$0xf] %vm3540_vm1, %v4246_v8 }
 0x4f0   : > { %v4492_v39 = vpop.permute.xlu2 %4491  ;;  %5281 = vmatmul.bf16.gmra.mxu0 %v6396_v49  ;;  %v9483_v8 = vpop.f32.mrf.mxu1  ;;  %10329 = vst [vmem:[#allocation44_spill] sm:$0xff] %v9488_v45 }
 0x4f1   : > { %4561 = vst.msk [vmem:[#allocation5 + $0x13c] sm:$0xf] %vm3765_vm2, %v4492_v39  ;;  %v9490_v39 = vpop.f32.mrf.mxu3 }
 0x4f2   : > { %10328 = vst [vmem:[#allocation43_spill] sm:$0xff] %v9483_v8 }
 0x4f3   : > { %10330 = vst [vmem:[#allocation45_spill] sm:$0xff] %v9490_v39 }
 0x4f5   : > { %v4244_v61 = vpop.permute.xlu0 %4243 }
 0x4f6   : > { %v4015_v23 = vpop.permute.xlu1 %4014  ;;  %4325 = vst.msk [vmem:[#allocation5 + $0xac] sm:$0xf] %vm3540_vm1, %v4244_v61 }
 0x4f7   : > { %4098 = vst.msk [vmem:[#allocation5 + $0x94] sm:$0xf] %vm3315_vm15, %v4015_v23 }
 0x4f8   : > { %v4242_v58 = vpop.permute.xlu2 %4241  ;;  %v9493_v23 = vpop.f32.mrf.mxu1  ;;  %v6730_v35 = vld [vmem:[#allocation5 + $0x13c] sm:$0xf] }
 0x4f9   : > { %4324 = vst.msk [vmem:[#allocation5 + $0xa0] sm:$0xf] %vm3540_vm1, %v4242_v58 }
 0x4fa   : > { %10331 = vst [vmem:[#allocation46_spill] sm:$0xff] %v9493_v23 }
 0x4fd   : > { %v4270_v59 = vpop.permute.xlu0 %4269 }
 0x4fe   : > { %v4470_v25 = vpop.permute.xlu1 %4469  ;;  %4338 = vst.msk [vmem:[#allocation5 + $0x148] sm:$0xf] %vm3540_vm1, %v4270_v59 }
 0x4ff   : > { %4550 = vst.msk [vmem:[#allocation5 + $0xb8] sm:$0xf] %vm3765_vm2, %v4470_v25  ;;  %v5218_v25 = vpop.f32.mrf.mxu2 }
 0x500   : > { %v4047_v60 = vpop.permute.xlu2 %4046  ;;  %v5396_v8 = vpop.f32.mrf.mxu1 }
 0x501   : > { %4114 = vst.msk [vmem:[#allocation5 + $0x154] sm:$0xf] %vm3315_vm15, %v4047_v60 }
 0x505   : > { %v4468_v42 = vpop.permute.xlu0 %4467 }
 0x506   : > { %v4240_v49 = vpop.permute.xlu1 %4239  ;;  %4549 = vst.msk [vmem:[#allocation5 + $0xac] sm:$0xf] %vm3765_vm2, %v4468_v42  ;;  %v6417_v59 = vld [vmem:[#allocation5 + $0xb4] sm:$0xf0] }
 0x507   : > { %4323 = vst.msk [vmem:[#allocation5 + $0x94] sm:$0xf] %vm3540_vm1, %v4240_v49 }
 0x508   : > { %v4274_v61 = vpop.permute.xlu2 %4273 }
 0x50b   : > { %v5307_v20 = vpop.f32.mrf.mxu3 }
 0x50c   : > { %v5308_v60 = vadd.f32 %v5307_v20, %v5218_v25 }
 0x50d   : > { %v4494_v45 = vpop.permute.xlu0 %4493  ;;  %v6712_v26 = vld [vmem:[#allocation5 + $0xac] sm:$0xf] }
 0x50e   : > { %v4466_v58 = vpop.permute.xlu1 %4465  ;;  %v9497_v22 = vadd.f32 %v5396_v8, %v5308_v60  ;;  %4562 = vst.msk [vmem:[#allocation5 + $0x148] sm:$0xf] %vm3765_vm2, %v4494_v45  ;;  %v6420_v49 = vor.u32 %v6712_v26, %v6417_v59  ;;  %v4598_v59 = vld [vmem:[#allocation4 + $0x1a2] sm:$0xff] }
 0x50f   : > { %4548 = vst.msk [vmem:[#allocation5 + $0xa0] sm:$0xf] %vm3765_vm2, %v4466_v58 }
 0x510   : > { %10332 = vst [vmem:[#allocation47_spill] sm:$0xff] %v9497_v22  ;;  %v4051_v23 = vpop.permute.xlu2 %4050  ;;  %5291 = vmatmul.bf16.vlgmr.msra.gmra.mxu2 %v6420_v49 }
 0x511   : > { %4116 = vst.msk [vmem:[#allocation5 + $0x16c] sm:$0xf] %vm3315_vm15, %v4051_v23 }
 0x513   : > { %v9552_v22 = vpop.f32.mrf.mxu3 }
 0x515   : > { %v4464_v39 = vpop.permute.xlu0 %4463  ;;  %v6489_v37 = vld [vmem:[#allocation5 + $0x144] sm:$0xf0] }
 0x516   : > { %v4272_v42 = vpop.permute.xlu1 %4271  ;;  %4547 = vst.msk [vmem:[#allocation5 + $0x94] sm:$0xf] %vm3765_vm2, %v4464_v39  ;;  %v6492_v20 = vor.u32 %v6730_v35, %v6489_v37  ;;  %v6405_v8 = vld [vmem:[#allocation5 + $0x9c] sm:$0xf0]  ;;  %v4597_v39 = vld [vmem:[#allocation4 + $0x19a] sm:$0xff] }
 0x517   : > { %4339 = vst.msk [vmem:[#allocation5 + $0x154] sm:$0xf] %vm3540_vm1, %v4272_v42 }
 0x518   : > { %5321 = vmatmul.bf16.gmra.mxu3 %v6492_v20  ;;  %v4278_v37 = vpop.permute.xlu2 %4277 }
 0x51d   : > { %v4049_v25 = vpop.permute.xlu0 %4048  ;;  %v6709_v60 = vld [vmem:[#allocation5 + $0x94] sm:$0xf] }
 0x51e   : > { %v4498_v58 = vpop.permute.xlu1 %4497  ;;  %4115 = vst.msk [vmem:[#allocation5 + $0x160] sm:$0xf] %vm3315_vm15, %v4049_v25  ;;  %v6408_v26 = vor.u32 %v6709_v60, %v6405_v8  ;;  %v4629_v25 = vpack.c.bf16 %v4597_v39, %v4597_v39  ;;  %v4630_v8 = vpack.c.bf16 %v4598_v59, %v4598_v59  ;;  %v5257_v60 = vpop.f32.mrf.mxu0 }
 0x51f   : > { %4340 = vst.msk [vmem:[#allocation5 + $0x160] sm:$0xf] %vm3540_vm1, %v4274_v61 }
 0x520   : > { %5286 = vmatmul.bf16.gmra.mxu0 %v6408_v26  ;;  %4564 = vst.msk [vmem:[#allocation5 + $0x160] sm:$0xf] %vm3765_vm2, %v4498_v58  ;;  %v5639_v58 = vld [vmem:[%s10238_s7] sm:$0xff]  ;;  %v9516_v26 = vpop.f32.mrf.mxu2 }
 0x521   : > { %4661 = vst.msk [vmem:[#allocation5 + $0x170] sm:$0xf] %vm3090_vm14, %v4629_v25  ;;  %5752 = vmatpush.msrb.mxu3 %v5639_v58 }
 0x522   : > { %4662 = vst.msk [vmem:[#allocation5 + $0x17c] sm:$0xf] %vm3090_vm14, %v4630_v8 }
 0x525   : > { %v4496_v23 = vpop.permute.xlu0 %4495 }
 0x526   : > { %v4276_v45 = vpop.permute.xlu1 %4275  ;;  %4563 = vst.msk [vmem:[#allocation5 + $0x154] sm:$0xf] %vm3765_vm2, %v4496_v23  ;;  %v5259_v39 = vpop.f32.mrf.mxu0 }
 0x527   : > { %4341 = vst.msk [vmem:[#allocation5 + $0x16c] sm:$0xf] %vm3540_vm1, %v4276_v45  ;;  %v6501_v35 = vld [vmem:[#allocation5 + $0x15c] sm:$0xf0] }
 0x528   : > { %v6519_v23 = vld [vmem:[#allocation5 + $0x170] sm:$0xf]  ;;  %v9519_v59 = vpop.f32.mrf.mxu2 }
 0x52d   : > { %v4053_v49 = vpop.permute.xlu0 %4052  ;;  %v6733_v42 = vld [vmem:[#allocation5 + $0x154] sm:$0xf] }
 0x52e   : > { %v4502_v20 = vpop.permute.xlu1 %4501  ;;  %4117 = vst.msk [vmem:[#allocation5 + $0x178] sm:$0xf] %vm3315_vm15, %v4053_v49  ;;  %v6504_v61 = vor.u32 %v6733_v42, %v6501_v35  ;;  %v6738_v35 = vld [vmem:[#allocation5 + $0x178] sm:$0xf0]  ;;  %v5262_v25 = vpop.f32.mrf.mxu0 }
 0x52f   : > { %4342 = vst.msk [vmem:[#allocation5 + $0x178] sm:$0xf] %vm3540_vm1, %v4278_v37  ;;  %v6520_v37 = vor.u32 %v6738_v35, %v6519_v23 }
 0x530   : > { %5326 = vmatmul.bf16.gmra.mxu3 %v6504_v61  ;;  %4566 = vst.msk [vmem:[#allocation5 + $0x178] sm:$0xf] %vm3765_vm2, %v4502_v20  ;;  %v9522_v61 = vpop.f32.mrf.mxu2 }
 0x531   : > { %6608 = vmatmul.msk.bf16.gmra.mxu1 %vm2947_vm11, %v6520_v37  ;;  %10333 = vst [vmem:[#allocation48_spill] sm:$0xff] %v9522_v61  ;;  %v5258_v61 = vadd.f32 %v5257_v60, %v9254_v32 }
 0x535   : > { %v4500_v45 = vpop.permute.xlu0 %4499 }
 0x536   : > { %4565 = vst.msk [vmem:[#allocation5 + $0x16c] sm:$0xf] %vm3765_vm2, %v4500_v45  ;;  %v5264_v8 = vpop.f32.mrf.mxu0 }
 0x537   : > { %v6513_v49 = vld [vmem:[#allocation5 + $0x174] sm:$0xf0] }
 0x538   : > { %v9524_v58 = vpop.f32.mrf.mxu2 }
 0x539   : > { %10334 = vst [vmem:[#allocation49_spill] sm:$0xff] %v9524_v58 }
 0x53d   : > { %v6736_v42 = vld [vmem:[#allocation5 + $0x16c] sm:$0xf] }
 0x53e   : > { %v6516_v20 = vor.u32 %v6736_v42, %v6513_v49  ;;  %v5267_v45 = vpop.f32.mrf.mxu0  ;;  %v5578_v49 = vld [vmem:[%s10241_s10 + $0x18] sm:$0xff]  ;;  %v5577_v42 = vld [vmem:[%s10241_s10 + $0x10] sm:$0xff] }
 0x53f   : > { %5595 = vmatpush.msra.mxu0 %v5578_v49 }
 0x540   : > { %5331 = vmatmul.bf16.gmra.mxu3 %v6516_v20  ;;  %v9528_v23 = vpop.f32.mrf.mxu2 }
 0x541   : > { %10335 = vst [vmem:[#allocation50_spill] sm:$0xff] %v9528_v23  ;;  %5596 = vmatpush.msra.mxu0 %v5577_v42  ;;  %v9550_v23 = vpop.f32.mrf.mxu1 }
 0x542   : > { %10339 = vst [vmem:[#allocation54_spill] sm:$0xff] %v9550_v23 }
 0x546   : > { %v5269_v35 = vpop.f32.mrf.mxu0 }
 0x548   : > { %v9532_v37 = vpop.f32.mrf.mxu2 }
 0x549   : > { %10336 = vst [vmem:[#allocation51_spill] sm:$0xff] %v9532_v37  ;;  %v9556_v49 = vpop.f32.mrf.mxu1 }
 0x54a   : > { %10340 = vst [vmem:[#allocation55_spill] sm:$0xff] %v9556_v49  ;;  %v5265_v49 = vadd.f32 %v5264_v8, %v9311_v50  ;;  %v5270_v50 = vadd.f32 %v5269_v35, %v9333_v29 }
 0x550   : > { %6612 = vmatmul.msk.f32.vlgmr.msrb.gmra.mxu3 %vm521_vm0, %v7213_v4  ;;  %v5272_v4 = vpop.f32.mrf.mxu0 }
 0x551   : > { %v9567_v58 = vpop.f32.mrf.mxu1  ;;  %v5273_v8 = vadd.f32 %v5272_v4, %v9342_v17 }
 0x558   : > { %6613 = vmatmul.msk.f32.gmra.mxu3 %vm521_vm0, %v7229_v6  ;;  %v9544_v6 = vpop.f32.mrf.mxu2  ;;  %v5274_v20 = vpop.f32.mrf.mxu0 }
 0x559   : > { %10337 = vst [vmem:[#allocation52_spill] sm:$0xff] %v9544_v6 }
 0x560   : > { %6614 = vmatmul.msk.f32.gmra.mxu3 %vm521_vm0, %v7206_v3  ;;  %v9548_v37 = vpop.f32.mrf.mxu2  ;;  %v5277_v3 = vpop.f32.mrf.mxu0 }
 0x561   : > { %10338 = vst [vmem:[#allocation53_spill] sm:$0xff] %v9548_v37  ;;  %v5260_v37 = vadd.f32 %v5259_v39, %v9267_v34  ;;  %v9581_v34 = vld [vmem:[%s10236_s5] ss:$0 sm:$0xff]  ;;  %v5278_v4 = vadd.f32 %v5277_v3, %v9364_v46 }
 0x568   : > { %6615 = vmatmul.msk.f32.gmra.mxu3 %vm521_vm0, %v7224_v5  ;;  %v9558_v42 = vpop.f32.mrf.mxu2  ;;  %v9560_v5 = vpop.f32.mrf.mxu3 }
 0x569   : > { %10341 = vst [vmem:[#allocation56_spill] sm:$0xff] %v9558_v42  ;;  %v5349_v42 = vadd.f32 %v9036_v55, %v5260_v37  ;;  %v5354_v55 = vadd.f32 %v9145_v21, %v5265_v49  ;;  %v5275_v21 = vadd.f32 %v5274_v20, %v9352_v38  ;;  %v5359_v37 = vadd.f32 %v9210_v53, %v5270_v50 }
 0x56a   : > { %v5362_v38 = vadd.f32 %v9356_v52, %v5273_v8 }
 0x56b   : > { %v5431_v39 = vmul.f32 %v9581_v34, %v5349_v42  ;;  %v5433_v35 = vmul.f32 %v9581_v34, %v5354_v55  ;;  %v5364_v20 = vadd.f32 %v9370_v33, %v5275_v21 }
 0x56c   : > { %v5436_v3 = vmul.f32 %v9581_v34, %v5362_v38 }
 0x570   : > { %6616 = vmatmul.msk.f32.gmra.mxu3 %vm521_vm0, %v7234_v7  ;;  %v5279_v7 = vpop.f32.mrf.mxu0  ;;  %v9564_v6 = vpop.f32.mrf.mxu2 }
 0x571   : > { %v9571_v23 = vpop.f32.mrf.mxu3 }
 0x578   : > { %6617 = vmatmul.msk.f32.gmra.mxu3 %vm521_vm0, %v7244_v11  ;;  %v5263_v11 = vadd.f32 %v5262_v25, %v9297_v43  ;;  %v5268_v43 = vadd.f32 %v5267_v45, %v9323_v57  ;;  %v5282_v60 = vpop.f32.mrf.mxu0  ;;  %v9588_v25 = vpop.f32.mrf.mxu1 }
 0x579   : > { %v9602_v29 = vpop.f32.mrf.mxu3 }
 0x57a   : > { %v5352_v32 = vadd.f32 %v9110_v14, %v5263_v11  ;;  %v5357_v57 = vadd.f32 %v9193_v12, %v5268_v43  ;;  %v5280_v11 = vadd.f32 %v5279_v7, %v9380_v40  ;;  %v5367_v43 = vadd.f32 %v9383_v44, %v5278_v4 }
 0x57b   : > { %v5437_v7 = vmul.f32 %v9581_v34, %v5364_v20  ;;  %v5576_v20 = vld [vmem:[%s10241_s10 + $0x8] sm:$0xff] }
 0x57c   : > { %v5432_v14 = vmul.f32 %v9581_v34, %v5352_v32  ;;  %v5434_v17 = vmul.f32 %v9581_v34, %v5357_v57  ;;  %v5438_v21 = vmul.f32 %v9581_v34, %v5367_v43  ;;  %5597 = vmatpush.msra.mxu0 %v5576_v20 }
 0x580   : > { %6618 = vmatmul.msk.f32.gmra.mxu3 %vm521_vm0, %v7239_v9  ;;  %v5347_v9 = vadd.f32 %v9011_v51, %v5258_v61  ;;  %v9594_v51 = vld [vmem:[%s10237_s6] ss:$0 sm:$0xff]  ;;  %v9597_v61 = vpop.f32.mrf.mxu2  ;;  %v5284_v32 = vpop.f32.mrf.mxu0 }
 0x581   : > { %v9605_v45 = vadd.f32 %v9594_v51, %v5431_v39  ;;  %v9615_v12 = vadd.f32 %v9594_v51, %v5432_v14  ;;  %v9624_v42 = vadd.f32 %v9594_v51, %v5433_v35  ;;  %v9633_v33 = vadd.f32 %v9594_v51, %v5434_v17  ;;  %v9638_v55 = vpop.f32.mrf.mxu1 }
 0x582   : > { %v5283_v39 = vadd.f32 %v5282_v60, %v9393_v10  ;;  %v5369_v14 = vadd.f32 %v9396_v54, %v5280_v11  ;;  %v5285_v57 = vadd.f32 %v5284_v32, %v9407_v41  ;;  %v9650_v10 = vpop.f32.mrf.mxu3  ;;  %v9655_v8 = vadd.f32 %v9594_v51, %v5436_v3 }
 0x583   : > { %v5499_v53 = vsel %vm2947_vm11, %v9605_v45, 0.0  ;;  %v5501_v52 = vsel %vm2947_vm11, %v9615_v12, 0.0  ;;  %v5503_v50 = vsel %vm2947_vm11, %v9624_v42, 0.0  ;;  %v5505_v60 = vsel %vm2947_vm11, %v9633_v33, 0.0 }
 0x584   : > { %v5372_v35 = vadd.f32 %v9409_v47, %v5283_v39  ;;  %v9660_v54 = vadd.f32 %v9594_v51, %v5437_v7  ;;  %v5439_v41 = vmul.f32 %v9581_v34, %v5369_v14  ;;  %v5374_v17 = vadd.f32 %v9421_v62, %v5285_v57 }
 0x585   : > { %v5509_v47 = vsel %vm2947_vm11, %v9655_v8, 0.0 }
 0x586   : > { %v9681_v3 = vadd.f32 %v9594_v51, %v5439_v41  ;;  %v5441_v43 = vmul.f32 %v9581_v34, %v5374_v17 }
 0x588   : > { %6619 = vmatmul.msk.f32.gmra.mxu3 %vm521_vm0, %v7249_v13  ;;  %v5430_v13 = vmul.f32 %v9581_v34, %v5347_v9 }
 0x58a   : > { %v9612_v49 = vadd.f32 %v9594_v51, %v5430_v13 }
 0x58c   : > { %v5498_v9 = vsel %vm2947_vm11, %v9612_v49, 0.0 }
 0x58d   : > { %v5500_v40 = vadd.f32 %v5499_v53, %v5498_v9  ;;  %v9672_v53 = vadd.f32 %v9594_v51, %v5438_v21  ;;  %v9676_v9 = vpop.f32.mrf.mxu1  ;;  %v5300_v21 = vadd.f32 %v9469_v48, %v9464_v30 }
 0x58f   : > { %v5502_v44 = vadd.f32 %v5501_v52, %v5500_v40  ;;  %v5511_v52 = vsel %vm2947_vm11, %v9660_v54, 0.0 }
 0x590   : > { %6620 = vmatmul.msk.f32.gmra.mxu3 %vm521_vm0, %v7262_v18  ;;  %v5435_v18 = vmul.f32 %v9581_v34, %v5359_v37 }
 0x591   : > { %v5504_v37 = vadd.f32 %v5503_v50, %v5502_v44  ;;  %v5513_v50 = vsel %vm2947_vm11, %v9672_v53, 0.0 }
 0x592   : > { %v9644_v13 = vadd.f32 %v9594_v51, %v5435_v18  ;;  %v5440_v18 = vmul.f32 %v9581_v34, %v5372_v35 }
 0x593   : > { %v5292_v46 = vpop.f32.mrf.mxu2  ;;  %v5506_v38 = vadd.f32 %v5505_v60, %v5504_v37 }
 0x594   : > { %v5293_v39 = vadd.f32 %v5292_v46, %v9440_v15  ;;  %v9693_v14 = vadd.f32 %v9594_v51, %v5440_v18  ;;  %v5298_v15 = vadd.f32 %v9459_v0, %v9454_v28  ;;  %v9702_v46 = vadd.f32 %v9594_v51, %v5441_v43  ;;  %v10345_v18 = vld [vmem:[#allocation41_spill] sm:$0xff] }
 0x596   : > { %v5382_v60 = vadd.f32 %v9444_v56, %v5293_v39  ;;  %v5387_v41 = vadd.f32 %v9462_v24, %v5298_v15  ;;  %v10342_v56 = vld [vmem:[#allocation42_spill] sm:$0xff]  ;;  %v5519_v30 = vsel %vm2947_vm11, %v9702_v46, 0.0  ;;  %v10346_v24 = vld [vmem:[#allocation44_spill] sm:$0xff] }
 0x598   : > { %6621 = vmatmul.msk.f32.gmra.mxu3 %vm521_vm0, %v7257_v16  ;;  %v5507_v16 = vsel %vm2947_vm11, %v9644_v13, 0.0  ;;  %v5444_v48 = vmul.f32 %v9581_v34, %v5382_v60 }
 0x599   : > { %v5508_v62 = vadd.f32 %v5507_v16, %v5506_v38  ;;  %v5303_v38 = vadd.f32 %v10342_v56, %v9478_v2 }
 0x59b   : > { %v5294_v32 = vpop.f32.mrf.mxu2  ;;  %v9688_v7 = vpop.f32.mrf.mxu3 }
 0x59c   : > { %v5295_v57 = vadd.f32 %v5294_v32, %v9448_v27  ;;  %v5517_v27 = vsel %vm2947_vm11, %v9693_v14, 0.0 }
 0x59d   : > { %v5287_v4 = vpop.f32.mrf.mxu0 }
 0x59e   : > { %v5288_v11 = vadd.f32 %v5287_v4, %v9418_v1  ;;  %v5510_v1 = vadd.f32 %v5509_v47, %v5508_v62  ;;  %v5384_v16 = vadd.f32 %v9452_v36, %v5295_v57  ;;  %v10343_v4 = vld [vmem:[#allocation40_spill] sm:$0xff]  ;;  %v9723_v36 = vpop.f32.mrf.mxu1  ;;  %v10347_v62 = vld [vmem:[#allocation45_spill] sm:$0xff] }
 0x59f   : > { %v10344_v47 = vld [vmem:[#allocation20_spill] sm:$0xff] }
 0x5a0   : > { %v5377_v40 = vadd.f32 %v9428_v31, %v5288_v11  ;;  %6622 = vmatmul.msk.f32.gmra.mxu3 %vm521_vm0, %v7269_v19  ;;  %v5512_v31 = vadd.f32 %v5511_v52, %v5510_v1  ;;  %v5515_v19 = vsel %vm2947_vm11, %v9681_v3, 0.0  ;;  %v5305_v52 = vadd.f32 %v10347_v62, %v10346_v24 }
 0x5a1   : > { %v5445_v2 = vmul.f32 %v9581_v34, %v5384_v16  ;;  %v5446_v1 = vmul.f32 %v9581_v34, %v5387_v41 }
 0x5a2   : > { %v5442_v44 = vmul.f32 %v9581_v34, %v5377_v40  ;;  %v5514_v35 = vadd.f32 %v5513_v50, %v5512_v31  ;;  %v10348_v50 = vld [vmem:[#allocation43_spill] sm:$0xff]  ;;  %v5310_v31 = vadd.f32 %v9552_v22, %v9516_v26  ;;  %v5313_v22 = vadd.f32 %v9560_v5, %v9519_v59  ;;  %v10352_v59 = vld [vmem:[#allocation48_spill] sm:$0xff] }
 0x5a3   : > { %v5324_v40 = vpop.f32.mrf.mxu3  ;;  %v5392_v57 = vadd.f32 %v10348_v50, %v5303_v38  ;;  %v10351_v38 = vld [vmem:[#allocation54_spill] sm:$0xff]  ;;  %v5315_v5 = vadd.f32 %v9571_v23, %v10352_v59 }
 0x5a4   : > { %v9711_v28 = vadd.f32 %v9594_v51, %v5442_v44  ;;  %v5516_v17 = vadd.f32 %v5515_v19, %v5514_v35  ;;  %v9735_v44 = vadd.f32 %v9594_v51, %v5444_v48 }
 0x5a5   : > { %v5289_v37 = vpop.f32.mrf.mxu0  ;;  %v5448_v41 = vmul.f32 %v9581_v34, %v5392_v57 }
 0x5a6   : > { %v5290_v0 = vadd.f32 %v5289_v37, %v9430_v63  ;;  %v5389_v63 = vadd.f32 %v10345_v18, %v5300_v21  ;;  %v5518_v11 = vadd.f32 %v5517_v27, %v5516_v17  ;;  %v5521_v32 = vsel %vm2947_vm11, %v9711_v28, 0.0  ;;  %v10349_v21 = vld [vmem:[#allocation46_spill] sm:$0xff]  ;;  %v10350_v17 = vld [vmem:[#allocation19_spill] sm:$0xff]  ;;  %v5416_v56 = vpop.f32.mrf.mxu1 }
 0x5a7   : > { %v5394_v35 = vadd.f32 %v10349_v21, %v5305_v52  ;;  %v9745_v37 = vadd.f32 %v9594_v51, %v5445_v2  ;;  %v5525_v26 = vsel %vm2947_vm11, %v9735_v44, 0.0  ;;  %v9776_v2 = vadd.f32 %v9594_v51, %v5448_v41 }
 0x5a8   : > { %v5379_v20 = vadd.f32 %v10343_v4, %v5290_v0  ;;  %6623 = vmatmul.msk.f32.gmra.mxu3 %vm521_vm0, %v10344_v47  ;;  %v5520_v39 = vadd.f32 %v5519_v30, %v5518_v11  ;;  %v5447_v60 = vmul.f32 %v9581_v34, %v5389_v63  ;;  %v9750_v0 = vadd.f32 %v9594_v51, %v5446_v1  ;;  %v5575_v4 = vld [vmem:[%s10241_s10] sm:$0xff]  ;;  %v10353_v63 = vld [vmem:[#allocation49_spill] sm:$0xff] }
 0x5a9   : > { %v5399_v30 = vadd.f32 %v10351_v38, %v5310_v31  ;;  %v5449_v47 = vmul.f32 %v9581_v34, %v5394_v35  ;;  %v5527_v18 = vsel %vm2947_vm11, %v9745_v37, 0.0  ;;  %5598 = vmatpush.msra.mxu0 %v5575_v4  ;;  %v5318_v11 = vadd.f32 %v9602_v29, %v10353_v63 }
 0x5aa   : > { %v5443_v43 = vmul.f32 %v9581_v34, %v5379_v20  ;;  %v5522_v19 = vadd.f32 %v5521_v32, %v5520_v39  ;;  %v9764_v20 = vadd.f32 %v9594_v51, %v5447_v60  ;;  %v5529_v52 = vsel %vm2947_vm11, %v9750_v0, 0.0  ;;  %v10354_v32 = vld [vmem:[#allocation47_spill] sm:$0xff] }
 0x5ab   : > { %v10355_v39 = vld [vmem:[#allocation55_spill] sm:$0xff]  ;;  %v5451_v1 = vmul.f32 %v9581_v34, %v5399_v30  ;;  %v9785_v29 = vadd.f32 %v9594_v51, %v5449_v47  ;;  %v5404_v31 = vadd.f32 %v9567_v58, %v5315_v5  ;;  %v5407_v21 = vadd.f32 %v9588_v25, %v5318_v11 }
 0x5ac   : > { %v9738_v15 = vadd.f32 %v9594_v51, %v5443_v43  ;;  %v5450_v43 = vmul.f32 %v9581_v34, %v10354_v32  ;;  %v5402_v23 = vadd.f32 %v10355_v39, %v5313_v22  ;;  %v5531_v57 = vsel %vm2947_vm11, %v9764_v20, 0.0  ;;  %v10357_v22 = vld [vmem:[#allocation51_spill] sm:$0xff] }
 0x5ad   : > { %v9802_v58 = vadd.f32 %v9594_v51, %v5451_v1  ;;  %v5535_v25 = vsel %vm2947_vm11, %v9785_v29, 0.0  ;;  %v5453_v38 = vmul.f32 %v9581_v34, %v5404_v31  ;;  %v5454_v59 = vmul.f32 %v9581_v34, %v5407_v21 }
 0x5ae   : > { %v5523_v27 = vsel %vm2947_vm11, %v9738_v15, 0.0  ;;  %v5452_v41 = vmul.f32 %v9581_v34, %v5402_v23  ;;  %v5418_v47 = vpop.f32.mrf.mxu1  ;;  %v10364_v23 = vld [vmem:[#allocation56_spill] sm:$0xff] }
 0x5af   : > { %v5524_v16 = vadd.f32 %v5523_v27, %v5522_v19  ;;  %v10356_v19 = vld [vmem:[#allocation50_spill] sm:$0xff]  ;;  %v5533_v27 = vsel %vm2947_vm11, %v9776_v2, 0.0  ;;  %10359 = vst [vmem:[#allocation42_spill] sm:$0xff] %v9802_v58 }
 0x5b0   : > { %6624 = vmatmul.msk.f32.gmra.mxu3 %vm521_vm0, %v10350_v17  ;;  %v5320_v60 = vadd.f32 %v9650_v10, %v10356_v19  ;;  %v10358_v17 = vld [vmem:[#allocation21_spill] sm:$0xff]  ;;  %v9813_v63 = vadd.f32 %v9594_v51, %v5452_v41  ;;  %v10366_v19 = vld [vmem:[#allocation23_spill] sm:$0xff] }
 0x5b1   : > { %v5526_v48 = vadd.f32 %v5525_v26, %v5524_v16  ;;  %v9794_v16 = vadd.f32 %v9594_v51, %v5450_v43  ;;  %v5323_v26 = vadd.f32 %v9688_v7, %v10357_v22 }
 0x5b2   : > { %v5409_v30 = vadd.f32 %v9638_v55, %v5320_v60  ;;  %10361 = vst [vmem:[#allocation40_spill] sm:$0xff] %v9813_v63  ;;  %v5539_v55 = vsel %vm2947_vm11, %v9802_v58, 0.0 }
 0x5b3   : > { %v5528_v24 = vadd.f32 %v5527_v18, %v5526_v48  ;;  %v5327_v62 = vpop.f32.mrf.mxu3  ;;  %v10360_v48 = vld [vmem:[#allocation52_spill] sm:$0xff]  ;;  %v5537_v18 = vsel %vm2947_vm11, %v9794_v16, 0.0  ;;  %v5412_v11 = vadd.f32 %v9676_v9, %v5323_v26  ;;  %v5541_v9 = vsel %vm2947_vm11, %v9813_v63, 0.0 }
 0x5b4   : > { %v5325_v4 = vadd.f32 %v5324_v40, %v10360_v48  ;;  %v9820_v40 = vadd.f32 %v9594_v51, %v5453_v38  ;;  %v5455_v43 = vmul.f32 %v9581_v34, %v5409_v30 }
 0x5b5   : > { %v5530_v50 = vadd.f32 %v5529_v52, %v5528_v24  ;;  %v10362_v24 = vld [vmem:[#allocation53_spill] sm:$0xff] }
 0x5b6   : > { %v5328_v52 = vadd.f32 %v5327_v62, %v10362_v24  ;;  %10363 = vst [vmem:[#allocation20_spill] sm:$0xff] %v9820_v40  ;;  %v5414_v39 = vadd.f32 %v9723_v36, %v5325_v4  ;;  %v5456_v62 = vmul.f32 %v9581_v34, %v5412_v11  ;;  %v5543_v21 = vsel %vm2947_vm11, %v9820_v40, 0.0  ;;  %v5421_v26 = vpop.f32.mrf.mxu1 }
 0x5b7   : > { %v5532_v35 = vadd.f32 %v5531_v57, %v5530_v50  ;;  %v9826_v50 = vadd.f32 %v9594_v51, %v5454_v59  ;;  %v9836_v36 = vadd.f32 %v9594_v51, %v5455_v43 }
 0x5b8   : > { %6625 = vmatmul.msk.f32.gmra.mxu3 %vm521_vm0, %v10358_v17  ;;  %v5417_v31 = vadd.f32 %v5416_v56, %v5328_v52  ;;  %v9842_v56 = vadd.f32 %v9594_v51, %v5456_v62 }
 0x5b9   : > { %v5534_v10 = vadd.f32 %v5533_v27, %v5532_v35  ;;  %10365 = vst [vmem:[#allocation41_spill] sm:$0xff] %v9826_v50  ;;  %v5457_v35 = vmul.f32 %v9581_v34, %v5414_v39  ;;  %v5545_v41 = vsel %vm2947_vm11, %v9826_v50, 0.0  ;;  %v5547_v30 = vsel %vm2947_vm11, %v9836_v36, 0.0  ;;  %v9952_v50 = vld [vmem:[%s10239_s8] ss:$0 sm:$0xff] }
 0x5ba   : > { %10367 = vst [vmem:[#allocation44_spill] sm:$0xff] %v9836_v36 }
 0x5bb   : > { %v5536_v7 = vadd.f32 %v5535_v25, %v5534_v10  ;;  %v5329_v5 = vpop.f32.mrf.mxu3  ;;  %10368 = vst [vmem:[#allocation45_spill] sm:$0xff] %v9842_v56  ;;  %v5458_v10 = vmul.f32 %v9581_v34, %v5417_v31  ;;  %v9849_v48 = vadd.f32 %v9594_v51, %v5457_v35 }
 0x5bc   : > { %v5330_v1 = vadd.f32 %v5329_v5, %v10364_v23  ;;  %v5549_v5 = vsel %vm2947_vm11, %v9842_v56, 0.0 }
 0x5bd   : > { %v5538_v32 = vadd.f32 %v5537_v18, %v5536_v7  ;;  %10369 = vst [vmem:[#allocation43_spill] sm:$0xff] %v9849_v48  ;;  %v6958_v7 = vmov 256.0   ;;  %v9855_v18 = vadd.f32 %v9594_v51, %v5458_v10  ;;  %v5551_v24 = vsel %vm2947_vm11, %v9849_v48, 0.0 }
 0x5be   : > { %v5419_v27 = vadd.f32 %v5418_v47, %v5330_v1  ;;  %6840 = vrcp.f32 %v6958_v7 }
 0x5bf   : > { %v5540_v57 = vadd.f32 %v5539_v55, %v5538_v32  ;;  %10370 = vst [vmem:[#allocation46_spill] sm:$0xff] %v9855_v18  ;;  %v5553_v39 = vsel %vm2947_vm11, %v9855_v18, 0.0 }
 0x5c0   : > { %6626 = vmatmul.msk.f32.gmra.mxu3 %vm521_vm0, %v10366_v19  ;;  %v5459_v4 = vmul.f32 %v9581_v34, %v5419_v27  ;;  %v10372_v27 = vld [vmem:[#allocation24_spill] sm:$0xff] }
 0x5c1   : > { %v5542_v60 = vadd.f32 %v5541_v9, %v5540_v57  ;;  %v5423_v9 = vpop.f32.mrf.mxu1 }
 0x5c2   : > { %v9862_v52 = vadd.f32 %v9594_v51, %v5459_v4 }
 0x5c3   : > { %v5544_v22 = vadd.f32 %v5543_v21, %v5542_v60  ;;  %v5332_v17 = vpop.f32.mrf.mxu3 }
 0x5c4   : > { %v5333_v25 = vadd.f32 %v5332_v17, %v9564_v6  ;;  %v10371_v6 = vld [vmem:[#allocation22_spill] sm:$0xff]  ;;  %v6841_v1 = vpop.eup %6840  ;;  %v5555_v62 = vsel %vm2947_vm11, %v9862_v52, 0.0 }
 0x5c5   : > { %v5546_v38 = vadd.f32 %v5545_v41, %v5544_v22  ;;  %v5568_v35 = vmul.f32 256.0, %v6841_v1  ;;  %vm5572_vm3 = vweird.f32 %v6841_v1 }
 0x5c6   : > { %v5422_v47 = vadd.f32 %v5421_v26, %v5333_v25 }
 0x5c7   : > { %v5548_v59 = vadd.f32 %v5547_v30, %v5546_v38  ;;  %v5569_v17 = vsub.f32 1.0, %v5568_v35  ;;  %v10373_v30 = vld [vmem:[#allocation26_spill] sm:$0xff] }
 0x5c8   : > { %6627 = vmatmul.msk.f32.gmra.mxu3 %vm521_vm0, %v10371_v6  ;;  %v5460_v55 = vmul.f32 %v9581_v34, %v5422_v47  ;;  %v10374_v6 = vld [vmem:[#allocation25_spill] sm:$0xff] }
 0x5c9   : > { %v5550_v11 = vadd.f32 %v5549_v5, %v5548_v59  ;;  %v5570_v38 = vmul.f32 %v6841_v1, %v5569_v17 }
 0x5ca   : > { %v9871_v31 = vadd.f32 %v9594_v51, %v5460_v55 }
 0x5cb   : > { %v5552_v32 = vadd.f32 %v5551_v24, %v5550_v11  ;;  %v5334_v43 = vpop.f32.mrf.mxu3  ;;  %v5571_v59 = vadd.f32 %v6841_v1, %v5570_v38  ;;  %v10385_v38 = vld [vmem:[#allocation37_spill] sm:$0xff] }
 0x5cc   : > { %v5335_v23 = vadd.f32 %v5334_v43, %v9597_v61  ;;  %v5557_v61 = vsel %vm2947_vm11, %v9871_v31, 0.0 }
 0x5cd   : > { %v5554_v57 = vadd.f32 %v5553_v39, %v5552_v32  ;;  %v5573_v5 = vsel %vm5572_vm3, %v6841_v1, %v5571_v59  ;;  %v10375_v32 = vld [vmem:[#allocation27_spill] sm:$0xff]  ;;  %v10376_v39 = vld [vmem:[#allocation29_spill] sm:$0xff] }
 0x5ce   : > { %v5424_v19 = vadd.f32 %v5423_v9, %v5335_v23  ;;  %v10377_v23 = vld [vmem:[#allocation28_spill] sm:$0xff]  ;;  %v5604_v9 = vld [vmem:[%s10243_s12] sm:$0x3] }
 0x5cf   : > { %v5556_v60 = vadd.f32 %v5555_v62, %v5554_v57  ;;  %v10378_v57 = vld [vmem:[#allocation30_spill] sm:$0xff]  ;;  %6610 = vmatpush.msk.msrb.mxu2 %vm5610_vm4, %v5604_v9 }
 0x5d0   : > { %v5461_v21 = vmul.f32 %v9581_v34, %v5424_v19  ;;  %6628 = vmatmul.msk.f32.gmra.mxu3 %vm521_vm0, %v10372_v27  ;;  %v10379_v19 = vld [vmem:[#allocation32_spill] sm:$0xff]  ;;  %v10381_v27 = vld [vmem:[#allocation33_spill] sm:$0xff] }
 0x5d1   : > { %v5558_v22 = vadd.f32 %v5557_v61, %v5556_v60  ;;  %v10382_v61 = vld [vmem:[#allocation35_spill] sm:$0xff] }
 0x5d2   : > { %v9879_v41 = vadd.f32 %v9594_v51, %v5461_v21  ;;  %v10380_v21 = vld [vmem:[#allocation31_spill] sm:$0xff] }
 0x5d3   : > { %v9885_v47 = vpop.f32.mrf.mxu3 }
 0x5d4   : > { %v5559_v26 = vsel %vm2947_vm11, %v9879_v41, 0.0  ;;  %v5854_v40 = vmul.f32 %v9952_v50, %v9885_v47 }
 0x5d5   : > { %v5560_v10 = vadd.f32 %v5559_v26, %v5558_v22  ;;  %v10383_v26 = vld [vmem:[#allocation34_spill] sm:$0xff] }
 0x5d7   : > { %v5561_v25 = vrot.slane %v5560_v10, 4 }
 0x5d8   : > { %6629 = vmatmul.msk.f32.gmra.mxu3 %vm521_vm0, %v10373_v30 }
 0x5d9   : > { %v5562_v34 = vadd.f32 %v5561_v25, %v5560_v10  ;;  %v10384_v10 = vld [vmem:[#allocation36_spill] sm:$0xff] }
 0x5db   : > { %v5563_v4 = vrot.slane %v5562_v34, 2  ;;  %v9890_v55 = vpop.f32.mrf.mxu3 }
 0x5dd   : > { %v5564_v7 = vadd.f32 %v5563_v4, %v5562_v34  ;;  %v10386_v34 = vld [vmem:[#allocation38_spill] sm:$0xff]  ;;  %v10387_v4 = vld [vmem:[#allocation39_spill] sm:$0xff] }
 0x5df   : > { %v5565_v51 = vrot.slane %v5564_v7, 1 }
 0x5e0   : > { %6630 = vmatmul.msk.f32.gmra.mxu3 %vm521_vm0, %v10374_v6 }
 0x5e1   : > { %v5566_v11 = vadd.f32 %v5565_v51, %v5564_v7 }
 0x5e3   : > { %v5574_v24 = vmul.f32 %v5573_v5, %v5566_v11  ;;  %v5760_v43 = vpop.f32.mrf.mxu3  ;;  %v5579_v5 = vld [vmem:[%s10242_s11] sm:$0x1] }
 0x5e5   : > { %6609 = vmatmul.msk.f32.vlgmr.msra.gmra.mxu0 %vm2947_vm11, %v5574_v24 }
 0x5e8   : > { %6631 = vmatmul.msk.f32.gmra.mxu3 %vm521_vm0, %v10375_v32 }
 0x5eb   : > { %v5763_v1 = vpop.f32.mrf.mxu3 }
 0x5f0   : > { %6632 = vmatmul.msk.f32.gmra.mxu3 %vm521_vm0, %v10376_v39 }
 0x5f3   : > { %v5766_v62 = vpop.f32.mrf.mxu3 }
 0x5f8   : > { %6633 = vmatmul.msk.f32.gmra.mxu3 %vm521_vm0, %v10377_v23 }
 0x5fb   : > { %v5769_v60 = vpop.f32.mrf.mxu3 }
 0x600   : > { %6634 = vmatmul.msk.f32.gmra.mxu3 %vm521_vm0, %v10378_v57 }
 0x603   : > { %v5772_v35 = vpop.f32.mrf.mxu3 }
 0x608   : > { %6635 = vmatmul.msk.f32.gmra.mxu3 %vm521_vm0, %v10379_v19 }
 0x60b   : > { %v5775_v22 = vpop.f32.mrf.mxu3 }
 0x60c   : > { %v5861_v47 = vmul.f32 %v9952_v50, %v5775_v22 }
 0x610   : > { %6636 = vmatmul.msk.f32.gmra.mxu3 %vm521_vm0, %v10380_v21 }
 0x613   : > { %v5778_v17 = vpop.f32.mrf.mxu3 }
 0x618   : > { %6637 = vmatmul.msk.f32.gmra.mxu3 %vm521_vm0, %v10381_v27 }
 0x61b   : > { %v5781_v25 = vpop.f32.mrf.mxu3 }
 0x61c   : > { %v5863_v63 = vmul.f32 %v9952_v50, %v5781_v25 }
 0x620   : > { %6638 = vmatmul.msk.f32.gmra.mxu3 %vm521_vm0, %v10382_v61 }
 0x623   : > { %v5784_v30 = vpop.f32.mrf.mxu3 }
 0x628   : > { %6639 = vmatmul.msk.f32.gmra.mxu3 %vm521_vm0, %v10383_v26 }
 0x62b   : > { %v5787_v59 = vpop.f32.mrf.mxu3 }
 0x630   : > { %6640 = vmatmul.msk.f32.gmra.mxu3 %vm521_vm0, %v10384_v10 }
 0x633   : > { %v5790_v7 = vpop.f32.mrf.mxu3 }
 0x638   : > { %6641 = vmatmul.msk.f32.gmra.mxu3 %vm521_vm0, %v10385_v38 }
 0x63b   : > { %v5793_v51 = vpop.f32.mrf.mxu3 }
 0x640   : > { %6642 = vmatmul.msk.f32.gmra.mxu3 %vm521_vm0, %v10386_v34 }
 0x643   : > { %v5796_v32 = vpop.f32.mrf.mxu3 }
 0x648   : > { %6643 = vmatmul.msk.f32.gmra.mxu3 %vm521_vm0, %v10387_v4  ;;  %v5605_v4 = vld [vmem:[%s10244_s13] sm:$0x1] }
 0x64b   : > { %v5799_v39 = vpop.f32.mrf.mxu3 }
 0x653   : > { %v5802_v23 = vpop.f32.mrf.mxu3 }
 0x65b   : > { %v5805_v57 = vpop.f32.mrf.mxu3 }
 0x662   : > { %v5600_v6 = vpop.f32.mrf.mxu0 }
 0x663   : > { %v5601_v11 = vadd.f32 %v5600_v6, %v5579_v5  ;;  %v9924_v9 = vpop.f32.mrf.mxu3 }
 0x665   : > { %v5603_v24 = vmax.f32 %v5601_v11, 0.0 }
 0x667   : > { %6611 = vmatmul.msk.f32.vlgmr.msrb.gmra.mxu2 %vm5606_vm5, %v5603_v24 }
 0x66b   : > { %v9926_v19 = vpop.f32.mrf.mxu3 }
 0x673   : > { %v9928_v21 = vpop.f32.mrf.mxu3 }
 0x67b   : > { %v9930_v27 = vpop.f32.mrf.mxu3 }
 0x683   : > { %v9932_v61 = vpop.f32.mrf.mxu3 }
 0x68b   : > { %v9934_v26 = vpop.f32.mrf.mxu3 }
 0x693   : > { %v9936_v10 = vpop.f32.mrf.mxu3 }
 0x69b   : > { %v9938_v38 = vpop.f32.mrf.mxu3 }
 0x69c   : > { %10388 = vst [vmem:[#allocation19_spill] sm:$0xff] %v9938_v38  ;;  %v5862_v38 = vmul.f32 %v9952_v50, %v5778_v17 }
 0x6a3   : > { %v9940_v34 = vpop.f32.mrf.mxu3 }
 0x6a4   : > { %10389 = vst [vmem:[#allocation54_spill] sm:$0xff] %v9940_v34 }
 0x6ab   : > { %v9945_v5 = vpop.f32.mrf.mxu3 }
 0x6ac   : > { %10390 = vst [vmem:[#allocation48_spill] sm:$0xff] %v9945_v5 }
 0x6b3   : > { %v9947_v48 = vpop.f32.mrf.mxu3 }
 0x6b4   : > { %10391 = vst [vmem:[#allocation49_spill] sm:$0xff] %v9947_v48  ;;  %v5860_v48 = vmul.f32 %v9952_v50, %v5772_v35 }
 0x6bb   : > { %v5841_v34 = vpop.f32.mrf.mxu3 }
 0x6ea   : > { %v5631_v6 = vpop.f32.mrf.mxu2 }
 0x6eb   : > { %v5632_v11 = vadd.f32 %v5631_v6, %v5605_v4  ;;  %v9959_v4 = vld [vmem:[%s10240_s9] ss:$0 sm:$0xff]  ;;  %v5857_v6 = vmul.f32 %v9952_v50, %v5763_v1  ;;  %v5864_v1 = vmul.f32 %v9952_v50, %v5784_v30 }
 0x6ec   : > { %v5890_v5 = vadd.f32 %v9959_v4, %v5854_v40  ;;  %v5883_v40 = vmul.f32 %v9952_v50, %v5841_v34  ;;  %v5896_v17 = vadd.f32 %v9959_v4, %v5860_v48  ;;  %v5897_v25 = vadd.f32 %v9959_v4, %v5861_v47 }
 0x6ed   : > { %v5634_v24 = vsub.f32 0.0, %v5632_v11  ;;  %v5858_v11 = vmul.f32 %v9952_v50, %v5766_v62  ;;  %v5865_v62 = vmul.f32 %v9952_v50, %v5787_v59  ;;  %v5898_v30 = vadd.f32 %v9959_v4, %v5862_v38 }
 0x6ee   : > { %v5899_v59 = vadd.f32 %v9959_v4, %v5863_v63  ;;  %v5869_v48 = vmul.f32 %v9952_v50, %v5799_v39  ;;  %v5871_v47 = vmul.f32 %v9952_v50, %v5805_v57 }
 0x6ef   : > { %v5635_v18 = vmul.f32 1.442695, %v5634_v24  ;;  %v5894_v35 = vadd.f32 %v9959_v4, %v5858_v11  ;;  %v5868_v11 = vmul.f32 %v9952_v50, %v5796_v32  ;;  %v9993_v34 = vadd.f32 %v9959_v4, %v5865_v62 }
 0x6f0   : > { %v10021_v62 = vadd.f32 %v9959_v4, %v5869_v48 }
 0x6f1   : > { %6842 = vpow2.f32 %v5635_v18  ;;  %v5855_v18 = vmul.f32 %v9952_v50, %v9890_v55 }
 0x6f3   : > { %v5891_v55 = vadd.f32 %v9959_v4, %v5855_v18  ;;  %v5866_v18 = vmul.f32 %v9952_v50, %v5790_v7 }
 0x6f5   : > { %v10005_v38 = vadd.f32 %v9959_v4, %v5866_v18 }
 0x6f7   : > { %v6843_v56 = vpop.eup %6842 }
 0x6f8   : > { %v5637_v36 = vadd.f32 1.0, %v6843_v56  ;;  %v5856_v56 = vmul.f32 %v9952_v50, %v5760_v43 }
 0x6fa   : > { %6844 = vrcp.f32 %v5637_v36  ;;  %v5859_v36 = vmul.f32 %v9952_v50, %v5769_v60  ;;  %v5892_v43 = vadd.f32 %v9959_v4, %v5856_v56  ;;  %v5893_v60 = vadd.f32 %v9959_v4, %v5857_v6  ;;  %v5844_v56 = vpop.f32.mrf.mxu3 }
 0x6fb   : > { %v5867_v6 = vmul.f32 %v9952_v50, %v5793_v51  ;;  %v5919_v51 = vadd.f32 %v9959_v4, %v5883_v40 }
 0x6fc   : > { %v5895_v22 = vadd.f32 %v9959_v4, %v5859_v36  ;;  %v5870_v36 = vmul.f32 %v9952_v50, %v5802_v23 }
 0x6fe   : > { %v10024_v57 = vadd.f32 %v9959_v4, %v5870_v36 }
 0x700   : > { %v6845_v24 = vpop.eup %6844 }
 0x701   : > { %v9978_v58 = vperm.slane %v6845_v24, 0  ;;  %v9990_v24 = vadd.f32 %v9959_v4, %v5864_v1 }
 0x703   : > { %v5923_v7 = vmul.f32 %v9978_v58, %v9612_v49  ;;  %v5924_v63 = vmul.f32 %v9978_v58, %v9605_v45  ;;  %v5952_v32 = vmul.f32 %v9978_v58, %v9862_v52  ;;  %v5925_v39 = vmul.f32 %v9978_v58, %v9615_v12 }
 0x704   : > { %v5926_v23 = vmul.f32 %v9978_v58, %v9624_v42  ;;  %v10013_v49 = vadd.f32 %v9959_v4, %v5867_v6  ;;  %v10016_v45 = vadd.f32 %v9959_v4, %v5868_v11  ;;  %v5872_v52 = vmul.f32 %v9952_v50, %v9924_v9 }
 0x705   : > { %v5984_v1 = vadd.f32 %v5952_v32, %v5919_v51  ;;  %v5927_v12 = vmul.f32 %v9978_v58, %v9633_v33  ;;  %v5884_v42 = vmul.f32 %v9952_v50, %v5844_v56  ;;  %v5928_v40 = vmul.f32 %v9978_v58, %v9644_v13 }
 0x706   : > { %v5955_v6 = vadd.f32 %v5923_v7, %v5890_v5  ;;  %v5956_v11 = vadd.f32 %v5924_v63, %v5891_v55  ;;  %v10032_v9 = vadd.f32 %v9959_v4, %v5871_v47  ;;  %v5929_v48 = vmul.f32 %v9978_v58, %v9655_v8 }
 0x707   : > { %v6016_v18 = vmax.f32 %v5984_v1, 0.0  ;;  %v5957_v51 = vadd.f32 %v5925_v39, %v5892_v43  ;;  %v5958_v36 = vadd.f32 %v5926_v23, %v5893_v60  ;;  %v10037_v32 = vadd.f32 %v9959_v4, %v5872_v52 }
 0x708   : > { %v5873_v33 = vmul.f32 %v9952_v50, %v9926_v19  ;;  %v5874_v13 = vmul.f32 %v9952_v50, %v9928_v21  ;;  %v5930_v5 = vmul.f32 %v9978_v58, %v9660_v54  ;;  %v5931_v8 = vmul.f32 %v9978_v58, %v9672_v53  ;;  %v5847_v21 = vpop.f32.mrf.mxu3 }
 0x709   : > { %6048 = vst.msk [vmem:[%s10047_s29 + $0xe8] sm:$0xff] %vm2947_vm11, %v6016_v18  ;;  %v5932_v55 = vmul.f32 %v9978_v58, %v9681_v3  ;;  %v5959_v19 = vadd.f32 %v5927_v12, %v5894_v35  ;;  %v5920_v43 = vadd.f32 %v9959_v4, %v5884_v42  ;;  %v5960_v60 = vadd.f32 %v5928_v40, %v5895_v22 }
 0x70a   : > { %v5953_v54 = vmul.f32 %v9978_v58, %v9871_v31  ;;  %v5987_v56 = vmax.f32 %v5955_v6, 0.0  ;;  %v5988_v7 = vmax.f32 %v5956_v11, 0.0  ;;  %v5933_v63 = vmul.f32 %v9978_v58, %v9693_v14 }
 0x70b   : > { %v5961_v47 = vadd.f32 %v5929_v48, %v5896_v17  ;;  %v5989_v53 = vmax.f32 %v5957_v51, 0.0  ;;  %v5990_v39 = vmax.f32 %v5958_v36, 0.0  ;;  %v5875_v3 = vmul.f32 %v9952_v50, %v9930_v27 }
 0x70c   : > { %v5962_v35 = vadd.f32 %v5930_v5, %v5897_v25  ;;  %v5985_v23 = vadd.f32 %v5953_v54, %v5920_v43  ;;  %v5885_v22 = vmul.f32 %v9952_v50, %v5847_v21  ;;  %6019 = vst.msk [vmem:[%s10047_s29] sm:$0xff] %vm2947_vm11, %v5987_v56  ;;  %v5909_v31 = vadd.f32 %v9959_v4, %v5873_v33  ;;  %v10392_v43 = vld [vmem:[#allocation42_spill] sm:$0xff] }
 0x70d   : > { %v5934_v52 = vmul.f32 %v9978_v58, %v9702_v46  ;;  %v5963_v14 = vadd.f32 %v5931_v8, %v5898_v30  ;;  %v5991_v17 = vmax.f32 %v5959_v19, 0.0  ;;  %6020 = vst.msk [vmem:[%s10047_s29 + $0x8] sm:$0xff] %vm2947_vm11, %v5988_v7  ;;  %v5935_v27 = vmul.f32 %v9978_v58, %v9711_v28  ;;  %v10394_v7 = vld [vmem:[#allocation19_spill] sm:$0xff] }
 0x70e   : > { %v5964_v25 = vadd.f32 %v5932_v55, %v5899_v59  ;;  %v6017_v1 = vmax.f32 %v5985_v23, 0.0  ;;  %v5992_v12 = vmax.f32 %v5960_v60, 0.0  ;;  %6021 = vst.msk [vmem:[%s10047_s29 + $0x10] sm:$0xff] %vm2947_vm11, %v5989_v53  ;;  %v5910_v42 = vadd.f32 %v9959_v4, %v5874_v13  ;;  %v10393_v60 = vld [vmem:[#allocation40_spill] sm:$0xff]  ;;  %v10397_v23 = vld [vmem:[#allocation41_spill] sm:$0xff] }
 0x70f   : > { %v5936_v40 = vmul.f32 %v9978_v58, %v9738_v15  ;;  %v5965_v46 = vadd.f32 %v5933_v63, %v9990_v24  ;;  %v5993_v30 = vmax.f32 %v5961_v47, 0.0  ;;  %6022 = vst.msk [vmem:[%s10047_s29 + $0x18] sm:$0xff] %vm2947_vm11, %v5990_v39  ;;  %v5911_v18 = vadd.f32 %v9959_v4, %v5875_v3  ;;  %v10395_v47 = vld [vmem:[#allocation20_spill] sm:$0xff]  ;;  %v10396_v3 = vld [vmem:[#allocation54_spill] sm:$0xff] }
 0x710   : > { %v5937_v28 = vmul.f32 %v9978_v58, %v9735_v44  ;;  %6049 = vst.msk [vmem:[%s10047_s29 + $0xf0] sm:$0xff] %vm2947_vm11, %v6017_v1  ;;  %v5994_v59 = vmax.f32 %v5962_v35, 0.0  ;;  %v5921_v6 = vadd.f32 %v9959_v4, %v5885_v22  ;;  %v5876_v15 = vmul.f32 %v9952_v50, %v9932_v61 }
 0x711   : > { %v5938_v24 = vmul.f32 %v9978_v58, %v9745_v37  ;;  %v5966_v11 = vadd.f32 %v5934_v52, %v9993_v34  ;;  %v5995_v48 = vmax.f32 %v5963_v14, 0.0  ;;  %6023 = vst.msk [vmem:[%s10047_s29 + $0x20] sm:$0xff] %vm2947_vm11, %v5991_v17  ;;  %v5939_v44 = vmul.f32 %v9978_v58, %v9750_v0  ;;  %v10398_v14 = vld [vmem:[#allocation48_spill] sm:$0xff] }
 0x712   : > { %v5967_v51 = vadd.f32 %v5935_v27, %v10005_v38  ;;  %v5996_v36 = vmax.f32 %v5964_v25, 0.0  ;;  %v5954_v33 = vmul.f32 %v9978_v58, %v9879_v41  ;;  %6024 = vst.msk [vmem:[%s10047_s29 + $0x28] sm:$0xff] %vm2947_vm11, %v5992_v12  ;;  %v5877_v37 = vmul.f32 %v9952_v50, %v9934_v26  ;;  %v10399_v27 = vld [vmem:[#allocation44_spill] sm:$0xff]  ;;  %v10400_v12 = vld [vmem:[#allocation49_spill] sm:$0xff] }
 0x713   : > { %v5940_v61 = vmul.f32 %v9978_v58, %v9764_v20  ;;  %v5968_v34 = vadd.f32 %v5936_v40, %v10013_v49  ;;  %v5997_v13 = vmax.f32 %v5965_v46, 0.0  ;;  %6025 = vst.msk [vmem:[%s10047_s29 + $0x30] sm:$0xff] %vm2947_vm11, %v5993_v30  ;;  %v5878_v0 = vmul.f32 %v9952_v50, %v9936_v10 }
 0x714   : > { %v5941_v41 = vmul.f32 %v9978_v58, %v9776_v2  ;;  %v5969_v38 = vadd.f32 %v5937_v28, %v10016_v45  ;;  %v5986_v5 = vadd.f32 %v5954_v33, %v5921_v6  ;;  %6026 = vst.msk [vmem:[%s10047_s29 + $0x38] sm:$0xff] %vm2947_vm11, %v5994_v59  ;;  %v5912_v20 = vadd.f32 %v9959_v4, %v5876_v15  ;;  %v10403_v6 = vld [vmem:[#allocation43_spill] sm:$0xff] }
 0x715   : > { %v5942_v26 = vmul.f32 %v9978_v58, %v9785_v29  ;;  %v5970_v49 = vadd.f32 %v5938_v24, %v10021_v62  ;;  %v5998_v8 = vmax.f32 %v5966_v11, 0.0  ;;  %6027 = vst.msk [vmem:[%s10047_s29 + $0x40] sm:$0xff] %vm2947_vm11, %v5995_v48  ;;  %v5943_v2 = vmul.f32 %v9978_v58, %v9794_v16  ;;  %v10404_v11 = vld [vmem:[#allocation46_spill] sm:$0xff] }
 0x716   : > { %v5971_v10 = vadd.f32 %v5939_v44, %v10024_v57  ;;  %v5999_v45 = vmax.f32 %v5967_v51, 0.0  ;;  %v6018_v55 = vmax.f32 %v5986_v5, 0.0  ;;  %6028 = vst.msk [vmem:[%s10047_s29 + $0x48] sm:$0xff] %vm2947_vm11, %v5996_v36  ;;  %v5913_v19 = vadd.f32 %v9959_v4, %v5877_v37 }
 0x717   : > { %v5944_v29 = vmul.f32 %v9978_v58, %v10392_v43  ;;  %v5972_v62 = vadd.f32 %v5940_v61, %v10032_v9  ;;  %v6000_v21 = vmax.f32 %v5968_v34, 0.0  ;;  %6029 = vst.msk [vmem:[%s10047_s29 + $0x50] sm:$0xff] %vm2947_vm11, %v5997_v13  ;;  %v5914_v16 = vadd.f32 %v9959_v4, %v5878_v0 }
 0x718   : > { %v5945_v57 = vmul.f32 %v9978_v58, %v10393_v60  ;;  %v5973_v54 = vadd.f32 %v5941_v41, %v10037_v32  ;;  %v6001_v56 = vmax.f32 %v5969_v38, 0.0  ;;  %6050 = vst.msk [vmem:[%s10047_s29 + $0xf8] sm:$0xff] %vm2947_vm11, %v6018_v55  ;;  %v5879_v63 = vmul.f32 %v9952_v50, %v10394_v7 }
 0x719   : > { %v5946_v9 = vmul.f32 %v9978_v58, %v10395_v47  ;;  %v5974_v53 = vadd.f32 %v5942_v26, %v5909_v31  ;;  %v6002_v39 = vmax.f32 %v5970_v49, 0.0  ;;  %6030 = vst.msk [vmem:[%s10047_s29 + $0x58] sm:$0xff] %vm2947_vm11, %v5998_v8  ;;  %v5880_v35 = vmul.f32 %v9952_v50, %v10396_v3 }
 0x71a   : > { %v5947_v32 = vmul.f32 %v9978_v58, %v10397_v23  ;;  %v5975_v22 = vadd.f32 %v5943_v2, %v5910_v42  ;;  %v6003_v52 = vmax.f32 %v5971_v10, 0.0  ;;  %6031 = vst.msk [vmem:[%s10047_s29 + $0x60] sm:$0xff] %vm2947_vm11, %v5999_v45  ;;  %v5881_v17 = vmul.f32 %v9952_v50, %v10398_v14  ;;  %v10402_v42 = vld [vmem:[#allocation45_spill] sm:$0xff] }
 0x71b   : > { %v5948_v31 = vmul.f32 %v9978_v58, %v10399_v27  ;;  %v5976_v25 = vadd.f32 %v5944_v29, %v5911_v18  ;;  %v6004_v1 = vmax.f32 %v5972_v62, 0.0  ;;  %6032 = vst.msk [vmem:[%s10047_s29 + $0x68] sm:$0xff] %vm2947_vm11, %v6000_v21  ;;  %v5882_v40 = vmul.f32 %v9952_v50, %v10400_v12 }
 0x71c   : > { %v5949_v46 = vmul.f32 %v9978_v58, %v10402_v42  ;;  %v5977_v30 = vadd.f32 %v5945_v57, %v5912_v20  ;;  %v6005_v28 = vmax.f32 %v5973_v54, 0.0  ;;  %6033 = vst.msk [vmem:[%s10047_s29 + $0x70] sm:$0xff] %vm2947_vm11, %v6001_v56  ;;  %v5915_v59 = vadd.f32 %v9959_v4, %v5879_v63 }
 0x71d   : > { %v5950_v18 = vmul.f32 %v9978_v58, %v10403_v6  ;;  %v5978_v15 = vadd.f32 %v5946_v9, %v5913_v19  ;;  %v6006_v24 = vmax.f32 %v5974_v53, 0.0  ;;  %6034 = vst.msk [vmem:[%s10047_s29 + $0x78] sm:$0xff] %vm2947_vm11, %v6002_v39  ;;  %v5916_v50 = vadd.f32 %v9959_v4, %v5880_v35 }
 0x71e   : > { %v5951_v48 = vmul.f32 %v9978_v58, %v10404_v11  ;;  %v5979_v44 = vadd.f32 %v5947_v32, %v5914_v16  ;;  %v6007_v51 = vmax.f32 %v5975_v22, 0.0  ;;  %6035 = vst.msk [vmem:[%s10047_s29 + $0x80] sm:$0xff] %vm2947_vm11, %v6003_v52  ;;  %v5917_v36 = vadd.f32 %v9959_v4, %v5881_v17 }
 0x71f   : > { %v5980_v33 = vadd.f32 %v5948_v31, %v5915_v59  ;;  %v6008_v37 = vmax.f32 %v5976_v25, 0.0  ;;  %6036 = vst.msk [vmem:[%s10047_s29 + $0x88] sm:$0xff] %vm2947_vm11, %v6004_v1  ;;  %v5918_v61 = vadd.f32 %v9959_v4, %v5882_v40  ;;  %v5981_v34 = vadd.f32 %v5949_v46, %v5916_v50 }
 0x720   : > { %v6009_v13 = vmax.f32 %v5977_v30, 0.0  ;;  %6037 = vst.msk [vmem:[%s10047_s29 + $0x90] sm:$0xff] %vm2947_vm11, %v6005_v28  ;;  %v5982_v58 = vadd.f32 %v5950_v18, %v5917_v36  ;;  %v6010_v0 = vmax.f32 %v5978_v15, 0.0  ;;  %v6011_v38 = vmax.f32 %v5979_v44, 0.0 }
 0x721   : > { %6038 = vst.msk [vmem:[%s10047_s29 + $0x98] sm:$0xff] %vm2947_vm11, %v6006_v24  ;;  %v5983_v41 = vadd.f32 %v5951_v48, %v5918_v61  ;;  %v6012_v4 = vmax.f32 %v5980_v33, 0.0  ;;  %v6013_v5 = vmax.f32 %v5981_v34, 0.0 }
 0x722   : > { %6039 = vst.msk [vmem:[%s10047_s29 + $0xa0] sm:$0xff] %vm2947_vm11, %v6007_v51  ;;  %v6014_v20 = vmax.f32 %v5982_v58, 0.0 }
 0x723   : > { %6040 = vst.msk [vmem:[%s10047_s29 + $0xa8] sm:$0xff] %vm2947_vm11, %v6008_v37  ;;  %v6015_v26 = vmax.f32 %v5983_v41, 0.0 }
 0x724   : > { %6041 = vst.msk [vmem:[%s10047_s29 + $0xb0] sm:$0xff] %vm2947_vm11, %v6009_v13 }
 0x725   : > { %6042 = vst.msk [vmem:[%s10047_s29 + $0xb8] sm:$0xff] %vm2947_vm11, %v6010_v0 }
 0x726   : > { %6043 = vst.msk [vmem:[%s10047_s29 + $0xc0] sm:$0xff] %vm2947_vm11, %v6011_v38 }
 0x727   : > { %6044 = vst.msk [vmem:[%s10047_s29 + $0xc8] sm:$0xff] %vm2947_vm11, %v6012_v4 }
 0x728   : > { %6045 = vst.msk [vmem:[%s10047_s29 + $0xd0] sm:$0xff] %vm2947_vm11, %v6013_v5 }
 0x729   : > { %6046 = vst.msk [vmem:[%s10047_s29 + $0xd8] sm:$0xff] %vm2947_vm11, %v6014_v20 }
 0x72a   : > { %6047 = vst.msk [vmem:[%s10047_s29 + $0xe0] sm:$0xff] %vm2947_vm11, %v6015_v26 }
 0x72b   : > { %6907 = shalt.err (!%p6904_p4)
}
 0x72c   : > { %s6959_s18 = smov 128   ;;  %s6960_s29 = smov 8  }
 0x72d   : > { %6777 = dma.vmem_to_hbm [thread:$0]  (%p7086_p11), %s6065_s20, 4096, %s6067_s19, %s6052_s21, %s6959_s18, %s6959_s18, %s6960_s29  }
 0x72e PF: > { %s10407_s28 = sld [smem:[#allocation12_spill]]  ;;  %p10409_p7 = scmp.ge.s32.totalorder %s6946_s16, 2 }
 0x730   : > { %p6784_p5 = pnand %p10409_p7, %p7090_p12 }
 0x732   : > { %p6785_p8 = pneg %p6784_p5 }
 0x734   : > { %s6081_s1 = sand.u32 1, %s10407_s28  }
 0x735   : > { %s6082_s14 = scalar_lea.sflag [#allocation8], %s6081_s1 }
 0x736   : > { %6929 = dma.done.wait (%p6785_p8), %s6082_s14, 4096  }
 0x737   : > { %6931 = vsyncadd (%p6785_p8), %s6082_s14, 4294963200  ;;  %s10410_s16 = sld [smem:[#allocation15_spill]]  ;;  %s10413_s29 = smov %s6938_s30 }
 0x738   : > { %s10411_s26 = sld [smem:[#allocation13_spill]] }
 0x739   : > { %s10412_s15 = sld [smem:[#allocation16_spill]] }
 0x73d   : > { %p27_p10 = scmp.ge.s32.totalorder %s10410_s16, 4  }
 0x73e   : > { %s10414_s30 = smov %s10411_s26 }
 0x73f   :  { %29 = sbr.rel (!%p27_p10) target bundleno = 9 (0x9), region = 127 }
 0x744   :  { %6088 = vsyncpa [#allocation7], 1 }
 0x745   :  { %6090 = vsyncpa [#allocation7 + $0x1], 1 }
 0x746   :  { %6091 = vsyncpa [#allocation8], 1 }
 0x747   :  { %6093 = vsyncpa [#allocation8 + $0x1], 1 }

</bundles_post_ra>
